<compile_context>
chip_gen: v5e
topology: v5e:2x2
jax: 0.10.0
libtpu: 0.0.40
codegen_flags: <defaults>
</compile_context>

<pallas_src>
import functools

import numpy as np
import jax
import jax.numpy as jnp
from jax import lax
from jax.experimental import pallas as pl
from jax.experimental.pallas import tpu as pltpu

W1 = 0.3
W2 = 0.01

# neighbor offsets in the exact order of get_kernel()'s 8 one-hot 3x3 filters
_NEIGH = [(-1, -1), (-1, 0), (-1, 1), (0, -1), (0, 1), (1, -1), (1, 0), (1, 1)]


def _offsets(dilations):
    return tuple((dy * d, dx * d) for d in dilations for (dy, dx) in _NEIGH)


def _pos_softmax_const(dilations):
    """w2 * softmax(pos_aff, dim=K) -- a pure constant of the module config."""
    base = np.ones(8, np.float64)
    base[[0, 2, 5, 7]] = np.sqrt(2.0)                   # diagonal neighbors
    pos = np.concatenate([base * d for d in dilations])  # (K,)
    pos_std = pos.std(ddof=1)                            # torch.std is unbiased
    pos_aff = -((pos / (pos_std + 1e-8) / W1) ** 2)
    e = np.exp(pos_aff - pos_aff.max())
    return tuple(float(v) for v in (W2 * e / e.sum()))   # (K,) python floats


def _replicate_pad_hw(x, d):
    """Replicate ('edge') pad the last two dims of a (C, H, W) value, in-kernel."""
    c, h, w = x.shape
    top = jnp.broadcast_to(x[:, :1, :], (c, d, w))
    bot = jnp.broadcast_to(x[:, h - 1:, :], (c, d, w))
    x = jnp.concatenate([top, x, bot], axis=1)
    left = jnp.broadcast_to(x[:, :, :1], (c, h + 2 * d, d))
    right = jnp.broadcast_to(x[:, :, w - 1:], (c, h + 2 * d, d))
    return jnp.concatenate([left, x, right], axis=2)


def _par_kernel(img_ref, m_ref, out_ref, aff_scr, masks_scr, *,
                offsets, pos_soft, num_iter, dmax, H, W):
    """Fused PAR forward for one batch element.

    img_ref  : (1, C, H, W)   input image block
    m_ref    : (1, Cm, H, W)  bilinearly resized masks block
    out_ref  : (1, Cm, H, W)  refined masks
    aff_scr  : (K, H, W) f32  VMEM affinity scratch (HBM never sees it)
    masks_scr: (Cm, H, W) f32 VMEM running-mask scratch
    """
    K = len(offsets)
    img = img_ref[0]                                   # (C, H, W), loaded once
    C = img.shape[0]
    imgp = _replicate_pad_hw(img, dmax)                # (C, H+2dmax, W+2dmax)

    def nbr(xp, dy, dx):
        # neighbor at offset (dy, dx) with replicate boundary (clamped indices)
        return xp[:, dmax + dy:dmax + dy + H, dmax + dx:dmax + dx + W]

    # ---- pass 1: neighbor mean over K (streamed, one neighbor live at a time)
    s = nbr(imgp, *offsets[0])
    for (dy, dx) in offsets[1:]:
        s = s + nbr(imgp, dy, dx)
    mean = s * (1.0 / K)

    # ---- pass 2: unbiased std over K (torch.std default, ddof=1) ------------
    ssq = jnp.zeros_like(img)
    for (dy, dx) in offsets:
        dlt = nbr(imgp, dy, dx) - mean
        ssq = ssq + dlt * dlt
    std = jnp.sqrt(ssq * (1.0 / (K - 1)))
    inv_std_w1 = (1.0 / W1) / (std + 1e-8)   # single divide; K uses become multiplies

    # ---- pass 3: per-neighbor channel-mean affinity -> scratch + running max
    neg_inv_c = -1.0 / C
    run_max = None
    for k, (dy, dx) in enumerate(offsets):
        t = jnp.abs(nbr(imgp, dy, dx) - img) * inv_std_w1
        a = jnp.sum(t * t, axis=0) * neg_inv_c         # (H, W): mean_c of -(t^2)
        aff_scr[k] = a
        run_max = a if run_max is None else jnp.maximum(run_max, a)

    # ---- pass 4: softmax over the K axis + constant positional term ---------
    denom = jnp.zeros((H, W), jnp.float32)
    for k in range(K):
        e = jnp.exp(aff_scr[k] - run_max)
        aff_scr[k] = e
        denom = denom + e
    inv_denom = pl.reciprocal(denom, approx=True)      # EUP slot, ~free
    for k in range(K):
        aff_scr[k] = aff_scr[k] * inv_denom + pos_soft[k]

    # ---- propagation: masks <- sum_k nbr_k(masks) * aff_k, num_iter times ---
    masks_scr[...] = m_ref[0]

    def prop_body(it, carry):
        mp = _replicate_pad_hw(masks_scr[...], dmax)   # in-kernel replicate pad
        dy0, dx0 = offsets[0]
        acc = nbr(mp, dy0, dx0) * aff_scr[0]
        for k in range(1, K):
            dy, dx = offsets[k]
            acc = acc + nbr(mp, dy, dx) * aff_scr[k]
        masks_scr[...] = acc
        return carry

    lax.fori_loop(0, num_iter, prop_body, 0)
    out_ref[0] = masks_scr[...]                        # one contiguous slab store


def _resize_bilinear_align_corners(x, out_h, out_w):
    # F.interpolate(mode='bilinear', align_corners=True)  (plain-JAX glue)
    b, c, h, w = x.shape

    def coords(n_in, n_out):
        if n_out == 1:
            return jnp.zeros((n_out,), jnp.float32)
        return jnp.arange(n_out, dtype=jnp.float32) * ((n_in - 1) / (n_out - 1))

    ys, xs = coords(h, out_h), coords(w, out_w)
    y0 = jnp.clip(jnp.floor(ys).astype(jnp.int32), 0, h - 1)
    y1 = jnp.clip(y0 + 1, 0, h - 1)
    wy = ys - y0.astype(jnp.float32)
    x0 = jnp.clip(jnp.floor(xs).astype(jnp.int32), 0, w - 1)
    x1 = jnp.clip(x0 + 1, 0, w - 1)
    wx = xs - x0.astype(jnp.float32)

    rows = (x[:, :, y0, :] * (1.0 - wy)[None, None, :, None]
            + x[:, :, y1, :] * wy[None, None, :, None])
    out = (rows[:, :, :, x0] * (1.0 - wx)[None, None, None, :]
           + rows[:, :, :, x1] * wx[None, None, None, :])
    return out


def par_forward(imgs, masks, dilations=(1, 2), num_iter=2):
    imgs = imgs.astype(jnp.float32)
    masks = masks.astype(jnp.float32)
    B, C, H, W = imgs.shape
    Cm = masks.shape[1]
    offsets = _offsets(dilations)
    K = len(offsets)
    dmax = max(dilations)
    pos_soft = _pos_softmax_const(dilations)

    # masks -> same spatial size as imgs (bilinear, align_corners=True)
    masks = _resize_bilinear_align_corners(masks, H, W)

    kernel = functools.partial(
        _par_kernel, offsets=offsets, pos_soft=pos_soft,
        num_iter=num_iter, dmax=dmax, H=H, W=W)

    # TODO(synk): for production image sizes, tile the H axis (halo of
    # num_iter*dmax rows), add that tile index as a second "parallel" grid axis
    # (feeds both v7x TensorCores) and set vmem_limit_bytes per generation;
    # whole-image-per-batch blocks are fine at these test sizes.
    return pl.pallas_call(
        kernel,
        out_shape=jax.ShapeDtypeStruct((B, Cm, H, W), jnp.float32),
        grid=(B,),
        in_specs=[pl.BlockSpec((1, C, H, W), lambda b: (b, 0, 0, 0)),
                  pl.BlockSpec((1, Cm, H, W), lambda b: (b, 0, 0, 0))],
        out_specs=pl.BlockSpec((1, Cm, H, W), lambda b: (b, 0, 0, 0)),
        scratch_shapes=[pltpu.VMEM((K, H, W), jnp.float32),
                        pltpu.VMEM((Cm, H, W), jnp.float32)],
        compiler_params=pltpu.CompilerParams(dimension_semantics=("parallel",)),
    )(imgs, masks)


if __name__ == "__main__":
    key = jax.random.PRNGKey(0)
    k1, k2 = jax.random.split(key)
    imgs = jax.random.uniform(k1, (2, 3, 16, 16), dtype=jnp.float32)   # RGB-like image
    masks = jax.random.uniform(k2, (2, 5, 8, 8), dtype=jnp.float32)    # low-res class masks
    out = par_forward(imgs, masks, dilations=(1, 2), num_iter=2)
    jax.block_until_ready(out)
    assert out.shape == (2, 5, 16, 16)
    print("KERNEL_OK")
</pallas_src>

<mosaic_0001>
module attributes {stable_mosaic.version = 11 : i64} {
  func.func @_par_kernel(%arg0: i32, %arg1: memref<1x3x16x16xf32, #tpu.memory_space<vmem>>, %arg2: memref<1x5x16x16xf32, #tpu.memory_space<vmem>>, %arg3: memref<1x5x16x16xf32, #tpu.memory_space<vmem>>, %arg4: memref<16x16x16xf32, #tpu.memory_space<vmem>>, %arg5: memref<5x16x16xf32, #tpu.memory_space<vmem>>) attributes {dimension_semantics = [#tpu.dimension_semantics<parallel>], iteration_bounds = array<i64: 2>, scalar_prefetch = 0 : i64, scratch_operands = 2 : i64, tpu.core_type = #tpu.core_type<tc>, window_params = [{transform_indices = @transform_0, window_bounds = array<i64: 1, 3, 16, 16>}, {transform_indices = @transform_1, window_bounds = array<i64: 1, 5, 16, 16>}, {transform_indices = @transform_2, window_bounds = array<i64: 1, 5, 16, 16>}]} {
    %c0 = arith.constant 0 : index
    %c0_0 = arith.constant 0 : index
    %c0_1 = arith.constant 0 : index
    %c0_2 = arith.constant 0 : index
    %0 = vector.load %arg1[%c0, %c0_0, %c0_1, %c0_2] : memref<1x3x16x16xf32, #tpu.memory_space<vmem>>, vector<1x3x16x16xf32>
    %1 = vector.shape_cast %0 : vector<1x3x16x16xf32> to vector<3x16x16xf32>
    %2 = vector.extract_strided_slice %1 {offsets = [0, 0, 0], sizes = [3, 1, 16], strides = [1, 1, 1]} : vector<3x16x16xf32> to vector<3x1x16xf32>
    %3 = vector.shape_cast %2 : vector<3x1x16xf32> to vector<3x1x16xf32>
    %4 = vector.broadcast %3 : vector<3x1x16xf32> to vector<3x2x16xf32>
    %5 = vector.extract_strided_slice %1 {offsets = [0, 15, 0], sizes = [3, 1, 16], strides = [1, 1, 1]} : vector<3x16x16xf32> to vector<3x1x16xf32>
    %6 = vector.shape_cast %5 : vector<3x1x16xf32> to vector<3x1x16xf32>
    %7 = vector.broadcast %6 : vector<3x1x16xf32> to vector<3x2x16xf32>
    %8 = tpu.concatenate %4, %1, %7 in 1 : vector<3x2x16xf32>, vector<3x16x16xf32>, vector<3x2x16xf32> -> vector<3x20x16xf32>
    %9 = vector.extract_strided_slice %8 {offsets = [0, 0, 0], sizes = [3, 20, 1], strides = [1, 1, 1]} : vector<3x20x16xf32> to vector<3x20x1xf32>
    %10 = vector.shape_cast %9 : vector<3x20x1xf32> to vector<3x20x1xf32>
    %11 = vector.broadcast %10 : vector<3x20x1xf32> to vector<3x20x2xf32>
    %12 = vector.extract_strided_slice %8 {offsets = [0, 0, 15], sizes = [3, 20, 1], strides = [1, 1, 1]} : vector<3x20x16xf32> to vector<3x20x1xf32>
    %13 = vector.shape_cast %12 : vector<3x20x1xf32> to vector<3x20x1xf32>
    %14 = vector.broadcast %13 : vector<3x20x1xf32> to vector<3x20x2xf32>
    %15 = tpu.concatenate %11, %8, %14 in 2 : vector<3x20x2xf32>, vector<3x20x16xf32>, vector<3x20x2xf32> -> vector<3x20x20xf32>
    %16 = vector.extract_strided_slice %15 {offsets = [0, 1, 1], sizes = [3, 16, 16], strides = [1, 1, 1]} : vector<3x20x20xf32> to vector<3x16x16xf32>
    %17 = vector.extract_strided_slice %15 {offsets = [0, 1, 2], sizes = [3, 16, 16], strides = [1, 1, 1]} : vector<3x20x20xf32> to vector<3x16x16xf32>
    %18 = arith.addf %16, %17 : vector<3x16x16xf32>
    %19 = vector.extract_strided_slice %15 {offsets = [0, 1, 3], sizes = [3, 16, 16], strides = [1, 1, 1]} : vector<3x20x20xf32> to vector<3x16x16xf32>
    %20 = arith.addf %18, %19 : vector<3x16x16xf32>
    %21 = vector.extract_strided_slice %15 {offsets = [0, 2, 1], sizes = [3, 16, 16], strides = [1, 1, 1]} : vector<3x20x20xf32> to vector<3x16x16xf32>
    %22 = arith.addf %20, %21 : vector<3x16x16xf32>
    %23 = vector.extract_strided_slice %15 {offsets = [0, 2, 3], sizes = [3, 16, 16], strides = [1, 1, 1]} : vector<3x20x20xf32> to vector<3x16x16xf32>
    %24 = arith.addf %22, %23 : vector<3x16x16xf32>
    %25 = vector.extract_strided_slice %15 {offsets = [0, 3, 1], sizes = [3, 16, 16], strides = [1, 1, 1]} : vector<3x20x20xf32> to vector<3x16x16xf32>
    %26 = arith.addf %24, %25 : vector<3x16x16xf32>
    %27 = vector.extract_strided_slice %15 {offsets = [0, 3, 2], sizes = [3, 16, 16], strides = [1, 1, 1]} : vector<3x20x20xf32> to vector<3x16x16xf32>
    %28 = arith.addf %26, %27 : vector<3x16x16xf32>
    %29 = vector.extract_strided_slice %15 {offsets = [0, 3, 3], sizes = [3, 16, 16], strides = [1, 1, 1]} : vector<3x20x20xf32> to vector<3x16x16xf32>
    %30 = arith.addf %28, %29 : vector<3x16x16xf32>
    %31 = vector.extract_strided_slice %15 {offsets = [0, 0, 0], sizes = [3, 16, 16], strides = [1, 1, 1]} : vector<3x20x20xf32> to vector<3x16x16xf32>
    %32 = arith.addf %30, %31 : vector<3x16x16xf32>
    %33 = vector.extract_strided_slice %15 {offsets = [0, 0, 2], sizes = [3, 16, 16], strides = [1, 1, 1]} : vector<3x20x20xf32> to vector<3x16x16xf32>
    %34 = arith.addf %32, %33 : vector<3x16x16xf32>
    %35 = vector.extract_strided_slice %15 {offsets = [0, 0, 4], sizes = [3, 16, 16], strides = [1, 1, 1]} : vector<3x20x20xf32> to vector<3x16x16xf32>
    %36 = arith.addf %34, %35 : vector<3x16x16xf32>
    %37 = vector.extract_strided_slice %15 {offsets = [0, 2, 0], sizes = [3, 16, 16], strides = [1, 1, 1]} : vector<3x20x20xf32> to vector<3x16x16xf32>
    %38 = arith.addf %36, %37 : vector<3x16x16xf32>
    %39 = vector.extract_strided_slice %15 {offsets = [0, 2, 4], sizes = [3, 16, 16], strides = [1, 1, 1]} : vector<3x20x20xf32> to vector<3x16x16xf32>
    %40 = arith.addf %38, %39 : vector<3x16x16xf32>
    %41 = vector.extract_strided_slice %15 {offsets = [0, 4, 0], sizes = [3, 16, 16], strides = [1, 1, 1]} : vector<3x20x20xf32> to vector<3x16x16xf32>
    %42 = arith.addf %40, %41 : vector<3x16x16xf32>
    %43 = vector.extract_strided_slice %15 {offsets = [0, 4, 2], sizes = [3, 16, 16], strides = [1, 1, 1]} : vector<3x20x20xf32> to vector<3x16x16xf32>
    %44 = arith.addf %42, %43 : vector<3x16x16xf32>
    %45 = vector.extract_strided_slice %15 {offsets = [0, 4, 4], sizes = [3, 16, 16], strides = [1, 1, 1]} : vector<3x20x20xf32> to vector<3x16x16xf32>
    %46 = arith.addf %44, %45 : vector<3x16x16xf32>
    %cst = arith.constant 6.250000e-02 : f32
    %47 = vector.broadcast %cst : f32 to vector<3x16x16xf32>
    %48 = arith.mulf %46, %47 : vector<3x16x16xf32>
    %cst_3 = arith.constant 0.000000e+00 : f32
    %49 = vector.broadcast %cst_3 : f32 to vector<3x16x16xf32>
    %50 = vector.extract_strided_slice %15 {offsets = [0, 1, 1], sizes = [3, 16, 16], strides = [1, 1, 1]} : vector<3x20x20xf32> to vector<3x16x16xf32>
    %51 = arith.subf %50, %48 : vector<3x16x16xf32>
    %52 = arith.mulf %51, %51 : vector<3x16x16xf32>
    %53 = arith.addf %49, %52 : vector<3x16x16xf32>
    %54 = vector.extract_strided_slice %15 {offsets = [0, 1, 2], sizes = [3, 16, 16], strides = [1, 1, 1]} : vector<3x20x20xf32> to vector<3x16x16xf32>
    %55 = arith.subf %54, %48 : vector<3x16x16xf32>
    %56 = arith.mulf %55, %55 : vector<3x16x16xf32>
    %57 = arith.addf %53, %56 : vector<3x16x16xf32>
    %58 = vector.extract_strided_slice %15 {offsets = [0, 1, 3], sizes = [3, 16, 16], strides = [1, 1, 1]} : vector<3x20x20xf32> to vector<3x16x16xf32>
    %59 = arith.subf %58, %48 : vector<3x16x16xf32>
    %60 = arith.mulf %59, %59 : vector<3x16x16xf32>
    %61 = arith.addf %57, %60 : vector<3x16x16xf32>
    %62 = vector.extract_strided_slice %15 {offsets = [0, 2, 1], sizes = [3, 16, 16], strides = [1, 1, 1]} : vector<3x20x20xf32> to vector<3x16x16xf32>
    %63 = arith.subf %62, %48 : vector<3x16x16xf32>
    %64 = arith.mulf %63, %63 : vector<3x16x16xf32>
    %65 = arith.addf %61, %64 : vector<3x16x16xf32>
    %66 = vector.extract_strided_slice %15 {offsets = [0, 2, 3], sizes = [3, 16, 16], strides = [1, 1, 1]} : vector<3x20x20xf32> to vector<3x16x16xf32>
    %67 = arith.subf %66, %48 : vector<3x16x16xf32>
    %68 = arith.mulf %67, %67 : vector<3x16x16xf32>
    %69 = arith.addf %65, %68 : vector<3x16x16xf32>
    %70 = vector.extract_strided_slice %15 {offsets = [0, 3, 1], sizes = [3, 16, 16], strides = [1, 1, 1]} : vector<3x20x20xf32> to vector<3x16x16xf32>
    %71 = arith.subf %70, %48 : vector<3x16x16xf32>
    %72 = arith.mulf %71, %71 : vector<3x16x16xf32>
    %73 = arith.addf %69, %72 : vector<3x16x16xf32>
    %74 = vector.extract_strided_slice %15 {offsets = [0, 3, 2], sizes = [3, 16, 16], strides = [1, 1, 1]} : vector<3x20x20xf32> to vector<3x16x16xf32>
    %75 = arith.subf %74, %48 : vector<3x16x16xf32>
    %76 = arith.mulf %75, %75 : vector<3x16x16xf32>
    %77 = arith.addf %73, %76 : vector<3x16x16xf32>
    %78 = vector.extract_strided_slice %15 {offsets = [0, 3, 3], sizes = [3, 16, 16], strides = [1, 1, 1]} : vector<3x20x20xf32> to vector<3x16x16xf32>
    %79 = arith.subf %78, %48 : vector<3x16x16xf32>
    %80 = arith.mulf %79, %79 : vector<3x16x16xf32>
    %81 = arith.addf %77, %80 : vector<3x16x16xf32>
    %82 = vector.extract_strided_slice %15 {offsets = [0, 0, 0], sizes = [3, 16, 16], strides = [1, 1, 1]} : vector<3x20x20xf32> to vector<3x16x16xf32>
    %83 = arith.subf %82, %48 : vector<3x16x16xf32>
    %84 = arith.mulf %83, %83 : vector<3x16x16xf32>
    %85 = arith.addf %81, %84 : vector<3x16x16xf32>
    %86 = vector.extract_strided_slice %15 {offsets = [0, 0, 2], sizes = [3, 16, 16], strides = [1, 1, 1]} : vector<3x20x20xf32> to vector<3x16x16xf32>
    %87 = arith.subf %86, %48 : vector<3x16x16xf32>
    %88 = arith.mulf %87, %87 : vector<3x16x16xf32>
    %89 = arith.addf %85, %88 : vector<3x16x16xf32>
    %90 = vector.extract_strided_slice %15 {offsets = [0, 0, 4], sizes = [3, 16, 16], strides = [1, 1, 1]} : vector<3x20x20xf32> to vector<3x16x16xf32>
    %91 = arith.subf %90, %48 : vector<3x16x16xf32>
    %92 = arith.mulf %91, %91 : vector<3x16x16xf32>
    %93 = arith.addf %89, %92 : vector<3x16x16xf32>
    %94 = vector.extract_strided_slice %15 {offsets = [0, 2, 0], sizes = [3, 16, 16], strides = [1, 1, 1]} : vector<3x20x20xf32> to vector<3x16x16xf32>
    %95 = arith.subf %94, %48 : vector<3x16x16xf32>
    %96 = arith.mulf %95, %95 : vector<3x16x16xf32>
    %97 = arith.addf %93, %96 : vector<3x16x16xf32>
    %98 = vector.extract_strided_slice %15 {offsets = [0, 2, 4], sizes = [3, 16, 16], strides = [1, 1, 1]} : vector<3x20x20xf32> to vector<3x16x16xf32>
    %99 = arith.subf %98, %48 : vector<3x16x16xf32>
    %100 = arith.mulf %99, %99 : vector<3x16x16xf32>
    %101 = arith.addf %97, %100 : vector<3x16x16xf32>
    %102 = vector.extract_strided_slice %15 {offsets = [0, 4, 0], sizes = [3, 16, 16], strides = [1, 1, 1]} : vector<3x20x20xf32> to vector<3x16x16xf32>
    %103 = arith.subf %102, %48 : vector<3x16x16xf32>
    %104 = arith.mulf %103, %103 : vector<3x16x16xf32>
    %105 = arith.addf %101, %104 : vector<3x16x16xf32>
    %106 = vector.extract_strided_slice %15 {offsets = [0, 4, 2], sizes = [3, 16, 16], strides = [1, 1, 1]} : vector<3x20x20xf32> to vector<3x16x16xf32>
    %107 = arith.subf %106, %48 : vector<3x16x16xf32>
    %108 = arith.mulf %107, %107 : vector<3x16x16xf32>
    %109 = arith.addf %105, %108 : vector<3x16x16xf32>
    %110 = vector.extract_strided_slice %15 {offsets = [0, 4, 4], sizes = [3, 16, 16], strides = [1, 1, 1]} : vector<3x20x20xf32> to vector<3x16x16xf32>
    %111 = arith.subf %110, %48 : vector<3x16x16xf32>
    %112 = arith.mulf %111, %111 : vector<3x16x16xf32>
    %113 = arith.addf %109, %112 : vector<3x16x16xf32>
    %cst_4 = arith.constant 0.0666666701 : f32
    %114 = vector.broadcast %cst_4 : f32 to vector<3x16x16xf32>
    %115 = arith.mulf %113, %114 : vector<3x16x16xf32>
    %116 = math.sqrt %115 : vector<3x16x16xf32>
    %cst_5 = arith.constant 9.99999993E-9 : f32
    %117 = vector.broadcast %cst_5 : f32 to vector<3x16x16xf32>
    %118 = arith.addf %116, %117 : vector<3x16x16xf32>
    %cst_6 = arith.constant 3.33333325 : f32
    %119 = vector.broadcast %cst_6 : f32 to vector<3x16x16xf32>
    %120 = arith.divf %119, %118 : vector<3x16x16xf32>
    %121 = vector.extract_strided_slice %15 {offsets = [0, 1, 1], sizes = [3, 16, 16], strides = [1, 1, 1]} : vector<3x20x20xf32> to vector<3x16x16xf32>
    %122 = arith.subf %121, %1 : vector<3x16x16xf32>
    %123 = math.absf %122 : vector<3x16x16xf32>
    %124 = arith.mulf %123, %120 : vector<3x16x16xf32>
    %125 = arith.mulf %124, %124 : vector<3x16x16xf32>
    %cst_7 = arith.constant dense<0.000000e+00> : vector<16x16xf32>
    %126 = vector.multi_reduction <add>, %125, %cst_7 [0] : vector<3x16x16xf32> to vector<16x16xf32>
    %cst_8 = arith.constant -0.333333343 : f32
    %127 = vector.broadcast %cst_8 : f32 to vector<16x16xf32>
    %128 = arith.mulf %126, %127 : vector<16x16xf32>
    %c0_9 = arith.constant 0 : index
    %c0_10 = arith.constant 0 : index
    %c0_11 = arith.constant 0 : index
    %129 = vector.load %arg4[%c0_9, %c0_10, %c0_11] : memref<16x16x16xf32, #tpu.memory_space<vmem>>, vector<1x16x16xf32>
    %130 = vector.shape_cast %129 : vector<1x16x16xf32> to vector<16x16xf32>
    %131 = vector.shape_cast %128 : vector<16x16xf32> to vector<1x16x16xf32>
    tpu.vector_store %arg4[%c0_9, %c0_10, %c0_11], %131 {strides = array<i32>} : memref<16x16x16xf32, #tpu.memory_space<vmem>>, vector<1x16x16xf32>,
    %132 = vector.extract_strided_slice %15 {offsets = [0, 1, 2], sizes = [3, 16, 16], strides = [1, 1, 1]} : vector<3x20x20xf32> to vector<3x16x16xf32>
    %133 = arith.subf %132, %1 : vector<3x16x16xf32>
    %134 = math.absf %133 : vector<3x16x16xf32>
    %135 = arith.mulf %134, %120 : vector<3x16x16xf32>
    %136 = arith.mulf %135, %135 : vector<3x16x16xf32>
    %cst_12 = arith.constant dense<0.000000e+00> : vector<16x16xf32>
    %137 = vector.multi_reduction <add>, %136, %cst_12 [0] : vector<3x16x16xf32> to vector<16x16xf32>
    %cst_13 = arith.constant -0.333333343 : f32
    %138 = vector.broadcast %cst_13 : f32 to vector<16x16xf32>
    %139 = arith.mulf %137, %138 : vector<16x16xf32>
    %c1 = arith.constant 1 : index
    %c0_14 = arith.constant 0 : index
    %c0_15 = arith.constant 0 : index
    %140 = vector.load %arg4[%c1, %c0_14, %c0_15] : memref<16x16x16xf32, #tpu.memory_space<vmem>>, vector<1x16x16xf32>
    %141 = vector.shape_cast %140 : vector<1x16x16xf32> to vector<16x16xf32>
    %142 = vector.shape_cast %139 : vector<16x16xf32> to vector<1x16x16xf32>
    tpu.vector_store %arg4[%c1, %c0_14, %c0_15], %142 {strides = array<i32>} : memref<16x16x16xf32, #tpu.memory_space<vmem>>, vector<1x16x16xf32>,
    %143 = arith.maximumf %128, %139 : vector<16x16xf32>
    %144 = vector.extract_strided_slice %15 {offsets = [0, 1, 3], sizes = [3, 16, 16], strides = [1, 1, 1]} : vector<3x20x20xf32> to vector<3x16x16xf32>
    %145 = arith.subf %144, %1 : vector<3x16x16xf32>
    %146 = math.absf %145 : vector<3x16x16xf32>
    %147 = arith.mulf %146, %120 : vector<3x16x16xf32>
    %148 = arith.mulf %147, %147 : vector<3x16x16xf32>
    %cst_16 = arith.constant dense<0.000000e+00> : vector<16x16xf32>
    %149 = vector.multi_reduction <add>, %148, %cst_16 [0] : vector<3x16x16xf32> to vector<16x16xf32>
    %cst_17 = arith.constant -0.333333343 : f32
    %150 = vector.broadcast %cst_17 : f32 to vector<16x16xf32>
    %151 = arith.mulf %149, %150 : vector<16x16xf32>
    %c2 = arith.constant 2 : index
    %c0_18 = arith.constant 0 : index
    %c0_19 = arith.constant 0 : index
    %152 = vector.load %arg4[%c2, %c0_18, %c0_19] : memref<16x16x16xf32, #tpu.memory_space<vmem>>, vector<1x16x16xf32>
    %153 = vector.shape_cast %152 : vector<1x16x16xf32> to vector<16x16xf32>
    %154 = vector.shape_cast %151 : vector<16x16xf32> to vector<1x16x16xf32>
    tpu.vector_store %arg4[%c2, %c0_18, %c0_19], %154 {strides = array<i32>} : memref<16x16x16xf32, #tpu.memory_space<vmem>>, vector<1x16x16xf32>,
    %155 = arith.maximumf %143, %151 : vector<16x16xf32>
    %156 = vector.extract_strided_slice %15 {offsets = [0, 2, 1], sizes = [3, 16, 16], strides = [1, 1, 1]} : vector<3x20x20xf32> to vector<3x16x16xf32>
    %157 = arith.subf %156, %1 : vector<3x16x16xf32>
    %158 = math.absf %157 : vector<3x16x16xf32>
    %159 = arith.mulf %158, %120 : vector<3x16x16xf32>
    %160 = arith.mulf %159, %159 : vector<3x16x16xf32>
    %cst_20 = arith.constant dense<0.000000e+00> : vector<16x16xf32>
    %161 = vector.multi_reduction <add>, %160, %cst_20 [0] : vector<3x16x16xf32> to vector<16x16xf32>
    %cst_21 = arith.constant -0.333333343 : f32
    %162 = vector.broadcast %cst_21 : f32 to vector<16x16xf32>
    %163 = arith.mulf %161, %162 : vector<16x16xf32>
    %c3 = arith.constant 3 : index
    %c0_22 = arith.constant 0 : index
    %c0_23 = arith.constant 0 : index
    %164 = vector.load %arg4[%c3, %c0_22, %c0_23] : memref<16x16x16xf32, #tpu.memory_space<vmem>>, vector<1x16x16xf32>
    %165 = vector.shape_cast %164 : vector<1x16x16xf32> to vector<16x16xf32>
    %166 = vector.shape_cast %163 : vector<16x16xf32> to vector<1x16x16xf32>
    tpu.vector_store %arg4[%c3, %c0_22, %c0_23], %166 {strides = array<i32>} : memref<16x16x16xf32, #tpu.memory_space<vmem>>, vector<1x16x16xf32>,
    %167 = arith.maximumf %155, %163 : vector<16x16xf32>
    %168 = vector.extract_strided_slice %15 {offsets = [0, 2, 3], sizes = [3, 16, 16], strides = [1, 1, 1]} : vector<3x20x20xf32> to vector<3x16x16xf32>
    %169 = arith.subf %168, %1 : vector<3x16x16xf32>
    %170 = math.absf %169 : vector<3x16x16xf32>
    %171 = arith.mulf %170, %120 : vector<3x16x16xf32>
    %172 = arith.mulf %171, %171 : vector<3x16x16xf32>
    %cst_24 = arith.constant dense<0.000000e+00> : vector<16x16xf32>
    %173 = vector.multi_reduction <add>, %172, %cst_24 [0] : vector<3x16x16xf32> to vector<16x16xf32>
    %cst_25 = arith.constant -0.333333343 : f32
    %174 = vector.broadcast %cst_25 : f32 to vector<16x16xf32>
    %175 = arith.mulf %173, %174 : vector<16x16xf32>
    %c4 = arith.constant 4 : index
    %c0_26 = arith.constant 0 : index
    %c0_27 = arith.constant 0 : index
    %176 = vector.load %arg4[%c4, %c0_26, %c0_27] : memref<16x16x16xf32, #tpu.memory_space<vmem>>, vector<1x16x16xf32>
    %177 = vector.shape_cast %176 : vector<1x16x16xf32> to vector<16x16xf32>
    %178 = vector.shape_cast %175 : vector<16x16xf32> to vector<1x16x16xf32>
    tpu.vector_store %arg4[%c4, %c0_26, %c0_27], %178 {strides = array<i32>} : memref<16x16x16xf32, #tpu.memory_space<vmem>>, vector<1x16x16xf32>,
    %179 = arith.maximumf %167, %175 : vector<16x16xf32>
    %180 = vector.extract_strided_slice %15 {offsets = [0, 3, 1], sizes = [3, 16, 16], strides = [1, 1, 1]} : vector<3x20x20xf32> to vector<3x16x16xf32>
    %181 = arith.subf %180, %1 : vector<3x16x16xf32>
    %182 = math.absf %181 : vector<3x16x16xf32>
    %183 = arith.mulf %182, %120 : vector<3x16x16xf32>
    %184 = arith.mulf %183, %183 : vector<3x16x16xf32>
    %cst_28 = arith.constant dense<0.000000e+00> : vector<16x16xf32>
    %185 = vector.multi_reduction <add>, %184, %cst_28 [0] : vector<3x16x16xf32> to vector<16x16xf32>
    %cst_29 = arith.constant -0.333333343 : f32
    %186 = vector.broadcast %cst_29 : f32 to vector<16x16xf32>
    %187 = arith.mulf %185, %186 : vector<16x16xf32>
    %c5 = arith.constant 5 : index
    %c0_30 = arith.constant 0 : index
    %c0_31 = arith.constant 0 : index
    %188 = vector.load %arg4[%c5, %c0_30, %c0_31] : memref<16x16x16xf32, #tpu.memory_space<vmem>>, vector<1x16x16xf32>
    %189 = vector.shape_cast %188 : vector<1x16x16xf32> to vector<16x16xf32>
    %190 = vector.shape_cast %187 : vector<16x16xf32> to vector<1x16x16xf32>
    tpu.vector_store %arg4[%c5, %c0_30, %c0_31], %190 {strides = array<i32>} : memref<16x16x16xf32, #tpu.memory_space<vmem>>, vector<1x16x16xf32>,
    %191 = arith.maximumf %179, %187 : vector<16x16xf32>
    %192 = vector.extract_strided_slice %15 {offsets = [0, 3, 2], sizes = [3, 16, 16], strides = [1, 1, 1]} : vector<3x20x20xf32> to vector<3x16x16xf32>
    %193 = arith.subf %192, %1 : vector<3x16x16xf32>
    %194 = math.absf %193 : vector<3x16x16xf32>
    %195 = arith.mulf %194, %120 : vector<3x16x16xf32>
    %196 = arith.mulf %195, %195 : vector<3x16x16xf32>
    %cst_32 = arith.constant dense<0.000000e+00> : vector<16x16xf32>
    %197 = vector.multi_reduction <add>, %196, %cst_32 [0] : vector<3x16x16xf32> to vector<16x16xf32>
    %cst_33 = arith.constant -0.333333343 : f32
    %198 = vector.broadcast %cst_33 : f32 to vector<16x16xf32>
    %199 = arith.mulf %197, %198 : vector<16x16xf32>
    %c6 = arith.constant 6 : index
    %c0_34 = arith.constant 0 : index
    %c0_35 = arith.constant 0 : index
    %200 = vector.load %arg4[%c6, %c0_34, %c0_35] : memref<16x16x16xf32, #tpu.memory_space<vmem>>, vector<1x16x16xf32>
    %201 = vector.shape_cast %200 : vector<1x16x16xf32> to vector<16x16xf32>
    %202 = vector.shape_cast %199 : vector<16x16xf32> to vector<1x16x16xf32>
    tpu.vector_store %arg4[%c6, %c0_34, %c0_35], %202 {strides = array<i32>} : memref<16x16x16xf32, #tpu.memory_space<vmem>>, vector<1x16x16xf32>,
    %203 = arith.maximumf %191, %199 : vector<16x16xf32>
    %204 = vector.extract_strided_slice %15 {offsets = [0, 3, 3], sizes = [3, 16, 16], strides = [1, 1, 1]} : vector<3x20x20xf32> to vector<3x16x16xf32>
    %205 = arith.subf %204, %1 : vector<3x16x16xf32>
    %206 = math.absf %205 : vector<3x16x16xf32>
    %207 = arith.mulf %206, %120 : vector<3x16x16xf32>
    %208 = arith.mulf %207, %207 : vector<3x16x16xf32>
    %cst_36 = arith.constant dense<0.000000e+00> : vector<16x16xf32>
    %209 = vector.multi_reduction <add>, %208, %cst_36 [0] : vector<3x16x16xf32> to vector<16x16xf32>
    %cst_37 = arith.constant -0.333333343 : f32
    %210 = vector.broadcast %cst_37 : f32 to vector<16x16xf32>
    %211 = arith.mulf %209, %210 : vector<16x16xf32>
    %c7 = arith.constant 7 : index
    %c0_38 = arith.constant 0 : index
    %c0_39 = arith.constant 0 : index
    %212 = vector.load %arg4[%c7, %c0_38, %c0_39] : memref<16x16x16xf32, #tpu.memory_space<vmem>>, vector<1x16x16xf32>
    %213 = vector.shape_cast %212 : vector<1x16x16xf32> to vector<16x16xf32>
    %214 = vector.shape_cast %211 : vector<16x16xf32> to vector<1x16x16xf32>
    tpu.vector_store %arg4[%c7, %c0_38, %c0_39], %214 {strides = array<i32>} : memref<16x16x16xf32, #tpu.memory_space<vmem>>, vector<1x16x16xf32>,
    %215 = arith.maximumf %203, %211 : vector<16x16xf32>
    %216 = vector.extract_strided_slice %15 {offsets = [0, 0, 0], sizes = [3, 16, 16], strides = [1, 1, 1]} : vector<3x20x20xf32> to vector<3x16x16xf32>
    %217 = arith.subf %216, %1 : vector<3x16x16xf32>
    %218 = math.absf %217 : vector<3x16x16xf32>
    %219 = arith.mulf %218, %120 : vector<3x16x16xf32>
    %220 = arith.mulf %219, %219 : vector<3x16x16xf32>
    %cst_40 = arith.constant dense<0.000000e+00> : vector<16x16xf32>
    %221 = vector.multi_reduction <add>, %220, %cst_40 [0] : vector<3x16x16xf32> to vector<16x16xf32>
    %cst_41 = arith.constant -0.333333343 : f32
    %222 = vector.broadcast %cst_41 : f32 to vector<16x16xf32>
    %223 = arith.mulf %221, %222 : vector<16x16xf32>
    %c8 = arith.constant 8 : index
    %c0_42 = arith.constant 0 : index
    %c0_43 = arith.constant 0 : index
    %224 = vector.load %arg4[%c8, %c0_42, %c0_43] : memref<16x16x16xf32, #tpu.memory_space<vmem>>, vector<1x16x16xf32>
    %225 = vector.shape_cast %224 : vector<1x16x16xf32> to vector<16x16xf32>
    %226 = vector.shape_cast %223 : vector<16x16xf32> to vector<1x16x16xf32>
    tpu.vector_store %arg4[%c8, %c0_42, %c0_43], %226 {strides = array<i32>} : memref<16x16x16xf32, #tpu.memory_space<vmem>>, vector<1x16x16xf32>,
    %227 = arith.maximumf %215, %223 : vector<16x16xf32>
    %228 = vector.extract_strided_slice %15 {offsets = [0, 0, 2], sizes = [3, 16, 16], strides = [1, 1, 1]} : vector<3x20x20xf32> to vector<3x16x16xf32>
    %229 = arith.subf %228, %1 : vector<3x16x16xf32>
    %230 = math.absf %229 : vector<3x16x16xf32>
    %231 = arith.mulf %230, %120 : vector<3x16x16xf32>
    %232 = arith.mulf %231, %231 : vector<3x16x16xf32>
    %cst_44 = arith.constant dense<0.000000e+00> : vector<16x16xf32>
    %233 = vector.multi_reduction <add>, %232, %cst_44 [0] : vector<3x16x16xf32> to vector<16x16xf32>
    %cst_45 = arith.constant -0.333333343 : f32
    %234 = vector.broadcast %cst_45 : f32 to vector<16x16xf32>
    %235 = arith.mulf %233, %234 : vector<16x16xf32>
    %c9 = arith.constant 9 : index
    %c0_46 = arith.constant 0 : index
    %c0_47 = arith.constant 0 : index
    %236 = vector.load %arg4[%c9, %c0_46, %c0_47] : memref<16x16x16xf32, #tpu.memory_space<vmem>>, vector<1x16x16xf32>
    %237 = vector.shape_cast %236 : vector<1x16x16xf32> to vector<16x16xf32>
    %238 = vector.shape_cast %235 : vector<16x16xf32> to vector<1x16x16xf32>
    tpu.vector_store %arg4[%c9, %c0_46, %c0_47], %238 {strides = array<i32>} : memref<16x16x16xf32, #tpu.memory_space<vmem>>, vector<1x16x16xf32>,
    %239 = arith.maximumf %227, %235 : vector<16x16xf32>
    %240 = vector.extract_strided_slice %15 {offsets = [0, 0, 4], sizes = [3, 16, 16], strides = [1, 1, 1]} : vector<3x20x20xf32> to vector<3x16x16xf32>
    %241 = arith.subf %240, %1 : vector<3x16x16xf32>
    %242 = math.absf %241 : vector<3x16x16xf32>
    %243 = arith.mulf %242, %120 : vector<3x16x16xf32>
    %244 = arith.mulf %243, %243 : vector<3x16x16xf32>
    %cst_48 = arith.constant dense<0.000000e+00> : vector<16x16xf32>
    %245 = vector.multi_reduction <add>, %244, %cst_48 [0] : vector<3x16x16xf32> to vector<16x16xf32>
    %cst_49 = arith.constant -0.333333343 : f32
    %246 = vector.broadcast %cst_49 : f32 to vector<16x16xf32>
    %247 = arith.mulf %245, %246 : vector<16x16xf32>
    %c10 = arith.constant 10 : index
    %c0_50 = arith.constant 0 : index
    %c0_51 = arith.constant 0 : index
    %248 = vector.load %arg4[%c10, %c0_50, %c0_51] : memref<16x16x16xf32, #tpu.memory_space<vmem>>, vector<1x16x16xf32>
    %249 = vector.shape_cast %248 : vector<1x16x16xf32> to vector<16x16xf32>
    %250 = vector.shape_cast %247 : vector<16x16xf32> to vector<1x16x16xf32>
    tpu.vector_store %arg4[%c10, %c0_50, %c0_51], %250 {strides = array<i32>} : memref<16x16x16xf32, #tpu.memory_space<vmem>>, vector<1x16x16xf32>,
    %251 = arith.maximumf %239, %247 : vector<16x16xf32>
    %252 = vector.extract_strided_slice %15 {offsets = [0, 2, 0], sizes = [3, 16, 16], strides = [1, 1, 1]} : vector<3x20x20xf32> to vector<3x16x16xf32>
    %253 = arith.subf %252, %1 : vector<3x16x16xf32>
    %254 = math.absf %253 : vector<3x16x16xf32>
    %255 = arith.mulf %254, %120 : vector<3x16x16xf32>
    %256 = arith.mulf %255, %255 : vector<3x16x16xf32>
    %cst_52 = arith.constant dense<0.000000e+00> : vector<16x16xf32>
    %257 = vector.multi_reduction <add>, %256, %cst_52 [0] : vector<3x16x16xf32> to vector<16x16xf32>
    %cst_53 = arith.constant -0.333333343 : f32
    %258 = vector.broadcast %cst_53 : f32 to vector<16x16xf32>
    %259 = arith.mulf %257, %258 : vector<16x16xf32>
    %c11 = arith.constant 11 : index
    %c0_54 = arith.constant 0 : index
    %c0_55 = arith.constant 0 : index
    %260 = vector.load %arg4[%c11, %c0_54, %c0_55] : memref<16x16x16xf32, #tpu.memory_space<vmem>>, vector<1x16x16xf32>
    %261 = vector.shape_cast %260 : vector<1x16x16xf32> to vector<16x16xf32>
    %262 = vector.shape_cast %259 : vector<16x16xf32> to vector<1x16x16xf32>
    tpu.vector_store %arg4[%c11, %c0_54, %c0_55], %262 {strides = array<i32>} : memref<16x16x16xf32, #tpu.memory_space<vmem>>, vector<1x16x16xf32>,
    %263 = arith.maximumf %251, %259 : vector<16x16xf32>
    %264 = vector.extract_strided_slice %15 {offsets = [0, 2, 4], sizes = [3, 16, 16], strides = [1, 1, 1]} : vector<3x20x20xf32> to vector<3x16x16xf32>
    %265 = arith.subf %264, %1 : vector<3x16x16xf32>
    %266 = math.absf %265 : vector<3x16x16xf32>
    %267 = arith.mulf %266, %120 : vector<3x16x16xf32>
    %268 = arith.mulf %267, %267 : vector<3x16x16xf32>
    %cst_56 = arith.constant dense<0.000000e+00> : vector<16x16xf32>
    %269 = vector.multi_reduction <add>, %268, %cst_56 [0] : vector<3x16x16xf32> to vector<16x16xf32>
    %cst_57 = arith.constant -0.333333343 : f32
    %270 = vector.broadcast %cst_57 : f32 to vector<16x16xf32>
    %271 = arith.mulf %269, %270 : vector<16x16xf32>
    %c12 = arith.constant 12 : index
    %c0_58 = arith.constant 0 : index
    %c0_59 = arith.constant 0 : index
    %272 = vector.load %arg4[%c12, %c0_58, %c0_59] : memref<16x16x16xf32, #tpu.memory_space<vmem>>, vector<1x16x16xf32>
    %273 = vector.shape_cast %272 : vector<1x16x16xf32> to vector<16x16xf32>
    %274 = vector.shape_cast %271 : vector<16x16xf32> to vector<1x16x16xf32>
    tpu.vector_store %arg4[%c12, %c0_58, %c0_59], %274 {strides = array<i32>} : memref<16x16x16xf32, #tpu.memory_space<vmem>>, vector<1x16x16xf32>,
    %275 = arith.maximumf %263, %271 : vector<16x16xf32>
    %276 = vector.extract_strided_slice %15 {offsets = [0, 4, 0], sizes = [3, 16, 16], strides = [1, 1, 1]} : vector<3x20x20xf32> to vector<3x16x16xf32>
    %277 = arith.subf %276, %1 : vector<3x16x16xf32>
    %278 = math.absf %277 : vector<3x16x16xf32>
    %279 = arith.mulf %278, %120 : vector<3x16x16xf32>
    %280 = arith.mulf %279, %279 : vector<3x16x16xf32>
    %cst_60 = arith.constant dense<0.000000e+00> : vector<16x16xf32>
    %281 = vector.multi_reduction <add>, %280, %cst_60 [0] : vector<3x16x16xf32> to vector<16x16xf32>
    %cst_61 = arith.constant -0.333333343 : f32
    %282 = vector.broadcast %cst_61 : f32 to vector<16x16xf32>
    %283 = arith.mulf %281, %282 : vector<16x16xf32>
    %c13 = arith.constant 13 : index
    %c0_62 = arith.constant 0 : index
    %c0_63 = arith.constant 0 : index
    %284 = vector.load %arg4[%c13, %c0_62, %c0_63] : memref<16x16x16xf32, #tpu.memory_space<vmem>>, vector<1x16x16xf32>
    %285 = vector.shape_cast %284 : vector<1x16x16xf32> to vector<16x16xf32>
    %286 = vector.shape_cast %283 : vector<16x16xf32> to vector<1x16x16xf32>
    tpu.vector_store %arg4[%c13, %c0_62, %c0_63], %286 {strides = array<i32>} : memref<16x16x16xf32, #tpu.memory_space<vmem>>, vector<1x16x16xf32>,
    %287 = arith.maximumf %275, %283 : vector<16x16xf32>
    %288 = vector.extract_strided_slice %15 {offsets = [0, 4, 2], sizes = [3, 16, 16], strides = [1, 1, 1]} : vector<3x20x20xf32> to vector<3x16x16xf32>
    %289 = arith.subf %288, %1 : vector<3x16x16xf32>
    %290 = math.absf %289 : vector<3x16x16xf32>
    %291 = arith.mulf %290, %120 : vector<3x16x16xf32>
    %292 = arith.mulf %291, %291 : vector<3x16x16xf32>
    %cst_64 = arith.constant dense<0.000000e+00> : vector<16x16xf32>
    %293 = vector.multi_reduction <add>, %292, %cst_64 [0] : vector<3x16x16xf32> to vector<16x16xf32>
    %cst_65 = arith.constant -0.333333343 : f32
    %294 = vector.broadcast %cst_65 : f32 to vector<16x16xf32>
    %295 = arith.mulf %293, %294 : vector<16x16xf32>
    %c14 = arith.constant 14 : index
    %c0_66 = arith.constant 0 : index
    %c0_67 = arith.constant 0 : index
    %296 = vector.load %arg4[%c14, %c0_66, %c0_67] : memref<16x16x16xf32, #tpu.memory_space<vmem>>, vector<1x16x16xf32>
    %297 = vector.shape_cast %296 : vector<1x16x16xf32> to vector<16x16xf32>
    %298 = vector.shape_cast %295 : vector<16x16xf32> to vector<1x16x16xf32>
    tpu.vector_store %arg4[%c14, %c0_66, %c0_67], %298 {strides = array<i32>} : memref<16x16x16xf32, #tpu.memory_space<vmem>>, vector<1x16x16xf32>,
    %299 = arith.maximumf %287, %295 : vector<16x16xf32>
    %300 = vector.extract_strided_slice %15 {offsets = [0, 4, 4], sizes = [3, 16, 16], strides = [1, 1, 1]} : vector<3x20x20xf32> to vector<3x16x16xf32>
    %301 = arith.subf %300, %1 : vector<3x16x16xf32>
    %302 = math.absf %301 : vector<3x16x16xf32>
    %303 = arith.mulf %302, %120 : vector<3x16x16xf32>
    %304 = arith.mulf %303, %303 : vector<3x16x16xf32>
    %cst_68 = arith.constant dense<0.000000e+00> : vector<16x16xf32>
    %305 = vector.multi_reduction <add>, %304, %cst_68 [0] : vector<3x16x16xf32> to vector<16x16xf32>
    %cst_69 = arith.constant -0.333333343 : f32
    %306 = vector.broadcast %cst_69 : f32 to vector<16x16xf32>
    %307 = arith.mulf %305, %306 : vector<16x16xf32>
    %c15 = arith.constant 15 : index
    %c0_70 = arith.constant 0 : index
    %c0_71 = arith.constant 0 : index
    %308 = vector.load %arg4[%c15, %c0_70, %c0_71] : memref<16x16x16xf32, #tpu.memory_space<vmem>>, vector<1x16x16xf32>
    %309 = vector.shape_cast %308 : vector<1x16x16xf32> to vector<16x16xf32>
    %310 = vector.shape_cast %307 : vector<16x16xf32> to vector<1x16x16xf32>
    tpu.vector_store %arg4[%c15, %c0_70, %c0_71], %310 {strides = array<i32>} : memref<16x16x16xf32, #tpu.memory_space<vmem>>, vector<1x16x16xf32>,
    %311 = arith.maximumf %299, %307 : vector<16x16xf32>
    %cst_72 = arith.constant 0.000000e+00 : f32
    %312 = vector.broadcast %cst_72 : f32 to vector<16x16xf32>
    %c0_73 = arith.constant 0 : index
    %c0_74 = arith.constant 0 : index
    %c0_75 = arith.constant 0 : index
    %313 = vector.load %arg4[%c0_73, %c0_74, %c0_75] : memref<16x16x16xf32, #tpu.memory_space<vmem>>, vector<1x16x16xf32>
    %314 = vector.shape_cast %313 : vector<1x16x16xf32> to vector<16x16xf32>
    %315 = arith.subf %314, %311 : vector<16x16xf32>
    %316 = math.exp %315 : vector<16x16xf32>
    %c0_76 = arith.constant 0 : index
    %c0_77 = arith.constant 0 : index
    %c0_78 = arith.constant 0 : index
    %317 = vector.load %arg4[%c0_76, %c0_77, %c0_78] : memref<16x16x16xf32, #tpu.memory_space<vmem>>, vector<1x16x16xf32>
    %318 = vector.shape_cast %317 : vector<1x16x16xf32> to vector<16x16xf32>
    %319 = vector.shape_cast %316 : vector<16x16xf32> to vector<1x16x16xf32>
    tpu.vector_store %arg4[%c0_76, %c0_77, %c0_78], %319 {strides = array<i32>} : memref<16x16x16xf32, #tpu.memory_space<vmem>>, vector<1x16x16xf32>,
    %320 = arith.addf %312, %316 : vector<16x16xf32>
    %c1_79 = arith.constant 1 : index
    %c0_80 = arith.constant 0 : index
    %c0_81 = arith.constant 0 : index
    %321 = vector.load %arg4[%c1_79, %c0_80, %c0_81] : memref<16x16x16xf32, #tpu.memory_space<vmem>>, vector<1x16x16xf32>
    %322 = vector.shape_cast %321 : vector<1x16x16xf32> to vector<16x16xf32>
    %323 = arith.subf %322, %311 : vector<16x16xf32>
    %324 = math.exp %323 : vector<16x16xf32>
    %c1_82 = arith.constant 1 : index
    %c0_83 = arith.constant 0 : index
    %c0_84 = arith.constant 0 : index
    %325 = vector.load %arg4[%c1_82, %c0_83, %c0_84] : memref<16x16x16xf32, #tpu.memory_space<vmem>>, vector<1x16x16xf32>
    %326 = vector.shape_cast %325 : vector<1x16x16xf32> to vector<16x16xf32>
    %327 = vector.shape_cast %324 : vector<16x16xf32> to vector<1x16x16xf32>
    tpu.vector_store %arg4[%c1_82, %c0_83, %c0_84], %327 {strides = array<i32>} : memref<16x16x16xf32, #tpu.memory_space<vmem>>, vector<1x16x16xf32>,
    %328 = arith.addf %320, %324 : vector<16x16xf32>
    %c2_85 = arith.constant 2 : index
    %c0_86 = arith.constant 0 : index
    %c0_87 = arith.constant 0 : index
    %329 = vector.load %arg4[%c2_85, %c0_86, %c0_87] : memref<16x16x16xf32, #tpu.memory_space<vmem>>, vector<1x16x16xf32>
    %330 = vector.shape_cast %329 : vector<1x16x16xf32> to vector<16x16xf32>
    %331 = arith.subf %330, %311 : vector<16x16xf32>
    %332 = math.exp %331 : vector<16x16xf32>
    %c2_88 = arith.constant 2 : index
    %c0_89 = arith.constant 0 : index
    %c0_90 = arith.constant 0 : index
    %333 = vector.load %arg4[%c2_88, %c0_89, %c0_90] : memref<16x16x16xf32, #tpu.memory_space<vmem>>, vector<1x16x16xf32>
    %334 = vector.shape_cast %333 : vector<1x16x16xf32> to vector<16x16xf32>
    %335 = vector.shape_cast %332 : vector<16x16xf32> to vector<1x16x16xf32>
    tpu.vector_store %arg4[%c2_88, %c0_89, %c0_90], %335 {strides = array<i32>} : memref<16x16x16xf32, #tpu.memory_space<vmem>>, vector<1x16x16xf32>,
    %336 = arith.addf %328, %332 : vector<16x16xf32>
    %c3_91 = arith.constant 3 : index
    %c0_92 = arith.constant 0 : index
    %c0_93 = arith.constant 0 : index
    %337 = vector.load %arg4[%c3_91, %c0_92, %c0_93] : memref<16x16x16xf32, #tpu.memory_space<vmem>>, vector<1x16x16xf32>
    %338 = vector.shape_cast %337 : vector<1x16x16xf32> to vector<16x16xf32>
    %339 = arith.subf %338, %311 : vector<16x16xf32>
    %340 = math.exp %339 : vector<16x16xf32>
    %c3_94 = arith.constant 3 : index
    %c0_95 = arith.constant 0 : index
    %c0_96 = arith.constant 0 : index
    %341 = vector.load %arg4[%c3_94, %c0_95, %c0_96] : memref<16x16x16xf32, #tpu.memory_space<vmem>>, vector<1x16x16xf32>
    %342 = vector.shape_cast %341 : vector<1x16x16xf32> to vector<16x16xf32>
    %343 = vector.shape_cast %340 : vector<16x16xf32> to vector<1x16x16xf32>
    tpu.vector_store %arg4[%c3_94, %c0_95, %c0_96], %343 {strides = array<i32>} : memref<16x16x16xf32, #tpu.memory_space<vmem>>, vector<1x16x16xf32>,
    %344 = arith.addf %336, %340 : vector<16x16xf32>
    %c4_97 = arith.constant 4 : index
    %c0_98 = arith.constant 0 : index
    %c0_99 = arith.constant 0 : index
    %345 = vector.load %arg4[%c4_97, %c0_98, %c0_99] : memref<16x16x16xf32, #tpu.memory_space<vmem>>, vector<1x16x16xf32>
    %346 = vector.shape_cast %345 : vector<1x16x16xf32> to vector<16x16xf32>
    %347 = arith.subf %346, %311 : vector<16x16xf32>
    %348 = math.exp %347 : vector<16x16xf32>
    %c4_100 = arith.constant 4 : index
    %c0_101 = arith.constant 0 : index
    %c0_102 = arith.constant 0 : index
    %349 = vector.load %arg4[%c4_100, %c0_101, %c0_102] : memref<16x16x16xf32, #tpu.memory_space<vmem>>, vector<1x16x16xf32>
    %350 = vector.shape_cast %349 : vector<1x16x16xf32> to vector<16x16xf32>
    %351 = vector.shape_cast %348 : vector<16x16xf32> to vector<1x16x16xf32>
    tpu.vector_store %arg4[%c4_100, %c0_101, %c0_102], %351 {strides = array<i32>} : memref<16x16x16xf32, #tpu.memory_space<vmem>>, vector<1x16x16xf32>,
    %352 = arith.addf %344, %348 : vector<16x16xf32>
    %c5_103 = arith.constant 5 : index
    %c0_104 = arith.constant 0 : index
    %c0_105 = arith.constant 0 : index
    %353 = vector.load %arg4[%c5_103, %c0_104, %c0_105] : memref<16x16x16xf32, #tpu.memory_space<vmem>>, vector<1x16x16xf32>
    %354 = vector.shape_cast %353 : vector<1x16x16xf32> to vector<16x16xf32>
    %355 = arith.subf %354, %311 : vector<16x16xf32>
    %356 = math.exp %355 : vector<16x16xf32>
    %c5_106 = arith.constant 5 : index
    %c0_107 = arith.constant 0 : index
    %c0_108 = arith.constant 0 : index
    %357 = vector.load %arg4[%c5_106, %c0_107, %c0_108] : memref<16x16x16xf32, #tpu.memory_space<vmem>>, vector<1x16x16xf32>
    %358 = vector.shape_cast %357 : vector<1x16x16xf32> to vector<16x16xf32>
    %359 = vector.shape_cast %356 : vector<16x16xf32> to vector<1x16x16xf32>
    tpu.vector_store %arg4[%c5_106, %c0_107, %c0_108], %359 {strides = array<i32>} : memref<16x16x16xf32, #tpu.memory_space<vmem>>, vector<1x16x16xf32>,
    %360 = arith.addf %352, %356 : vector<16x16xf32>
    %c6_109 = arith.constant 6 : index
    %c0_110 = arith.constant 0 : index
    %c0_111 = arith.constant 0 : index
    %361 = vector.load %arg4[%c6_109, %c0_110, %c0_111] : memref<16x16x16xf32, #tpu.memory_space<vmem>>, vector<1x16x16xf32>
    %362 = vector.shape_cast %361 : vector<1x16x16xf32> to vector<16x16xf32>
    %363 = arith.subf %362, %311 : vector<16x16xf32>
    %364 = math.exp %363 : vector<16x16xf32>
    %c6_112 = arith.constant 6 : index
    %c0_113 = arith.constant 0 : index
    %c0_114 = arith.constant 0 : index
    %365 = vector.load %arg4[%c6_112, %c0_113, %c0_114] : memref<16x16x16xf32, #tpu.memory_space<vmem>>, vector<1x16x16xf32>
    %366 = vector.shape_cast %365 : vector<1x16x16xf32> to vector<16x16xf32>
    %367 = vector.shape_cast %364 : vector<16x16xf32> to vector<1x16x16xf32>
    tpu.vector_store %arg4[%c6_112, %c0_113, %c0_114], %367 {strides = array<i32>} : memref<16x16x16xf32, #tpu.memory_space<vmem>>, vector<1x16x16xf32>,
    %368 = arith.addf %360, %364 : vector<16x16xf32>
    %c7_115 = arith.constant 7 : index
    %c0_116 = arith.constant 0 : index
    %c0_117 = arith.constant 0 : index
    %369 = vector.load %arg4[%c7_115, %c0_116, %c0_117] : memref<16x16x16xf32, #tpu.memory_space<vmem>>, vector<1x16x16xf32>
    %370 = vector.shape_cast %369 : vector<1x16x16xf32> to vector<16x16xf32>
    %371 = arith.subf %370, %311 : vector<16x16xf32>
    %372 = math.exp %371 : vector<16x16xf32>
    %c7_118 = arith.constant 7 : index
    %c0_119 = arith.constant 0 : index
    %c0_120 = arith.constant 0 : index
    %373 = vector.load %arg4[%c7_118, %c0_119, %c0_120] : memref<16x16x16xf32, #tpu.memory_space<vmem>>, vector<1x16x16xf32>
    %374 = vector.shape_cast %373 : vector<1x16x16xf32> to vector<16x16xf32>
    %375 = vector.shape_cast %372 : vector<16x16xf32> to vector<1x16x16xf32>
    tpu.vector_store %arg4[%c7_118, %c0_119, %c0_120], %375 {strides = array<i32>} : memref<16x16x16xf32, #tpu.memory_space<vmem>>, vector<1x16x16xf32>,
    %376 = arith.addf %368, %372 : vector<16x16xf32>
    %c8_121 = arith.constant 8 : index
    %c0_122 = arith.constant 0 : index
    %c0_123 = arith.constant 0 : index
    %377 = vector.load %arg4[%c8_121, %c0_122, %c0_123] : memref<16x16x16xf32, #tpu.memory_space<vmem>>, vector<1x16x16xf32>
    %378 = vector.shape_cast %377 : vector<1x16x16xf32> to vector<16x16xf32>
    %379 = arith.subf %378, %311 : vector<16x16xf32>
    %380 = math.exp %379 : vector<16x16xf32>
    %c8_124 = arith.constant 8 : index
    %c0_125 = arith.constant 0 : index
    %c0_126 = arith.constant 0 : index
    %381 = vector.load %arg4[%c8_124, %c0_125, %c0_126] : memref<16x16x16xf32, #tpu.memory_space<vmem>>, vector<1x16x16xf32>
    %382 = vector.shape_cast %381 : vector<1x16x16xf32> to vector<16x16xf32>
    %383 = vector.shape_cast %380 : vector<16x16xf32> to vector<1x16x16xf32>
    tpu.vector_store %arg4[%c8_124, %c0_125, %c0_126], %383 {strides = array<i32>} : memref<16x16x16xf32, #tpu.memory_space<vmem>>, vector<1x16x16xf32>,
    %384 = arith.addf %376, %380 : vector<16x16xf32>
    %c9_127 = arith.constant 9 : index
    %c0_128 = arith.constant 0 : index
    %c0_129 = arith.constant 0 : index
    %385 = vector.load %arg4[%c9_127, %c0_128, %c0_129] : memref<16x16x16xf32, #tpu.memory_space<vmem>>, vector<1x16x16xf32>
    %386 = vector.shape_cast %385 : vector<1x16x16xf32> to vector<16x16xf32>
    %387 = arith.subf %386, %311 : vector<16x16xf32>
    %388 = math.exp %387 : vector<16x16xf32>
    %c9_130 = arith.constant 9 : index
    %c0_131 = arith.constant 0 : index
    %c0_132 = arith.constant 0 : index
    %389 = vector.load %arg4[%c9_130, %c0_131, %c0_132] : memref<16x16x16xf32, #tpu.memory_space<vmem>>, vector<1x16x16xf32>
    %390 = vector.shape_cast %389 : vector<1x16x16xf32> to vector<16x16xf32>
    %391 = vector.shape_cast %388 : vector<16x16xf32> to vector<1x16x16xf32>
    tpu.vector_store %arg4[%c9_130, %c0_131, %c0_132], %391 {strides = array<i32>} : memref<16x16x16xf32, #tpu.memory_space<vmem>>, vector<1x16x16xf32>,
    %392 = arith.addf %384, %388 : vector<16x16xf32>
    %c10_133 = arith.constant 10 : index
    %c0_134 = arith.constant 0 : index
    %c0_135 = arith.constant 0 : index
    %393 = vector.load %arg4[%c10_133, %c0_134, %c0_135] : memref<16x16x16xf32, #tpu.memory_space<vmem>>, vector<1x16x16xf32>
    %394 = vector.shape_cast %393 : vector<1x16x16xf32> to vector<16x16xf32>
    %395 = arith.subf %394, %311 : vector<16x16xf32>
    %396 = math.exp %395 : vector<16x16xf32>
    %c10_136 = arith.constant 10 : index
    %c0_137 = arith.constant 0 : index
    %c0_138 = arith.constant 0 : index
    %397 = vector.load %arg4[%c10_136, %c0_137, %c0_138] : memref<16x16x16xf32, #tpu.memory_space<vmem>>, vector<1x16x16xf32>
    %398 = vector.shape_cast %397 : vector<1x16x16xf32> to vector<16x16xf32>
    %399 = vector.shape_cast %396 : vector<16x16xf32> to vector<1x16x16xf32>
    tpu.vector_store %arg4[%c10_136, %c0_137, %c0_138], %399 {strides = array<i32>} : memref<16x16x16xf32, #tpu.memory_space<vmem>>, vector<1x16x16xf32>,
    %400 = arith.addf %392, %396 : vector<16x16xf32>
    %c11_139 = arith.constant 11 : index
    %c0_140 = arith.constant 0 : index
    %c0_141 = arith.constant 0 : index
    %401 = vector.load %arg4[%c11_139, %c0_140, %c0_141] : memref<16x16x16xf32, #tpu.memory_space<vmem>>, vector<1x16x16xf32>
    %402 = vector.shape_cast %401 : vector<1x16x16xf32> to vector<16x16xf32>
    %403 = arith.subf %402, %311 : vector<16x16xf32>
    %404 = math.exp %403 : vector<16x16xf32>
    %c11_142 = arith.constant 11 : index
    %c0_143 = arith.constant 0 : index
    %c0_144 = arith.constant 0 : index
    %405 = vector.load %arg4[%c11_142, %c0_143, %c0_144] : memref<16x16x16xf32, #tpu.memory_space<vmem>>, vector<1x16x16xf32>
    %406 = vector.shape_cast %405 : vector<1x16x16xf32> to vector<16x16xf32>
    %407 = vector.shape_cast %404 : vector<16x16xf32> to vector<1x16x16xf32>
    tpu.vector_store %arg4[%c11_142, %c0_143, %c0_144], %407 {strides = array<i32>} : memref<16x16x16xf32, #tpu.memory_space<vmem>>, vector<1x16x16xf32>,
    %408 = arith.addf %400, %404 : vector<16x16xf32>
    %c12_145 = arith.constant 12 : index
    %c0_146 = arith.constant 0 : index
    %c0_147 = arith.constant 0 : index
    %409 = vector.load %arg4[%c12_145, %c0_146, %c0_147] : memref<16x16x16xf32, #tpu.memory_space<vmem>>, vector<1x16x16xf32>
    %410 = vector.shape_cast %409 : vector<1x16x16xf32> to vector<16x16xf32>
    %411 = arith.subf %410, %311 : vector<16x16xf32>
    %412 = math.exp %411 : vector<16x16xf32>
    %c12_148 = arith.constant 12 : index
    %c0_149 = arith.constant 0 : index
    %c0_150 = arith.constant 0 : index
    %413 = vector.load %arg4[%c12_148, %c0_149, %c0_150] : memref<16x16x16xf32, #tpu.memory_space<vmem>>, vector<1x16x16xf32>
    %414 = vector.shape_cast %413 : vector<1x16x16xf32> to vector<16x16xf32>
    %415 = vector.shape_cast %412 : vector<16x16xf32> to vector<1x16x16xf32>
    tpu.vector_store %arg4[%c12_148, %c0_149, %c0_150], %415 {strides = array<i32>} : memref<16x16x16xf32, #tpu.memory_space<vmem>>, vector<1x16x16xf32>,
    %416 = arith.addf %408, %412 : vector<16x16xf32>
    %c13_151 = arith.constant 13 : index
    %c0_152 = arith.constant 0 : index
    %c0_153 = arith.constant 0 : index
    %417 = vector.load %arg4[%c13_151, %c0_152, %c0_153] : memref<16x16x16xf32, #tpu.memory_space<vmem>>, vector<1x16x16xf32>
    %418 = vector.shape_cast %417 : vector<1x16x16xf32> to vector<16x16xf32>
    %419 = arith.subf %418, %311 : vector<16x16xf32>
    %420 = math.exp %419 : vector<16x16xf32>
    %c13_154 = arith.constant 13 : index
    %c0_155 = arith.constant 0 : index
    %c0_156 = arith.constant 0 : index
    %421 = vector.load %arg4[%c13_154, %c0_155, %c0_156] : memref<16x16x16xf32, #tpu.memory_space<vmem>>, vector<1x16x16xf32>
    %422 = vector.shape_cast %421 : vector<1x16x16xf32> to vector<16x16xf32>
    %423 = vector.shape_cast %420 : vector<16x16xf32> to vector<1x16x16xf32>
    tpu.vector_store %arg4[%c13_154, %c0_155, %c0_156], %423 {strides = array<i32>} : memref<16x16x16xf32, #tpu.memory_space<vmem>>, vector<1x16x16xf32>,
    %424 = arith.addf %416, %420 : vector<16x16xf32>
    %c14_157 = arith.constant 14 : index
    %c0_158 = arith.constant 0 : index
    %c0_159 = arith.constant 0 : index
    %425 = vector.load %arg4[%c14_157, %c0_158, %c0_159] : memref<16x16x16xf32, #tpu.memory_space<vmem>>, vector<1x16x16xf32>
    %426 = vector.shape_cast %425 : vector<1x16x16xf32> to vector<16x16xf32>
    %427 = arith.subf %426, %311 : vector<16x16xf32>
    %428 = math.exp %427 : vector<16x16xf32>
    %c14_160 = arith.constant 14 : index
    %c0_161 = arith.constant 0 : index
    %c0_162 = arith.constant 0 : index
    %429 = vector.load %arg4[%c14_160, %c0_161, %c0_162] : memref<16x16x16xf32, #tpu.memory_space<vmem>>, vector<1x16x16xf32>
    %430 = vector.shape_cast %429 : vector<1x16x16xf32> to vector<16x16xf32>
    %431 = vector.shape_cast %428 : vector<16x16xf32> to vector<1x16x16xf32>
    tpu.vector_store %arg4[%c14_160, %c0_161, %c0_162], %431 {strides = array<i32>} : memref<16x16x16xf32, #tpu.memory_space<vmem>>, vector<1x16x16xf32>,
    %432 = arith.addf %424, %428 : vector<16x16xf32>
    %c15_163 = arith.constant 15 : index
    %c0_164 = arith.constant 0 : index
    %c0_165 = arith.constant 0 : index
    %433 = vector.load %arg4[%c15_163, %c0_164, %c0_165] : memref<16x16x16xf32, #tpu.memory_space<vmem>>, vector<1x16x16xf32>
    %434 = vector.shape_cast %433 : vector<1x16x16xf32> to vector<16x16xf32>
    %435 = arith.subf %434, %311 : vector<16x16xf32>
    %436 = math.exp %435 : vector<16x16xf32>
    %c15_166 = arith.constant 15 : index
    %c0_167 = arith.constant 0 : index
    %c0_168 = arith.constant 0 : index
    %437 = vector.load %arg4[%c15_166, %c0_167, %c0_168] : memref<16x16x16xf32, #tpu.memory_space<vmem>>, vector<1x16x16xf32>
    %438 = vector.shape_cast %437 : vector<1x16x16xf32> to vector<16x16xf32>
    %439 = vector.shape_cast %436 : vector<16x16xf32> to vector<1x16x16xf32>
    tpu.vector_store %arg4[%c15_166, %c0_167, %c0_168], %439 {strides = array<i32>} : memref<16x16x16xf32, #tpu.memory_space<vmem>>, vector<1x16x16xf32>,
    %440 = arith.addf %432, %436 : vector<16x16xf32>
    %441 = tpu.reciprocal %440 {approx = true} : vector<16x16xf32> -> vector<16x16xf32>
    %c0_169 = arith.constant 0 : index
    %c0_170 = arith.constant 0 : index
    %c0_171 = arith.constant 0 : index
    %442 = vector.load %arg4[%c0_169, %c0_170, %c0_171] : memref<16x16x16xf32, #tpu.memory_space<vmem>>, vector<1x16x16xf32>
    %443 = vector.shape_cast %442 : vector<1x16x16xf32> to vector<16x16xf32>
    %444 = arith.mulf %443, %441 : vector<16x16xf32>
    %cst_172 = arith.constant 6.3597337E-13 : f32
    %445 = vector.broadcast %cst_172 : f32 to vector<16x16xf32>
    %446 = arith.addf %444, %445 : vector<16x16xf32>
    %c0_173 = arith.constant 0 : index
    %c0_174 = arith.constant 0 : index
    %c0_175 = arith.constant 0 : index
    %447 = vector.load %arg4[%c0_173, %c0_174, %c0_175] : memref<16x16x16xf32, #tpu.memory_space<vmem>>, vector<1x16x16xf32>
    %448 = vector.shape_cast %447 : vector<1x16x16xf32> to vector<16x16xf32>
    %449 = vector.shape_cast %446 : vector<16x16xf32> to vector<1x16x16xf32>
    tpu.vector_store %arg4[%c0_173, %c0_174, %c0_175], %449 {strides = array<i32>} : memref<16x16x16xf32, #tpu.memory_space<vmem>>, vector<1x16x16xf32>,
    %c1_176 = arith.constant 1 : index
    %c0_177 = arith.constant 0 : index
    %c0_178 = arith.constant 0 : index
    %450 = vector.load %arg4[%c1_176, %c0_177, %c0_178] : memref<16x16x16xf32, #tpu.memory_space<vmem>>, vector<1x16x16xf32>
    %451 = vector.shape_cast %450 : vector<1x16x16xf32> to vector<16x16xf32>
    %452 = arith.mulf %451, %441 : vector<16x16xf32>
    %cst_179 = arith.constant 2.500000e-03 : f32
    %453 = vector.broadcast %cst_179 : f32 to vector<16x16xf32>
    %454 = arith.addf %452, %453 : vector<16x16xf32>
    %c1_180 = arith.constant 1 : index
    %c0_181 = arith.constant 0 : index
    %c0_182 = arith.constant 0 : index
    %455 = vector.load %arg4[%c1_180, %c0_181, %c0_182] : memref<16x16x16xf32, #tpu.memory_space<vmem>>, vector<1x16x16xf32>
    %456 = vector.shape_cast %455 : vector<1x16x16xf32> to vector<16x16xf32>
    %457 = vector.shape_cast %454 : vector<16x16xf32> to vector<1x16x16xf32>
    tpu.vector_store %arg4[%c1_180, %c0_181, %c0_182], %457 {strides = array<i32>} : memref<16x16x16xf32, #tpu.memory_space<vmem>>, vector<1x16x16xf32>,
    %c2_183 = arith.constant 2 : index
    %c0_184 = arith.constant 0 : index
    %c0_185 = arith.constant 0 : index
    %458 = vector.load %arg4[%c2_183, %c0_184, %c0_185] : memref<16x16x16xf32, #tpu.memory_space<vmem>>, vector<1x16x16xf32>
    %459 = vector.shape_cast %458 : vector<1x16x16xf32> to vector<16x16xf32>
    %460 = arith.mulf %459, %441 : vector<16x16xf32>
    %cst_186 = arith.constant 6.3597337E-13 : f32
    %461 = vector.broadcast %cst_186 : f32 to vector<16x16xf32>
    %462 = arith.addf %460, %461 : vector<16x16xf32>
    %c2_187 = arith.constant 2 : index
    %c0_188 = arith.constant 0 : index
    %c0_189 = arith.constant 0 : index
    %463 = vector.load %arg4[%c2_187, %c0_188, %c0_189] : memref<16x16x16xf32, #tpu.memory_space<vmem>>, vector<1x16x16xf32>
    %464 = vector.shape_cast %463 : vector<1x16x16xf32> to vector<16x16xf32>
    %465 = vector.shape_cast %462 : vector<16x16xf32> to vector<1x16x16xf32>
    tpu.vector_store %arg4[%c2_187, %c0_188, %c0_189], %465 {strides = array<i32>} : memref<16x16x16xf32, #tpu.memory_space<vmem>>, vector<1x16x16xf32>,
    %c3_190 = arith.constant 3 : index
    %c0_191 = arith.constant 0 : index
    %c0_192 = arith.constant 0 : index
    %466 = vector.load %arg4[%c3_190, %c0_191, %c0_192] : memref<16x16x16xf32, #tpu.memory_space<vmem>>, vector<1x16x16xf32>
    %467 = vector.shape_cast %466 : vector<1x16x16xf32> to vector<16x16xf32>
    %468 = arith.mulf %467, %441 : vector<16x16xf32>
    %cst_193 = arith.constant 2.500000e-03 : f32
    %469 = vector.broadcast %cst_193 : f32 to vector<16x16xf32>
    %470 = arith.addf %468, %469 : vector<16x16xf32>
    %c3_194 = arith.constant 3 : index
    %c0_195 = arith.constant 0 : index
    %c0_196 = arith.constant 0 : index
    %471 = vector.load %arg4[%c3_194, %c0_195, %c0_196] : memref<16x16x16xf32, #tpu.memory_space<vmem>>, vector<1x16x16xf32>
    %472 = vector.shape_cast %471 : vector<1x16x16xf32> to vector<16x16xf32>
    %473 = vector.shape_cast %470 : vector<16x16xf32> to vector<1x16x16xf32>
    tpu.vector_store %arg4[%c3_194, %c0_195, %c0_196], %473 {strides = array<i32>} : memref<16x16x16xf32, #tpu.memory_space<vmem>>, vector<1x16x16xf32>,
    %c4_197 = arith.constant 4 : index
    %c0_198 = arith.constant 0 : index
    %c0_199 = arith.constant 0 : index
    %474 = vector.load %arg4[%c4_197, %c0_198, %c0_199] : memref<16x16x16xf32, #tpu.memory_space<vmem>>, vector<1x16x16xf32>
    %475 = vector.shape_cast %474 : vector<1x16x16xf32> to vector<16x16xf32>
    %476 = arith.mulf %475, %441 : vector<16x16xf32>
    %cst_200 = arith.constant 2.500000e-03 : f32
    %477 = vector.broadcast %cst_200 : f32 to vector<16x16xf32>
    %478 = arith.addf %476, %477 : vector<16x16xf32>
    %c4_201 = arith.constant 4 : index
    %c0_202 = arith.constant 0 : index
    %c0_203 = arith.constant 0 : index
    %479 = vector.load %arg4[%c4_201, %c0_202, %c0_203] : memref<16x16x16xf32, #tpu.memory_space<vmem>>, vector<1x16x16xf32>
    %480 = vector.shape_cast %479 : vector<1x16x16xf32> to vector<16x16xf32>
    %481 = vector.shape_cast %478 : vector<16x16xf32> to vector<1x16x16xf32>
    tpu.vector_store %arg4[%c4_201, %c0_202, %c0_203], %481 {strides = array<i32>} : memref<16x16x16xf32, #tpu.memory_space<vmem>>, vector<1x16x16xf32>,
    %c5_204 = arith.constant 5 : index
    %c0_205 = arith.constant 0 : index
    %c0_206 = arith.constant 0 : index
    %482 = vector.load %arg4[%c5_204, %c0_205, %c0_206] : memref<16x16x16xf32, #tpu.memory_space<vmem>>, vector<1x16x16xf32>
    %483 = vector.shape_cast %482 : vector<1x16x16xf32> to vector<16x16xf32>
    %484 = arith.mulf %483, %441 : vector<16x16xf32>
    %cst_207 = arith.constant 6.3597337E-13 : f32
    %485 = vector.broadcast %cst_207 : f32 to vector<16x16xf32>
    %486 = arith.addf %484, %485 : vector<16x16xf32>
    %c5_208 = arith.constant 5 : index
    %c0_209 = arith.constant 0 : index
    %c0_210 = arith.constant 0 : index
    %487 = vector.load %arg4[%c5_208, %c0_209, %c0_210] : memref<16x16x16xf32, #tpu.memory_space<vmem>>, vector<1x16x16xf32>
    %488 = vector.shape_cast %487 : vector<1x16x16xf32> to vector<16x16xf32>
    %489 = vector.shape_cast %486 : vector<16x16xf32> to vector<1x16x16xf32>
    tpu.vector_store %arg4[%c5_208, %c0_209, %c0_210], %489 {strides = array<i32>} : memref<16x16x16xf32, #tpu.memory_space<vmem>>, vector<1x16x16xf32>,
    %c6_211 = arith.constant 6 : index
    %c0_212 = arith.constant 0 : index
    %c0_213 = arith.constant 0 : index
    %490 = vector.load %arg4[%c6_211, %c0_212, %c0_213] : memref<16x16x16xf32, #tpu.memory_space<vmem>>, vector<1x16x16xf32>
    %491 = vector.shape_cast %490 : vector<1x16x16xf32> to vector<16x16xf32>
    %492 = arith.mulf %491, %441 : vector<16x16xf32>
    %cst_214 = arith.constant 2.500000e-03 : f32
    %493 = vector.broadcast %cst_214 : f32 to vector<16x16xf32>
    %494 = arith.addf %492, %493 : vector<16x16xf32>
    %c6_215 = arith.constant 6 : index
    %c0_216 = arith.constant 0 : index
    %c0_217 = arith.constant 0 : index
    %495 = vector.load %arg4[%c6_215, %c0_216, %c0_217] : memref<16x16x16xf32, #tpu.memory_space<vmem>>, vector<1x16x16xf32>
    %496 = vector.shape_cast %495 : vector<1x16x16xf32> to vector<16x16xf32>
    %497 = vector.shape_cast %494 : vector<16x16xf32> to vector<1x16x16xf32>
    tpu.vector_store %arg4[%c6_215, %c0_216, %c0_217], %497 {strides = array<i32>} : memref<16x16x16xf32, #tpu.memory_space<vmem>>, vector<1x16x16xf32>,
    %c7_218 = arith.constant 7 : index
    %c0_219 = arith.constant 0 : index
    %c0_220 = arith.constant 0 : index
    %498 = vector.load %arg4[%c7_218, %c0_219, %c0_220] : memref<16x16x16xf32, #tpu.memory_space<vmem>>, vector<1x16x16xf32>
    %499 = vector.shape_cast %498 : vector<1x16x16xf32> to vector<16x16xf32>
    %500 = arith.mulf %499, %441 : vector<16x16xf32>
    %cst_221 = arith.constant 6.3597337E-13 : f32
    %501 = vector.broadcast %cst_221 : f32 to vector<16x16xf32>
    %502 = arith.addf %500, %501 : vector<16x16xf32>
    %c7_222 = arith.constant 7 : index
    %c0_223 = arith.constant 0 : index
    %c0_224 = arith.constant 0 : index
    %503 = vector.load %arg4[%c7_222, %c0_223, %c0_224] : memref<16x16x16xf32, #tpu.memory_space<vmem>>, vector<1x16x16xf32>
    %504 = vector.shape_cast %503 : vector<1x16x16xf32> to vector<16x16xf32>
    %505 = vector.shape_cast %502 : vector<16x16xf32> to vector<1x16x16xf32>
    tpu.vector_store %arg4[%c7_222, %c0_223, %c0_224], %505 {strides = array<i32>} : memref<16x16x16xf32, #tpu.memory_space<vmem>>, vector<1x16x16xf32>,
    %c8_225 = arith.constant 8 : index
    %c0_226 = arith.constant 0 : index
    %c0_227 = arith.constant 0 : index
    %506 = vector.load %arg4[%c8_225, %c0_226, %c0_227] : memref<16x16x16xf32, #tpu.memory_space<vmem>>, vector<1x16x16xf32>
    %507 = vector.shape_cast %506 : vector<1x16x16xf32> to vector<16x16xf32>
    %508 = arith.mulf %507, %441 : vector<16x16xf32>
    %cst_228 = arith.constant 0.000000e+00 : f32
    %509 = vector.broadcast %cst_228 : f32 to vector<16x16xf32>
    %510 = arith.addf %508, %509 : vector<16x16xf32>
    %c8_229 = arith.constant 8 : index
    %c0_230 = arith.constant 0 : index
    %c0_231 = arith.constant 0 : index
    %511 = vector.load %arg4[%c8_229, %c0_230, %c0_231] : memref<16x16x16xf32, #tpu.memory_space<vmem>>, vector<1x16x16xf32>
    %512 = vector.shape_cast %511 : vector<1x16x16xf32> to vector<16x16xf32>
    %513 = vector.shape_cast %510 : vector<16x16xf32> to vector<1x16x16xf32>
    tpu.vector_store %arg4[%c8_229, %c0_230, %c0_231], %513 {strides = array<i32>} : memref<16x16x16xf32, #tpu.memory_space<vmem>>, vector<1x16x16xf32>,
    %c9_232 = arith.constant 9 : index
    %c0_233 = arith.constant 0 : index
    %c0_234 = arith.constant 0 : index
    %514 = vector.load %arg4[%c9_232, %c0_233, %c0_234] : memref<16x16x16xf32, #tpu.memory_space<vmem>>, vector<1x16x16xf32>
    %515 = vector.shape_cast %514 : vector<1x16x16xf32> to vector<16x16xf32>
    %516 = arith.mulf %515, %441 : vector<16x16xf32>
    %cst_235 = arith.constant 4.11563465E-32 : f32
    %517 = vector.broadcast %cst_235 : f32 to vector<16x16xf32>
    %518 = arith.addf %516, %517 : vector<16x16xf32>
    %c9_236 = arith.constant 9 : index
    %c0_237 = arith.constant 0 : index
    %c0_238 = arith.constant 0 : index
    %519 = vector.load %arg4[%c9_236, %c0_237, %c0_238] : memref<16x16x16xf32, #tpu.memory_space<vmem>>, vector<1x16x16xf32>
    %520 = vector.shape_cast %519 : vector<1x16x16xf32> to vector<16x16xf32>
    %521 = vector.shape_cast %518 : vector<16x16xf32> to vector<1x16x16xf32>
    tpu.vector_store %arg4[%c9_236, %c0_237, %c0_238], %521 {strides = array<i32>} : memref<16x16x16xf32, #tpu.memory_space<vmem>>, vector<1x16x16xf32>,
    %c10_239 = arith.constant 10 : index
    %c0_240 = arith.constant 0 : index
    %c0_241 = arith.constant 0 : index
    %522 = vector.load %arg4[%c10_239, %c0_240, %c0_241] : memref<16x16x16xf32, #tpu.memory_space<vmem>>, vector<1x16x16xf32>
    %523 = vector.shape_cast %522 : vector<1x16x16xf32> to vector<16x16xf32>
    %524 = arith.mulf %523, %441 : vector<16x16xf32>
    %cst_242 = arith.constant 0.000000e+00 : f32
    %525 = vector.broadcast %cst_242 : f32 to vector<16x16xf32>
    %526 = arith.addf %524, %525 : vector<16x16xf32>
    %c10_243 = arith.constant 10 : index
    %c0_244 = arith.constant 0 : index
    %c0_245 = arith.constant 0 : index
    %527 = vector.load %arg4[%c10_243, %c0_244, %c0_245] : memref<16x16x16xf32, #tpu.memory_space<vmem>>, vector<1x16x16xf32>
    %528 = vector.shape_cast %527 : vector<1x16x16xf32> to vector<16x16xf32>
    %529 = vector.shape_cast %526 : vector<16x16xf32> to vector<1x16x16xf32>
    tpu.vector_store %arg4[%c10_243, %c0_244, %c0_245], %529 {strides = array<i32>} : memref<16x16x16xf32, #tpu.memory_space<vmem>>, vector<1x16x16xf32>,
    %c11_246 = arith.constant 11 : index
    %c0_247 = arith.constant 0 : index
    %c0_248 = arith.constant 0 : index
    %530 = vector.load %arg4[%c11_246, %c0_247, %c0_248] : memref<16x16x16xf32, #tpu.memory_space<vmem>>, vector<1x16x16xf32>
    %531 = vector.shape_cast %530 : vector<1x16x16xf32> to vector<16x16xf32>
    %532 = arith.mulf %531, %441 : vector<16x16xf32>
    %cst_249 = arith.constant 4.11563465E-32 : f32
    %533 = vector.broadcast %cst_249 : f32 to vector<16x16xf32>
    %534 = arith.addf %532, %533 : vector<16x16xf32>
    %c11_250 = arith.constant 11 : index
    %c0_251 = arith.constant 0 : index
    %c0_252 = arith.constant 0 : index
    %535 = vector.load %arg4[%c11_250, %c0_251, %c0_252] : memref<16x16x16xf32, #tpu.memory_space<vmem>>, vector<1x16x16xf32>
    %536 = vector.shape_cast %535 : vector<1x16x16xf32> to vector<16x16xf32>
    %537 = vector.shape_cast %534 : vector<16x16xf32> to vector<1x16x16xf32>
    tpu.vector_store %arg4[%c11_250, %c0_251, %c0_252], %537 {strides = array<i32>} : memref<16x16x16xf32, #tpu.memory_space<vmem>>, vector<1x16x16xf32>,
    %c12_253 = arith.constant 12 : index
    %c0_254 = arith.constant 0 : index
    %c0_255 = arith.constant 0 : index
    %538 = vector.load %arg4[%c12_253, %c0_254, %c0_255] : memref<16x16x16xf32, #tpu.memory_space<vmem>>, vector<1x16x16xf32>
    %539 = vector.shape_cast %538 : vector<1x16x16xf32> to vector<16x16xf32>
    %540 = arith.mulf %539, %441 : vector<16x16xf32>
    %cst_256 = arith.constant 4.11563465E-32 : f32
    %541 = vector.broadcast %cst_256 : f32 to vector<16x16xf32>
    %542 = arith.addf %540, %541 : vector<16x16xf32>
    %c12_257 = arith.constant 12 : index
    %c0_258 = arith.constant 0 : index
    %c0_259 = arith.constant 0 : index
    %543 = vector.load %arg4[%c12_257, %c0_258, %c0_259] : memref<16x16x16xf32, #tpu.memory_space<vmem>>, vector<1x16x16xf32>
    %544 = vector.shape_cast %543 : vector<1x16x16xf32> to vector<16x16xf32>
    %545 = vector.shape_cast %542 : vector<16x16xf32> to vector<1x16x16xf32>
    tpu.vector_store %arg4[%c12_257, %c0_258, %c0_259], %545 {strides = array<i32>} : memref<16x16x16xf32, #tpu.memory_space<vmem>>, vector<1x16x16xf32>,
    %c13_260 = arith.constant 13 : index
    %c0_261 = arith.constant 0 : index
    %c0_262 = arith.constant 0 : index
    %546 = vector.load %arg4[%c13_260, %c0_261, %c0_262] : memref<16x16x16xf32, #tpu.memory_space<vmem>>, vector<1x16x16xf32>
    %547 = vector.shape_cast %546 : vector<1x16x16xf32> to vector<16x16xf32>
    %548 = arith.mulf %547, %441 : vector<16x16xf32>
    %cst_263 = arith.constant 0.000000e+00 : f32
    %549 = vector.broadcast %cst_263 : f32 to vector<16x16xf32>
    %550 = arith.addf %548, %549 : vector<16x16xf32>
    %c13_264 = arith.constant 13 : index
    %c0_265 = arith.constant 0 : index
    %c0_266 = arith.constant 0 : index
    %551 = vector.load %arg4[%c13_264, %c0_265, %c0_266] : memref<16x16x16xf32, #tpu.memory_space<vmem>>, vector<1x16x16xf32>
    %552 = vector.shape_cast %551 : vector<1x16x16xf32> to vector<16x16xf32>
    %553 = vector.shape_cast %550 : vector<16x16xf32> to vector<1x16x16xf32>
    tpu.vector_store %arg4[%c13_264, %c0_265, %c0_266], %553 {strides = array<i32>} : memref<16x16x16xf32, #tpu.memory_space<vmem>>, vector<1x16x16xf32>,
    %c14_267 = arith.constant 14 : index
    %c0_268 = arith.constant 0 : index
    %c0_269 = arith.constant 0 : index
    %554 = vector.load %arg4[%c14_267, %c0_268, %c0_269] : memref<16x16x16xf32, #tpu.memory_space<vmem>>, vector<1x16x16xf32>
    %555 = vector.shape_cast %554 : vector<1x16x16xf32> to vector<16x16xf32>
    %556 = arith.mulf %555, %441 : vector<16x16xf32>
    %cst_270 = arith.constant 4.11563465E-32 : f32
    %557 = vector.broadcast %cst_270 : f32 to vector<16x16xf32>
    %558 = arith.addf %556, %557 : vector<16x16xf32>
    %c14_271 = arith.constant 14 : index
    %c0_272 = arith.constant 0 : index
    %c0_273 = arith.constant 0 : index
    %559 = vector.load %arg4[%c14_271, %c0_272, %c0_273] : memref<16x16x16xf32, #tpu.memory_space<vmem>>, vector<1x16x16xf32>
    %560 = vector.shape_cast %559 : vector<1x16x16xf32> to vector<16x16xf32>
    %561 = vector.shape_cast %558 : vector<16x16xf32> to vector<1x16x16xf32>
    tpu.vector_store %arg4[%c14_271, %c0_272, %c0_273], %561 {strides = array<i32>} : memref<16x16x16xf32, #tpu.memory_space<vmem>>, vector<1x16x16xf32>,
    %c15_274 = arith.constant 15 : index
    %c0_275 = arith.constant 0 : index
    %c0_276 = arith.constant 0 : index
    %562 = vector.load %arg4[%c15_274, %c0_275, %c0_276] : memref<16x16x16xf32, #tpu.memory_space<vmem>>, vector<1x16x16xf32>
    %563 = vector.shape_cast %562 : vector<1x16x16xf32> to vector<16x16xf32>
    %564 = arith.mulf %563, %441 : vector<16x16xf32>
    %cst_277 = arith.constant 0.000000e+00 : f32
    %565 = vector.broadcast %cst_277 : f32 to vector<16x16xf32>
    %566 = arith.addf %564, %565 : vector<16x16xf32>
    %c15_278 = arith.constant 15 : index
    %c0_279 = arith.constant 0 : index
    %c0_280 = arith.constant 0 : index
    %567 = vector.load %arg4[%c15_278, %c0_279, %c0_280] : memref<16x16x16xf32, #tpu.memory_space<vmem>>, vector<1x16x16xf32>
    %568 = vector.shape_cast %567 : vector<1x16x16xf32> to vector<16x16xf32>
    %569 = vector.shape_cast %566 : vector<16x16xf32> to vector<1x16x16xf32>
    tpu.vector_store %arg4[%c15_278, %c0_279, %c0_280], %569 {strides = array<i32>} : memref<16x16x16xf32, #tpu.memory_space<vmem>>, vector<1x16x16xf32>,
    %c0_281 = arith.constant 0 : index
    %c0_282 = arith.constant 0 : index
    %c0_283 = arith.constant 0 : index
    %c0_284 = arith.constant 0 : index
    %570 = vector.load %arg2[%c0_281, %c0_282, %c0_283, %c0_284] : memref<1x5x16x16xf32, #tpu.memory_space<vmem>>, vector<1x5x16x16xf32>
    %571 = vector.shape_cast %570 : vector<1x5x16x16xf32> to vector<5x16x16xf32>
    %c0_285 = arith.constant 0 : index
    %c0_286 = arith.constant 0 : index
    %c0_287 = arith.constant 0 : index
    %572 = vector.load %arg5[%c0_285, %c0_286, %c0_287] : memref<5x16x16xf32, #tpu.memory_space<vmem>>, vector<5x16x16xf32>
    tpu.vector_store %arg5[%c0_285, %c0_286, %c0_287], %571 {strides = array<i32>} : memref<5x16x16xf32, #tpu.memory_space<vmem>>, vector<5x16x16xf32>,
    %c0_i32 = arith.constant 0 : i32
    %c2_i32 = arith.constant 2 : i32
    %573 = arith.addi %c0_i32, %c2_i32 : i32
    %c1_i32 = arith.constant 1 : i32
    scf.for %arg6 = %c0_i32 to %573 step %c1_i32  : i32 {
      %c0_295 = arith.constant 0 : index
      %c0_296 = arith.constant 0 : index
      %c0_297 = arith.constant 0 : index
      %578 = vector.load %arg5[%c0_295, %c0_296, %c0_297] : memref<5x16x16xf32, #tpu.memory_space<vmem>>, vector<5x16x16xf32>
      %579 = vector.extract_strided_slice %578 {offsets = [0, 0, 0], sizes = [5, 1, 16], strides = [1, 1, 1]} : vector<5x16x16xf32> to vector<5x1x16xf32>
      %580 = vector.shape_cast %579 : vector<5x1x16xf32> to vector<5x1x16xf32>
      %581 = vector.broadcast %580 : vector<5x1x16xf32> to vector<5x2x16xf32>
      %582 = vector.extract_strided_slice %578 {offsets = [0, 15, 0], sizes = [5, 1, 16], strides = [1, 1, 1]} : vector<5x16x16xf32> to vector<5x1x16xf32>
      %583 = vector.shape_cast %582 : vector<5x1x16xf32> to vector<5x1x16xf32>
      %584 = vector.broadcast %583 : vector<5x1x16xf32> to vector<5x2x16xf32>
      %585 = tpu.concatenate %581, %578, %584 in 1 : vector<5x2x16xf32>, vector<5x16x16xf32>, vector<5x2x16xf32> -> vector<5x20x16xf32>
      %586 = vector.extract_strided_slice %585 {offsets = [0, 0, 0], sizes = [5, 20, 1], strides = [1, 1, 1]} : vector<5x20x16xf32> to vector<5x20x1xf32>
      %587 = vector.shape_cast %586 : vector<5x20x1xf32> to vector<5x20x1xf32>
      %588 = vector.broadcast %587 : vector<5x20x1xf32> to vector<5x20x2xf32>
      %589 = vector.extract_strided_slice %585 {offsets = [0, 0, 15], sizes = [5, 20, 1], strides = [1, 1, 1]} : vector<5x20x16xf32> to vector<5x20x1xf32>
      %590 = vector.shape_cast %589 : vector<5x20x1xf32> to vector<5x20x1xf32>
      %591 = vector.broadcast %590 : vector<5x20x1xf32> to vector<5x20x2xf32>
      %592 = tpu.concatenate %588, %585, %591 in 2 : vector<5x20x2xf32>, vector<5x20x16xf32>, vector<5x20x2xf32> -> vector<5x20x20xf32>
      %593 = vector.extract_strided_slice %592 {offsets = [0, 1, 1], sizes = [5, 16, 16], strides = [1, 1, 1]} : vector<5x20x20xf32> to vector<5x16x16xf32>
      %c0_298 = arith.constant 0 : index
      %c0_299 = arith.constant 0 : index
      %c0_300 = arith.constant 0 : index
      %594 = vector.load %arg4[%c0_298, %c0_299, %c0_300] : memref<16x16x16xf32, #tpu.memory_space<vmem>>, vector<1x16x16xf32>
      %595 = vector.shape_cast %594 : vector<1x16x16xf32> to vector<16x16xf32>
      %596 = vector.shape_cast %595 : vector<16x16xf32> to vector<1x16x16xf32>
      %597 = vector.broadcast %596 : vector<1x16x16xf32> to vector<5x16x16xf32>
      %598 = arith.mulf %593, %597 : vector<5x16x16xf32>
      %599 = vector.extract_strided_slice %592 {offsets = [0, 1, 2], sizes = [5, 16, 16], strides = [1, 1, 1]} : vector<5x20x20xf32> to vector<5x16x16xf32>
      %c1_301 = arith.constant 1 : index
      %c0_302 = arith.constant 0 : index
      %c0_303 = arith.constant 0 : index
      %600 = vector.load %arg4[%c1_301, %c0_302, %c0_303] : memref<16x16x16xf32, #tpu.memory_space<vmem>>, vector<1x16x16xf32>
      %601 = vector.shape_cast %600 : vector<1x16x16xf32> to vector<16x16xf32>
      %602 = vector.shape_cast %601 : vector<16x16xf32> to vector<1x16x16xf32>
      %603 = vector.broadcast %602 : vector<1x16x16xf32> to vector<5x16x16xf32>
      %604 = arith.mulf %599, %603 : vector<5x16x16xf32>
      %605 = arith.addf %598, %604 : vector<5x16x16xf32>
      %606 = vector.extract_strided_slice %592 {offsets = [0, 1, 3], sizes = [5, 16, 16], strides = [1, 1, 1]} : vector<5x20x20xf32> to vector<5x16x16xf32>
      %c2_304 = arith.constant 2 : index
      %c0_305 = arith.constant 0 : index
      %c0_306 = arith.constant 0 : index
      %607 = vector.load %arg4[%c2_304, %c0_305, %c0_306] : memref<16x16x16xf32, #tpu.memory_space<vmem>>, vector<1x16x16xf32>
      %608 = vector.shape_cast %607 : vector<1x16x16xf32> to vector<16x16xf32>
      %609 = vector.shape_cast %608 : vector<16x16xf32> to vector<1x16x16xf32>
      %610 = vector.broadcast %609 : vector<1x16x16xf32> to vector<5x16x16xf32>
      %611 = arith.mulf %606, %610 : vector<5x16x16xf32>
      %612 = arith.addf %605, %611 : vector<5x16x16xf32>
      %613 = vector.extract_strided_slice %592 {offsets = [0, 2, 1], sizes = [5, 16, 16], strides = [1, 1, 1]} : vector<5x20x20xf32> to vector<5x16x16xf32>
      %c3_307 = arith.constant 3 : index
      %c0_308 = arith.constant 0 : index
      %c0_309 = arith.constant 0 : index
      %614 = vector.load %arg4[%c3_307, %c0_308, %c0_309] : memref<16x16x16xf32, #tpu.memory_space<vmem>>, vector<1x16x16xf32>
      %615 = vector.shape_cast %614 : vector<1x16x16xf32> to vector<16x16xf32>
      %616 = vector.shape_cast %615 : vector<16x16xf32> to vector<1x16x16xf32>
      %617 = vector.broadcast %616 : vector<1x16x16xf32> to vector<5x16x16xf32>
      %618 = arith.mulf %613, %617 : vector<5x16x16xf32>
      %619 = arith.addf %612, %618 : vector<5x16x16xf32>
      %620 = vector.extract_strided_slice %592 {offsets = [0, 2, 3], sizes = [5, 16, 16], strides = [1, 1, 1]} : vector<5x20x20xf32> to vector<5x16x16xf32>
      %c4_310 = arith.constant 4 : index
      %c0_311 = arith.constant 0 : index
      %c0_312 = arith.constant 0 : index
      %621 = vector.load %arg4[%c4_310, %c0_311, %c0_312] : memref<16x16x16xf32, #tpu.memory_space<vmem>>, vector<1x16x16xf32>
      %622 = vector.shape_cast %621 : vector<1x16x16xf32> to vector<16x16xf32>
      %623 = vector.shape_cast %622 : vector<16x16xf32> to vector<1x16x16xf32>
      %624 = vector.broadcast %623 : vector<1x16x16xf32> to vector<5x16x16xf32>
      %625 = arith.mulf %620, %624 : vector<5x16x16xf32>
      %626 = arith.addf %619, %625 : vector<5x16x16xf32>
      %627 = vector.extract_strided_slice %592 {offsets = [0, 3, 1], sizes = [5, 16, 16], strides = [1, 1, 1]} : vector<5x20x20xf32> to vector<5x16x16xf32>
      %c5_313 = arith.constant 5 : index
      %c0_314 = arith.constant 0 : index
      %c0_315 = arith.constant 0 : index
      %628 = vector.load %arg4[%c5_313, %c0_314, %c0_315] : memref<16x16x16xf32, #tpu.memory_space<vmem>>, vector<1x16x16xf32>
      %629 = vector.shape_cast %628 : vector<1x16x16xf32> to vector<16x16xf32>
      %630 = vector.shape_cast %629 : vector<16x16xf32> to vector<1x16x16xf32>
      %631 = vector.broadcast %630 : vector<1x16x16xf32> to vector<5x16x16xf32>
      %632 = arith.mulf %627, %631 : vector<5x16x16xf32>
      %633 = arith.addf %626, %632 : vector<5x16x16xf32>
      %634 = vector.extract_strided_slice %592 {offsets = [0, 3, 2], sizes = [5, 16, 16], strides = [1, 1, 1]} : vector<5x20x20xf32> to vector<5x16x16xf32>
      %c6_316 = arith.constant 6 : index
      %c0_317 = arith.constant 0 : index
      %c0_318 = arith.constant 0 : index
      %635 = vector.load %arg4[%c6_316, %c0_317, %c0_318] : memref<16x16x16xf32, #tpu.memory_space<vmem>>, vector<1x16x16xf32>
      %636 = vector.shape_cast %635 : vector<1x16x16xf32> to vector<16x16xf32>
      %637 = vector.shape_cast %636 : vector<16x16xf32> to vector<1x16x16xf32>
      %638 = vector.broadcast %637 : vector<1x16x16xf32> to vector<5x16x16xf32>
      %639 = arith.mulf %634, %638 : vector<5x16x16xf32>
      %640 = arith.addf %633, %639 : vector<5x16x16xf32>
      %641 = vector.extract_strided_slice %592 {offsets = [0, 3, 3], sizes = [5, 16, 16], strides = [1, 1, 1]} : vector<5x20x20xf32> to vector<5x16x16xf32>
      %c7_319 = arith.constant 7 : index
      %c0_320 = arith.constant 0 : index
      %c0_321 = arith.constant 0 : index
      %642 = vector.load %arg4[%c7_319, %c0_320, %c0_321] : memref<16x16x16xf32, #tpu.memory_space<vmem>>, vector<1x16x16xf32>
      %643 = vector.shape_cast %642 : vector<1x16x16xf32> to vector<16x16xf32>
      %644 = vector.shape_cast %643 : vector<16x16xf32> to vector<1x16x16xf32>
      %645 = vector.broadcast %644 : vector<1x16x16xf32> to vector<5x16x16xf32>
      %646 = arith.mulf %641, %645 : vector<5x16x16xf32>
      %647 = arith.addf %640, %646 : vector<5x16x16xf32>
      %648 = vector.extract_strided_slice %592 {offsets = [0, 0, 0], sizes = [5, 16, 16], strides = [1, 1, 1]} : vector<5x20x20xf32> to vector<5x16x16xf32>
      %c8_322 = arith.constant 8 : index
      %c0_323 = arith.constant 0 : index
      %c0_324 = arith.constant 0 : index
      %649 = vector.load %arg4[%c8_322, %c0_323, %c0_324] : memref<16x16x16xf32, #tpu.memory_space<vmem>>, vector<1x16x16xf32>
      %650 = vector.shape_cast %649 : vector<1x16x16xf32> to vector<16x16xf32>
      %651 = vector.shape_cast %650 : vector<16x16xf32> to vector<1x16x16xf32>
      %652 = vector.broadcast %651 : vector<1x16x16xf32> to vector<5x16x16xf32>
      %653 = arith.mulf %648, %652 : vector<5x16x16xf32>
      %654 = arith.addf %647, %653 : vector<5x16x16xf32>
      %655 = vector.extract_strided_slice %592 {offsets = [0, 0, 2], sizes = [5, 16, 16], strides = [1, 1, 1]} : vector<5x20x20xf32> to vector<5x16x16xf32>
      %c9_325 = arith.constant 9 : index
      %c0_326 = arith.constant 0 : index
      %c0_327 = arith.constant 0 : index
      %656 = vector.load %arg4[%c9_325, %c0_326, %c0_327] : memref<16x16x16xf32, #tpu.memory_space<vmem>>, vector<1x16x16xf32>
      %657 = vector.shape_cast %656 : vector<1x16x16xf32> to vector<16x16xf32>
      %658 = vector.shape_cast %657 : vector<16x16xf32> to vector<1x16x16xf32>
      %659 = vector.broadcast %658 : vector<1x16x16xf32> to vector<5x16x16xf32>
      %660 = arith.mulf %655, %659 : vector<5x16x16xf32>
      %661 = arith.addf %654, %660 : vector<5x16x16xf32>
      %662 = vector.extract_strided_slice %592 {offsets = [0, 0, 4], sizes = [5, 16, 16], strides = [1, 1, 1]} : vector<5x20x20xf32> to vector<5x16x16xf32>
      %c10_328 = arith.constant 10 : index
      %c0_329 = arith.constant 0 : index
      %c0_330 = arith.constant 0 : index
      %663 = vector.load %arg4[%c10_328, %c0_329, %c0_330] : memref<16x16x16xf32, #tpu.memory_space<vmem>>, vector<1x16x16xf32>
      %664 = vector.shape_cast %663 : vector<1x16x16xf32> to vector<16x16xf32>
      %665 = vector.shape_cast %664 : vector<16x16xf32> to vector<1x16x16xf32>
      %666 = vector.broadcast %665 : vector<1x16x16xf32> to vector<5x16x16xf32>
      %667 = arith.mulf %662, %666 : vector<5x16x16xf32>
      %668 = arith.addf %661, %667 : vector<5x16x16xf32>
      %669 = vector.extract_strided_slice %592 {offsets = [0, 2, 0], sizes = [5, 16, 16], strides = [1, 1, 1]} : vector<5x20x20xf32> to vector<5x16x16xf32>
      %c11_331 = arith.constant 11 : index
      %c0_332 = arith.constant 0 : index
      %c0_333 = arith.constant 0 : index
      %670 = vector.load %arg4[%c11_331, %c0_332, %c0_333] : memref<16x16x16xf32, #tpu.memory_space<vmem>>, vector<1x16x16xf32>
      %671 = vector.shape_cast %670 : vector<1x16x16xf32> to vector<16x16xf32>
      %672 = vector.shape_cast %671 : vector<16x16xf32> to vector<1x16x16xf32>
      %673 = vector.broadcast %672 : vector<1x16x16xf32> to vector<5x16x16xf32>
      %674 = arith.mulf %669, %673 : vector<5x16x16xf32>
      %675 = arith.addf %668, %674 : vector<5x16x16xf32>
      %676 = vector.extract_strided_slice %592 {offsets = [0, 2, 4], sizes = [5, 16, 16], strides = [1, 1, 1]} : vector<5x20x20xf32> to vector<5x16x16xf32>
      %c12_334 = arith.constant 12 : index
      %c0_335 = arith.constant 0 : index
      %c0_336 = arith.constant 0 : index
      %677 = vector.load %arg4[%c12_334, %c0_335, %c0_336] : memref<16x16x16xf32, #tpu.memory_space<vmem>>, vector<1x16x16xf32>
      %678 = vector.shape_cast %677 : vector<1x16x16xf32> to vector<16x16xf32>
      %679 = vector.shape_cast %678 : vector<16x16xf32> to vector<1x16x16xf32>
      %680 = vector.broadcast %679 : vector<1x16x16xf32> to vector<5x16x16xf32>
      %681 = arith.mulf %676, %680 : vector<5x16x16xf32>
      %682 = arith.addf %675, %681 : vector<5x16x16xf32>
      %683 = vector.extract_strided_slice %592 {offsets = [0, 4, 0], sizes = [5, 16, 16], strides = [1, 1, 1]} : vector<5x20x20xf32> to vector<5x16x16xf32>
      %c13_337 = arith.constant 13 : index
      %c0_338 = arith.constant 0 : index
      %c0_339 = arith.constant 0 : index
      %684 = vector.load %arg4[%c13_337, %c0_338, %c0_339] : memref<16x16x16xf32, #tpu.memory_space<vmem>>, vector<1x16x16xf32>
      %685 = vector.shape_cast %684 : vector<1x16x16xf32> to vector<16x16xf32>
      %686 = vector.shape_cast %685 : vector<16x16xf32> to vector<1x16x16xf32>
      %687 = vector.broadcast %686 : vector<1x16x16xf32> to vector<5x16x16xf32>
      %688 = arith.mulf %683, %687 : vector<5x16x16xf32>
      %689 = arith.addf %682, %688 : vector<5x16x16xf32>
      %690 = vector.extract_strided_slice %592 {offsets = [0, 4, 2], sizes = [5, 16, 16], strides = [1, 1, 1]} : vector<5x20x20xf32> to vector<5x16x16xf32>
      %c14_340 = arith.constant 14 : index
      %c0_341 = arith.constant 0 : index
      %c0_342 = arith.constant 0 : index
      %691 = vector.load %arg4[%c14_340, %c0_341, %c0_342] : memref<16x16x16xf32, #tpu.memory_space<vmem>>, vector<1x16x16xf32>
      %692 = vector.shape_cast %691 : vector<1x16x16xf32> to vector<16x16xf32>
      %693 = vector.shape_cast %692 : vector<16x16xf32> to vector<1x16x16xf32>
      %694 = vector.broadcast %693 : vector<1x16x16xf32> to vector<5x16x16xf32>
      %695 = arith.mulf %690, %694 : vector<5x16x16xf32>
      %696 = arith.addf %689, %695 : vector<5x16x16xf32>
      %697 = vector.extract_strided_slice %592 {offsets = [0, 4, 4], sizes = [5, 16, 16], strides = [1, 1, 1]} : vector<5x20x20xf32> to vector<5x16x16xf32>
      %c15_343 = arith.constant 15 : index
      %c0_344 = arith.constant 0 : index
      %c0_345 = arith.constant 0 : index
      %698 = vector.load %arg4[%c15_343, %c0_344, %c0_345] : memref<16x16x16xf32, #tpu.memory_space<vmem>>, vector<1x16x16xf32>
      %699 = vector.shape_cast %698 : vector<1x16x16xf32> to vector<16x16xf32>
      %700 = vector.shape_cast %699 : vector<16x16xf32> to vector<1x16x16xf32>
      %701 = vector.broadcast %700 : vector<1x16x16xf32> to vector<5x16x16xf32>
      %702 = arith.mulf %697, %701 : vector<5x16x16xf32>
      %703 = arith.addf %696, %702 : vector<5x16x16xf32>
      %c0_346 = arith.constant 0 : index
      %c0_347 = arith.constant 0 : index
      %c0_348 = arith.constant 0 : index
      %704 = vector.load %arg5[%c0_346, %c0_347, %c0_348] : memref<5x16x16xf32, #tpu.memory_space<vmem>>, vector<5x16x16xf32>
      tpu.vector_store %arg5[%c0_346, %c0_347, %c0_348], %703 {strides = array<i32>} : memref<5x16x16xf32, #tpu.memory_space<vmem>>, vector<5x16x16xf32>,
    }
    %c0_288 = arith.constant 0 : index
    %c0_289 = arith.constant 0 : index
    %c0_290 = arith.constant 0 : index
    %574 = vector.load %arg5[%c0_288, %c0_289, %c0_290] : memref<5x16x16xf32, #tpu.memory_space<vmem>>, vector<5x16x16xf32>
    %c0_291 = arith.constant 0 : index
    %c0_292 = arith.constant 0 : index
    %c0_293 = arith.constant 0 : index
    %c0_294 = arith.constant 0 : index
    %575 = vector.load %arg3[%c0_291, %c0_292, %c0_293, %c0_294] : memref<1x5x16x16xf32, #tpu.memory_space<vmem>>, vector<1x5x16x16xf32>
    %576 = vector.shape_cast %575 : vector<1x5x16x16xf32> to vector<5x16x16xf32>
    %577 = vector.shape_cast %574 : vector<5x16x16xf32> to vector<1x5x16x16xf32>
    tpu.vector_store %arg3[%c0_291, %c0_292, %c0_293, %c0_294], %577 {strides = array<i32>} : memref<1x5x16x16xf32, #tpu.memory_space<vmem>>, vector<1x5x16x16xf32>,
    return
  }
  func.func @transform_0(%arg0: i32) -> (i32, i32, i32, i32) {
    %c0_i32 = arith.constant 0 : i32
    %c0_i32_0 = arith.constant 0 : i32
    %c0_i32_1 = arith.constant 0 : i32
    %c0_i32_2 = arith.constant 0 : i32
    return %arg0, %c0_i32, %c0_i32_0, %c0_i32_1 : i32, i32, i32, i32
  }
  func.func @transform_1(%arg0: i32) -> (i32, i32, i32, i32) {
    %c0_i32 = arith.constant 0 : i32
    %c0_i32_0 = arith.constant 0 : i32
    %c0_i32_1 = arith.constant 0 : i32
    %c0_i32_2 = arith.constant 0 : i32
    return %arg0, %c0_i32, %c0_i32_0, %c0_i32_1 : i32, i32, i32, i32
  }
  func.func @transform_2(%arg0: i32) -> (i32, i32, i32, i32) {
    %c0_i32 = arith.constant 0 : i32
    %c0_i32_0 = arith.constant 0 : i32
    %c0_i32_1 = arith.constant 0 : i32
    %c0_i32_2 = arith.constant 0 : i32
    return %arg0, %c0_i32, %c0_i32_0, %c0_i32_1 : i32, i32, i32, i32
  }
}

</mosaic_0001>

<bundles_post_ra>
// kernel: tpu_custom_call.1
= control target key start
LH: loop header
LB: loop body
LE: loop exit
PB: predicated region body
PF: predicated region fallthrough
CT: control target
= control target key end

     0   :  { %7 = vsyncpa [#allocation5], 0  ;;  %s12921_s0 = inlined_call_operand.hbm [shape: f32[2,3,16,16], index: 0, kind: input, shape index: {}]   ;;  %s12922_s1 = inlined_call_operand.hbm [shape: f32[2,5,16,16], index: 1, kind: input, shape index: {}]   ;;  %s12923_s2 = inlined_call_operand.hbm [shape: f32[2,5,16,16], index: 2, kind: output, shape index: {}]  }
   0x1   :  { %9 = vsyncpa [#allocation5 + $0x1], 0 }
   0x2   :  { %10 = vsyncpa [#allocation8], 0 }
   0x3   :  { %12 = vsyncpa [#allocation8 + $0x1], 0 }
   0x4   :  { %13 = vsyncpa [#allocation6], 0 }
   0x5   :  { %15 = vsyncpa [#allocation6 + $0x1], 0  ;;  %s7824_s9 = smov 0   ;;  %s7826_s10 = smov 0  }
   0x6   :  { %s7828_s11 = smov 0   ;;  %s7830_s12 = smov 0  }
   0x7 LB: > { %s7845_s13 = sadd.s32 4294967295, %s7780_s12   ;;  %s7414_s14 = sadd.s32 4294967294, %s7780_s12   ;;  %s7780_s12 = sphi %s7830_s12, %s13702_s12   ;;  %s7776_s11 = sphi %s7828_s11, %s13701_s11   ;;  %s7772_s10 = sphi %s7826_s10, %s13700_s10   ;;  %s7768_s9 = sphi %s7824_s9, %s13699_s9  }
   0x8   : > { %s7849_s15 = sadd.s32 1, %s7780_s12   ;;  %s28_s16 = sadd.s32 1, %s7776_s11 }
   0x9   : > { %s25_s17 = ssub.s32 %s7780_s12, %s7849_s15  ;;  %p35_p0 = scmp.ne.s32.totalorder %s7776_s11, %s7772_s10 }
   0xa   : > { %p26_p1 = scmp.eq.s32.totalorder %s25_s17, 0  ;;  %p36_p2 = scmp.eq.s32.totalorder %s7780_s12, 0 }
   0xb   : > { %p41_p3 = scmp.ne.s32.totalorder %s7772_s10, %s7768_s9  ;;  %p42_p4 = scmp.eq.s32.totalorder %s7845_s13, 0 }
   0xc   : > { %s7861_s18 = scalar_select %p26_p1, %s7776_s11, %s28_s16  }
   0xd   : > { %p37_p5 = por %p36_p2, %p35_p0  ;;  %p7863_p6 = por %p42_p4, %p41_p3 }
   0xe   : > { %p91_p7 = scmp.eq.s32.totalorder %s7845_s13, 1  ;;  %p97_p8 = scmp.eq.s32.totalorder %s7414_s14, 1 }
   0xf   : > { %p7416_p9 = scmp.ge.s32.totalorder %s7780_s12, 2  ;;  %p7447_p10 = scmp.lt.s32.totalorder %s7780_s12, 2 }
  0x10   : > { %p7870_p11 = por %p91_p7, %p35_p0  ;;  %p7874_p12 = por %p97_p8, %p41_p3 }
  0x11   : > { %s7879_s22 = sand.u32 1, %s7776_s11   ;;  %s7424_s23 = smul.u32 48, %s7780_s12 }
  0x12   : > { %s7423_s24 = smul.u32 48, %s7879_s22  ;;  %p7886_p13 = pnand %p7447_p10, %p37_p5 }
  0x13   : > { %s126_s27 = scalar_lea.hbm %s12921_s0, %s7424_s23  ;;  %s118_s4 = scalar_lea.sflag [#allocation5], %s7879_s22 }
  0x14   : > { %s127_s29 = sshll.u32 %s126_s27, 4  ;;  %s121_s30 = scalar_lea.vmem [#allocation4], %s7423_s24  ;;  %s128_s29 = int_to_ptr.hbm [resolvable:$true] %s127_s29 }
  0x15   : > { %s129_s3 = sshll.u32 %s121_s30, 4  ;;  %s7646_s5 = sshra.s32 %s128_s29, 4  ;;  %s130_s3 = int_to_ptr.vmem [resolvable:$true] %s129_s3  ;;  %s7647_s5 = int_to_ptr.hbm [resolvable:$true] %s7646_s5 }
  0x16   : > { %s7648_s6 = scalar_lea.hbm %s7647_s5, 48  ;;  %p7650_p1 = pneg %p7886_p13 }
  0x17   : > { %p7649_p0 = scmp.ne.s32.totalorder %s7647_s5, %s7648_s6  ;;  %s7653_s14 = scalar_lea.hbm %s12921_s0, 96 }
  0x18   : > { %p7654_p4 = scmp.lt.s32.totalorder %s7647_s5, %s12921_s0  ;;  %p7655_p5 = scmp.lt.s32.totalorder %s7653_s14, %s7648_s6 }
  0x19   : > { %p7651_p2 = pnand %p7650_p1, %p7649_p0 }
  0x1a   : > { %p7656_p7 = por %p7655_p5, %p7654_p4 }
  0x1b   : > { %p7652_p3 = pneg %p7651_p2 }
  0x1d   : > { %p7657_p8 = pnand %p7656_p7, %p7652_p3 }
  0x1f   : > { %7660 = shalt.err (!%p7657_p8)
}
  0x20   : > { %s12924_s23 = smov 128   ;;  %s7787_s24 = smov 8  }
  0x21   : > { %7439 = dma.hbm_to_vmem [thread:$0]  (!%p7886_p13), %s128_s29, 768, %s130_s3, %s118_s4, %s12924_s23, %s12924_s23, %s7787_s24  }
  0x22   : > { %p7419_p10 = scmp.ge.s32.totalorder %s7780_s12, 1  ;;  %p159_p0 = scmp.lt.s32.totalorder %s7780_s12, 3 }
  0x23   : > { %s7425_s25 = smul.u32 80, %s7879_s22  ;;  %s140_s16 = scalar_lea.sflag [#allocation8], %s7879_s22 }
  0x24   : > { %p7910_p2 = pnand %p7419_p10, %p159_p0  ;;  %s7426_s27 = smul.u32 80, %s7780_s12 }
  0x25   : > { %s143_s7 = scalar_lea.vmem [#allocation7], %s7425_s25  ;;  %s7683_s23 = scalar_lea.hbm %s12922_s1, 160 }
  0x26   : > { %s148_s6 = scalar_lea.hbm %s12922_s1, %s7426_s27  ;;  %s151_s8 = sshll.u32 %s143_s7, 4  ;;  %s152_s8 = int_to_ptr.vmem [resolvable:$true] %s151_s8 }
  0x27   : > { %s149_s14 = sshll.u32 %s148_s6, 4  ;;  %s150_s14 = int_to_ptr.hbm [resolvable:$true] %s149_s14 }
  0x28   : > { %s7676_s29 = sshra.s32 %s150_s14, 4  ;;  %s7677_s29 = int_to_ptr.hbm [resolvable:$true] %s7676_s29 }
  0x29   : > { %s7678_s3 = scalar_lea.hbm %s7677_s29, 80  ;;  %p7684_p7 = scmp.lt.s32.totalorder %s7677_s29, %s12922_s1 }
  0x2a   : > { %p7679_p3 = scmp.ne.s32.totalorder %s7677_s29, %s7678_s3  ;;  %p7685_p8 = scmp.lt.s32.totalorder %s7683_s23, %s7678_s3 }
  0x2c   : > { %p7681_p4 = pnand %p7679_p3, %p7650_p1  ;;  %p7686_p10 = por %p7685_p8, %p7684_p7 }
  0x2e   : > { %p7682_p5 = pneg %p7681_p4 }
  0x30   : > { %p7687_p0 = pnand %p7686_p10, %p7682_p5 }
  0x32   : > { %7690 = shalt.err (!%p7687_p0)
}
  0x33   : > { %s13074_s22 = smov 128   ;;  %163 = sbr.rel (%p7910_p2) target bundleno = 7336 (0x1ca8), region = 28 }
  0x34   : > { %7442 = dma.hbm_to_vmem [thread:$0]  (!%p7886_p13), %s150_s14, 1280, %s152_s8, %s140_s16, %s13074_s22, %s13074_s22, %s7787_s24  }
  0x38   : > { %s7936_s25 = sand.u32 1, %s7772_s10  }
  0x39   : > { %s7427_s5 = smul.u32 48, %s7936_s25  ;;  %s166_s23 = scalar_lea.sflag [#allocation5], %s7936_s25 }
  0x3b   : > { %s7940_s6 = scalar_lea.vmem [#allocation4], %s7427_s5 }
  0x3c   : > { %7755 = dma.done.wait (%p7863_p6), %s166_s23, 768  }
  0x3d   : > { %7757 = vsyncadd (%p7863_p6), %s166_s23, 4294966528  ;;  %s7428_s28 = smul.u32 80, %s7936_s25  ;;  %s176_s24 = scalar_lea.sflag [#allocation8], %s7936_s25 }
  0x3f   : > { %s7950_s26 = scalar_lea.vmem [#allocation7], %s7428_s28 }
  0x40   : > { %7759 = dma.done.wait (%p7863_p6), %s176_s24, 1280  }
  0x41   : > { %7761 = vsyncadd (%p7863_p6), %s176_s24, 4294966016  ;;  %v7788_v0 = vmov 0   ;;  %vm2817_vm0 = vcmask 130048   ;;  %v5118_v1 = vld [vmem:[%s7950_s26] sm:$0xff]  ;;  %v5119_v2 = vld [vmem:[%s7950_s26 + $0x8] sm:$0xff]  ;;  %vm224_vm1 = vcmask 1041408  }
  0x42   : > { %7514 = vset.pattern.permute.xlu2 %v7788_v0  ;;  %7513 = vset.pattern.permute.xlu1 %v7788_v0  ;;  %v5120_v3 = vld [vmem:[%s7950_s26 + $0x10] sm:$0xff]  ;;  %v5121_v4 = vld [vmem:[%s7950_s26 + $0x18] sm:$0xff]  ;;  %5128 = vst.msk [vmem:[#allocation3] sm:$0xff] %vm2817_vm0, %v5118_v1  ;;  %v5122_v5 = vld [vmem:[%s7950_s26 + $0x20] sm:$0xff]  ;;  %v7789_v38 = vmov 15   ;;  %s7790_s19 = smov 2  }
  0x43   : > { %7512 = vset.pattern.permute.xlu0 %v7788_v0  ;;  %5129 = vst.msk [vmem:[#allocation3 + $0x8] sm:$0xff] %vm2817_vm0, %v5119_v2  ;;  %v5123_v6 = vld [vmem:[%s7950_s26 + $0x28] sm:$0xff]  ;;  %v208_v7 = vld [vmem:[%s7940_s6 + $0x10] sm:$0xff]  ;;  %v209_v8 = vld [vmem:[%s7940_s6 + $0x18] sm:$0xff]  ;;  %vm12991_vm2 = vcmask 15360   ;;  %vm12990_vm3 = vcmask 146432  }
  0x44   : > { %5130 = vst.msk [vmem:[#allocation3 + $0x10] sm:$0xff] %vm2817_vm0, %v5120_v3  ;;  %v5124_v9 = vld [vmem:[%s7950_s26 + $0x30] sm:$0xff]  ;;  %v7969_v10 = vrot.slane %v208_v7, 6  ;;  %v7971_v11 = vrot.slane %v209_v8, 6  ;;  %v207_v12 = vld [vmem:[%s7940_s6 + $0x8] sm:$0xff]  ;;  %v206_v13 = vld [vmem:[%s7940_s6] sm:$0xff] }
  0x45   : > { %5131 = vst.msk [vmem:[#allocation3 + $0x18] sm:$0xff] %vm2817_vm0, %v5121_v4  ;;  %v5125_v14 = vld [vmem:[%s7950_s26 + $0x38] sm:$0xff]  ;;  %v215_v15 = vperm.slane %v207_v12, 7  ;;  %v7977_v16 = vrot.slane %v207_v12, 6  ;;  %v212_v17 = vperm.slane %v206_v13, 0  ;;  %v7979_v18 = vrot.slane %v206_v13, 6 }
  0x46   : > { %13075 = vst [vmem:[#allocation13_spill] sm:$0xff] %v7969_v10  ;;  %v5126_v19 = vld [vmem:[%s7950_s26 + $0x40] sm:$0xff]  ;;  %v7986_v20 = vsel %vm224_vm1, %v7969_v10, %v7971_v11  ;;  %v5127_v21 = vld [vmem:[%s7950_s26 + $0x48] sm:$0xff]  ;;  %v216_v24 = vperm.slane %v209_v8, 7  ;;  %v213_v25 = vperm.slane %v208_v7, 0  ;;  %s7791_s7 = smov 127  }
  0x47   : > { %13076 = vst [vmem:[#allocation14_spill] sm:$0xff] %v7971_v11  ;;  %266 = vperm.xlu2 %7514, %v7986_v20   ;;  %v243_v22 = vsel %vm224_vm1, %v7977_v16, %v215_v15  ;;  %v240_v23 = vsel %vm224_vm1, %v212_v17, %v7979_v18  ;;  %v8005_v28 = vsel %vm224_vm1, %v7979_v18, %v7977_v16  ;;  %v211_v29 = vld [vmem:[%s7940_s6 + $0x28] sm:$0xff]  ;;  %v210_v30 = vld [vmem:[%s7940_s6 + $0x20] sm:$0xff]  ;;  %s7792_s8 = smov 126   ;;  %vm452_vm4 = vcmask 1046528   ;;  %s7793_s14 = smov 1  }
  0x48   : > { %5132 = vst.msk [vmem:[#allocation3 + $0x20] sm:$0xff] %vm2817_vm0, %v5122_v5  ;;  %257 = vperm.xlu1 %7513, %v243_v22   ;;  %248 = vperm.xlu0 %7512, %v240_v23   ;;  %v244_v26 = vsel %vm224_vm1, %v7971_v11, %v216_v24  ;;  %v241_v27 = vsel %vm224_vm1, %v213_v25, %v7969_v10  ;;  %v217_v31 = vperm.slane %v211_v29, 7  ;;  %v8010_v32 = vrot.slane %v211_v29, 6  ;;  %s7794_s16 = smov 125   ;;  %s7795_s29 = smov 3  }
  0x49   : > { %13077 = vst [vmem:[#allocation15_spill] sm:$0xff] %v7977_v16  ;;  %v8012_v33 = vrot.slane %v210_v30, 6  ;;  %v214_v34 = vperm.slane %v210_v30, 0  ;;  %vm522_vm5 = vcmask 1045504   ;;  %vm628_vm6 = vcmask 1040384   ;;  %s7796_s3 = smov 4  }
  0x4a   : > { %13078 = vst [vmem:[#allocation16_spill] sm:$0xff] %v7979_v18  ;;  %v245_v35 = vsel %vm224_vm1, %v8010_v32, %v217_v31  ;;  %vm12992_vm7 = vcmask 1044480   ;;  %vm2118_vm8 = vcmask 1042432   ;;  %s7797_s4 = smov 124   ;;  %s11521_s17 = scalar_lea.vmem [#allocation9], %s7428_s28 }
  0x4b   : > { %5133 = vst.msk [vmem:[#allocation3 + $0x28] sm:$0xff] %vm2817_vm0, %v5123_v6  ;;  %v8019_v36 = vsel %vm224_vm1, %v8012_v33, %v8010_v32  ;;  %v242_v37 = vsel %vm224_vm1, %v214_v34, %v8012_v33  ;;  %s11523_s30 = smov 0  }
  0x4c   : > { %13079 = vst [vmem:[#allocation17_spill] sm:$0xff] %v7986_v20 }
  0x4d   : > { %5134 = vst.msk [vmem:[#allocation3 + $0x30] sm:$0xff] %vm2817_vm0, %v5124_v9 }
  0x4e   : > { %5135 = vst.msk [vmem:[#allocation3 + $0x38] sm:$0xff] %vm2817_vm0, %v5125_v14 }
  0x4f   : > { %5136 = vst.msk [vmem:[#allocation3 + $0x40] sm:$0xff] %vm2817_vm0, %v5126_v19  ;;  %271 = vperm.xlu2 %7514, %v244_v26  }
  0x50   : > { %5137 = vst.msk [vmem:[#allocation3 + $0x48] sm:$0xff] %vm2817_vm0, %v5127_v21  ;;  %262 = vperm.xlu1 %7513, %v241_v27   ;;  %252 = vperm.xlu0 %7512, %v8005_v28  }
  0x51   : > { %13080 = vst [vmem:[#allocation18_spill] sm:$0xff] %v8005_v28 }
  0x52   : > { %13081 = vst [vmem:[#allocation19_spill] sm:$0xff] %v8010_v32 }
  0x53   : > { %13082 = vst [vmem:[#allocation20_spill] sm:$0xff] %v8012_v33 }
  0x54   : > { %13083 = vst [vmem:[#allocation21_spill] sm:$0xff] %v8019_v36 }
  0x57   : > { %285 = vperm.xlu2 %7514, %v245_v35  }
  0x58   : > { %280 = vperm.xlu1 %7513, %v8019_v36   ;;  %276 = vperm.xlu0 %7512, %v242_v37  }
  0x5f   : > { %7517 = vset.pattern.permute.xlu2 %v7789_v38 }
  0x60   : > { %7516 = vset.pattern.permute.xlu1 %v7789_v38  ;;  %7515 = vset.pattern.permute.xlu0 %v7789_v38 }
  0x61   : > { %297 = vperm.xlu2 %7517, %v243_v22   ;;  %293 = vperm.xlu1 %7516, %v8005_v28  }
  0x62   : > { %289 = vperm.xlu0 %7515, %v240_v23  }
  0x69   : > { %305 = vperm.xlu2 %7517, %v7986_v20   ;;  %301 = vperm.xlu1 %7516, %v241_v27  }
  0x6a   : > { %309 = vperm.xlu0 %7515, %v244_v26  }
  0x71   : > { %317 = vperm.xlu2 %7517, %v8019_v36   ;;  %313 = vperm.xlu1 %7516, %v242_v37  }
  0x72   : > { %321 = vperm.xlu0 %7515, %v245_v35  }
  0x79   : > { %326 = vrot.lane.b32.xlu2 %v8005_v28, %s7790_s19  ;;  %324 = vrot.lane.b32.xlu1 %v240_v23, %s7790_s19 }
  0x7a   : > { %328 = vrot.lane.b32.xlu0 %v243_v22, %s7790_s19 }
  0x81   : > { %332 = vrot.lane.b32.xlu2 %v7986_v20, %s7790_s19  ;;  %330 = vrot.lane.b32.xlu1 %v241_v27, %s7790_s19 }
  0x82   : > { %334 = vrot.lane.b32.xlu0 %v244_v26, %s7790_s19 }
  0x89   : > { %338 = vrot.lane.b32.xlu2 %v8019_v36, %s7790_s19  ;;  %336 = vrot.lane.b32.xlu1 %v242_v37, %s7790_s19 }
  0x8a   : > { %340 = vrot.lane.b32.xlu0 %v245_v35, %s7790_s19 }
  0xa1   : > { %v267_v39 = vpop.permute.xlu2 %266 }
  0xa9   : > { %v272_v40 = vpop.permute.xlu2 %271 }
  0xb1   : > { %v286_v41 = vpop.permute.xlu2 %285 }
  0xba   : > { %v258_v42 = vpop.permute.xlu1 %257  ;;  %v249_v43 = vpop.permute.xlu0 %248 }
  0xbb   : > { %v298_v44 = vpop.permute.xlu2 %297 }
  0xc2   : > { %v263_v45 = vpop.permute.xlu1 %262  ;;  %v253_v46 = vpop.permute.xlu0 %252 }
  0xc3   : > { %v306_v47 = vpop.permute.xlu2 %305 }
  0xca   : > { %v281_v48 = vpop.permute.xlu1 %280  ;;  %v277_v49 = vpop.permute.xlu0 %276 }
  0xcb   : > { %v318_v50 = vpop.permute.xlu2 %317 }
  0xd3   : > { %v327_v51 = vpop.permute.xlu2 %326  ;;  %v294_v52 = vpop.permute.xlu1 %293 }
  0xd4   : > { %v353_v53 = vsel %vm12991_vm2, %v253_v46, %v327_v51  ;;  %v290_v54 = vpop.permute.xlu0 %289 }
  0xd5   : > { %v8041_v55 = vsel %vm12990_vm3, %v353_v53, %v294_v52 }
  0xd6   : > { %13084 = vst [vmem:[#allocation22_spill] sm:$0xff] %v8041_v55  ;;  %382 = vrot.lane.b32.xlu2 %v8041_v55, %s7791_s7  ;;  %v454_v26 = vrot.slane %v8041_v55, 1 }
  0xdb   : > { %v333_v56 = vpop.permute.xlu2 %332  ;;  %v302_v57 = vpop.permute.xlu1 %301 }
  0xdc   : > { %v356_v58 = vsel %vm12991_vm2, %v267_v39, %v333_v56  ;;  %v310_v59 = vpop.permute.xlu0 %309 }
  0xdd   : > { %v8047_v60 = vsel %vm12990_vm3, %v356_v58, %v306_v47 }
  0xde   : > { %388 = vrot.lane.b32.xlu2 %v8047_v60, %s7791_s7  ;;  %v459_v30 = vrot.slane %v8047_v60, 1 }
  0xe3   : > { %v339_v61 = vpop.permute.xlu2 %338  ;;  %v314_v62 = vpop.permute.xlu1 %313 }
  0xe4   : > { %v359_v63 = vsel %vm12991_vm2, %v281_v48, %v339_v61  ;;  %v322_v0 = vpop.permute.xlu0 %321 }
  0xe5   : > { %v8053_v1 = vsel %vm12990_vm3, %v359_v63, %v318_v50 }
  0xe6   : > { %394 = vrot.lane.b32.xlu2 %v8053_v1, %s7791_s7  ;;  %v464_v35 = vrot.slane %v8053_v1, 1  ;;  %v534_v50 = vrot.slane %v8053_v1, 2 }
  0xeb   : > { %v325_v2 = vpop.permute.xlu1 %324 }
  0xec   : > { %v352_v3 = vsel %vm12991_vm2, %v249_v43, %v325_v2  ;;  %v329_v4 = vpop.permute.xlu0 %328 }
  0xed   : > { %v8059_v5 = vsel %vm12990_vm3, %v352_v3, %v290_v54  ;;  %v354_v6 = vsel %vm12991_vm2, %v258_v42, %v329_v4  ;;  %v630_v3 = vrot.slane %v8041_v55, 7 }
  0xee   : > { %13085 = vst [vmem:[#allocation23_spill] sm:$0xff] %v8059_v5  ;;  %v8063_v7 = vsel %vm12990_vm3, %v354_v6, %v298_v44  ;;  %418 = vrot.lane.b32.xlu2 %v8041_v55, %s7792_s8  ;;  %380 = vrot.lane.b32.xlu1 %v8059_v5, %s7791_s7  ;;  %v453_v38 = vrot.slane %v8059_v5, 1  ;;  %v523_v54 = vrot.slane %v8059_v5, 2  ;;  %v629_v2 = vrot.slane %v8059_v5, 7 }
  0xef   : > { %384 = vrot.lane.b32.xlu0 %v8063_v7, %s7791_s7  ;;  %v8100_v25 = vrot.slane %v8063_v7, 1  ;;  %v8143_v39 = vrot.slane %v8063_v7, 2 }
  0xf0   : > { %v631_v4 = vsel %vm628_vm6, %v629_v2, %v630_v3 }
  0xf1   : > { %v8105_v27 = vsel %vm452_vm4, %v454_v26, %v8100_v25  ;;  %13091 = vst [vmem:[#allocation29_spill] sm:$0xff] %v8143_v39 }
  0xf3   : > { %v331_v8 = vpop.permute.xlu1 %330 }
  0xf4   : > { %v355_v9 = vsel %vm12991_vm2, %v263_v45, %v331_v8  ;;  %v335_v12 = vpop.permute.xlu0 %334  ;;  %v529_v45 = vrot.slane %v8047_v60, 2 }
  0xf5   : > { %v8073_v13 = vsel %vm12990_vm3, %v355_v9, %v302_v57  ;;  %v357_v14 = vsel %vm12991_vm2, %v272_v40, %v335_v12  ;;  %v524_v40 = vrot.slane %v8041_v55, 2  ;;  %v633_v9 = vrot.slane %v8047_v60, 7 }
  0xf6   : > { %13086 = vst [vmem:[#allocation24_spill] sm:$0xff] %v8073_v13  ;;  %v8077_v15 = vsel %vm12990_vm3, %v357_v14, %v310_v59  ;;  %424 = vrot.lane.b32.xlu2 %v8047_v60, %s7792_s8  ;;  %386 = vrot.lane.b32.xlu1 %v8073_v13, %s7791_s7  ;;  %v458_v43 = vrot.slane %v8073_v13, 1  ;;  %v528_v58 = vrot.slane %v8073_v13, 2  ;;  %v632_v8 = vrot.slane %v8073_v13, 7 }
  0xf7   : > { %390 = vrot.lane.b32.xlu0 %v8077_v15, %s7791_s7  ;;  %v8114_v29 = vrot.slane %v8077_v15, 1  ;;  %v8151_v42 = vsel %vm522_vm5, %v524_v40, %v8143_v39  ;;  %v8161_v44 = vrot.slane %v8077_v15, 2  ;;  %v8199_v56 = vsel %vm522_vm5, %v523_v54, %v524_v40 }
  0xf8   : > { %v8165_v46 = vsel %vm452_vm4, %v458_v43, %v459_v30  ;;  %13096 = vst [vmem:[#allocation34_spill] sm:$0xff] %v8199_v56  ;;  %v8211_v59 = vsel %vm522_vm5, %v528_v58, %v529_v45  ;;  %v634_v12 = vsel %vm628_vm6, %v632_v8, %v633_v9 }
  0xf9   : > { %13089 = vst [vmem:[#allocation27_spill] sm:$0xff] %v8114_v29  ;;  %v8119_v31 = vsel %vm452_vm4, %v459_v30, %v8114_v29  ;;  %v8169_v47 = vsel %vm522_vm5, %v529_v45, %v8161_v44 }
  0xfa   : > { %13092 = vst [vmem:[#allocation30_spill] sm:$0xff] %v8161_v44 }
  0xfb   : > { %v337_v17 = vpop.permute.xlu1 %336  ;;  %13093 = vst [vmem:[#allocation31_spill] sm:$0xff] %v8165_v46 }
  0xfc   : > { %v358_v19 = vsel %vm12991_vm2, %v277_v49, %v337_v17  ;;  %v341_v21 = vpop.permute.xlu0 %340  ;;  %13097 = vst [vmem:[#allocation35_spill] sm:$0xff] %v8211_v59 }
  0xfd   : > { %v8087_v22 = vsel %vm12990_vm3, %v358_v19, %v314_v62  ;;  %v360_v23 = vsel %vm12991_vm2, %v286_v41, %v341_v21  ;;  %v8147_v41 = vsel %vm452_vm4, %v453_v38, %v454_v26  ;;  %v636_v19 = vrot.slane %v8053_v1, 7 }
  0xfe   : > { %13087 = vst [vmem:[#allocation25_spill] sm:$0xff] %v8087_v22  ;;  %v8091_v24 = vsel %vm12990_vm3, %v360_v23, %v322_v0  ;;  %430 = vrot.lane.b32.xlu2 %v8053_v1, %s7792_s8  ;;  %392 = vrot.lane.b32.xlu1 %v8087_v22, %s7791_s7  ;;  %v463_v48 = vrot.slane %v8087_v22, 1  ;;  %v533_v62 = vrot.slane %v8087_v22, 2  ;;  %v635_v17 = vrot.slane %v8087_v22, 7 }
  0xff   : > { %13088 = vst [vmem:[#allocation26_spill] sm:$0xff] %v8091_v24  ;;  %396 = vrot.lane.b32.xlu0 %v8091_v24, %s7791_s7  ;;  %v8128_v34 = vrot.slane %v8091_v24, 1  ;;  %v8179_v49 = vrot.slane %v8091_v24, 2 }
 0x100   : > { %v8183_v51 = vsel %vm452_vm4, %v463_v48, %v464_v35  ;;  %v8223_v63 = vsel %vm522_vm5, %v533_v62, %v534_v50  ;;  %v637_v21 = vsel %vm628_vm6, %v635_v17, %v636_v19 }
 0x101   : > { %13090 = vst [vmem:[#allocation28_spill] sm:$0xff] %v8128_v34  ;;  %v8133_v37 = vsel %vm452_vm4, %v464_v35, %v8128_v34  ;;  %v8187_v52 = vsel %vm522_vm5, %v534_v50, %v8179_v49 }
 0x102   : > { %13094 = vst [vmem:[#allocation32_spill] sm:$0xff] %v8179_v49 }
 0x103   : > { %13095 = vst [vmem:[#allocation33_spill] sm:$0xff] %v8183_v51 }
 0x104   : > { %13098 = vst [vmem:[#allocation36_spill] sm:$0xff] %v8223_v63 }
 0x106   : > { %416 = vrot.lane.b32.xlu1 %v8059_v5, %s7792_s8  ;;  %488 = vrot.lane.b32.xlu2 %v8105_v27, %s7792_s8 }
 0x107   : > { %420 = vrot.lane.b32.xlu0 %v8063_v7, %s7792_s8 }
 0x10e   : > { %422 = vrot.lane.b32.xlu1 %v8073_v13, %s7792_s8  ;;  %494 = vrot.lane.b32.xlu2 %v8119_v31, %s7792_s8 }
 0x10f   : > { %426 = vrot.lane.b32.xlu0 %v8077_v15, %s7792_s8 }
 0x116   : > { %428 = vrot.lane.b32.xlu1 %v8087_v22, %s7792_s8  ;;  %500 = vrot.lane.b32.xlu2 %v8133_v37, %s7792_s8 }
 0x117   : > { %432 = vrot.lane.b32.xlu0 %v8091_v24, %s7792_s8 }
 0x11e   : > { %486 = vrot.lane.b32.xlu1 %v8147_v41, %s7792_s8  ;;  %558 = vrot.lane.b32.xlu2 %v8151_v42, %s7791_s7 }
 0x11f   : > { %490 = vrot.lane.b32.xlu0 %v8100_v25, %s7792_s8 }
 0x126   : > { %492 = vrot.lane.b32.xlu1 %v8165_v46, %s7792_s8  ;;  %564 = vrot.lane.b32.xlu2 %v8169_v47, %s7791_s7 }
 0x127   : > { %496 = vrot.lane.b32.xlu0 %v8114_v29, %s7792_s8 }
 0x12e   : > { %498 = vrot.lane.b32.xlu1 %v8183_v51, %s7792_s8  ;;  %570 = vrot.lane.b32.xlu2 %v8187_v52, %s7791_s7 }
 0x12f   : > { %502 = vrot.lane.b32.xlu0 %v8128_v34, %s7792_s8 }
 0x130   : > { %v8195_v53 = vpop.permute.xlu2 %382 }
 0x136   : > { %556 = vrot.lane.b32.xlu1 %v8199_v56, %s7791_s7  ;;  %594 = vrot.lane.b32.xlu2 %v8151_v42, %s7792_s8 }
 0x137   : > { %560 = vrot.lane.b32.xlu0 %v8143_v39, %s7791_s7 }
 0x138   : > { %v8207_v57 = vpop.permute.xlu2 %388 }
 0x13e   : > { %562 = vrot.lane.b32.xlu1 %v8211_v59, %s7791_s7  ;;  %600 = vrot.lane.b32.xlu2 %v8169_v47, %s7792_s8 }
 0x13f   : > { %566 = vrot.lane.b32.xlu0 %v8161_v44, %s7791_s7 }
 0x140   : > { %v8219_v61 = vpop.permute.xlu2 %394 }
 0x146   : > { %568 = vrot.lane.b32.xlu1 %v8223_v63, %s7791_s7  ;;  %606 = vrot.lane.b32.xlu2 %v8187_v52, %s7792_s8 }
 0x147   : > { %572 = vrot.lane.b32.xlu0 %v8179_v49, %s7791_s7 }
 0x148   : > { %v8231_v0 = vpop.permute.xlu2 %418 }
 0x14e   : > { %592 = vrot.lane.b32.xlu1 %v8199_v56, %s7792_s8  ;;  %640 = vrot.lane.b32.xlu2 %v631_v4, %s7793_s14  ;;  %v824_v56 = vrot.slane %v8073_v13, 3 }
 0x14f   : > { %596 = vrot.lane.b32.xlu0 %v8143_v39, %s7792_s8 }
 0x150   : > { %v8241_v6 = vpop.permute.xlu2 %424 }
 0x156   : > { %598 = vrot.lane.b32.xlu1 %v8211_v59, %s7792_s8  ;;  %646 = vrot.lane.b32.xlu2 %v634_v12, %s7793_s14 }
 0x157   : > { %602 = vrot.lane.b32.xlu0 %v8161_v44, %s7792_s8 }
 0x158   : > { %v8251_v14 = vpop.permute.xlu2 %430 }
 0x15e   : > { %604 = vrot.lane.b32.xlu1 %v8223_v63, %s7792_s8  ;;  %652 = vrot.lane.b32.xlu2 %v637_v21, %s7793_s14 }
 0x15f   : > { %608 = vrot.lane.b32.xlu0 %v8179_v49, %s7792_s8 }
 0x160   : > { %v8261_v23 = vpop.permute.xlu1 %380  ;;  %v8263_v26 = vpop.permute.xlu2 %488 }
 0x161   : > { %v8265_v30 = vpop.permute.xlu0 %384 }
 0x166   : > { %638 = vrot.lane.b32.xlu1 %v629_v2, %s7793_s14  ;;  %676 = vrot.lane.b32.xlu2 %v631_v4, %s7791_s7 }
 0x167   : > { %642 = vrot.lane.b32.xlu0 %v630_v3, %s7793_s14 }
 0x168   : > { %v8270_v35 = vpop.permute.xlu1 %386  ;;  %v8272_v38 = vpop.permute.xlu2 %494 }
 0x169   : > { %v8274_v40 = vpop.permute.xlu0 %390 }
 0x16a   : > { %13099 = vst [vmem:[#allocation37_spill] sm:$0xff] %v8274_v40 }
 0x16e   : > { %644 = vrot.lane.b32.xlu1 %v632_v8, %s7793_s14  ;;  %682 = vrot.lane.b32.xlu2 %v634_v12, %s7791_s7 }
 0x16f   : > { %648 = vrot.lane.b32.xlu0 %v633_v9, %s7793_s14 }
 0x170   : > { %v8279_v43 = vpop.permute.xlu1 %392  ;;  %v8281_v45 = vpop.permute.xlu2 %500 }
 0x171   : > { %13100 = vst [vmem:[#allocation38_spill] sm:$0xff] %v8279_v43  ;;  %v8283_v48 = vpop.permute.xlu0 %396 }
 0x172   : > { %13101 = vst [vmem:[#allocation39_spill] sm:$0xff] %v8283_v48  ;;  %v8405_v48 = vrot.slane %v8077_v15, 3 }
 0x176   : > { %650 = vrot.lane.b32.xlu1 %v635_v17, %s7793_s14  ;;  %688 = vrot.lane.b32.xlu2 %v637_v21, %s7791_s7 }
 0x177   : > { %654 = vrot.lane.b32.xlu0 %v636_v19, %s7793_s14 }
 0x178   : > { %v8288_v50 = vpop.permute.xlu1 %416  ;;  %v8290_v54 = vpop.permute.xlu2 %558 }
 0x179   : > { %v8292_v58 = vpop.permute.xlu0 %420 }
 0x17e   : > { %674 = vrot.lane.b32.xlu1 %v629_v2, %s7791_s7  ;;  %712 = vrot.lane.b32.xlu2 %v631_v4, %s7794_s16 }
 0x17f   : > { %678 = vrot.lane.b32.xlu0 %v630_v3, %s7791_s7 }
 0x180   : > { %v8297_v62 = vpop.permute.xlu1 %422  ;;  %v8299_v33 = vpop.permute.xlu2 %564 }
 0x181   : > { %13102 = vst [vmem:[#allocation40_spill] sm:$0xff] %v8297_v62  ;;  %v8301_v10 = vpop.permute.xlu0 %426 }
 0x182   : > { %13103 = vst [vmem:[#allocation41_spill] sm:$0xff] %v8301_v10  ;;  %v829_v10 = vrot.slane %v8087_v22, 3 }
 0x186   : > { %680 = vrot.lane.b32.xlu1 %v632_v8, %s7791_s7  ;;  %718 = vrot.lane.b32.xlu2 %v634_v12, %s7794_s16 }
 0x187   : > { %684 = vrot.lane.b32.xlu0 %v633_v9, %s7791_s7 }
 0x188   : > { %v8306_v32 = vpop.permute.xlu1 %428  ;;  %v8308_v18 = vpop.permute.xlu2 %570 }
 0x189   : > { %13104 = vst [vmem:[#allocation42_spill] sm:$0xff] %v8306_v32  ;;  %v8310_v11 = vpop.permute.xlu0 %432 }
 0x18a   : > { %13105 = vst [vmem:[#allocation43_spill] sm:$0xff] %v8310_v11 }
 0x18e   : > { %686 = vrot.lane.b32.xlu1 %v635_v17, %s7791_s7  ;;  %724 = vrot.lane.b32.xlu2 %v637_v21, %s7794_s16 }
 0x18f   : > { %690 = vrot.lane.b32.xlu0 %v636_v19, %s7791_s7 }
 0x190   : > { %v8315_v4 = vpop.permute.xlu1 %486  ;;  %v8317_v16 = vpop.permute.xlu2 %594 }
 0x191   : > { %v8319_v36 = vpop.permute.xlu0 %490 }
 0x192   : > { %13106 = vst [vmem:[#allocation44_spill] sm:$0xff] %v8319_v36 }
 0x196   : > { %710 = vrot.lane.b32.xlu1 %v629_v2, %s7794_s16  ;;  %748 = vrot.lane.b32.xlu2 %v8105_v27, %s7793_s14 }
 0x197   : > { %714 = vrot.lane.b32.xlu0 %v630_v3, %s7794_s16 }
 0x198   : > { %v8325_v12 = vpop.permute.xlu1 %492  ;;  %v8327_v20 = vpop.permute.xlu2 %600 }
 0x199   : > { %13107 = vst [vmem:[#allocation45_spill] sm:$0xff] %v8325_v12  ;;  %v8329_v21 = vpop.permute.xlu0 %496 }
 0x19a   : > { %13108 = vst [vmem:[#allocation46_spill] sm:$0xff] %v8329_v21 }
 0x19e   : > { %716 = vrot.lane.b32.xlu1 %v632_v8, %s7794_s16  ;;  %754 = vrot.lane.b32.xlu2 %v8119_v31, %s7793_s14 }
 0x19f   : > { %720 = vrot.lane.b32.xlu0 %v633_v9, %s7794_s16 }
 0x1a0   : > { %v8335_v28 = vpop.permute.xlu1 %498  ;;  %v8337_v2 = vpop.permute.xlu2 %606 }
 0x1a1   : > { %13109 = vst [vmem:[#allocation47_spill] sm:$0xff] %v8335_v28  ;;  %v8339_v49 = vpop.permute.xlu0 %502 }
 0x1a2   : > { %13110 = vst [vmem:[#allocation48_spill] sm:$0xff] %v8339_v49 }
 0x1a6   : > { %722 = vrot.lane.b32.xlu1 %v635_v17, %s7794_s16  ;;  %760 = vrot.lane.b32.xlu2 %v8133_v37, %s7793_s14 }
 0x1a7   : > { %726 = vrot.lane.b32.xlu0 %v636_v19, %s7794_s16 }
 0x1a8   : > { %v8345_v3 = vpop.permute.xlu1 %556  ;;  %v8347_v8 = vpop.permute.xlu2 %640 }
 0x1a9   : > { %13111 = vst [vmem:[#allocation49_spill] sm:$0xff] %v8345_v3  ;;  %v8349_v63 = vpop.permute.xlu0 %560  ;;  %v830_v3 = vrot.slane %v8053_v1, 3 }
 0x1aa   : > { %13112 = vst [vmem:[#allocation50_spill] sm:$0xff] %v8349_v63  ;;  %v832_v63 = vrot.slane %v8091_v24, 3 }
 0x1ac   : > { %v833_v39 = vsel %vm12992_vm7, %v830_v3, %v832_v63 }
 0x1ae   : > { %746 = vrot.lane.b32.xlu1 %v8147_v41, %s7793_s14  ;;  %784 = vrot.lane.b32.xlu2 %v8105_v27, %s7794_s16 }
 0x1af   : > { %750 = vrot.lane.b32.xlu0 %v8100_v25, %s7793_s14 }
 0x1b0   : > { %v8357_v9 = vpop.permute.xlu1 %562  ;;  %v8359_v17 = vpop.permute.xlu2 %646 }
 0x1b1   : > { %13113 = vst [vmem:[#allocation51_spill] sm:$0xff] %v8357_v9  ;;  %v8361_v19 = vpop.permute.xlu0 %566 }
 0x1b2   : > { %13114 = vst [vmem:[#allocation52_spill] sm:$0xff] %v8361_v19 }
 0x1b6   : > { %752 = vrot.lane.b32.xlu1 %v8165_v46, %s7793_s14  ;;  %790 = vrot.lane.b32.xlu2 %v8119_v31, %s7794_s16 }
 0x1b7   : > { %756 = vrot.lane.b32.xlu0 %v8114_v29, %s7793_s14 }
 0x1b8   : > { %v8369_v49 = vpop.permute.xlu1 %568  ;;  %v8371_v28 = vpop.permute.xlu2 %652 }
 0x1b9   : > { %13115 = vst [vmem:[#allocation53_spill] sm:$0xff] %v8369_v49  ;;  %v8373_v44 = vpop.permute.xlu0 %572  ;;  %v8388_v49 = vrot.slane %v8063_v7, 3 }
 0x1ba   : > { %13116 = vst [vmem:[#allocation54_spill] sm:$0xff] %v8373_v44  ;;  %v820_v44 = vrot.slane %v8041_v55, 3 }
 0x1bc   : > { %v823_v11 = vsel %vm12992_vm7, %v820_v44, %v8388_v49 }
 0x1be   : > { %758 = vrot.lane.b32.xlu1 %v8183_v51, %s7793_s14  ;;  %796 = vrot.lane.b32.xlu2 %v8133_v37, %s7794_s16 }
 0x1bf   : > { %762 = vrot.lane.b32.xlu0 %v8128_v34, %s7793_s14 }
 0x1c0   : > { %v8381_v19 = vpop.permute.xlu1 %592  ;;  %v8383_v9 = vpop.permute.xlu2 %676 }
 0x1c1   : > { %13117 = vst [vmem:[#allocation55_spill] sm:$0xff] %v8381_v19  ;;  %v8385_v59 = vpop.permute.xlu0 %596  ;;  %v825_v19 = vrot.slane %v8047_v60, 3 }
 0x1c2   : > { %13118 = vst [vmem:[#allocation56_spill] sm:$0xff] %v8385_v59 }
 0x1c3   : > { %v828_v12 = vsel %vm12992_vm7, %v825_v19, %v8405_v48 }
 0x1c6   : > { %782 = vrot.lane.b32.xlu1 %v8147_v41, %s7794_s16  ;;  %836 = vrot.lane.b32.xlu2 %v823_v11, %s7793_s14 }
 0x1c7   : > { %786 = vrot.lane.b32.xlu0 %v8100_v25, %s7794_s16 }
 0x1c8   : > { %v8398_v32 = vpop.permute.xlu1 %598  ;;  %v8400_v59 = vpop.permute.xlu2 %682 }
 0x1c9   : > { %13119 = vst [vmem:[#allocation57_spill] sm:$0xff] %v8398_v32  ;;  %v8402_v21 = vpop.permute.xlu0 %602 }
 0x1ca   : > { %13120 = vst [vmem:[#allocation58_spill] sm:$0xff] %v8402_v21 }
 0x1ce   : > { %788 = vrot.lane.b32.xlu1 %v8165_v46, %s7794_s16  ;;  %842 = vrot.lane.b32.xlu2 %v828_v12, %s7793_s14 }
 0x1cf   : > { %792 = vrot.lane.b32.xlu0 %v8114_v29, %s7794_s16 }
 0x1d0   : > { %v8415_v32 = vpop.permute.xlu1 %604  ;;  %v8417_v43 = vpop.permute.xlu2 %688 }
 0x1d1   : > { %13121 = vst [vmem:[#allocation59_spill] sm:$0xff] %v8415_v32  ;;  %v8419_v21 = vpop.permute.xlu0 %608 }
 0x1d2   : > { %13122 = vst [vmem:[#allocation60_spill] sm:$0xff] %v8419_v21  ;;  %v819_v21 = vrot.slane %v8059_v5, 3 }
 0x1d4   : > { %v821_v24 = vsel %vm12992_vm7, %v819_v21, %v820_v44 }
 0x1d6   : > { %794 = vrot.lane.b32.xlu1 %v8183_v51, %s7794_s16  ;;  %848 = vrot.lane.b32.xlu2 %v833_v39, %s7793_s14 }
 0x1d7   : > { %798 = vrot.lane.b32.xlu0 %v8128_v34, %s7794_s16 }
 0x1d8   : > { %v8429_v29 = vpop.permute.xlu1 %638  ;;  %v8431_v32 = vpop.permute.xlu2 %712 }
 0x1d9   : > { %13123 = vst [vmem:[#allocation61_spill] sm:$0xff] %v8429_v29  ;;  %v8433_v46 = vpop.permute.xlu0 %642 }
 0x1da   : > { %13124 = vst [vmem:[#allocation62_spill] sm:$0xff] %v8433_v46  ;;  %v826_v46 = vsel %vm12992_vm7, %v824_v56, %v825_v19 }
 0x1de   : > { %834 = vrot.lane.b32.xlu1 %v821_v24, %s7793_s14  ;;  %872 = vrot.lane.b32.xlu2 %v823_v11, %s7791_s7 }
 0x1df   : > { %838 = vrot.lane.b32.xlu0 %v8388_v49, %s7793_s14 }
 0x1e0   : > { %v8441_v51 = vpop.permute.xlu1 %644  ;;  %v8443_v34 = vpop.permute.xlu2 %718 }
 0x1e1   : > { %13125 = vst [vmem:[#allocation63_spill] sm:$0xff] %v8441_v51  ;;  %v8445_v29 = vpop.permute.xlu0 %648 }
 0x1e2   : > { %13126 = vst [vmem:[#allocation64_spill] sm:$0xff] %v8445_v29  ;;  %v831_v29 = vsel %vm12992_vm7, %v829_v10, %v830_v3 }
 0x1e6   : > { %840 = vrot.lane.b32.xlu1 %v826_v46, %s7793_s14  ;;  %878 = vrot.lane.b32.xlu2 %v828_v12, %s7791_s7 }
 0x1e7   : > { %844 = vrot.lane.b32.xlu0 %v8405_v48, %s7793_s14 }
 0x1e8   : > { %v8453_v44 = vpop.permute.xlu1 %650  ;;  %v8455_v21 = vpop.permute.xlu2 %724 }
 0x1e9   : > { %13127 = vst [vmem:[#allocation65_spill] sm:$0xff] %v8453_v44  ;;  %v8457_v51 = vpop.permute.xlu0 %654 }
 0x1ea   : > { %13128 = vst [vmem:[#allocation66_spill] sm:$0xff] %v8457_v51 }
 0x1ee   : > { %846 = vrot.lane.b32.xlu1 %v831_v29, %s7793_s14  ;;  %884 = vrot.lane.b32.xlu2 %v833_v39, %s7791_s7 }
 0x1ef   : > { %850 = vrot.lane.b32.xlu0 %v832_v63, %s7793_s14 }
 0x1f0   : > { %v8464_v56 = vpop.permute.xlu1 %674  ;;  %v8466_v19 = vpop.permute.xlu2 %748 }
 0x1f1   : > { %13129 = vst [vmem:[#allocation67_spill] sm:$0xff] %v8464_v56  ;;  %v8468_v62 = vpop.permute.xlu0 %678 }
 0x1f2   : > { %13130 = vst [vmem:[#allocation68_spill] sm:$0xff] %v8468_v62 }
 0x1f6   : > { %870 = vrot.lane.b32.xlu1 %v821_v24, %s7791_s7  ;;  %908 = vrot.lane.b32.xlu2 %v823_v11, %s7794_s16 }
 0x1f7   : > { %874 = vrot.lane.b32.xlu0 %v8388_v49, %s7791_s7 }
 0x1f8   : > { %v8474_v10 = vpop.permute.xlu1 %680  ;;  %v8476_v3 = vpop.permute.xlu2 %754 }
 0x1f9   : > { %13131 = vst [vmem:[#allocation69_spill] sm:$0xff] %v8474_v10  ;;  %v8478_v51 = vpop.permute.xlu0 %684 }
 0x1fa   : > { %13132 = vst [vmem:[#allocation70_spill] sm:$0xff] %v8478_v51 }
 0x1fe   : > { %876 = vrot.lane.b32.xlu1 %v826_v46, %s7791_s7  ;;  %914 = vrot.lane.b32.xlu2 %v828_v12, %s7794_s16 }
 0x1ff   : > { %880 = vrot.lane.b32.xlu0 %v8405_v48, %s7791_s7 }
 0x200   : > { %v8484_v44 = vpop.permute.xlu1 %686  ;;  %v8486_v62 = vpop.permute.xlu2 %760 }
 0x201   : > { %13133 = vst [vmem:[#allocation71_spill] sm:$0xff] %v8484_v44  ;;  %v8488_v11 = vpop.permute.xlu0 %690 }
 0x202   : > { %13134 = vst [vmem:[#allocation72_spill] sm:$0xff] %v8488_v11 }
 0x206   : > { %882 = vrot.lane.b32.xlu1 %v831_v29, %s7791_s7  ;;  %920 = vrot.lane.b32.xlu2 %v833_v39, %s7794_s16 }
 0x207   : > { %886 = vrot.lane.b32.xlu0 %v832_v63, %s7791_s7 }
 0x208   : > { %v8493_v51 = vpop.permute.xlu1 %710  ;;  %v785_v10 = vpop.permute.xlu2 %784 }
 0x209   : > { %13135 = vst [vmem:[#allocation73_spill] sm:$0xff] %v8493_v51  ;;  %v8495_v56 = vpop.permute.xlu0 %714 }
 0x20a   : > { %13136 = vst [vmem:[#allocation74_spill] sm:$0xff] %v8495_v56 }
 0x20e   : > { %906 = vrot.lane.b32.xlu1 %v821_v24, %s7794_s16 }
 0x20f   : > { %910 = vrot.lane.b32.xlu0 %v8388_v49, %s7794_s16 }
 0x210   : > { %v8500_v12 = vpop.permute.xlu1 %716  ;;  %v8502_v44 = vpop.permute.xlu2 %790 }
 0x211   : > { %13137 = vst [vmem:[#allocation75_spill] sm:$0xff] %v8500_v12  ;;  %v8504_v11 = vpop.permute.xlu0 %720 }
 0x212   : > { %13138 = vst [vmem:[#allocation76_spill] sm:$0xff] %v8504_v11 }
 0x216   : > { %912 = vrot.lane.b32.xlu1 %v826_v46, %s7794_s16 }
 0x217   : > { %916 = vrot.lane.b32.xlu0 %v8405_v48, %s7794_s16 }
 0x218   : > { %v8509_v39 = vpop.permute.xlu1 %722  ;;  %v8511_v51 = vpop.permute.xlu2 %796 }
 0x219   : > { %13139 = vst [vmem:[#allocation77_spill] sm:$0xff] %v8509_v39  ;;  %v8513_v56 = vpop.permute.xlu0 %726 }
 0x21a   : > { %13140 = vst [vmem:[#allocation78_spill] sm:$0xff] %v8513_v56  ;;  %v408_v56 = vadd.f32 %v8195_v53, %v8041_v55 }
 0x21e   : > { %918 = vrot.lane.b32.xlu1 %v831_v29, %s7794_s16  ;;  %v444_v29 = vadd.f32 %v8231_v0, %v408_v56 }
 0x21f   : > { %922 = vrot.lane.b32.xlu0 %v832_v63, %s7794_s16 }
 0x220   : > { %v8517_v24 = vpop.permute.xlu1 %746  ;;  %v837_v49 = vpop.permute.xlu2 %836  ;;  %v478_v63 = vadd.f32 %v8105_v27, %v444_v29  ;;  %v414_v29 = vadd.f32 %v8219_v61, %v8053_v1 }
 0x221   : > { %13141 = vst [vmem:[#allocation79_spill] sm:$0xff] %v8517_v24  ;;  %v8519_v12 = vpop.permute.xlu0 %750 }
 0x222   : > { %13142 = vst [vmem:[#allocation80_spill] sm:$0xff] %v8519_v12 }
 0x228   : > { %v8521_v11 = vpop.permute.xlu1 %752  ;;  %v843_v46 = vpop.permute.xlu2 %842 }
 0x229   : > { %13143 = vst [vmem:[#allocation81_spill] sm:$0xff] %v8521_v11  ;;  %v8523_v22 = vpop.permute.xlu0 %756  ;;  %v411_v11 = vadd.f32 %v8207_v57, %v8047_v60 }
 0x22a   : > { %13144 = vst [vmem:[#allocation82_spill] sm:$0xff] %v8523_v22  ;;  %v514_v22 = vadd.f32 %v8263_v26, %v478_v63 }
 0x22c   : > { %v548_v53 = vadd.f32 %v8151_v42, %v514_v22 }
 0x22e   : > { %v584_v0 = vadd.f32 %v8290_v54, %v548_v53 }
 0x230   : > { %v8525_v48 = vpop.permute.xlu1 %758  ;;  %v849_v39 = vpop.permute.xlu2 %848  ;;  %v620_v26 = vadd.f32 %v8317_v16, %v584_v0 }
 0x231   : > { %13145 = vst [vmem:[#allocation83_spill] sm:$0xff] %v8525_v48  ;;  %v8529_v36 = vpop.permute.xlu0 %762  ;;  %v447_v48 = vadd.f32 %v8241_v6, %v411_v11  ;;  %v450_v6 = vadd.f32 %v8251_v14, %v414_v29 }
 0x232   : > { %v666_v22 = vadd.f32 %v8347_v8, %v620_v26 }
 0x233   : > { %v481_v55 = vadd.f32 %v8119_v31, %v447_v48  ;;  %v484_v54 = vadd.f32 %v8133_v37, %v450_v6 }
 0x234   : > { %v702_v42 = vadd.f32 %v8383_v9, %v666_v22 }
 0x235   : > { %v517_v57 = vadd.f32 %v8272_v38, %v481_v55  ;;  %v520_v16 = vadd.f32 %v8281_v45, %v484_v54 }
 0x236   : > { %v738_v61 = vadd.f32 %v8431_v32, %v702_v42 }
 0x237   : > { %v551_v31 = vadd.f32 %v8169_v47, %v517_v57  ;;  %v554_v37 = vadd.f32 %v8187_v52, %v520_v16 }
 0x238   : > { %v8533_v24 = vpop.permute.xlu1 %782  ;;  %v873_v12 = vpop.permute.xlu2 %872  ;;  %v774_v14 = vadd.f32 %v8466_v19, %v738_v61 }
 0x239   : > { %v8538_v40 = vpop.permute.xlu0 %786  ;;  %v587_v11 = vadd.f32 %v8299_v33, %v551_v31  ;;  %v590_v32 = vadd.f32 %v8308_v18, %v554_v37 }
 0x23a   : > { %v810_v9 = vadd.f32 %v785_v10, %v774_v14 }
 0x23b   : > { %v623_v38 = vadd.f32 %v8327_v20, %v587_v11  ;;  %v626_v19 = vadd.f32 %v8337_v2, %v590_v32  ;;  %v409_v11 = vadd.f32 %v8265_v30, %v8063_v7 }
 0x23c   : > { %v862_v53 = vadd.f32 %v837_v49, %v810_v9  ;;  %v13147_v9 = vld [vmem:[#allocation44_spill] sm:$0xff] }
 0x23d   : > { %v669_v47 = vadd.f32 %v8359_v17, %v623_v38  ;;  %v672_v52 = vadd.f32 %v8371_v28, %v626_v19  ;;  %v410_v38 = vadd.f32 %v8270_v35, %v8073_v13 }
 0x23e   : > { %v898_v29 = vadd.f32 %v873_v12, %v862_v53  ;;  %v13149_v53 = vld [vmem:[#allocation41_spill] sm:$0xff] }
 0x23f   : > { %v705_v33 = vadd.f32 %v8400_v59, %v669_v47  ;;  %v708_v18 = vadd.f32 %v8417_v43, %v672_v52  ;;  %v13155_v52 = vld [vmem:[#allocation50_spill] sm:$0xff] }
 0x240   : > { %v8544_v56 = vpop.permute.xlu1 %788  ;;  %v879_v27 = vpop.permute.xlu2 %878 }
 0x241   : > { %v8550_v63 = vpop.permute.xlu0 %792  ;;  %v741_v0 = vadd.f32 %v8443_v34, %v705_v33  ;;  %v744_v12 = vadd.f32 %v8455_v21, %v708_v18 }
 0x243   : > { %v777_v57 = vadd.f32 %v8476_v3, %v741_v0  ;;  %v780_v6 = vadd.f32 %v8486_v62, %v744_v12  ;;  %v13150_v0 = vld [vmem:[#allocation34_spill] sm:$0xff] }
 0x244   : > { %v13157_v12 = vld [vmem:[#allocation38_spill] sm:$0xff] }
 0x245   : > { %v813_v59 = vadd.f32 %v8502_v44, %v777_v57  ;;  %v816_v44 = vadd.f32 %v8511_v51, %v780_v6  ;;  %v13153_v57 = vld [vmem:[#allocation49_spill] sm:$0xff] }
 0x247   : > { %v865_v34 = vadd.f32 %v843_v46, %v813_v59  ;;  %v868_v43 = vadd.f32 %v849_v39, %v816_v44  ;;  %v445_v39 = vadd.f32 %v8292_v58, %v409_v11  ;;  %v13148_v58 = vld [vmem:[#allocation40_spill] sm:$0xff] }
 0x248   : > { %v8559_v48 = vpop.permute.xlu1 %794  ;;  %v885_v55 = vpop.permute.xlu2 %884  ;;  %v446_v33 = vadd.f32 %v13148_v58, %v410_v38  ;;  %v13165_v38 = vld [vmem:[#allocation61_spill] sm:$0xff]  ;;  %v13168_v58 = vld [vmem:[#allocation35_spill] sm:$0xff] }
 0x249   : > { %v8564_v8 = vpop.permute.xlu0 %798  ;;  %v901_v2 = vadd.f32 %v879_v27, %v865_v34  ;;  %v904_v46 = vadd.f32 %v885_v55, %v868_v43  ;;  %v407_v27 = vadd.f32 %v8261_v23, %v8059_v5  ;;  %v479_v16 = vadd.f32 %v8100_v25, %v445_v39  ;;  %v13156_v34 = vld [vmem:[#allocation25_spill] sm:$0xff] }
 0x24b   : > { %v443_v51 = vadd.f32 %v8288_v50, %v407_v27  ;;  %v13146_v50 = vld [vmem:[#allocation37_spill] sm:$0xff]  ;;  %v515_v37 = vadd.f32 %v13147_v9, %v479_v16  ;;  %v13167_v9 = vld [vmem:[#allocation62_spill] sm:$0xff] }
 0x24c   : > { %v412_v47 = vadd.f32 %v13146_v50, %v8077_v15  ;;  %v13166_v50 = vld [vmem:[#allocation43_spill] sm:$0xff] }
 0x24d   : > { %v477_v55 = vadd.f32 %v8147_v41, %v443_v51  ;;  %v13163_v51 = vld [vmem:[#allocation56_spill] sm:$0xff] }
 0x24e   : > { %v448_v32 = vadd.f32 %v13149_v53, %v412_v47  ;;  %v13169_v53 = vld [vmem:[#allocation67_spill] sm:$0xff] }
 0x24f   : > { %v513_v14 = vadd.f32 %v8315_v4, %v477_v55  ;;  %v13164_v55 = vld [vmem:[#allocation42_spill] sm:$0xff] }
 0x250   : > { %v8571_v45 = vpop.permute.xlu1 %834  ;;  %v909_v20 = vpop.permute.xlu2 %908 }
 0x251   : > { %v934_v26 = vadd.f32 %v909_v20, %v898_v29  ;;  %v8575_v17 = vpop.permute.xlu0 %838  ;;  %v547_v41 = vadd.f32 %v13150_v0, %v513_v14  ;;  %v13151_v29 = vld [vmem:[#allocation29_spill] sm:$0xff]  ;;  %v13152_v20 = vld [vmem:[#allocation31_spill] sm:$0xff]  ;;  %v13170_v0 = vld [vmem:[#allocation30_spill] sm:$0xff] }
 0x252   : > { %v549_v25 = vadd.f32 %v13151_v29, %v515_v37  ;;  %v480_v19 = vadd.f32 %v13152_v20, %v446_v33  ;;  %v13171_v29 = vld [vmem:[#allocation68_spill] sm:$0xff]  ;;  %v13172_v20 = vld [vmem:[#allocation33_spill] sm:$0xff] }
 0x253   : > { %v8579_v10 = vmul.f32 0.0625, %v934_v26  ;;  %v583_v35 = vadd.f32 %v13153_v57, %v547_v41  ;;  %v13154_v26 = vld [vmem:[#allocation27_spill] sm:$0xff] }
 0x254   : > { %v482_v4 = vadd.f32 %v13154_v26, %v448_v32  ;;  %v585_v59 = vadd.f32 %v13155_v52, %v549_v25  ;;  %v13173_v57 = vld [vmem:[#allocation51_spill] sm:$0xff]  ;;  %v13174_v26 = vld [vmem:[#allocation73_spill] sm:$0xff]  ;;  %v13175_v52 = vld [vmem:[#allocation28_spill] sm:$0xff] }
 0x255   : > { %989 = vrot.lane.b32.xlu2 %v8579_v10, %s7793_s14 }
 0x256   : > { %v621_v39 = vadd.f32 %v13163_v51, %v585_v59 }
 0x258   : > { %v8585_v49 = vpop.permute.xlu1 %840  ;;  %v915_v3 = vpop.permute.xlu2 %914  ;;  %v667_v37 = vadd.f32 %v13167_v9, %v621_v39 }
 0x259   : > { %v937_v22 = vadd.f32 %v915_v3, %v901_v2  ;;  %v8588_v28 = vpop.permute.xlu0 %844  ;;  %v413_v2 = vadd.f32 %v13157_v12, %v13156_v34  ;;  %v13158_v3 = vld [vmem:[#allocation45_spill] sm:$0xff]  ;;  %v13176_v12 = vld [vmem:[#allocation52_spill] sm:$0xff] }
 0x25a   : > { %v516_v6 = vadd.f32 %v13158_v3, %v480_v19  ;;  %v703_v25 = vadd.f32 %v13171_v29, %v667_v37  ;;  %v13177_v3 = vld [vmem:[#allocation74_spill] sm:$0xff]  ;;  %v13184_v37 = vld [vmem:[#allocation63_spill] sm:$0xff]  ;;  %v13187_v29 = vld [vmem:[#allocation69_spill] sm:$0xff] }
 0x25b   : > { %v8591_v31 = vmul.f32 0.0625, %v937_v22  ;;  %v13159_v22 = vld [vmem:[#allocation55_spill] sm:$0xff]  ;;  %v449_v16 = vadd.f32 %v13164_v55, %v413_v2  ;;  %v13181_v55 = vld [vmem:[#allocation48_spill] sm:$0xff] }
 0x25c   : > { %v619_v44 = vadd.f32 %v13159_v22, %v583_v35  ;;  %v550_v33 = vadd.f32 %v13168_v58, %v516_v6  ;;  %v739_v22 = vadd.f32 %v13177_v3, %v703_v25  ;;  %v13178_v6 = vld [vmem:[#allocation47_spill] sm:$0xff]  ;;  %v13192_v3 = vld [vmem:[#allocation54_spill] sm:$0xff] }
 0x25d   : > { %995 = vrot.lane.b32.xlu2 %v8591_v31, %s7793_s14  ;;  %v483_v19 = vadd.f32 %v13172_v20, %v449_v16 }
 0x25e   : > { %v665_v14 = vadd.f32 %v13165_v38, %v619_v44  ;;  %v586_v35 = vadd.f32 %v13173_v57, %v550_v33  ;;  %v13182_v38 = vld [vmem:[#allocation58_spill] sm:$0xff]  ;;  %v13185_v33 = vld [vmem:[#allocation64_spill] sm:$0xff] }
 0x260   : > { %v8595_v42 = vpop.permute.xlu1 %846  ;;  %v921_v21 = vpop.permute.xlu2 %920  ;;  %v701_v32 = vadd.f32 %v13169_v53, %v665_v14 }
 0x261   : > { %v940_v54 = vadd.f32 %v921_v21, %v904_v46  ;;  %v8599_v62 = vpop.permute.xlu0 %850  ;;  %v13160_v46 = vld [vmem:[#allocation26_spill] sm:$0xff]  ;;  %v13161_v21 = vld [vmem:[#allocation39_spill] sm:$0xff] }
 0x262   : > { %v415_v27 = vadd.f32 %v13161_v21, %v13160_v46  ;;  %v519_v21 = vadd.f32 %v13178_v6, %v483_v19  ;;  %v13188_v19 = vld [vmem:[#allocation32_spill] sm:$0xff] }
 0x263   : > { %v8604_v61 = vmul.f32 0.0625, %v940_v54  ;;  %v13162_v54 = vld [vmem:[#allocation46_spill] sm:$0xff] }
 0x264   : > { %v518_v11 = vadd.f32 %v13162_v54, %v482_v4  ;;  %v451_v47 = vadd.f32 %v13166_v50, %v415_v27  ;;  %v737_v4 = vadd.f32 %v13174_v26, %v701_v32  ;;  %v13179_v27 = vld [vmem:[#allocation57_spill] sm:$0xff]  ;;  %v13183_v50 = vld [vmem:[#allocation80_spill] sm:$0xff] }
 0x265   : > { %1001 = vrot.lane.b32.xlu2 %v8604_v61, %s7793_s14  ;;  %v622_v54 = vadd.f32 %v13179_v27, %v586_v35  ;;  %v775_v9 = vadd.f32 %v13183_v50, %v739_v22  ;;  %v13189_v35 = vld [vmem:[#allocation70_spill] sm:$0xff] }
 0x266   : > { %v552_v41 = vadd.f32 %v13170_v0, %v518_v11  ;;  %v485_v59 = vadd.f32 %v13175_v52, %v451_v47  ;;  %v13180_v11 = vld [vmem:[#allocation79_spill] sm:$0xff]  ;;  %v13186_v0 = vld [vmem:[#allocation36_spill] sm:$0xff]  ;;  %v13190_v52 = vld [vmem:[#allocation53_spill] sm:$0xff] }
 0x267   : > { %v773_v51 = vadd.f32 %v13180_v11, %v737_v4  ;;  %v668_v47 = vadd.f32 %v13184_v37, %v622_v54  ;;  %v811_v32 = vadd.f32 %v8538_v40, %v775_v9  ;;  %v13193_v40 = vld [vmem:[#allocation76_spill] sm:$0xff]  ;;  %v13194_v54 = vld [vmem:[#allocation59_spill] sm:$0xff]  ;;  %v13198_v37 = vld [vmem:[#allocation65_spill] sm:$0xff] }
 0x268   : > { %v871_v23 = vpop.permute.xlu1 %870  ;;  %v588_v2 = vadd.f32 %v13176_v12, %v552_v41  ;;  %v521_v16 = vadd.f32 %v13181_v55, %v485_v59  ;;  %v553_v41 = vadd.f32 %v13186_v0, %v519_v21  ;;  %v13191_v12 = vld [vmem:[#allocation75_spill] sm:$0xff] }
 0x269   : > { %v875_v30 = vpop.permute.xlu0 %874  ;;  %v809_v58 = vadd.f32 %v8533_v24, %v773_v51  ;;  %v704_v25 = vadd.f32 %v13187_v29, %v668_v47  ;;  %v863_v4 = vadd.f32 %v8575_v17, %v811_v32  ;;  %v13197_v17 = vld [vmem:[#allocation82_spill] sm:$0xff]  ;;  %v13200_v0 = vld [vmem:[#allocation71_spill] sm:$0xff] }
 0x26a   : > { %v624_v14 = vadd.f32 %v13182_v38, %v588_v2  ;;  %v555_v57 = vadd.f32 %v13188_v19, %v521_v16  ;;  %v589_v59 = vadd.f32 %v13190_v52, %v553_v41  ;;  %v13196_v38 = vld [vmem:[#allocation60_spill] sm:$0xff] }
 0x26b   : > { %v861_v20 = vadd.f32 %v8571_v45, %v809_v58  ;;  %v740_v24 = vadd.f32 %v13191_v12, %v704_v25  ;;  %v899_v21 = vadd.f32 %v875_v30, %v863_v4  ;;  %v13195_v45 = vld [vmem:[#allocation81_spill] sm:$0xff]  ;;  %v13201_v25 = vld [vmem:[#allocation72_spill] sm:$0xff] }
 0x26c   : > { %v670_v53 = vadd.f32 %v13185_v33, %v624_v14  ;;  %v591_v22 = vadd.f32 %v13192_v3, %v555_v57  ;;  %v625_v11 = vadd.f32 %v13194_v54, %v589_v59  ;;  %v13199_v33 = vld [vmem:[#allocation66_spill] sm:$0xff] }
 0x26d   : > { %v897_v2 = vadd.f32 %v871_v23, %v861_v20  ;;  %v776_v51 = vadd.f32 %v13195_v45, %v740_v24 }
 0x26e   : > { %v706_v26 = vadd.f32 %v13189_v35, %v670_v53  ;;  %v627_v14 = vadd.f32 %v13196_v38, %v591_v22  ;;  %v671_v47 = vadd.f32 %v13198_v37, %v625_v11  ;;  %v13203_v35 = vld [vmem:[#allocation78_spill] sm:$0xff] }
 0x26f   : > { %v812_v23 = vadd.f32 %v8544_v56, %v776_v51  ;;  %v13202_v56 = vld [vmem:[#allocation77_spill] sm:$0xff] }
 0x270   : > { %v8625_v18 = vpop.permute.xlu1 %876  ;;  %v742_v6 = vadd.f32 %v13193_v40, %v706_v26  ;;  %v673_v30 = vadd.f32 %v13199_v33, %v627_v14  ;;  %v707_v41 = vadd.f32 %v13200_v0, %v671_v47 }
 0x271   : > { %v8631_v43 = vpop.permute.xlu0 %880  ;;  %v864_v29 = vadd.f32 %v8585_v49, %v812_v23  ;;  %v13204_v49 = vld [vmem:[#allocation83_spill] sm:$0xff] }
 0x272   : > { %v778_v50 = vadd.f32 %v13197_v17, %v742_v6  ;;  %v709_v20 = vadd.f32 %v13201_v25, %v673_v30  ;;  %v743_v57 = vadd.f32 %v13202_v56, %v707_v41 }
 0x274   : > { %v814_v53 = vadd.f32 %v8550_v63, %v778_v50  ;;  %v900_v63 = vadd.f32 %v8625_v18, %v864_v29  ;;  %v745_v26 = vadd.f32 %v13203_v35, %v709_v20  ;;  %v779_v59 = vadd.f32 %v13204_v49, %v743_v57 }
 0x276   : > { %v866_v19 = vadd.f32 %v8588_v28, %v814_v53  ;;  %v815_v28 = vadd.f32 %v8559_v48, %v779_v59 }
 0x278   : > { %v883_v44 = vpop.permute.xlu1 %882  ;;  %v902_v4 = vadd.f32 %v8631_v43, %v866_v19  ;;  %v867_v18 = vadd.f32 %v8595_v42, %v815_v28 }
 0x279   : > { %v887_v39 = vpop.permute.xlu0 %886 }
 0x280   : > { %v907_v27 = vpop.permute.xlu1 %906 }
 0x281   : > { %v933_v55 = vadd.f32 %v907_v27, %v897_v2  ;;  %v911_v16 = vpop.permute.xlu0 %910  ;;  %v781_v2 = vadd.f32 %v8529_v36, %v745_v26  ;;  %v903_v36 = vadd.f32 %v883_v44, %v867_v18 }
 0x282   : > { %v935_v9 = vadd.f32 %v911_v16, %v899_v21 }
 0x283   : > { %v8677_v58 = vmul.f32 0.0625, %v933_v55  ;;  %v817_v40 = vadd.f32 %v8564_v8, %v781_v2 }
 0x284   : > { %v8681_v32 = vmul.f32 0.0625, %v935_v9 }
 0x285   : > { %987 = vrot.lane.b32.xlu1 %v8677_v58, %s7793_s14  ;;  %v869_v43 = vadd.f32 %v8599_v62, %v817_v40  ;;  %v13209_v62 = vld [vmem:[#allocation22_spill] sm:$0xff] }
 0x286   : > { %991 = vrot.lane.b32.xlu0 %v8681_v32, %s7793_s14 }
 0x287   : > { %v905_v21 = vadd.f32 %v887_v39, %v869_v43  ;;  %v8766_v43 = vrot.slane %v8677_v58, 7 }
 0x288   : > { %v913_v52 = vpop.permute.xlu1 %912 }
 0x289   : > { %v936_v12 = vadd.f32 %v913_v52, %v900_v63  ;;  %v917_v24 = vpop.permute.xlu0 %916 }
 0x28a   : > { %v938_v3 = vadd.f32 %v917_v24, %v902_v4 }
 0x28b   : > { %v8698_v22 = vmul.f32 0.0625, %v936_v12 }
 0x28c   : > { %v8701_v6 = vmul.f32 0.0625, %v938_v3 }
 0x28d   : > { %13205 = vst [vmem:[#allocation37_spill] sm:$0xff] %v8698_v22  ;;  %993 = vrot.lane.b32.xlu1 %v8698_v22, %s7793_s14 }
 0x28e   : > { %13206 = vst [vmem:[#allocation44_spill] sm:$0xff] %v8701_v6  ;;  %997 = vrot.lane.b32.xlu0 %v8701_v6, %s7793_s14 }
 0x290   : > { %v919_v27 = vpop.permute.xlu1 %918 }
 0x291   : > { %v939_v48 = vadd.f32 %v919_v27, %v903_v36  ;;  %v923_v54 = vpop.permute.xlu0 %922  ;;  %v1168_v36 = vrot.slane %v8579_v10, 7  ;;  %v8776_v27 = vrot.slane %v8698_v22, 7 }
 0x292   : > { %v941_v11 = vadd.f32 %v923_v54, %v905_v21 }
 0x293   : > { %v8709_v45 = vmul.f32 0.0625, %v939_v48  ;;  %v8771_v21 = vsel %vm628_vm6, %v8766_v43, %v1168_v36  ;;  %v1173_v48 = vrot.slane %v8591_v31, 7 }
 0x294   : > { %v8711_v8 = vmul.f32 0.0625, %v941_v11 }
 0x295   : > { %13207 = vst [vmem:[#allocation40_spill] sm:$0xff] %v8709_v45  ;;  %999 = vrot.lane.b32.xlu1 %v8709_v45, %s7793_s14  ;;  %v8781_v54 = vsel %vm628_vm6, %v8776_v27, %v1173_v48  ;;  %v8786_v11 = vrot.slane %v8709_v45, 7 }
 0x296   : > { %13208 = vst [vmem:[#allocation41_spill] sm:$0xff] %v8711_v8  ;;  %1003 = vrot.lane.b32.xlu0 %v8711_v8, %s7793_s14 }
 0x297   : > { %13210 = vst [vmem:[#allocation34_spill] sm:$0xff] %v8786_v11 }
 0x2af   : > { %v990_v42 = vpop.permute.xlu2 %989 }
 0x2b0   : > { %v1015_v51 = vsub.f32 %v13209_v62, %v990_v42  ;;  %v1178_v42 = vrot.slane %v8604_v61, 7 }
 0x2b2   : > { %v1024_v55 = vmul.f32 %v1015_v51, %v1015_v51  ;;  %v8791_v51 = vsel %vm628_vm6, %v8786_v11, %v1178_v42 }
 0x2b4   : > { %1043 = vrot.lane.b32.xlu2 %v1024_v55, %s7791_s7 }
 0x2b7   : > { %v996_v44 = vpop.permute.xlu2 %995 }
 0x2b8   : > { %v1018_v39 = vsub.f32 %v8047_v60, %v996_v44 }
 0x2ba   : > { %v1027_v16 = vmul.f32 %v1018_v39, %v1018_v39 }
 0x2bc   : > { %1049 = vrot.lane.b32.xlu2 %v1027_v16, %s7791_s7 }
 0x2bf   : > { %v1002_v38 = vpop.permute.xlu2 %1001 }
 0x2c0   : > { %v1021_v14 = vsub.f32 %v8053_v1, %v1002_v38 }
 0x2c2   : > { %v1030_v17 = vmul.f32 %v1021_v14, %v1021_v14 }
 0x2c4   : > { %1055 = vrot.lane.b32.xlu2 %v1030_v17, %s7791_s7 }
 0x2cc   : > { %1079 = vrot.lane.b32.xlu2 %v8579_v10, %s7790_s19 }
 0x2d4   : > { %1085 = vrot.lane.b32.xlu2 %v8591_v31, %s7790_s19 }
 0x2dc   : > { %1091 = vrot.lane.b32.xlu2 %v8604_v61, %s7790_s19 }
 0x2f7   : > { %v988_v50 = vpop.permute.xlu1 %987 }
 0x2f8   : > { %v1014_v9 = vsub.f32 %v8059_v5, %v988_v50  ;;  %v992_v37 = vpop.permute.xlu0 %991 }
 0x2f9   : > { %v1016_v47 = vsub.f32 %v8063_v7, %v992_v37 }
 0x2fa   : > { %v1023_v23 = vmul.f32 %v1014_v9, %v1014_v9 }
 0x2fb   : > { %v1025_v33 = vmul.f32 %v1016_v47, %v1016_v47 }
 0x2fc   : > { %1041 = vrot.lane.b32.xlu1 %v1023_v23, %s7791_s7 }
 0x2fd   : > { %1045 = vrot.lane.b32.xlu0 %v1025_v33, %s7791_s7 }
 0x2ff   : > { %v994_v30 = vpop.permute.xlu1 %993 }
 0x300   : > { %v1017_v53 = vsub.f32 %v8073_v13, %v994_v30  ;;  %v998_v0 = vpop.permute.xlu0 %997 }
 0x301   : > { %v1019_v41 = vsub.f32 %v8077_v15, %v998_v0 }
 0x302   : > { %v1026_v29 = vmul.f32 %v1017_v53, %v1017_v53 }
 0x303   : > { %v1028_v25 = vmul.f32 %v1019_v41, %v1019_v41 }
 0x304   : > { %1047 = vrot.lane.b32.xlu1 %v1026_v29, %s7791_s7 }
 0x305   : > { %1051 = vrot.lane.b32.xlu0 %v1028_v25, %s7791_s7 }
 0x307   : > { %v1000_v20 = vpop.permute.xlu1 %999 }
 0x308   : > { %v1020_v19 = vsub.f32 %v13156_v34, %v1000_v20  ;;  %v1004_v56 = vpop.permute.xlu0 %1003 }
 0x309   : > { %v1022_v57 = vsub.f32 %v13160_v46, %v1004_v56 }
 0x30a   : > { %v1029_v63 = vmul.f32 %v1020_v19, %v1020_v19 }
 0x30b   : > { %v1031_v35 = vmul.f32 %v1022_v57, %v1022_v57 }
 0x30c   : > { %1053 = vrot.lane.b32.xlu1 %v1029_v63, %s7791_s7 }
 0x30d   : > { %1057 = vrot.lane.b32.xlu0 %v1031_v35, %s7791_s7  ;;  %v1170_v35 = vrot.slane %v8681_v32, 7 }
 0x30e   : > { %v8741_v26 = vpop.permute.xlu2 %1043 }
 0x314   : > { %1077 = vrot.lane.b32.xlu1 %v8677_v58, %s7790_s19 }
 0x315   : > { %1081 = vrot.lane.b32.xlu0 %v8681_v32, %s7790_s19 }
 0x316   : > { %v8747_v4 = vpop.permute.xlu2 %1049 }
 0x31c   : > { %1083 = vrot.lane.b32.xlu1 %v8698_v22, %s7790_s19 }
 0x31d   : > { %1087 = vrot.lane.b32.xlu0 %v8701_v6, %s7790_s19 }
 0x31e   : > { %v8753_v52 = vpop.permute.xlu2 %1055 }
 0x324   : > { %1089 = vrot.lane.b32.xlu1 %v8709_v45, %s7790_s19 }
 0x325   : > { %1093 = vrot.lane.b32.xlu0 %v8711_v8, %s7790_s19 }
 0x326   : > { %v1080_v49 = vpop.permute.xlu2 %1079 }
 0x327   : > { %v1105_v59 = vsub.f32 %v13209_v62, %v1080_v49  ;;  %v8823_v49 = vsel %vm628_vm6, %v1168_v36, %v1170_v35 }
 0x329   : > { %v1114_v12 = vmul.f32 %v1105_v59, %v1105_v59  ;;  %v1175_v59 = vrot.slane %v8701_v6, 7 }
 0x32b   : > { %1133 = vrot.lane.b32.xlu2 %v1114_v12, %s7792_s8  ;;  %v8831_v12 = vsel %vm628_vm6, %v1173_v48, %v1175_v59 }
 0x32e   : > { %v1086_v24 = vpop.permute.xlu2 %1085 }
 0x32f   : > { %v1108_v2 = vsub.f32 %v8047_v60, %v1086_v24  ;;  %v1180_v24 = vrot.slane %v8711_v8, 7 }
 0x331   : > { %v1117_v3 = vmul.f32 %v1108_v2, %v1108_v2  ;;  %v8839_v2 = vsel %vm628_vm6, %v1178_v42, %v1180_v24 }
 0x333   : > { %1139 = vrot.lane.b32.xlu2 %v1117_v3, %s7792_s8 }
 0x336   : > { %v1092_v28 = vpop.permute.xlu2 %1091 }
 0x337   : > { %v1111_v40 = vsub.f32 %v8053_v1, %v1092_v28 }
 0x339   : > { %v1120_v18 = vmul.f32 %v1111_v40, %v1111_v40 }
 0x33b   : > { %1145 = vrot.lane.b32.xlu2 %v1120_v18, %s7792_s8 }
 0x343   : > { %1253 = vrot.lane.b32.xlu2 %v8771_v21, %s7790_s19 }
 0x34b   : > { %1259 = vrot.lane.b32.xlu2 %v8781_v54, %s7790_s19 }
 0x353   : > { %1265 = vrot.lane.b32.xlu2 %v8791_v51, %s7790_s19 }
 0x36e   : > { %v8795_v55 = vpop.permute.xlu1 %1041 }
 0x36f   : > { %13211 = vst [vmem:[#allocation29_spill] sm:$0xff] %v8795_v55  ;;  %v8797_v44 = vpop.permute.xlu0 %1045 }
 0x370   : > { %13212 = vst [vmem:[#allocation31_spill] sm:$0xff] %v8797_v44 }
 0x376   : > { %v8799_v39 = vpop.permute.xlu1 %1047 }
 0x377   : > { %13213 = vst [vmem:[#allocation49_spill] sm:$0xff] %v8799_v39  ;;  %v8801_v16 = vpop.permute.xlu0 %1051 }
 0x378   : > { %13214 = vst [vmem:[#allocation27_spill] sm:$0xff] %v8801_v16 }
 0x37e   : > { %v8803_v38 = vpop.permute.xlu1 %1053 }
 0x37f   : > { %13215 = vst [vmem:[#allocation50_spill] sm:$0xff] %v8803_v38  ;;  %v8805_v14 = vpop.permute.xlu0 %1057 }
 0x380   : > { %13216 = vst [vmem:[#allocation25_spill] sm:$0xff] %v8805_v14 }
 0x385   : > { %v8843_v3 = vpop.permute.xlu2 %1133 }
 0x386   : > { %v1078_v17 = vpop.permute.xlu1 %1077 }
 0x387   : > { %v1104_v50 = vsub.f32 %v8059_v5, %v1078_v17  ;;  %v1082_v9 = vpop.permute.xlu0 %1081 }
 0x388   : > { %v1106_v37 = vsub.f32 %v8063_v7, %v1082_v9 }
 0x389   : > { %v1113_v47 = vmul.f32 %v1104_v50, %v1104_v50 }
 0x38a   : > { %v1115_v23 = vmul.f32 %v1106_v37, %v1106_v37 }
 0x38b   : > { %1131 = vrot.lane.b32.xlu1 %v1113_v47, %s7792_s8 }
 0x38c   : > { %1135 = vrot.lane.b32.xlu0 %v1115_v23, %s7792_s8 }
 0x38d   : > { %v8845_v28 = vpop.permute.xlu2 %1139 }
 0x38e   : > { %v1084_v33 = vpop.permute.xlu1 %1083 }
 0x38f   : > { %v1107_v30 = vsub.f32 %v8073_v13, %v1084_v33  ;;  %v1088_v53 = vpop.permute.xlu0 %1087 }
 0x390   : > { %v1109_v0 = vsub.f32 %v8077_v15, %v1088_v53 }
 0x391   : > { %v1116_v41 = vmul.f32 %v1107_v30, %v1107_v30 }
 0x392   : > { %v1118_v29 = vmul.f32 %v1109_v0, %v1109_v0 }
 0x393   : > { %1137 = vrot.lane.b32.xlu1 %v1116_v41, %s7792_s8 }
 0x394   : > { %1141 = vrot.lane.b32.xlu0 %v1118_v29, %s7792_s8 }
 0x395   : > { %v8851_v36 = vpop.permute.xlu2 %1145 }
 0x396   : > { %v1090_v25 = vpop.permute.xlu1 %1089  ;;  %13219 = vst [vmem:[#allocation55_spill] sm:$0xff] %v8851_v36 }
 0x397   : > { %v1110_v20 = vsub.f32 %v13156_v34, %v1090_v25  ;;  %v1094_v19 = vpop.permute.xlu0 %1093 }
 0x398   : > { %v1112_v56 = vsub.f32 %v13160_v46, %v1094_v19 }
 0x399   : > { %v1119_v57 = vmul.f32 %v1110_v20, %v1110_v20 }
 0x39a   : > { %v1121_v63 = vmul.f32 %v1112_v56, %v1112_v56 }
 0x39b   : > { %1143 = vrot.lane.b32.xlu1 %v1119_v57, %s7792_s8 }
 0x39c   : > { %1147 = vrot.lane.b32.xlu0 %v1121_v63, %s7792_s8 }
 0x39d   : > { %v1254_v50 = vpop.permute.xlu2 %1253 }
 0x39e   : > { %v1279_v37 = vsub.f32 %v13209_v62, %v1254_v50 }
 0x3a0   : > { %v1288_v33 = vmul.f32 %v1279_v37, %v1279_v37 }
 0x3a2   : > { %v1306_v25 = vrot.slane %v1288_v33, 1 }
 0x3a3   : > { %1251 = vrot.lane.b32.xlu1 %v8766_v43, %s7790_s19 }
 0x3a4   : > { %1255 = vrot.lane.b32.xlu0 %v8823_v49, %s7790_s19 }
 0x3a5   : > { %v1260_v47 = vpop.permute.xlu2 %1259 }
 0x3a6   : > { %v1282_v20 = vsub.f32 %v8047_v60, %v1260_v47 }
 0x3a8   : > { %v1291_v59 = vmul.f32 %v1282_v20, %v1282_v20 }
 0x3ab   : > { %1257 = vrot.lane.b32.xlu1 %v8776_v27, %s7790_s19 }
 0x3ac   : > { %1261 = vrot.lane.b32.xlu0 %v8831_v12, %s7790_s19 }
 0x3ad   : > { %v1266_v37 = vpop.permute.xlu2 %1265 }
 0x3b3   : > { %1263 = vrot.lane.b32.xlu1 %v8786_v11, %s7790_s19 }
 0x3b4   : > { %1267 = vrot.lane.b32.xlu0 %v8839_v2, %s7790_s19 }
 0x3fd   : > { %v8847_v40 = vpop.permute.xlu1 %1131 }
 0x3fe   : > { %13217 = vst [vmem:[#allocation38_spill] sm:$0xff] %v8847_v40  ;;  %v8849_v18 = vpop.permute.xlu0 %1135 }
 0x3ff   : > { %13218 = vst [vmem:[#allocation45_spill] sm:$0xff] %v8849_v18 }
 0x405   : > { %v8853_v48 = vpop.permute.xlu1 %1137 }
 0x406   : > { %13220 = vst [vmem:[#allocation26_spill] sm:$0xff] %v8853_v48  ;;  %v8855_v17 = vpop.permute.xlu0 %1141 }
 0x407   : > { %13221 = vst [vmem:[#allocation39_spill] sm:$0xff] %v8855_v17 }
 0x40d   : > { %v8857_v42 = vpop.permute.xlu1 %1143 }
 0x40e   : > { %13222 = vst [vmem:[#allocation46_spill] sm:$0xff] %v8857_v42  ;;  %v8859_v9 = vpop.permute.xlu0 %1147 }
 0x40f   : > { %13223 = vst [vmem:[#allocation56_spill] sm:$0xff] %v8859_v9 }
 0x415   : > { %v1252_v23 = vpop.permute.xlu1 %1251 }
 0x416   : > { %v1278_v30 = vsub.f32 %v8059_v5, %v1252_v23  ;;  %v1256_v53 = vpop.permute.xlu0 %1255 }
 0x417   : > { %v1280_v0 = vsub.f32 %v8063_v7, %v1256_v53  ;;  %v1285_v53 = vsub.f32 %v8053_v1, %v1266_v37 }
 0x418   : > { %v1287_v41 = vmul.f32 %v1278_v30, %v1278_v30  ;;  %v1311_v30 = vrot.slane %v1291_v59, 1 }
 0x419   : > { %v1289_v29 = vmul.f32 %v1280_v0, %v1280_v0 }
 0x41a   : > { %v1305_v19 = vrot.slane %v1287_v41, 1 }
 0x41b   : > { %v1308_v56 = vrot.slane %v1289_v29, 1 }
 0x41c   : > { %v1307_v57 = vsel %vm452_vm4, %v1305_v19, %v1306_v25  ;;  %v1294_v19 = vmul.f32 %v1285_v53, %v1285_v53  ;;  %v1357_v53 = vrot.slane %v8579_v10, 6 }
 0x41d   : > { %1324 = vrot.lane.b32.xlu0 %v1308_v56, %s7792_s8  ;;  %v1258_v63 = vpop.permute.xlu1 %1257  ;;  %1320 = vrot.lane.b32.xlu1 %v1307_v57, %s7792_s8  ;;  %v1309_v35 = vsel %vm452_vm4, %v1306_v25, %v1308_v56 }
 0x41e   : > { %v1281_v24 = vsub.f32 %v8073_v13, %v1258_v63  ;;  %1322 = vrot.lane.b32.xlu2 %v1309_v35, %s7792_s8  ;;  %v1262_v50 = vpop.permute.xlu0 %1261 }
 0x41f   : > { %v1283_v47 = vsub.f32 %v8077_v15, %v1262_v50 }
 0x420   : > { %v1290_v23 = vmul.f32 %v1281_v24, %v1281_v24  ;;  %v1316_v24 = vrot.slane %v1294_v19, 1 }
 0x421   : > { %v1292_v33 = vmul.f32 %v1283_v47, %v1283_v47 }
 0x422   : > { %v1310_v0 = vrot.slane %v1290_v23, 1 }
 0x423   : > { %v1313_v41 = vrot.slane %v1292_v33, 1  ;;  %v1359_v33 = vrot.slane %v8681_v32, 6 }
 0x424   : > { %v1312_v29 = vsel %vm452_vm4, %v1310_v0, %v1311_v30 }
 0x425   : > { %1330 = vrot.lane.b32.xlu0 %v1313_v41, %s7792_s8  ;;  %v1264_v25 = vpop.permute.xlu1 %1263  ;;  %1326 = vrot.lane.b32.xlu1 %v1312_v29, %s7792_s8  ;;  %v1314_v20 = vsel %vm452_vm4, %v1311_v30, %v1313_v41  ;;  %v8887_v30 = vrot.slane %v8677_v58, 6  ;;  %v8891_v0 = vsel %vm224_vm1, %v1357_v53, %v1359_v33  ;;  %v1364_v29 = vrot.slane %v8701_v6, 6 }
 0x426   : > { %v1284_v56 = vsub.f32 %v13156_v34, %v1264_v25  ;;  %1328 = vrot.lane.b32.xlu2 %v1314_v20, %s7792_s8  ;;  %v1268_v57 = vpop.permute.xlu0 %1267  ;;  %v8905_v25 = vrot.slane %v8698_v22, 6  ;;  %v1362_v20 = vrot.slane %v8591_v31, 6 }
 0x427   : > { %v1286_v63 = vsub.f32 %v13160_v46, %v1268_v57  ;;  %v8899_v41 = vsel %vm224_vm1, %v8887_v30, %v1357_v53  ;;  %v1369_v57 = vrot.slane %v8711_v8, 6 }
 0x428   : > { %v1293_v35 = vmul.f32 %v1284_v56, %v1284_v56  ;;  %13224 = vst [vmem:[#allocation42_spill] sm:$0xff] %v8905_v25  ;;  %v8909_v19 = vsel %vm224_vm1, %v1362_v20, %v1364_v29  ;;  %v8917_v56 = vsel %vm224_vm1, %v8905_v25, %v1362_v20 }
 0x429   : > { %v1295_v59 = vmul.f32 %v1286_v63, %v1286_v63  ;;  %v8923_v63 = vrot.slane %v8709_v45, 6 }
 0x42a   : > { %v1315_v50 = vrot.slane %v1293_v35, 1  ;;  %v1367_v35 = vrot.slane %v8604_v61, 6 }
 0x42b   : > { %v1318_v37 = vrot.slane %v1295_v59, 1  ;;  %13225 = vst [vmem:[#allocation61_spill] sm:$0xff] %v8923_v63 }
 0x42c   : > { %v1317_v47 = vsel %vm452_vm4, %v1315_v50, %v1316_v24  ;;  %v8927_v59 = vsel %vm224_vm1, %v1367_v35, %v1369_v57 }
 0x42d   : > { %1336 = vrot.lane.b32.xlu0 %v1318_v37, %s7792_s8  ;;  %1332 = vrot.lane.b32.xlu1 %v1317_v47, %s7792_s8  ;;  %v1319_v23 = vsel %vm452_vm4, %v1316_v24, %v1318_v37  ;;  %v8935_v24 = vsel %vm224_vm1, %v8923_v63, %v1367_v35 }
 0x42e   : > { %1334 = vrot.lane.b32.xlu2 %v1319_v23, %s7792_s8 }
 0x435   : > { %1444 = vrot.lane.b32.xlu0 %v8891_v0, %s7793_s14  ;;  %1440 = vrot.lane.b32.xlu1 %v8887_v30, %s7793_s14 }
 0x436   : > { %1442 = vrot.lane.b32.xlu2 %v8899_v41, %s7793_s14 }
 0x43d   : > { %1450 = vrot.lane.b32.xlu0 %v8909_v19, %s7793_s14  ;;  %1446 = vrot.lane.b32.xlu1 %v8905_v25, %s7793_s14 }
 0x43e   : > { %1448 = vrot.lane.b32.xlu2 %v8917_v56, %s7793_s14 }
 0x445   : > { %1456 = vrot.lane.b32.xlu0 %v8927_v59, %s7793_s14  ;;  %1452 = vrot.lane.b32.xlu1 %v8923_v63, %s7793_s14 }
 0x446   : > { %1454 = vrot.lane.b32.xlu2 %v8935_v24, %s7793_s14 }
 0x478   : > { %v8939_v50 = vpop.permute.xlu2 %1322 }
 0x480   : > { %v8941_v37 = vpop.permute.xlu2 %1328 }
 0x488   : > { %v8947_v33 = vpop.permute.xlu2 %1334 }
 0x489   : > { %13228 = vst [vmem:[#allocation35_spill] sm:$0xff] %v8947_v33 }
 0x48f   : > { %v8943_v47 = vpop.permute.xlu0 %1324  ;;  %v8945_v23 = vpop.permute.xlu1 %1320 }
 0x490   : > { %13226 = vst [vmem:[#allocation43_spill] sm:$0xff] %v8943_v47  ;;  %v1443_v20 = vpop.permute.xlu2 %1442 }
 0x491   : > { %13227 = vst [vmem:[#allocation62_spill] sm:$0xff] %v8945_v23  ;;  %v1468_v9 = vsub.f32 %v13209_v62, %v1443_v20 }
 0x493   : > { %v1477_v14 = vmul.f32 %v1468_v9, %v1468_v9 }
 0x497   : > { %v8949_v53 = vpop.permute.xlu0 %1330  ;;  %v8951_v29 = vpop.permute.xlu1 %1326 }
 0x498   : > { %13229 = vst [vmem:[#allocation67_spill] sm:$0xff] %v8949_v53  ;;  %v1449_v42 = vpop.permute.xlu2 %1448  ;;  %v1495_v53 = vrot.slane %v1477_v14, 2 }
 0x499   : > { %13230 = vst [vmem:[#allocation30_spill] sm:$0xff] %v8951_v29  ;;  %v1471_v29 = vsub.f32 %v8047_v60, %v1449_v42 }
 0x49f   : > { %v8953_v57 = vpop.permute.xlu0 %1336  ;;  %v8955_v35 = vpop.permute.xlu1 %1332 }
 0x4a0   : > { %13231 = vst [vmem:[#allocation68_spill] sm:$0xff] %v8953_v57 }
 0x4a1   : > { %13232 = vst [vmem:[#allocation33_spill] sm:$0xff] %v8955_v35 }
 0x4a7   : > { %v1445_v17 = vpop.permute.xlu0 %1444  ;;  %v1441_v48 = vpop.permute.xlu1 %1440 }
 0x4a8   : > { %v1469_v40 = vsub.f32 %v8063_v7, %v1445_v17  ;;  %v1467_v23 = vsub.f32 %v8059_v5, %v1441_v48  ;;  %v1480_v48 = vmul.f32 %v1471_v29, %v1471_v29  ;;  %v1455_v17 = vpop.permute.xlu2 %1454 }
 0x4aa   : > { %v1478_v47 = vmul.f32 %v1469_v40, %v1469_v40  ;;  %v1476_v38 = vmul.f32 %v1467_v23, %v1467_v23  ;;  %v1474_v23 = vsub.f32 %v8053_v1, %v1455_v17 }
 0x4ac   : > { %v1497_v16 = vrot.slane %v1478_v47, 2  ;;  %v1494_v39 = vrot.slane %v1476_v38, 2  ;;  %v1500_v47 = vrot.slane %v1480_v48, 2 }
 0x4ae   : > { %1513 = vrot.lane.b32.xlu0 %v1497_v16, %s7791_s7  ;;  %v1498_v57 = vsel %vm522_vm5, %v1495_v53, %v1497_v16  ;;  %v1496_v20 = vsel %vm522_vm5, %v1494_v39, %v1495_v53 }
 0x4af   : > { %1511 = vrot.lane.b32.xlu2 %v1498_v57, %s7791_s7  ;;  %v1451_v9 = vpop.permute.xlu0 %1450  ;;  %v1447_v35 = vpop.permute.xlu1 %1446  ;;  %1509 = vrot.lane.b32.xlu1 %v1496_v20, %s7791_s7 }
 0x4b0   : > { %v1472_v40 = vsub.f32 %v8077_v15, %v1451_v9  ;;  %v1470_v14 = vsub.f32 %v8073_v13, %v1447_v35  ;;  %v1483_v35 = vmul.f32 %v1474_v23, %v1474_v23 }
 0x4b2   : > { %v1481_v42 = vmul.f32 %v1472_v40, %v1472_v40  ;;  %v1479_v38 = vmul.f32 %v1470_v14, %v1470_v14  ;;  %v1505_v14 = vrot.slane %v1483_v35, 2 }
 0x4b4   : > { %v1502_v16 = vrot.slane %v1481_v42, 2  ;;  %v1499_v55 = vrot.slane %v1479_v38, 2 }
 0x4b6   : > { %1519 = vrot.lane.b32.xlu0 %v1502_v16, %s7791_s7  ;;  %v1503_v39 = vsel %vm522_vm5, %v1500_v47, %v1502_v16  ;;  %v1501_v53 = vsel %vm522_vm5, %v1499_v55, %v1500_v47 }
 0x4b7   : > { %1517 = vrot.lane.b32.xlu2 %v1503_v39, %s7791_s7  ;;  %v1457_v29 = vpop.permute.xlu0 %1456  ;;  %v1453_v57 = vpop.permute.xlu1 %1452  ;;  %1515 = vrot.lane.b32.xlu1 %v1501_v53, %s7791_s7 }
 0x4b8   : > { %v1475_v20 = vsub.f32 %v13160_v46, %v1457_v29  ;;  %v1473_v9 = vsub.f32 %v13156_v34, %v1453_v57 }
 0x4ba   : > { %v1484_v48 = vmul.f32 %v1475_v20, %v1475_v20  ;;  %v1482_v40 = vmul.f32 %v1473_v9, %v1473_v9 }
 0x4bc   : > { %v1507_v17 = vrot.slane %v1484_v48, 2  ;;  %v1504_v42 = vrot.slane %v1482_v40, 2 }
 0x4be   : > { %1525 = vrot.lane.b32.xlu0 %v1507_v17, %s7791_s7  ;;  %v1508_v55 = vsel %vm522_vm5, %v1505_v14, %v1507_v17  ;;  %v1506_v38 = vsel %vm522_vm5, %v1504_v42, %v1505_v14 }
 0x4bf   : > { %1523 = vrot.lane.b32.xlu2 %v1508_v55, %s7791_s7  ;;  %1521 = vrot.lane.b32.xlu1 %v1506_v38, %s7791_s7 }
 0x4c6   : > { %1549 = vrot.lane.b32.xlu0 %v8891_v0, %s7790_s19 }
 0x4c7   : > { %1547 = vrot.lane.b32.xlu2 %v8899_v41, %s7790_s19  ;;  %1545 = vrot.lane.b32.xlu1 %v8887_v30, %s7790_s19 }
 0x4ce   : > { %1555 = vrot.lane.b32.xlu0 %v8909_v19, %s7790_s19 }
 0x4cf   : > { %1553 = vrot.lane.b32.xlu2 %v8917_v56, %s7790_s19  ;;  %1551 = vrot.lane.b32.xlu1 %v8905_v25, %s7790_s19 }
 0x4d6   : > { %1561 = vrot.lane.b32.xlu0 %v8927_v59, %s7790_s19 }
 0x4d7   : > { %1559 = vrot.lane.b32.xlu2 %v8935_v24, %s7790_s19  ;;  %1557 = vrot.lane.b32.xlu1 %v8923_v63, %s7790_s19 }
 0x509   : > { %v8999_v47 = vpop.permute.xlu2 %1511 }
 0x511   : > { %v9001_v23 = vpop.permute.xlu2 %1517 }
 0x512   : > { %13233 = vst [vmem:[#allocation51_spill] sm:$0xff] %v9001_v23 }
 0x519   : > { %v9007_v53 = vpop.permute.xlu2 %1523 }
 0x51a   : > { %13236 = vst [vmem:[#allocation52_spill] sm:$0xff] %v9007_v53 }
 0x520   : > { %v9003_v16 = vpop.permute.xlu0 %1513 }
 0x521   : > { %13234 = vst [vmem:[#allocation73_spill] sm:$0xff] %v9003_v16  ;;  %v9005_v39 = vpop.permute.xlu1 %1509  ;;  %v1548_v35 = vpop.permute.xlu2 %1547 }
 0x522   : > { %13235 = vst [vmem:[#allocation28_spill] sm:$0xff] %v9005_v39  ;;  %v1573_v48 = vsub.f32 %v13209_v62, %v1548_v35 }
 0x524   : > { %v1582_v17 = vmul.f32 %v1573_v48, %v1573_v48 }
 0x528   : > { %v9009_v29 = vpop.permute.xlu0 %1519 }
 0x529   : > { %13237 = vst [vmem:[#allocation74_spill] sm:$0xff] %v9009_v29  ;;  %v9011_v57 = vpop.permute.xlu1 %1515  ;;  %v1554_v40 = vpop.permute.xlu2 %1553  ;;  %v1600_v29 = vrot.slane %v1582_v17, 2 }
 0x52a   : > { %13238 = vst [vmem:[#allocation47_spill] sm:$0xff] %v9011_v57  ;;  %v1576_v57 = vsub.f32 %v8047_v60, %v1554_v40 }
 0x530   : > { %v9013_v20 = vpop.permute.xlu0 %1525 }
 0x531   : > { %13239 = vst [vmem:[#allocation57_spill] sm:$0xff] %v9013_v20  ;;  %v9015_v9 = vpop.permute.xlu1 %1521  ;;  %v1560_v17 = vpop.permute.xlu2 %1559 }
 0x532   : > { %13240 = vst [vmem:[#allocation79_spill] sm:$0xff] %v9015_v9 }
 0x538   : > { %v1550_v14 = vpop.permute.xlu0 %1549 }
 0x539   : > { %v1574_v42 = vsub.f32 %v8063_v7, %v1550_v14  ;;  %v1546_v55 = vpop.permute.xlu1 %1545  ;;  %v1585_v14 = vmul.f32 %v1576_v57, %v1576_v57 }
 0x53a   : > { %v1572_v38 = vsub.f32 %v8059_v5, %v1546_v55 }
 0x53b   : > { %v1583_v39 = vmul.f32 %v1574_v42, %v1574_v42  ;;  %v1605_v42 = vrot.slane %v1585_v14, 2 }
 0x53c   : > { %v1581_v16 = vmul.f32 %v1572_v38, %v1572_v38  ;;  %v1579_v38 = vsub.f32 %v8053_v1, %v1560_v17 }
 0x53d   : > { %v1602_v53 = vrot.slane %v1583_v39, 2 }
 0x53e   : > { %v1599_v63 = vrot.slane %v1581_v16, 2 }
 0x53f   : > { %1618 = vrot.lane.b32.xlu0 %v1602_v53, %s7792_s8  ;;  %v1603_v20 = vsel %vm522_vm5, %v1600_v29, %v1602_v53 }
 0x540   : > { %1616 = vrot.lane.b32.xlu2 %v1603_v20, %s7792_s8  ;;  %v1556_v35 = vpop.permute.xlu0 %1555  ;;  %v1601_v48 = vsel %vm522_vm5, %v1599_v63, %v1600_v29  ;;  %v1588_v20 = vmul.f32 %v1579_v38, %v1579_v38  ;;  %v1653_v38 = vrot.slane %v8681_v32, 1 }
 0x541   : > { %v1577_v9 = vsub.f32 %v8077_v15, %v1556_v35  ;;  %v1552_v55 = vpop.permute.xlu1 %1551  ;;  %1614 = vrot.lane.b32.xlu1 %v1601_v48, %s7792_s8 }
 0x542   : > { %v1575_v40 = vsub.f32 %v8073_v13, %v1552_v55  ;;  %v1610_v17 = vrot.slane %v1588_v20, 2 }
 0x543   : > { %v1586_v39 = vmul.f32 %v1577_v9, %v1577_v9 }
 0x544   : > { %v1584_v16 = vmul.f32 %v1575_v40, %v1575_v40 }
 0x545   : > { %v1607_v53 = vrot.slane %v1586_v39, 2 }
 0x546   : > { %v1604_v25 = vrot.slane %v1584_v16, 2 }
 0x547   : > { %1624 = vrot.lane.b32.xlu0 %v1607_v53, %s7792_s8  ;;  %v1608_v63 = vsel %vm522_vm5, %v1605_v42, %v1607_v53  ;;  %v1656_v53 = vrot.slane %v8591_v31, 1 }
 0x548   : > { %1622 = vrot.lane.b32.xlu2 %v1608_v63, %s7792_s8  ;;  %v1562_v29 = vpop.permute.xlu0 %1561  ;;  %v1606_v57 = vsel %vm522_vm5, %v1604_v25, %v1605_v42  ;;  %v1655_v42 = vrot.slane %v8698_v22, 1  ;;  %v1650_v63 = vrot.slane %v8677_v58, 1 }
 0x549   : > { %v1580_v35 = vsub.f32 %v13160_v46, %v1562_v29  ;;  %v1558_v48 = vpop.permute.xlu1 %1557  ;;  %1620 = vrot.lane.b32.xlu1 %v1606_v57, %s7792_s8  ;;  %v1651_v29 = vrot.slane %v8579_v10, 1 }
 0x54a   : > { %v1578_v9 = vsub.f32 %v13156_v34, %v1558_v48  ;;  %v9047_v57 = vsel %vm452_vm4, %v1655_v42, %v1656_v53  ;;  %v1663_v48 = vrot.slane %v8711_v8, 1 }
 0x54b   : > { %v1589_v14 = vmul.f32 %v1580_v35, %v1580_v35  ;;  %v9052_v20 = vsel %vm452_vm4, %v1651_v29, %v1653_v38  ;;  %v9057_v35 = vsel %vm452_vm4, %v1650_v63, %v1651_v29 }
 0x54c   : > { %v1587_v55 = vmul.f32 %v1578_v9, %v1578_v9  ;;  %v1660_v9 = vrot.slane %v8709_v45, 1 }
 0x54d   : > { %v1612_v40 = vrot.slane %v1589_v14, 2  ;;  %v1661_v14 = vrot.slane %v8604_v61, 1 }
 0x54e   : > { %v1609_v39 = vrot.slane %v1587_v55, 2  ;;  %v1658_v55 = vrot.slane %v8701_v6, 1 }
 0x54f   : > { %1630 = vrot.lane.b32.xlu0 %v1612_v40, %s7792_s8  ;;  %v1613_v16 = vsel %vm522_vm5, %v1610_v17, %v1612_v40  ;;  %v9071_v40 = vsel %vm452_vm4, %v1660_v9, %v1661_v14 }
 0x550   : > { %1628 = vrot.lane.b32.xlu2 %v1613_v16, %s7792_s8  ;;  %v1611_v25 = vsel %vm522_vm5, %v1609_v39, %v1610_v17  ;;  %v9066_v17 = vsel %vm452_vm4, %v1661_v14, %v1663_v48  ;;  %v9076_v39 = vsel %vm452_vm4, %v1656_v53, %v1658_v55 }
 0x551   : > { %1626 = vrot.lane.b32.xlu1 %v1611_v25, %s7792_s8 }
 0x557   : > { %1669 = vrot.lane.b32.xlu0 %v9047_v57, %s7791_s7 }
 0x558   : > { %1667 = vrot.lane.b32.xlu2 %v9052_v20, %s7791_s7 }
 0x559   : > { %1665 = vrot.lane.b32.xlu1 %v9057_v35, %s7791_s7 }
 0x55f   : > { %1675 = vrot.lane.b32.xlu0 %v9066_v17, %s7791_s7 }
 0x560   : > { %1673 = vrot.lane.b32.xlu2 %v9071_v40, %s7791_s7 }
 0x561   : > { %1671 = vrot.lane.b32.xlu1 %v9076_v39, %s7791_s7 }
 0x59a   : > { %v9080_v16 = vpop.permute.xlu2 %1616 }
 0x5a2   : > { %v9082_v25 = vpop.permute.xlu2 %1622 }
 0x5a3   : > { %13241 = vst [vmem:[#allocation48_spill] sm:$0xff] %v9082_v25 }
 0x5aa   : > { %v9084_v42 = vpop.permute.xlu2 %1628 }
 0x5ab   : > { %13242 = vst [vmem:[#allocation58_spill] sm:$0xff] %v9084_v42 }
 0x5b1   : > { %v9086_v38 = vpop.permute.xlu0 %1618 }
 0x5b2   : > { %13243 = vst [vmem:[#allocation80_spill] sm:$0xff] %v9086_v38  ;;  %v1668_v63 = vpop.permute.xlu2 %1667 }
 0x5b3   : > { %v1684_v29 = vsub.f32 %v13209_v62, %v1668_v63  ;;  %v9089_v48 = vpop.permute.xlu1 %1614 }
 0x5b4   : > { %13244 = vst [vmem:[#allocation63_spill] sm:$0xff] %v9089_v48 }
 0x5b5   : > { %v1690_v9 = vmul.f32 %v1684_v29, %v1684_v29 }
 0x5b7   : > { %v1702_v14 = vrot.slane %v1690_v9, 7 }
 0x5b9   : > { %1714 = vrot.lane.b32.xlu0 %v1702_v14, %s7793_s14  ;;  %v9092_v53 = vpop.permute.xlu0 %1624 }
 0x5ba   : > { %13245 = vst [vmem:[#allocation64_spill] sm:$0xff] %v9092_v53 }
 0x5bb   : > { %v9094_v55 = vpop.permute.xlu1 %1620 }
 0x5bc   : > { %13246 = vst [vmem:[#allocation36_spill] sm:$0xff] %v9094_v55 }
 0x5c1   : > { %v9096_v18 = vpop.permute.xlu0 %1630 }
 0x5c2   : > { %13247 = vst [vmem:[#allocation69_spill] sm:$0xff] %v9096_v18 }
 0x5c3   : > { %v9098_v25 = vpop.permute.xlu1 %1626 }
 0x5c4   : > { %13248 = vst [vmem:[#allocation32_spill] sm:$0xff] %v9098_v25  ;;  %v1674_v25 = vpop.permute.xlu2 %1673 }
 0x5c9   : > { %v1670_v42 = vpop.permute.xlu0 %1669 }
 0x5ca   : > { %v1685_v63 = vsub.f32 %v8073_v13, %v1670_v42 }
 0x5cb   : > { %v1666_v33 = vpop.permute.xlu1 %1665 }
 0x5cc   : > { %v1683_v38 = vsub.f32 %v8059_v5, %v1666_v33  ;;  %v1691_v55 = vmul.f32 %v1685_v63, %v1685_v63  ;;  %v1687_v33 = vsub.f32 %v13156_v34, %v1674_v25 }
 0x5ce   : > { %v1689_v44 = vmul.f32 %v1683_v38, %v1683_v38  ;;  %v1704_v38 = vrot.slane %v1691_v55, 7 }
 0x5d0   : > { %v1701_v48 = vrot.slane %v1689_v44, 7 }
 0x5d1   : > { %v1676_v9 = vpop.permute.xlu0 %1675 }
 0x5d2   : > { %1710 = vrot.lane.b32.xlu1 %v1701_v48, %s7793_s14  ;;  %v1703_v29 = vsel %vm628_vm6, %v1701_v48, %v1702_v14  ;;  %v1688_v23 = vsub.f32 %v8053_v1, %v1676_v9  ;;  %v1693_v14 = vmul.f32 %v1687_v33, %v1687_v33 }
 0x5d3   : > { %v1672_v53 = vpop.permute.xlu1 %1671  ;;  %1712 = vrot.lane.b32.xlu2 %v1703_v29, %s7793_s14 }
 0x5d4   : > { %v1686_v18 = vsub.f32 %v8047_v60, %v1672_v53  ;;  %v1694_v44 = vmul.f32 %v1688_v23, %v1688_v23  ;;  %v1707_v53 = vrot.slane %v1693_v14, 7 }
 0x5d6   : > { %v1692_v36 = vmul.f32 %v1686_v18, %v1686_v18  ;;  %v1708_v63 = vrot.slane %v1694_v44, 7 }
 0x5d8   : > { %v1705_v42 = vrot.slane %v1692_v36, 7  ;;  %v1709_v18 = vsel %vm628_vm6, %v1707_v53, %v1708_v63 }
 0x5da   : > { %1720 = vrot.lane.b32.xlu0 %v1705_v42, %s7793_s14  ;;  %1716 = vrot.lane.b32.xlu1 %v1704_v38, %s7793_s14  ;;  %v1706_v48 = vsel %vm628_vm6, %v1704_v38, %v1705_v42 }
 0x5db   : > { %1718 = vrot.lane.b32.xlu2 %v1706_v48, %s7793_s14 }
 0x5e2   : > { %1722 = vrot.lane.b32.xlu1 %v1707_v53, %s7793_s14  ;;  %1726 = vrot.lane.b32.xlu0 %v1708_v63, %s7793_s14 }
 0x5e3   : > { %1724 = vrot.lane.b32.xlu2 %v1709_v18, %s7793_s14 }
 0x5ea   : > { %1746 = vrot.lane.b32.xlu1 %v9057_v35, %s7793_s14  ;;  %1750 = vrot.lane.b32.xlu0 %v9047_v57, %s7793_s14 }
 0x5eb   : > { %1748 = vrot.lane.b32.xlu2 %v9052_v20, %s7793_s14 }
 0x5f2   : > { %1752 = vrot.lane.b32.xlu1 %v9076_v39, %s7793_s14  ;;  %1756 = vrot.lane.b32.xlu0 %v9066_v17, %s7793_s14 }
 0x5f3   : > { %1754 = vrot.lane.b32.xlu2 %v9071_v40, %s7793_s14 }
 0x62b   : > { %v9134_v55 = vpop.permute.xlu0 %1714 }
 0x62c   : > { %13252 = vst [vmem:[#allocation54_spill] sm:$0xff] %v9134_v55 }
 0x62d   : > { %v9128_v36 = vpop.permute.xlu2 %1712 }
 0x62e   : > { %13249 = vst [vmem:[#allocation70_spill] sm:$0xff] %v9128_v36 }
 0x635   : > { %v9130_v23 = vpop.permute.xlu2 %1718 }
 0x636   : > { %13250 = vst [vmem:[#allocation53_spill] sm:$0xff] %v9130_v23 }
 0x63d   : > { %v9132_v25 = vpop.permute.xlu2 %1724 }
 0x63e   : > { %13251 = vst [vmem:[#allocation75_spill] sm:$0xff] %v9132_v25 }
 0x644   : > { %v9136_v29 = vpop.permute.xlu1 %1710 }
 0x645   : > { %13253 = vst [vmem:[#allocation76_spill] sm:$0xff] %v9136_v29  ;;  %v1749_v9 = vpop.permute.xlu2 %1748 }
 0x646   : > { %v1765_v33 = vsub.f32 %v13209_v62, %v1749_v9 }
 0x648   : > { %v1771_v38 = vmul.f32 %v1765_v33, %v1765_v33 }
 0x64a   : > { %v1783_v42 = vrot.slane %v1771_v38, 7 }
 0x64c   : > { %v9139_v44 = vpop.permute.xlu1 %1716  ;;  %1795 = vrot.lane.b32.xlu0 %v1783_v42, %s7791_s7  ;;  %v9142_v48 = vpop.permute.xlu0 %1720 }
 0x64d   : > { %13254 = vst [vmem:[#allocation59_spill] sm:$0xff] %v9139_v44 }
 0x64e   : > { %13255 = vst [vmem:[#allocation81_spill] sm:$0xff] %v9142_v48 }
 0x654   : > { %v9144_v14 = vpop.permute.xlu1 %1722  ;;  %v9146_v63 = vpop.permute.xlu0 %1726 }
 0x655   : > { %13256 = vst [vmem:[#allocation60_spill] sm:$0xff] %v9144_v14 }
 0x656   : > { %13257 = vst [vmem:[#allocation82_spill] sm:$0xff] %v9146_v63  ;;  %v1755_v63 = vpop.permute.xlu2 %1754 }
 0x65c   : > { %v1747_v53 = vpop.permute.xlu1 %1746  ;;  %v1751_v18 = vpop.permute.xlu0 %1750 }
 0x65d   : > { %v1764_v55 = vsub.f32 %v8059_v5, %v1747_v53  ;;  %v1766_v9 = vsub.f32 %v8073_v13, %v1751_v18 }
 0x65f   : > { %v1770_v29 = vmul.f32 %v1764_v55, %v1764_v55  ;;  %v1772_v44 = vmul.f32 %v1766_v9, %v1766_v9  ;;  %v1768_v55 = vsub.f32 %v13156_v34, %v1755_v63 }
 0x661   : > { %v1782_v25 = vrot.slane %v1770_v29, 7  ;;  %v1785_v29 = vrot.slane %v1772_v44, 7 }
 0x663   : > { %1791 = vrot.lane.b32.xlu1 %v1782_v25, %s7791_s7  ;;  %v1784_v33 = vsel %vm628_vm6, %v1782_v25, %v1783_v42  ;;  %v1774_v42 = vmul.f32 %v1768_v55, %v1768_v55 }
 0x664   : > { %v1753_v38 = vpop.permute.xlu1 %1752  ;;  %1793 = vrot.lane.b32.xlu2 %v1784_v33, %s7791_s7  ;;  %v1757_v48 = vpop.permute.xlu0 %1756 }
 0x665   : > { %v1767_v14 = vsub.f32 %v8047_v60, %v1753_v38  ;;  %v1769_v36 = vsub.f32 %v8053_v1, %v1757_v48  ;;  %v1788_v33 = vrot.slane %v1774_v42, 7 }
 0x667   : > { %v1773_v23 = vmul.f32 %v1767_v14, %v1767_v14  ;;  %v1775_v18 = vmul.f32 %v1769_v36, %v1769_v36 }
 0x669   : > { %v1786_v53 = vrot.slane %v1773_v23, 7  ;;  %v1789_v9 = vrot.slane %v1775_v18, 7 }
 0x66b   : > { %1801 = vrot.lane.b32.xlu0 %v1786_v53, %s7791_s7  ;;  %1797 = vrot.lane.b32.xlu1 %v1785_v29, %s7791_s7  ;;  %v1787_v25 = vsel %vm628_vm6, %v1785_v29, %v1786_v53  ;;  %v1790_v48 = vsel %vm628_vm6, %v1788_v33, %v1789_v9 }
 0x66c   : > { %1799 = vrot.lane.b32.xlu2 %v1787_v25, %s7791_s7 }
 0x673   : > { %1803 = vrot.lane.b32.xlu1 %v1788_v33, %s7791_s7  ;;  %1807 = vrot.lane.b32.xlu0 %v1789_v9, %s7791_s7 }
 0x674   : > { %1805 = vrot.lane.b32.xlu2 %v1790_v48, %s7791_s7 }
 0x67b   : > { %1827 = vrot.lane.b32.xlu1 %v9057_v35, %s7795_s29  ;;  %1831 = vrot.lane.b32.xlu0 %v9047_v57, %s7795_s29 }
 0x67c   : > { %1829 = vrot.lane.b32.xlu2 %v9052_v20, %s7795_s29 }
 0x683   : > { %1833 = vrot.lane.b32.xlu1 %v9076_v39, %s7795_s29  ;;  %1837 = vrot.lane.b32.xlu0 %v9066_v17, %s7795_s29 }
 0x684   : > { %1835 = vrot.lane.b32.xlu2 %v9071_v40, %s7795_s29 }
 0x6be   : > { %v9176_v36 = vpop.permute.xlu2 %1793  ;;  %v9182_v44 = vpop.permute.xlu0 %1795 }
 0x6bf   : > { %13258 = vst [vmem:[#allocation65_spill] sm:$0xff] %v9176_v36 }
 0x6c0   : > { %13261 = vst [vmem:[#allocation72_spill] sm:$0xff] %v9182_v44 }
 0x6c6   : > { %v9178_v23 = vpop.permute.xlu2 %1799 }
 0x6c7   : > { %13259 = vst [vmem:[#allocation66_spill] sm:$0xff] %v9178_v23 }
 0x6ce   : > { %v9180_v35 = vpop.permute.xlu2 %1805 }
 0x6cf   : > { %13260 = vst [vmem:[#allocation71_spill] sm:$0xff] %v9180_v35 }
 0x6d5   : > { %v9184_v57 = vpop.permute.xlu1 %1791 }
 0x6d6   : > { %13262 = vst [vmem:[#allocation77_spill] sm:$0xff] %v9184_v57  ;;  %v1830_v20 = vpop.permute.xlu2 %1829 }
 0x6d7   : > { %v1846_v14 = vsub.f32 %v13209_v62, %v1830_v20 }
 0x6d9   : > { %v1852_v39 = vmul.f32 %v1846_v14, %v1846_v14 }
 0x6db   : > { %v1864_v63 = vrot.slane %v1852_v39, 7 }
 0x6dd   : > { %v9187_v38 = vpop.permute.xlu1 %1797  ;;  %1876 = vrot.lane.b32.xlu0 %v1864_v63, %s7794_s16  ;;  %v9190_v17 = vpop.permute.xlu0 %1801 }
 0x6de   : > { %13263 = vst [vmem:[#allocation78_spill] sm:$0xff] %v9187_v38 }
 0x6df   : > { %13264 = vst [vmem:[#allocation83_spill] sm:$0xff] %v9190_v17 }
 0x6e5   : > { %v9192_v40 = vpop.permute.xlu1 %1803  ;;  %v9194_v55 = vpop.permute.xlu0 %1807 }
 0x6e6   : > { %13265 = vst [vmem:[#allocation22_spill] sm:$0xff] %v9192_v40 }
 0x6e7   : > { %13266 = vst [vmem:[#allocation84_spill] sm:$0xff] %v9194_v55  ;;  %v1836_v55 = vpop.permute.xlu2 %1835 }
 0x6ed   : > { %v1828_v29 = vpop.permute.xlu1 %1827  ;;  %v1832_v53 = vpop.permute.xlu0 %1831 }
 0x6ee   : > { %v1845_v18 = vsub.f32 %v8059_v5, %v1828_v29  ;;  %v1847_v9 = vsub.f32 %v8073_v13, %v1832_v53  ;;  %v1849_v29 = vsub.f32 %v13156_v34, %v1836_v55 }
 0x6f0   : > { %v1851_v25 = vmul.f32 %v1845_v18, %v1845_v18  ;;  %v1853_v14 = vmul.f32 %v1847_v9, %v1847_v9 }
 0x6f2   : > { %v1863_v42 = vrot.slane %v1851_v25, 7  ;;  %v1866_v18 = vrot.slane %v1853_v14, 7 }
 0x6f4   : > { %1872 = vrot.lane.b32.xlu1 %v1863_v42, %s7794_s16  ;;  %v1865_v33 = vsel %vm628_vm6, %v1863_v42, %v1864_v63  ;;  %v1855_v42 = vmul.f32 %v1849_v29, %v1849_v29 }
 0x6f5   : > { %v1834_v48 = vpop.permute.xlu1 %1833  ;;  %1874 = vrot.lane.b32.xlu2 %v1865_v33, %s7794_s16  ;;  %v1838_v20 = vpop.permute.xlu0 %1837 }
 0x6f6   : > { %v1848_v39 = vsub.f32 %v8047_v60, %v1834_v48  ;;  %v1850_v17 = vsub.f32 %v8053_v1, %v1838_v20  ;;  %v1869_v33 = vrot.slane %v1855_v42, 7 }
 0x6f8   : > { %v1854_v40 = vmul.f32 %v1848_v39, %v1848_v39  ;;  %v1856_v53 = vmul.f32 %v1850_v17, %v1850_v17 }
 0x6fa   : > { %v1867_v25 = vrot.slane %v1854_v40, 7  ;;  %v1870_v9 = vrot.slane %v1856_v53, 7 }
 0x6fc   : > { %1882 = vrot.lane.b32.xlu0 %v1867_v25, %s7794_s16  ;;  %1878 = vrot.lane.b32.xlu1 %v1866_v18, %s7794_s16  ;;  %v1868_v63 = vsel %vm628_vm6, %v1866_v18, %v1867_v25  ;;  %v1871_v55 = vsel %vm628_vm6, %v1869_v33, %v1870_v9 }
 0x6fd   : > { %1880 = vrot.lane.b32.xlu2 %v1868_v63, %s7794_s16 }
 0x704   : > { %1884 = vrot.lane.b32.xlu1 %v1869_v33, %s7794_s16  ;;  %1888 = vrot.lane.b32.xlu0 %v1870_v9, %s7794_s16 }
 0x705   : > { %1886 = vrot.lane.b32.xlu2 %v1871_v55, %s7794_s16 }
 0x70c   : > { %1908 = vrot.lane.b32.xlu1 %v8766_v43, %s7791_s7  ;;  %1912 = vrot.lane.b32.xlu0 %v8823_v49, %s7791_s7 }
 0x70d   : > { %1910 = vrot.lane.b32.xlu2 %v8771_v21, %s7791_s7 }
 0x714   : > { %1914 = vrot.lane.b32.xlu1 %v8776_v27, %s7791_s7  ;;  %1918 = vrot.lane.b32.xlu0 %v8831_v12, %s7791_s7 }
 0x715   : > { %1916 = vrot.lane.b32.xlu2 %v8781_v54, %s7791_s7 }
 0x71c   : > { %1920 = vrot.lane.b32.xlu1 %v8786_v11, %s7791_s7  ;;  %1924 = vrot.lane.b32.xlu0 %v8839_v2, %s7791_s7 }
 0x71d   : > { %1922 = vrot.lane.b32.xlu2 %v8791_v51, %s7791_s7 }
 0x74f   : > { %v9230_v17 = vpop.permute.xlu2 %1874  ;;  %v9234_v48 = vpop.permute.xlu0 %1876 }
 0x750   : > { %13267 = vst [vmem:[#allocation85_spill] sm:$0xff] %v9230_v17 }
 0x751   : > { %13269 = vst [vmem:[#allocation87_spill] sm:$0xff] %v9234_v48 }
 0x757   : > { %v9232_v40 = vpop.permute.xlu2 %1880 }
 0x758   : > { %13268 = vst [vmem:[#allocation86_spill] sm:$0xff] %v9232_v40 }
 0x75f   : > { %v9238_v14 = vpop.permute.xlu2 %1886 }
 0x760   : > { %13271 = vst [vmem:[#allocation89_spill] sm:$0xff] %v9238_v14 }
 0x766   : > { %v9236_v20 = vpop.permute.xlu1 %1872 }
 0x767   : > { %13270 = vst [vmem:[#allocation88_spill] sm:$0xff] %v9236_v20  ;;  %v1911_v18 = vpop.permute.xlu2 %1910 }
 0x768   : > { %v1936_v63 = vsub.f32 %v13209_v62, %v1911_v18 }
 0x76a   : > { %v1945_v55 = vmul.f32 %v1936_v63, %v1936_v63 }
 0x76e   : > { %v9240_v39 = vpop.permute.xlu1 %1878  ;;  %v9242_v29 = vpop.permute.xlu0 %1882 }
 0x76f   : > { %13272 = vst [vmem:[#allocation90_spill] sm:$0xff] %v9240_v39  ;;  %v1917_v42 = vpop.permute.xlu2 %1916  ;;  %v1963_v39 = vrot.slane %v1945_v55, 1 }
 0x770   : > { %13273 = vst [vmem:[#allocation91_spill] sm:$0xff] %v9242_v29  ;;  %v1939_v29 = vsub.f32 %v8047_v60, %v1917_v42 }
 0x776   : > { %v9244_v25 = vpop.permute.xlu1 %1884  ;;  %v9246_v53 = vpop.permute.xlu0 %1888 }
 0x777   : > { %13274 = vst [vmem:[#allocation92_spill] sm:$0xff] %v9244_v25  ;;  %v1923_v42 = vpop.permute.xlu2 %1922 }
 0x778   : > { %13275 = vst [vmem:[#allocation93_spill] sm:$0xff] %v9246_v53  ;;  %v1942_v55 = vsub.f32 %v8053_v1, %v1923_v42 }
 0x77e   : > { %v1909_v9 = vpop.permute.xlu1 %1908  ;;  %v1913_v33 = vpop.permute.xlu0 %1912 }
 0x77f   : > { %v1935_v38 = vsub.f32 %v8059_v5, %v1909_v9  ;;  %v1937_v20 = vsub.f32 %v8063_v7, %v1913_v33  ;;  %v1948_v9 = vmul.f32 %v1939_v29, %v1939_v29 }
 0x781   : > { %v1944_v57 = vmul.f32 %v1935_v38, %v1935_v38  ;;  %v1946_v48 = vmul.f32 %v1937_v20, %v1937_v20  ;;  %v1968_v33 = vrot.slane %v1948_v9, 1 }
 0x783   : > { %v1962_v44 = vrot.slane %v1944_v57, 1  ;;  %v1965_v14 = vrot.slane %v1946_v48, 1 }
 0x785   : > { %1981 = vrot.lane.b32.xlu0 %v1965_v14, %s7793_s14  ;;  %v1964_v53 = vsel %vm452_vm4, %v1962_v44, %v1963_v39  ;;  %v1966_v18 = vsel %vm452_vm4, %v1963_v39, %v1965_v14 }
 0x786   : > { %v1915_v25 = vpop.permute.xlu1 %1914  ;;  %1977 = vrot.lane.b32.xlu1 %v1964_v53, %s7793_s14  ;;  %1979 = vrot.lane.b32.xlu2 %v1966_v18, %s7793_s14  ;;  %v1919_v63 = vpop.permute.xlu0 %1918 }
 0x787   : > { %v1938_v38 = vsub.f32 %v8073_v13, %v1915_v25  ;;  %v1940_v20 = vsub.f32 %v8077_v15, %v1919_v63  ;;  %v1951_v25 = vmul.f32 %v1942_v55, %v1942_v55 }
 0x789   : > { %v1947_v57 = vmul.f32 %v1938_v38, %v1938_v38  ;;  %v1949_v48 = vmul.f32 %v1940_v20, %v1940_v20  ;;  %v1973_v20 = vrot.slane %v1951_v25, 1 }
 0x78b   : > { %v1967_v44 = vrot.slane %v1947_v57, 1  ;;  %v1970_v35 = vrot.slane %v1949_v48, 1 }
 0x78d   : > { %1987 = vrot.lane.b32.xlu0 %v1970_v35, %s7793_s14  ;;  %v1969_v14 = vsel %vm452_vm4, %v1967_v44, %v1968_v33  ;;  %v1971_v39 = vsel %vm452_vm4, %v1968_v33, %v1970_v35 }
 0x78e   : > { %v1921_v53 = vpop.permute.xlu1 %1920  ;;  %1983 = vrot.lane.b32.xlu1 %v1969_v14, %s7793_s14  ;;  %1985 = vrot.lane.b32.xlu2 %v1971_v39, %s7793_s14  ;;  %v1925_v29 = vpop.permute.xlu0 %1924 }
 0x78f   : > { %v1941_v18 = vsub.f32 %v13156_v34, %v1921_v53  ;;  %v1943_v63 = vsub.f32 %v13160_v46, %v1925_v29 }
 0x791   : > { %v1950_v9 = vmul.f32 %v1941_v18, %v1941_v18  ;;  %v1952_v38 = vmul.f32 %v1943_v63, %v1943_v63 }
 0x793   : > { %v1972_v42 = vrot.slane %v1950_v9, 1  ;;  %v1975_v57 = vrot.slane %v1952_v38, 1 }
 0x795   : > { %1993 = vrot.lane.b32.xlu0 %v1975_v57, %s7793_s14  ;;  %v1974_v35 = vsel %vm452_vm4, %v1972_v42, %v1973_v20  ;;  %v1976_v48 = vsel %vm452_vm4, %v1973_v20, %v1975_v57 }
 0x796   : > { %1989 = vrot.lane.b32.xlu1 %v1974_v35, %s7793_s14  ;;  %1991 = vrot.lane.b32.xlu2 %v1976_v48, %s7793_s14 }
 0x79d   : > { %2017 = vrot.lane.b32.xlu0 %v8823_v49, %s7795_s29 }
 0x79e   : > { %2013 = vrot.lane.b32.xlu1 %v8766_v43, %s7795_s29  ;;  %2015 = vrot.lane.b32.xlu2 %v8771_v21, %s7795_s29 }
 0x7a5   : > { %2023 = vrot.lane.b32.xlu0 %v8831_v12, %s7795_s29 }
 0x7a6   : > { %2019 = vrot.lane.b32.xlu1 %v8776_v27, %s7795_s29  ;;  %2021 = vrot.lane.b32.xlu2 %v8781_v54, %s7795_s29 }
 0x7ad   : > { %2029 = vrot.lane.b32.xlu0 %v8839_v2, %s7795_s29 }
 0x7ae   : > { %2025 = vrot.lane.b32.xlu1 %v8786_v11, %s7795_s29  ;;  %2027 = vrot.lane.b32.xlu2 %v8791_v51, %s7795_s29 }
 0x7e0   : > { %v9290_v33 = vpop.permute.xlu2 %1979 }
 0x7e1   : > { %13276 = vst [vmem:[#allocation94_spill] sm:$0xff] %v9290_v33 }
 0x7e8   : > { %v9292_v55 = vpop.permute.xlu2 %1985 }
 0x7e9   : > { %13277 = vst [vmem:[#allocation95_spill] sm:$0xff] %v9292_v55 }
 0x7f0   : > { %v9298_v39 = vpop.permute.xlu2 %1991 }
 0x7f1   : > { %13280 = vst [vmem:[#allocation98_spill] sm:$0xff] %v9298_v39 }
 0x7f7   : > { %v9294_v44 = vpop.permute.xlu0 %1981 }
 0x7f8   : > { %13278 = vst [vmem:[#allocation96_spill] sm:$0xff] %v9294_v44  ;;  %v9296_v14 = vpop.permute.xlu1 %1977  ;;  %v2016_v25 = vpop.permute.xlu2 %2015 }
 0x7f9   : > { %13279 = vst [vmem:[#allocation97_spill] sm:$0xff] %v9296_v14  ;;  %v2041_v9 = vsub.f32 %v13209_v62, %v2016_v25 }
 0x7fb   : > { %v2050_v42 = vmul.f32 %v2041_v9, %v2041_v9 }
 0x7ff   : > { %v9300_v53 = vpop.permute.xlu0 %1987 }
 0x800   : > { %13281 = vst [vmem:[#allocation99_spill] sm:$0xff] %v9300_v53  ;;  %v9302_v29 = vpop.permute.xlu1 %1983  ;;  %v2022_v38 = vpop.permute.xlu2 %2021  ;;  %v2068_v53 = vrot.slane %v2050_v42, 1 }
 0x801   : > { %13282 = vst [vmem:[#allocation100_spill] sm:$0xff] %v9302_v29  ;;  %v2044_v29 = vsub.f32 %v8047_v60, %v2022_v38 }
 0x807   : > { %v9304_v18 = vpop.permute.xlu0 %1993 }
 0x808   : > { %13283 = vst [vmem:[#allocation101_spill] sm:$0xff] %v9304_v18  ;;  %v9306_v63 = vpop.permute.xlu1 %1989  ;;  %v2028_v42 = vpop.permute.xlu2 %2027 }
 0x809   : > { %13284 = vst [vmem:[#allocation102_spill] sm:$0xff] %v9306_v63 }
 0x80f   : > { %v2018_v20 = vpop.permute.xlu0 %2017 }
 0x810   : > { %v2042_v57 = vsub.f32 %v8063_v7, %v2018_v20  ;;  %v2014_v35 = vpop.permute.xlu1 %2013  ;;  %v2053_v20 = vmul.f32 %v2044_v29, %v2044_v29 }
 0x811   : > { %v2040_v48 = vsub.f32 %v8059_v5, %v2014_v35 }
 0x812   : > { %v2051_v14 = vmul.f32 %v2042_v57, %v2042_v57  ;;  %v2073_v57 = vrot.slane %v2053_v20, 1 }
 0x813   : > { %v2049_v44 = vmul.f32 %v2040_v48, %v2040_v48  ;;  %v2047_v48 = vsub.f32 %v8053_v1, %v2028_v42 }
 0x814   : > { %v2070_v39 = vrot.slane %v2051_v14, 1 }
 0x815   : > { %v2067_v55 = vrot.slane %v2049_v44, 1 }
 0x816   : > { %2086 = vrot.lane.b32.xlu0 %v2070_v39, %s7794_s16  ;;  %v2071_v63 = vsel %vm452_vm4, %v2068_v53, %v2070_v39 }
 0x817   : > { %2084 = vrot.lane.b32.xlu2 %v2071_v63, %s7794_s16  ;;  %v2024_v25 = vpop.permute.xlu0 %2023  ;;  %v2069_v9 = vsel %vm452_vm4, %v2067_v55, %v2068_v53  ;;  %v2056_v63 = vmul.f32 %v2047_v48, %v2047_v48  ;;  %v9334_v48 = vrot.slane %v8677_v58, 5 }
 0x818   : > { %v2045_v18 = vsub.f32 %v8077_v15, %v2024_v25  ;;  %v2020_v35 = vpop.permute.xlu1 %2019  ;;  %2082 = vrot.lane.b32.xlu1 %v2069_v9, %s7794_s16 }
 0x819   : > { %v2043_v38 = vsub.f32 %v8073_v13, %v2020_v35  ;;  %v2078_v42 = vrot.slane %v2056_v63, 1  ;;  %v9352_v63 = vrot.slane %v8698_v22, 5 }
 0x81a   : > { %v2054_v14 = vmul.f32 %v2045_v18, %v2045_v18 }
 0x81b   : > { %v2052_v44 = vmul.f32 %v2043_v38, %v2043_v38 }
 0x81c   : > { %v2075_v39 = vrot.slane %v2054_v14, 1 }
 0x81d   : > { %v2072_v40 = vrot.slane %v2052_v44, 1 }
 0x81e   : > { %2092 = vrot.lane.b32.xlu0 %v2075_v39, %s7794_s16  ;;  %v2076_v55 = vsel %vm452_vm4, %v2073_v57, %v2075_v39  ;;  %v2120_v39 = vrot.slane %v8579_v10, 5 }
 0x81f   : > { %2090 = vrot.lane.b32.xlu2 %v2076_v55, %s7794_s16  ;;  %v2030_v53 = vpop.permute.xlu0 %2029  ;;  %v2074_v29 = vsel %vm452_vm4, %v2072_v40, %v2073_v57  ;;  %v2122_v57 = vrot.slane %v8681_v32, 5 }
 0x820   : > { %v2048_v25 = vsub.f32 %v13160_v46, %v2030_v53  ;;  %v2026_v9 = vpop.permute.xlu1 %2025  ;;  %2088 = vrot.lane.b32.xlu1 %v2074_v29, %s7794_s16  ;;  %v9344_v53 = vsel %vm2118_vm8, %v9334_v48, %v2120_v39  ;;  %v2127_v29 = vrot.slane %v8701_v6, 5 }
 0x821   : > { %v2046_v18 = vsub.f32 %v13156_v34, %v2026_v9  ;;  %v9338_v55 = vsel %vm2118_vm8, %v2120_v39, %v2122_v57 }
 0x822   : > { %v2057_v20 = vmul.f32 %v2048_v25, %v2048_v25  ;;  %v2125_v25 = vrot.slane %v8591_v31, 5 }
 0x823   : > { %v2055_v35 = vmul.f32 %v2046_v18, %v2046_v18 }
 0x824   : > { %v2080_v38 = vrot.slane %v2057_v20, 1  ;;  %v9356_v9 = vsel %vm2118_vm8, %v2125_v25, %v2127_v29  ;;  %v9362_v18 = vsel %vm2118_vm8, %v9352_v63, %v2125_v25  ;;  %v2132_v20 = vrot.slane %v8711_v8, 5 }
 0x825   : > { %v2077_v14 = vrot.slane %v2055_v35, 1  ;;  %v9370_v35 = vrot.slane %v8709_v45, 5 }
 0x826   : > { %2098 = vrot.lane.b32.xlu0 %v2080_v38, %s7794_s16  ;;  %v2081_v44 = vsel %vm452_vm4, %v2078_v42, %v2080_v38 }
 0x827   : > { %2096 = vrot.lane.b32.xlu2 %v2081_v44, %s7794_s16  ;;  %v2079_v40 = vsel %vm452_vm4, %v2077_v14, %v2078_v42  ;;  %v2130_v42 = vrot.slane %v8604_v61, 5 }
 0x828   : > { %2094 = vrot.lane.b32.xlu1 %v2079_v40, %s7794_s16 }
 0x829   : > { %v9374_v38 = vsel %vm2118_vm8, %v2130_v42, %v2132_v20  ;;  %v9380_v14 = vsel %vm2118_vm8, %v9370_v35, %v2130_v42 }
 0x82e   : > { %2138 = vrot.lane.b32.xlu0 %v9338_v55, %s7791_s7 }
 0x82f   : > { %2136 = vrot.lane.b32.xlu2 %v9344_v53, %s7791_s7 }
 0x830   : > { %2134 = vrot.lane.b32.xlu1 %v9334_v48, %s7791_s7 }
 0x836   : > { %2144 = vrot.lane.b32.xlu0 %v9356_v9, %s7791_s7 }
 0x837   : > { %2142 = vrot.lane.b32.xlu2 %v9362_v18, %s7791_s7 }
 0x838   : > { %2140 = vrot.lane.b32.xlu1 %v9352_v63, %s7791_s7 }
 0x83e   : > { %2150 = vrot.lane.b32.xlu0 %v9374_v38, %s7791_s7 }
 0x83f   : > { %2148 = vrot.lane.b32.xlu2 %v9380_v14, %s7791_s7 }
 0x840   : > { %2146 = vrot.lane.b32.xlu1 %v9370_v35, %s7791_s7 }
 0x871   : > { %v9386_v44 = vpop.permute.xlu2 %2084 }
 0x872   : > { %13285 = vst [vmem:[#allocation103_spill] sm:$0xff] %v9386_v44 }
 0x879   : > { %v9388_v40 = vpop.permute.xlu2 %2090 }
 0x87a   : > { %13286 = vst [vmem:[#allocation104_spill] sm:$0xff] %v9388_v40 }
 0x881   : > { %v9394_v29 = vpop.permute.xlu2 %2096 }
 0x882   : > { %13289 = vst [vmem:[#allocation107_spill] sm:$0xff] %v9394_v29 }
 0x888   : > { %v9390_v57 = vpop.permute.xlu0 %2086 }
 0x889   : > { %13287 = vst [vmem:[#allocation105_spill] sm:$0xff] %v9390_v57  ;;  %v2137_v42 = vpop.permute.xlu2 %2136 }
 0x88a   : > { %v9392_v39 = vpop.permute.xlu1 %2082  ;;  %v2162_v8 = vsub.f32 %v13209_v62, %v2137_v42 }
 0x88b   : > { %13288 = vst [vmem:[#allocation106_spill] sm:$0xff] %v9392_v39 }
 0x88c   : > { %v2171_v40 = vmul.f32 %v2162_v8, %v2162_v8 }
 0x88e   : > { %v2189_v11 = vrot.slane %v2171_v40, 3 }
 0x890   : > { %v9396_v25 = vpop.permute.xlu0 %2092 }
 0x891   : > { %13290 = vst [vmem:[#allocation108_spill] sm:$0xff] %v9396_v25  ;;  %v2143_v44 = vpop.permute.xlu2 %2142 }
 0x892   : > { %v9398_v20 = vpop.permute.xlu1 %2088  ;;  %v2165_v25 = vsub.f32 %v8047_v60, %v2143_v44 }
 0x893   : > { %13291 = vst [vmem:[#allocation109_spill] sm:$0xff] %v9398_v20 }
 0x894   : > { %v2174_v8 = vmul.f32 %v2165_v25, %v2165_v25 }
 0x898   : > { %v9400_v23 = vpop.permute.xlu0 %2098 }
 0x899   : > { %13292 = vst [vmem:[#allocation110_spill] sm:$0xff] %v9400_v23  ;;  %v2149_v23 = vpop.permute.xlu2 %2148 }
 0x89a   : > { %v9402_v33 = vpop.permute.xlu1 %2094 }
 0x89b   : > { %13293 = vst [vmem:[#allocation111_spill] sm:$0xff] %v9402_v33 }
 0x8a0   : > { %v2139_v17 = vpop.permute.xlu0 %2138 }
 0x8a1   : > { %v2163_v57 = vsub.f32 %v8063_v7, %v2139_v17 }
 0x8a2   : > { %v2135_v45 = vpop.permute.xlu1 %2134 }
 0x8a3   : > { %v2172_v39 = vmul.f32 %v2163_v57, %v2163_v57  ;;  %v2161_v29 = vsub.f32 %v8059_v5, %v2135_v45 }
 0x8a5   : > { %v2191_v20 = vrot.slane %v2172_v39, 3  ;;  %v2170_v6 = vmul.f32 %v2161_v29, %v2161_v29  ;;  %v2168_v39 = vsub.f32 %v8053_v1, %v2149_v23 }
 0x8a7   : > { %v2188_v22 = vrot.slane %v2170_v6, 3  ;;  %2207 = vrot.lane.b32.xlu0 %v2191_v20, %s7793_s14  ;;  %v2192_v33 = vsel %vm12992_vm7, %v2189_v11, %v2191_v20  ;;  %v2194_v6 = vrot.slane %v2174_v8, 3 }
 0x8a8   : > { %2205 = vrot.lane.b32.xlu2 %v2192_v33, %s7793_s14  ;;  %v2145_v42 = vpop.permute.xlu0 %2144 }
 0x8a9   : > { %v2166_v17 = vsub.f32 %v8077_v15, %v2145_v42  ;;  %v2190_v57 = vsel %vm12992_vm7, %v2188_v22, %v2189_v11  ;;  %v2177_v11 = vmul.f32 %v2168_v39, %v2168_v39 }
 0x8aa   : > { %v2141_v45 = vpop.permute.xlu1 %2140  ;;  %2203 = vrot.lane.b32.xlu1 %v2190_v57, %s7793_s14 }
 0x8ab   : > { %v2175_v44 = vmul.f32 %v2166_v17, %v2166_v17  ;;  %v2164_v40 = vsub.f32 %v8073_v13, %v2141_v45  ;;  %v2199_v57 = vrot.slane %v2177_v11, 3 }
 0x8ad   : > { %v2196_v29 = vrot.slane %v2175_v44, 3  ;;  %v2173_v20 = vmul.f32 %v2164_v40, %v2164_v40 }
 0x8af   : > { %v2193_v36 = vrot.slane %v2173_v20, 3  ;;  %2213 = vrot.lane.b32.xlu0 %v2196_v29, %s7793_s14  ;;  %v2197_v33 = vsel %vm12992_vm7, %v2194_v6, %v2196_v29 }
 0x8b0   : > { %2211 = vrot.lane.b32.xlu2 %v2197_v33, %s7793_s14  ;;  %v2151_v22 = vpop.permute.xlu0 %2150 }
 0x8b1   : > { %v2169_v25 = vsub.f32 %v13160_v46, %v2151_v22  ;;  %v2195_v42 = vsel %vm12992_vm7, %v2193_v36, %v2194_v6 }
 0x8b2   : > { %v2147_v17 = vpop.permute.xlu1 %2146  ;;  %2209 = vrot.lane.b32.xlu1 %v2195_v42, %s7793_s14 }
 0x8b3   : > { %v2178_v8 = vmul.f32 %v2169_v25, %v2169_v25  ;;  %v2167_v23 = vsub.f32 %v13156_v34, %v2147_v17 }
 0x8b5   : > { %v2201_v45 = vrot.slane %v2178_v8, 3  ;;  %v2176_v44 = vmul.f32 %v2167_v23, %v2167_v23 }
 0x8b7   : > { %v2198_v40 = vrot.slane %v2176_v44, 3  ;;  %2219 = vrot.lane.b32.xlu0 %v2201_v45, %s7793_s14  ;;  %v2202_v29 = vsel %vm12992_vm7, %v2199_v57, %v2201_v45 }
 0x8b8   : > { %2217 = vrot.lane.b32.xlu2 %v2202_v29, %s7793_s14 }
 0x8b9   : > { %v2200_v39 = vsel %vm12992_vm7, %v2198_v40, %v2199_v57 }
 0x8ba   : > { %2215 = vrot.lane.b32.xlu1 %v2200_v39, %s7793_s14 }
 0x8bf   : > { %2243 = vrot.lane.b32.xlu0 %v9338_v55, %s7793_s14 }
 0x8c0   : > { %2241 = vrot.lane.b32.xlu2 %v9344_v53, %s7793_s14 }
 0x8c2   : > { %2239 = vrot.lane.b32.xlu1 %v9334_v48, %s7793_s14 }
 0x8c7   : > { %2249 = vrot.lane.b32.xlu0 %v9356_v9, %s7793_s14 }
 0x8c8   : > { %2247 = vrot.lane.b32.xlu2 %v9362_v18, %s7793_s14 }
 0x8ca   : > { %2245 = vrot.lane.b32.xlu1 %v9352_v63, %s7793_s14 }
 0x8cf   : > { %2255 = vrot.lane.b32.xlu0 %v9374_v38, %s7793_s14 }
 0x8d0   : > { %2253 = vrot.lane.b32.xlu2 %v9380_v14, %s7793_s14 }
 0x8d2   : > { %2251 = vrot.lane.b32.xlu1 %v9370_v35, %s7793_s14 }
 0x902   : > { %v9446_v36 = vpop.permute.xlu2 %2205 }
 0x90a   : > { %v9448_v6 = vpop.permute.xlu2 %2211 }
 0x90b   : > { %13294 = vst [vmem:[#allocation112_spill] sm:$0xff] %v9448_v6 }
 0x912   : > { %v9454_v22 = vpop.permute.xlu2 %2217 }
 0x913   : > { %13297 = vst [vmem:[#allocation115_spill] sm:$0xff] %v9454_v22 }
 0x919   : > { %v9450_v20 = vpop.permute.xlu0 %2207 }
 0x91a   : > { %13295 = vst [vmem:[#allocation113_spill] sm:$0xff] %v9450_v20  ;;  %v2242_v42 = vpop.permute.xlu2 %2241 }
 0x91b   : > { %v2267_v23 = vsub.f32 %v13209_v62, %v2242_v42 }
 0x91c   : > { %v9452_v33 = vpop.permute.xlu1 %2203 }
 0x91d   : > { %13296 = vst [vmem:[#allocation114_spill] sm:$0xff] %v9452_v33  ;;  %v2276_v44 = vmul.f32 %v2267_v23, %v2267_v23 }
 0x91f   : > { %v2294_v20 = vrot.slane %v2276_v44, 3 }
 0x921   : > { %v9456_v11 = vpop.permute.xlu0 %2213 }
 0x922   : > { %13298 = vst [vmem:[#allocation116_spill] sm:$0xff] %v9456_v11  ;;  %v2248_v57 = vpop.permute.xlu2 %2247 }
 0x923   : > { %v2270_v11 = vsub.f32 %v8047_v60, %v2248_v57 }
 0x924   : > { %v9458_v25 = vpop.permute.xlu1 %2209 }
 0x925   : > { %13299 = vst [vmem:[#allocation117_spill] sm:$0xff] %v9458_v25  ;;  %v2279_v23 = vmul.f32 %v2270_v11, %v2270_v11 }
 0x927   : > { %v2299_v57 = vrot.slane %v2279_v23, 3 }
 0x929   : > { %v9460_v17 = vpop.permute.xlu0 %2219 }
 0x92a   : > { %13300 = vst [vmem:[#allocation118_spill] sm:$0xff] %v9460_v17 }
 0x92c   : > { %v9462_v8 = vpop.permute.xlu1 %2215 }
 0x92d   : > { %13301 = vst [vmem:[#allocation119_spill] sm:$0xff] %v9462_v8 }
 0x931   : > { %v2244_v45 = vpop.permute.xlu0 %2243 }
 0x932   : > { %v2268_v40 = vsub.f32 %v8063_v7, %v2244_v45 }
 0x934   : > { %v2277_v29 = vmul.f32 %v2268_v40, %v2268_v40  ;;  %v2240_v39 = vpop.permute.xlu1 %2239  ;;  %v2254_v40 = vpop.permute.xlu2 %2253 }
 0x935   : > { %v2266_v33 = vsub.f32 %v8059_v5, %v2240_v39 }
 0x936   : > { %v2296_v25 = vrot.slane %v2277_v29, 3  ;;  %v2273_v29 = vsub.f32 %v8053_v1, %v2254_v40 }
 0x937   : > { %v2275_v22 = vmul.f32 %v2266_v33, %v2266_v33 }
 0x938   : > { %2312 = vrot.lane.b32.xlu0 %v2296_v25, %s7791_s7  ;;  %v2297_v8 = vsel %vm12992_vm7, %v2294_v20, %v2296_v25 }
 0x939   : > { %v2293_v17 = vrot.slane %v2275_v22, 3  ;;  %2310 = vrot.lane.b32.xlu2 %v2297_v8, %s7791_s7  ;;  %v2250_v42 = vpop.permute.xlu0 %2249 }
 0x93a   : > { %v2271_v45 = vsub.f32 %v8077_v15, %v2250_v42 }
 0x93b   : > { %v2295_v6 = vsel %vm12992_vm7, %v2293_v17, %v2294_v20  ;;  %v2282_v20 = vmul.f32 %v2273_v29, %v2273_v29 }
 0x93c   : > { %v2280_v39 = vmul.f32 %v2271_v45, %v2271_v45  ;;  %v2246_v44 = vpop.permute.xlu1 %2245  ;;  %2308 = vrot.lane.b32.xlu1 %v2295_v6, %s7791_s7 }
 0x93d   : > { %v2269_v33 = vsub.f32 %v8073_v13, %v2246_v44  ;;  %v2304_v40 = vrot.slane %v2282_v20, 3 }
 0x93e   : > { %v2301_v25 = vrot.slane %v2280_v39, 3 }
 0x93f   : > { %v2278_v22 = vmul.f32 %v2269_v33, %v2269_v33 }
 0x940   : > { %2318 = vrot.lane.b32.xlu0 %v2301_v25, %s7791_s7  ;;  %v2302_v11 = vsel %vm12992_vm7, %v2299_v57, %v2301_v25 }
 0x941   : > { %v2298_v8 = vrot.slane %v2278_v22, 3  ;;  %2316 = vrot.lane.b32.xlu2 %v2302_v11, %s7791_s7  ;;  %v2256_v42 = vpop.permute.xlu0 %2255 }
 0x942   : > { %v2274_v17 = vsub.f32 %v13160_v46, %v2256_v42 }
 0x943   : > { %v2300_v6 = vsel %vm12992_vm7, %v2298_v8, %v2299_v57 }
 0x944   : > { %v2283_v45 = vmul.f32 %v2274_v17, %v2274_v17  ;;  %v2252_v44 = vpop.permute.xlu1 %2251  ;;  %2314 = vrot.lane.b32.xlu1 %v2300_v6, %s7791_s7 }
 0x945   : > { %v2272_v23 = vsub.f32 %v13156_v34, %v2252_v44 }
 0x946   : > { %v2306_v39 = vrot.slane %v2283_v45, 3 }
 0x947   : > { %v2281_v33 = vmul.f32 %v2272_v23, %v2272_v23 }
 0x948   : > { %2324 = vrot.lane.b32.xlu0 %v2306_v39, %s7791_s7  ;;  %v2307_v25 = vsel %vm12992_vm7, %v2304_v40, %v2306_v39 }
 0x949   : > { %v2303_v22 = vrot.slane %v2281_v33, 3  ;;  %2322 = vrot.lane.b32.xlu2 %v2307_v25, %s7791_s7 }
 0x94b   : > { %v2305_v29 = vsel %vm12992_vm7, %v2303_v22, %v2304_v40 }
 0x94c   : > { %2320 = vrot.lane.b32.xlu1 %v2305_v29, %s7791_s7 }
 0x950   : > { %2348 = vrot.lane.b32.xlu0 %v9338_v55, %s7795_s29 }
 0x951   : > { %2346 = vrot.lane.b32.xlu2 %v9344_v53, %s7795_s29 }
 0x954   : > { %2344 = vrot.lane.b32.xlu1 %v9334_v48, %s7795_s29 }
 0x958   : > { %2354 = vrot.lane.b32.xlu0 %v9356_v9, %s7795_s29 }
 0x959   : > { %2352 = vrot.lane.b32.xlu2 %v9362_v18, %s7795_s29 }
 0x95c   : > { %2350 = vrot.lane.b32.xlu1 %v9352_v63, %s7795_s29 }
 0x960   : > { %2360 = vrot.lane.b32.xlu0 %v9374_v38, %s7795_s29 }
 0x961   : > { %2358 = vrot.lane.b32.xlu2 %v9380_v14, %s7795_s29 }
 0x964   : > { %2356 = vrot.lane.b32.xlu1 %v9370_v35, %s7795_s29 }
 0x993   : > { %v9506_v55 = vpop.permute.xlu2 %2310 }
 0x99b   : > { %v9508_v48 = vpop.permute.xlu2 %2316 }
 0x9a3   : > { %v9512_v9 = vpop.permute.xlu2 %2322 }
 0x9aa   : > { %v9510_v53 = vpop.permute.xlu0 %2312 }
 0x9ab   : > { %v2347_v38 = vpop.permute.xlu2 %2346 }
 0x9ac   : > { %v2372_v35 = vsub.f32 %v13209_v62, %v2347_v38 }
 0x9ae   : > { %v9514_v18 = vpop.permute.xlu1 %2308  ;;  %v2381_v20 = vmul.f32 %v2372_v35, %v2372_v35 }
 0x9b0   : > { %v2399_v44 = vrot.slane %v2381_v20, 3 }
 0x9b2   : > { %v9516_v63 = vpop.permute.xlu0 %2318 }
 0x9b3   : > { %v2353_v8 = vpop.permute.xlu2 %2352 }
 0x9b4   : > { %v2375_v23 = vsub.f32 %v8047_v60, %v2353_v8 }
 0x9b6   : > { %v9518_v57 = vpop.permute.xlu1 %2314  ;;  %v2384_v29 = vmul.f32 %v2375_v23, %v2375_v23 }
 0x9ba   : > { %v9520_v11 = vpop.permute.xlu0 %2324 }
 0x9be   : > { %v9522_v14 = vpop.permute.xlu1 %2320 }
 0x9bf   : > { %13302 = vst [vmem:[#allocation120_spill] sm:$0xff] %v9522_v14 }
 0x9c2   : > { %v2349_v42 = vpop.permute.xlu0 %2348 }
 0x9c3   : > { %v2373_v17 = vsub.f32 %v8063_v7, %v2349_v42  ;;  %v2359_v42 = vpop.permute.xlu2 %2358 }
 0x9c5   : > { %v2382_v6 = vmul.f32 %v2373_v17, %v2373_v17 }
 0x9c6   : > { %v2345_v45 = vpop.permute.xlu1 %2344 }
 0x9c7   : > { %v2401_v40 = vrot.slane %v2382_v6, 3  ;;  %v2371_v39 = vsub.f32 %v8059_v5, %v2345_v45  ;;  %v2404_v6 = vrot.slane %v2384_v29, 3  ;;  %v2378_v45 = vsub.f32 %v8053_v1, %v2359_v42 }
 0x9c9   : > { %v2380_v33 = vmul.f32 %v2371_v39, %v2371_v39  ;;  %2417 = vrot.lane.b32.xlu0 %v2401_v40, %s7794_s16  ;;  %v2402_v25 = vsel %vm12992_vm7, %v2399_v44, %v2401_v40 }
 0x9ca   : > { %2415 = vrot.lane.b32.xlu2 %v2402_v25, %s7794_s16  ;;  %v2355_v22 = vpop.permute.xlu0 %2354  ;;  %v2387_v25 = vmul.f32 %v2378_v45, %v2378_v45 }
 0x9cb   : > { %v2398_v38 = vrot.slane %v2380_v33, 3  ;;  %v2376_v35 = vsub.f32 %v8077_v15, %v2355_v22 }
 0x9cc   : > { %v2409_v42 = vrot.slane %v2387_v25, 3 }
 0x9cd   : > { %v2385_v17 = vmul.f32 %v2376_v35, %v2376_v35  ;;  %v2400_v20 = vsel %vm12992_vm7, %v2398_v38, %v2399_v44 }
 0x9ce   : > { %v2351_v8 = vpop.permute.xlu1 %2350  ;;  %2413 = vrot.lane.b32.xlu1 %v2400_v20, %s7794_s16 }
 0x9cf   : > { %v2406_v39 = vrot.slane %v2385_v17, 3  ;;  %v2374_v40 = vsub.f32 %v8073_v13, %v2351_v8 }
 0x9d1   : > { %v2383_v14 = vmul.f32 %v2374_v40, %v2374_v40  ;;  %2423 = vrot.lane.b32.xlu0 %v2406_v39, %s7794_s16  ;;  %v2407_v23 = vsel %vm12992_vm7, %v2404_v6, %v2406_v39  ;;  %v7622_v39 = vld [vmem:[%s7940_s6 + $0x8] sm:$0xff] }
 0x9d2   : > { %2421 = vrot.lane.b32.xlu2 %v2407_v23, %s7794_s16  ;;  %v2361_v33 = vpop.permute.xlu0 %2360  ;;  %v9547_v40 = vrot.slane %v7622_v39, 7  ;;  %v1193_v39 = vsub.f32 %v8063_v7, %v8823_v49  ;;  %v1195_v49 = vsub.f32 %v8047_v60, %v8781_v54 }
 0x9d3   : > { %v2403_v44 = vrot.slane %v2383_v14, 3  ;;  %v2379_v22 = vsub.f32 %v13160_v46, %v2361_v33 }
 0x9d4   : > { %13303 = vst [vmem:[#allocation121_spill] sm:$0xff] %v9547_v40 }
 0x9d5   : > { %v2388_v29 = vmul.f32 %v2379_v22, %v2379_v22  ;;  %v2405_v38 = vsel %vm12992_vm7, %v2403_v44, %v2404_v6  ;;  %v7623_v6 = vld [vmem:[%s7940_s6] sm:$0xff]  ;;  %v7624_v44 = vld [vmem:[%s7940_s6 + $0x18] sm:$0xff] }
 0x9d6   : > { %v2357_v35 = vpop.permute.xlu1 %2356  ;;  %2419 = vrot.lane.b32.xlu1 %v2405_v38, %s7794_s16  ;;  %v9550_v23 = vrot.slane %v7623_v6, 7  ;;  %v9564_v22 = vrot.slane %v7624_v44, 7  ;;  %v952_v6 = vsub.f32 %v13209_v62, %v8579_v10  ;;  %v9607_v44 = vmul.f32 %v1193_v39, %v1193_v39 }
 0x9d7   : > { %v2411_v17 = vrot.slane %v2388_v29, 3  ;;  %v2377_v20 = vsub.f32 %v13156_v34, %v2357_v35  ;;  %v7625_v29 = vld [vmem:[%s7940_s6 + $0x10] sm:$0xff]  ;;  %v955_v39 = vsub.f32 %v8047_v60, %v8591_v31 }
 0x9d8   : > { %13304 = vst [vmem:[#allocation122_spill] sm:$0xff] %v9550_v23  ;;  %v9557_v25 = vsel %vm628_vm6, %v9550_v23, %v9547_v40  ;;  %v9567_v38 = vrot.slane %v7625_v29, 7  ;;  %v961_v29 = vmul.f32 %v952_v6, %v952_v6  ;;  %v12970_v10 = vrot.slane %v9607_v44, 1 }
 0x9d9   : > { %v2386_v8 = vmul.f32 %v2377_v20, %v2377_v20  ;;  %2429 = vrot.lane.b32.xlu0 %v2411_v17, %s7794_s16  ;;  %v2412_v14 = vsel %vm12992_vm7, %v2409_v42, %v2411_v17  ;;  %13305 = vst [vmem:[#allocation123_spill] sm:$0xff] %v9564_v22  ;;  %v7627_v20 = vld [vmem:[%s7940_s6 + $0x20] sm:$0xff] }
 0x9da   : > { %2427 = vrot.lane.b32.xlu2 %v2412_v14, %s7794_s16  ;;  %13306 = vst [vmem:[#allocation124_spill] sm:$0xff] %v9567_v38  ;;  %v9574_v35 = vsel %vm628_vm6, %v9567_v38, %v9564_v22 }
 0x9db   : > { %v2408_v45 = vrot.slane %v2386_v8, 3  ;;  %v9584_v8 = vrot.slane %v7627_v20, 7  ;;  %v1381_v20 = vsub.f32 %v13209_v62, %v8899_v41 }
 0x9dd   : > { %v2410_v33 = vsel %vm12992_vm7, %v2408_v45, %v2409_v42  ;;  %v7626_v42 = vld [vmem:[%s7940_s6 + $0x28] sm:$0xff]  ;;  %13308 = vst [vmem:[#allocation126_spill] sm:$0xff] %v9584_v8  ;;  %v1192_v45 = vsub.f32 %v13209_v62, %v8771_v21  ;;  %v9625_v41 = vmul.f32 %v1381_v20, %v1381_v20 }
 0x9de   : > { %2425 = vrot.lane.b32.xlu1 %v2410_v33, %s7794_s16  ;;  %v9581_v17 = vrot.slane %v7626_v42, 7  ;;  %v1382_v42 = vsub.f32 %v8063_v7, %v8891_v0 }
 0x9df   : > { %v9605_v33 = vmul.f32 %v1192_v45, %v1192_v45  ;;  %v1196_v45 = vsub.f32 %v8077_v15, %v8831_v12  ;;  %v964_v12 = vmul.f32 %v955_v39, %v955_v39 }
 0x9e0   : > { %13307 = vst [vmem:[#allocation125_spill] sm:$0xff] %v9581_v17  ;;  %v9591_v14 = vsel %vm628_vm6, %v9584_v8, %v9581_v17  ;;  %v9623_v6 = vmul.f32 %v1382_v42, %v1382_v42  ;;  %v1384_v42 = vsub.f32 %v8047_v60, %v8917_v56 }
 0x9e1   : > { %2723 = vrot.lane.b32.xlu0 %v9547_v40, %s7793_s14  ;;  %13309 = vst [vmem:[#allocation127_spill] sm:$0xff] %v9591_v14  ;;  %v12977_v21 = vrot.slane %v9605_v33, 1  ;;  %v1072_v20 = vadd.f32 %v8747_v4, %v964_v12  ;;  %v1191_v4 = vsub.f32 %v8059_v5, %v8766_v43  ;;  %v953_v43 = vsub.f32 %v8063_v7, %v8681_v32 }
 0x9e2   : > { %2721 = vrot.lane.b32.xlu2 %v9557_v25, %s7793_s14  ;;  %v12973_v31 = vrot.slane %v9623_v6, 2  ;;  %v1388_v32 = vsub.f32 %v13160_v46, %v8927_v59 }
 0x9e3   : > { %v1222_v54 = vsel %vm452_vm4, %v12977_v21, %v12970_v10  ;;  %v1162_v10 = vadd.f32 %v8845_v28, %v1072_v20  ;;  %v1200_v20 = vmul.f32 %v1191_v4, %v1191_v4 }
 0x9e6   : > { %2719 = vrot.lane.b32.xlu1 %v9550_v23, %s7793_s14  ;;  %v13322_v23 = vld [vmem:[#allocation48_spill] sm:$0xff] }
 0x9e9   : > { %2729 = vrot.lane.b32.xlu0 %v9564_v22, %s7793_s14 }
 0x9ea   : > { %2727 = vrot.lane.b32.xlu2 %v9574_v35, %s7793_s14 }
 0x9ee   : > { %2725 = vrot.lane.b32.xlu1 %v9567_v38, %s7793_s14 }
 0x9f1   : > { %2735 = vrot.lane.b32.xlu0 %v9581_v17, %s7793_s14 }
 0x9f2   : > { %2733 = vrot.lane.b32.xlu2 %v9591_v14, %s7793_s14 }
 0x9f6   : > { %2731 = vrot.lane.b32.xlu1 %v9584_v8, %s7793_s14  ;;  %v1069_v8 = vadd.f32 %v8741_v26, %v961_v29  ;;  %v9627_v26 = vmul.f32 %v1195_v49, %v1195_v49  ;;  %v9629_v29 = vmul.f32 %v1196_v45, %v1196_v45  ;;  %v958_v49 = vsub.f32 %v8053_v1, %v8604_v61 }
 0x9f7   : > { %v9657_v61 = vmul.f32 %v1384_v42, %v1384_v42 }
 0x9f8   : > { %v1159_v0 = vadd.f32 %v8843_v3, %v1069_v8  ;;  %v12971_v3 = vrot.slane %v9625_v41, 2  ;;  %v1385_v8 = vsub.f32 %v8077_v15, %v8909_v19  ;;  %v12974_v39 = vrot.slane %v9627_v26, 1 }
 0x9f9   : > { %v1199_v19 = vsub.f32 %v13160_v46, %v8839_v2 }
 0x9fa   : > { %v1243_v38 = vadd.f32 %v1222_v54, %v1159_v0  ;;  %v1198_v0 = vsub.f32 %v8053_v1, %v8791_v51  ;;  %v12972_v54 = vrot.slane %v9629_v29, 1  ;;  %v9655_v56 = vmul.f32 %v1385_v8, %v1385_v8 }
 0x9fb   : > { %v1411_v51 = vsel %vm522_vm5, %v12971_v3, %v12973_v31  ;;  %v9670_v28 = vmul.f32 %v1199_v19, %v1199_v19  ;;  %v1387_v19 = vsub.f32 %v8053_v1, %v8935_v24  ;;  %v962_v3 = vmul.f32 %v953_v43, %v953_v43  ;;  %v13311_v31 = vld [vmem:[#allocation70_spill] sm:$0xff] }
 0x9fc   : > { %v1348_v45 = vadd.f32 %v8939_v50, %v1243_v38  ;;  %v967_v50 = vmul.f32 %v958_v49, %v958_v49  ;;  %v951_v38 = vsub.f32 %v8059_v5, %v8677_v58  ;;  %v9666_v12 = vmul.f32 %v1198_v0, %v1198_v0 }
 0x9fd   : > { %v1227_v8 = vsel %vm452_vm4, %v12974_v39, %v12972_v54  ;;  %v1380_v58 = vsub.f32 %v8059_v5, %v8887_v30  ;;  %v12976_v0 = vrot.slane %v9657_v61, 2  ;;  %v13310_v54 = vld [vmem:[#allocation55_spill] sm:$0xff]  ;;  %v9695_v24 = vmul.f32 %v1388_v32, %v1388_v32 }
 0x9fe   : > { %v1432_v2 = vadd.f32 %v1411_v51, %v1348_v45  ;;  %v1246_v42 = vadd.f32 %v1227_v8, %v1162_v10  ;;  %v12975_v45 = vrot.slane %v9655_v56, 2  ;;  %v1075_v51 = vadd.f32 %v8753_v52, %v967_v50 }
 0x9ff   : > { %v12979_v30 = vrot.slane %v9666_v12, 1  ;;  %v960_v8 = vmul.f32 %v951_v38, %v951_v38  ;;  %v9697_v52 = vmul.f32 %v1387_v19, %v1387_v19  ;;  %v13312_v38 = vld [vmem:[#allocation65_spill] sm:$0xff]  ;;  %v13315_v19 = vld [vmem:[#allocation34_spill] sm:$0xff] }
 0xa00   : > { %v1537_v49 = vadd.f32 %v8999_v47, %v1432_v2  ;;  %v1351_v10 = vadd.f32 %v8941_v37, %v1246_v42  ;;  %v1194_v47 = vsub.f32 %v8073_v13, %v8776_v27  ;;  %v12978_v2 = vrot.slane %v9670_v28, 1 }
 0xa01   : > { %v1165_v59 = vadd.f32 %v13310_v54, %v1075_v51  ;;  %v1218_v37 = vrot.slane %v1200_v20, 1  ;;  %v1416_v27 = vsel %vm522_vm5, %v12976_v0, %v12975_v45  ;;  %v9704_v42 = vmul.f32 %v1380_v58, %v1380_v58  ;;  %v13313_v54 = vld [vmem:[#allocation37_spill] sm:$0xff] }
 0xa02   : > { %v1642_v4 = vadd.f32 %v9080_v16, %v1537_v49  ;;  %v1203_v16 = vmul.f32 %v1194_v47, %v1194_v47  ;;  %v1435_v50 = vadd.f32 %v1416_v27, %v1351_v10  ;;  %v13314_v49 = vld [vmem:[#allocation44_spill] sm:$0xff]  ;;  %v1232_v20 = vsel %vm452_vm4, %v12979_v30, %v12978_v2  ;;  %v13318_v27 = vld [vmem:[#allocation85_spill] sm:$0xff]  ;;  %v13321_v30 = vld [vmem:[#allocation35_spill] sm:$0xff] }
 0xa03   : > { %v956_v32 = vsub.f32 %v8077_v15, %v13314_v49  ;;  %v1197_v51 = vsub.f32 %v13156_v34, %v13315_v19  ;;  %v13316_v10 = vld [vmem:[#allocation40_spill] sm:$0xff]  ;;  %v1249_v47 = vadd.f32 %v1232_v20, %v1165_v59  ;;  %v13320_v49 = vld [vmem:[#allocation41_spill] sm:$0xff] }
 0xa04   : > { %v1738_v39 = vadd.f32 %v13311_v31, %v1642_v4  ;;  %v954_v31 = vsub.f32 %v8073_v13, %v13313_v54  ;;  %v957_v58 = vsub.f32 %v13156_v34, %v13316_v10  ;;  %v13319_v54 = vld [vmem:[#allocation31_spill] sm:$0xff]  ;;  %v959_v0 = vsub.f32 %v13160_v46, %v13320_v49  ;;  %v13323_v10 = vld [vmem:[#allocation94_spill] sm:$0xff]  ;;  %v13327_v2 = vld [vmem:[#allocation53_spill] sm:$0xff] }
 0xa05   : > { %v1070_v45 = vadd.f32 %v13319_v54, %v962_v3  ;;  %v1354_v17 = vadd.f32 %v13321_v30, %v1249_v47  ;;  %v1223_v19 = vrot.slane %v1203_v16, 1  ;;  %v965_v54 = vmul.f32 %v956_v32, %v956_v32  ;;  %v13328_v30 = vld [vmem:[#allocation103_spill] sm:$0xff] }
 0xa06   : > { %v1819_v43 = vadd.f32 %v13312_v38, %v1738_v39  ;;  %v13317_v39 = vld [vmem:[#allocation51_spill] sm:$0xff]  ;;  %v963_v20 = vmul.f32 %v954_v31, %v954_v31  ;;  %v13326_v49 = vrot.slane %v9605_v33, 1  ;;  %v966_v47 = vmul.f32 %v957_v58, %v957_v58 }
 0xa07   : > { %v1540_v4 = vadd.f32 %v13317_v39, %v1435_v50  ;;  %v13324_v50 = vld [vmem:[#allocation45_spill] sm:$0xff]  ;;  %v13330_v31 = vrot.slane %v9697_v52, 2  ;;  %v13331_v32 = vrot.slane %v9627_v26, 1  ;;  %v13337_v26 = vld [vmem:[#allocation86_spill] sm:$0xff] }
 0xa08   : > { %v1900_v38 = vadd.f32 %v13318_v27, %v1819_v43  ;;  %v1160_v39 = vadd.f32 %v13324_v50, %v1070_v45  ;;  %v1206_v43 = vmul.f32 %v1197_v51, %v1197_v51  ;;  %v13325_v27 = vld [vmem:[#allocation42_spill] sm:$0xff]  ;;  %v1220_v21 = vsel %vm452_vm4, %v1218_v37, %v13326_v49  ;;  %v13334_v50 = vld [vmem:[#allocation61_spill] sm:$0xff] }
 0xa09   : > { %v1645_v22 = vadd.f32 %v13322_v23, %v1540_v4  ;;  %v1383_v3 = vsub.f32 %v8073_v13, %v13325_v27  ;;  %v968_v23 = vmul.f32 %v959_v0, %v959_v0  ;;  %v13329_v4 = vrot.slane %v9695_v24, 2  ;;  %v13332_v37 = vld [vmem:[#allocation66_spill] sm:$0xff]  ;;  %v13335_v49 = vld [vmem:[#allocation29_spill] sm:$0xff] }
 0xa0a   : > { %v2005_v59 = vadd.f32 %v13323_v10, %v1900_v38  ;;  %v1407_v51 = vrot.slane %v9704_v42, 2  ;;  %v1225_v33 = vsel %vm452_vm4, %v1223_v19, %v13331_v32  ;;  %v1228_v58 = vrot.slane %v1206_v43, 1  ;;  %v13336_v42 = vld [vmem:[#allocation52_spill] sm:$0xff]  ;;  %v13338_v19 = vld [vmem:[#allocation49_spill] sm:$0xff]  ;;  %v13342_v32 = vld [vmem:[#allocation38_spill] sm:$0xff] }
 0xa0b   : > { %v1741_v14 = vadd.f32 %v13327_v2, %v1645_v22  ;;  %v1421_v45 = vsel %vm522_vm5, %v13330_v31, %v13329_v4  ;;  %v13333_v2 = vrot.slane %v9607_v44, 1  ;;  %v1386_v27 = vsub.f32 %v13156_v34, %v13334_v50 }
 0xa0c   : > { %v2110_v16 = vadd.f32 %v13328_v30, %v2005_v59  ;;  %v1438_v38 = vadd.f32 %v1421_v45, %v1354_v17  ;;  %v1392_v59 = vmul.f32 %v1383_v3, %v1383_v3  ;;  %v1068_v30 = vadd.f32 %v13335_v49, %v960_v8  ;;  %v13339_v45 = vld [vmem:[#allocation27_spill] sm:$0xff] }
 0xa0d   : > { %v1822_v10 = vadd.f32 %v13332_v37, %v1741_v14  ;;  %v1244_v0 = vadd.f32 %v13333_v2, %v1160_v39  ;;  %v1071_v14 = vadd.f32 %v13338_v19, %v963_v20  ;;  %v13341_v39 = vld [vmem:[#allocation43_spill] sm:$0xff]  ;;  %v13343_v2 = vld [vmem:[#allocation58_spill] sm:$0xff]  ;;  %v1395_v19 = vmul.f32 %v1386_v27, %v1386_v27 }
 0xa0e   : > { %v2231_v22 = vadd.f32 %v9446_v36, %v2110_v16  ;;  %v1543_v4 = vadd.f32 %v13336_v42, %v1438_v38  ;;  %v1073_v36 = vadd.f32 %v13339_v45, %v965_v54  ;;  %v13340_v16 = vld [vmem:[#allocation50_spill] sm:$0xff]  ;;  %v1158_v37 = vadd.f32 %v13342_v32, %v1068_v30  ;;  %v13344_v8 = vld [vmem:[#allocation95_spill] sm:$0xff]  ;;  %v13345_v42 = vld [vmem:[#allocation25_spill] sm:$0xff] }
 0xa0f   : > { %v1903_v31 = vadd.f32 %v13337_v26, %v1822_v10  ;;  %v1074_v44 = vadd.f32 %v13340_v16, %v966_v47  ;;  %v1349_v43 = vadd.f32 %v13341_v39, %v1244_v0  ;;  %v1076_v10 = vadd.f32 %v13345_v42, %v968_v23  ;;  %v13346_v26 = vld [vmem:[#allocation26_spill] sm:$0xff]  ;;  %v13349_v47 = vld [vmem:[#allocation75_spill] sm:$0xff]  ;;  %v13350_v0 = vld [vmem:[#allocation104_spill] sm:$0xff] }
 0xa10   : > { %v2336_v17 = vadd.f32 %v9506_v55, %v2231_v22  ;;  %v1648_v50 = vadd.f32 %v13343_v2, %v1543_v4  ;;  %v1161_v55 = vadd.f32 %v13346_v26, %v1071_v14  ;;  %v13347_v22 = vld [vmem:[#allocation39_spill] sm:$0xff]  ;;  %v13348_v54 = vld [vmem:[#allocation46_spill] sm:$0xff]  ;;  %v13351_v30 = vld [vmem:[#allocation56_spill] sm:$0xff]  ;;  %v13353_v23 = vrot.slane %v9623_v6, 2 }
 0xa11   : > { %v2008_v49 = vadd.f32 %v13344_v8, %v1903_v31  ;;  %v1163_v20 = vadd.f32 %v13347_v22, %v1073_v36  ;;  %v1164_v45 = vadd.f32 %v13348_v54, %v1074_v44  ;;  %v1166_v4 = vadd.f32 %v13351_v30, %v1076_v10  ;;  %v13354_v27 = vld [vmem:[#allocation71_spill] sm:$0xff]  ;;  %v13355_v44 = vld [vmem:[#allocation112_spill] sm:$0xff]  ;;  %v13358_v10 = vld [vmem:[#allocation62_spill] sm:$0xff] }
 0xa12   : > { %v1744_v16 = vadd.f32 %v13349_v47, %v1648_v50  ;;  %v13352_v31 = vrot.slane %v9666_v12, 1  ;;  %v1433_v14 = vadd.f32 %v13353_v23, %v1349_v43  ;;  %v1242_v36 = vadd.f32 %v1220_v21, %v1158_v37  ;;  %v13359_v6 = vld [vmem:[#allocation89_spill] sm:$0xff]  ;;  %v13361_v22 = vld [vmem:[#allocation30_spill] sm:$0xff] }
 0xa13   : > { %v2113_v39 = vadd.f32 %v13350_v0, %v2008_v49  ;;  %v13356_v50 = vrot.slane %v9629_v29, 1  ;;  %v1245_v49 = vadd.f32 %v1225_v33, %v1161_v55  ;;  %v1417_v12 = vrot.slane %v1395_v19, 2  ;;  %v13363_v29 = vld [vmem:[#allocation80_spill] sm:$0xff]  ;;  %v13364_v55 = vld [vmem:[#allocation33_spill] sm:$0xff]  ;;  %v13365_v19 = vld [vmem:[#allocation98_spill] sm:$0xff] }
 0xa14   : > { %v1825_v32 = vadd.f32 %v13354_v27, %v1744_v16  ;;  %v13362_v47 = vrot.slane %v9670_v28, 1  ;;  %v13368_v23 = vrot.slane %v9657_v61, 2  ;;  %v13369_v28 = vld [vmem:[#allocation54_spill] sm:$0xff] }
 0xa15   : > { %v2234_v2 = vadd.f32 %v13355_v44, %v2113_v39  ;;  %v1247_v8 = vadd.f32 %v13356_v50, %v1163_v20  ;;  %v1350_v54 = vadd.f32 %v13361_v22, %v1245_v49  ;;  %v13379_v22 = vld [vmem:[#allocation74_spill] sm:$0xff] }
 0xa16   : > { %v1906_v43 = vadd.f32 %v13359_v6, %v1825_v32  ;;  %v1250_v16 = vadd.f32 %v13362_v47, %v1166_v4  ;;  %v13370_v32 = vrot.slane %v9697_v52, 2  ;;  %v13376_v52 = vld [vmem:[#allocation47_spill] sm:$0xff] }
 0xa17   : > { %v2339_v21 = vadd.f32 %v9508_v48, %v2234_v2  ;;  %v13371_v2 = vld [vmem:[#allocation107_spill] sm:$0xff] }
 0xa18   : > { %v2011_v39 = vadd.f32 %v13365_v19, %v1906_v43  ;;  %v1419_v44 = vsel %vm522_vm5, %v1417_v12, %v13370_v32  ;;  %v13377_v43 = vrot.slane %v9695_v24, 2  ;;  %v13380_v47 = vld [vmem:[#allocation79_spill] sm:$0xff]  ;;  %v13383_v19 = vld [vmem:[#allocation36_spill] sm:$0xff]  ;;  %v13388_v32 = vld [vmem:[#allocation69_spill] sm:$0xff] }
 0xa1a   : > { %v2116_v50 = vadd.f32 %v13371_v2, %v2011_v39  ;;  %v13389_v2 = vld [vmem:[#allocation59_spill] sm:$0xff] }
 0xa24   : > { %v2416_v3 = vpop.permute.xlu2 %2415 }
 0xa25   : > { %v2441_v38 = vadd.f32 %v2416_v3, %v2336_v17  ;;  %v1230_v17 = vsel %vm452_vm4, %v1228_v58, %v13352_v31  ;;  %v1412_v3 = vrot.slane %v1392_v59, 2  ;;  %v1347_v58 = vadd.f32 %v13358_v10, %v1242_v36  ;;  %v13360_v59 = vld [vmem:[#allocation67_spill] sm:$0xff] }
 0xa26   : > { %v1248_v26 = vadd.f32 %v1230_v17, %v1164_v45  ;;  %v1352_v37 = vadd.f32 %v13360_v59, %v1247_v8  ;;  %v13366_v45 = vld [vmem:[#allocation68_spill] sm:$0xff]  ;;  %v13367_v17 = vrot.slane %v9625_v41, 2  ;;  %v13372_v41 = vrot.slane %v9655_v56, 2  ;;  %v13378_v59 = vld [vmem:[#allocation87_spill] sm:$0xff] }
 0xa27   : > { %v9770_v40 = vmul.f32 0.06666667, %v2441_v38  ;;  %v13357_v38 = vld [vmem:[#allocation73_spill] sm:$0xff]  ;;  %v1355_v31 = vadd.f32 %v13366_v45, %v1250_v16 }
 0xa28   : > { %v1538_v42 = vadd.f32 %v13357_v38, %v1433_v14  ;;  %v1353_v0 = vadd.f32 %v13364_v55, %v1248_v26  ;;  %v1409_v48 = vsel %vm522_vm5, %v1407_v51, %v13367_v17  ;;  %v1414_v14 = vsel %vm522_vm5, %v1412_v3, %v13368_v23  ;;  %v13373_v38 = vld [vmem:[#allocation72_spill] sm:$0xff]  ;;  %v13382_v55 = vld [vmem:[#allocation57_spill] sm:$0xff] }
 0xa29   : > { %7518 = vrsqrt.f32 %v9770_v40  ;;  %v1431_v27 = vadd.f32 %v1409_v48, %v1347_v58  ;;  %v1436_v49 = vadd.f32 %v13372_v41, %v1352_v37  ;;  %v1434_v51 = vadd.f32 %v1414_v14, %v1350_v54  ;;  %v13375_v58 = vld [vmem:[#allocation115_spill] sm:$0xff]  ;;  %v13386_v23 = vld [vmem:[#allocation32_spill] sm:$0xff] }
 0xa2a   : > { %v1643_v20 = vadd.f32 %v13363_v29, %v1538_v42  ;;  %v13374_v42 = vld [vmem:[#allocation28_spill] sm:$0xff]  ;;  %v1437_v26 = vadd.f32 %v1419_v44, %v1353_v0  ;;  %v2237_v6 = vadd.f32 %v13375_v58, %v2116_v50  ;;  %v13381_v29 = vld [vmem:[#allocation63_spill] sm:$0xff]  ;;  %vm2477_vm9 = vcmp.eq.f32.partialorder %v9770_v40, inf }
 0xa2b   : > { %v1536_v10 = vadd.f32 %v13374_v42, %v1431_v27  ;;  %v1539_v12 = vadd.f32 %v13376_v52, %v1434_v51  ;;  %v1541_v54 = vadd.f32 %v13379_v22, %v1436_v49  ;;  %v13397_v22 = vld [vmem:[#allocation83_spill] sm:$0xff]  ;;  %vm2479_vm10 = vcmp.eq.f32.partialorder %v9770_v40, 0.0 }
 0xa2c   : > { %v2422_v33 = vpop.permute.xlu2 %2421  ;;  %v1739_v4 = vadd.f32 %v13369_v28, %v1643_v20  ;;  %v1542_v16 = vadd.f32 %v13380_v47, %v1437_v26  ;;  %v13387_v28 = vld [vmem:[#allocation76_spill] sm:$0xff] }
 0xa2d   : > { %v2444_v30 = vadd.f32 %v2422_v33, %v2339_v21  ;;  %v1439_v21 = vadd.f32 %v13377_v43, %v1355_v31  ;;  %v1641_v20 = vadd.f32 %v13381_v29, %v1536_v10  ;;  %v2342_v33 = vadd.f32 %v9512_v9, %v2237_v6  ;;  %v13385_v31 = vld [vmem:[#allocation64_spill] sm:$0xff]  ;;  %v13390_v9 = vld [vmem:[#allocation105_spill] sm:$0xff]  ;;  %v13394_v6 = vld [vmem:[#allocation82_spill] sm:$0xff] }
 0xa2e   : > { %v1820_v61 = vadd.f32 %v13373_v38, %v1739_v4  ;;  %v1644_v39 = vadd.f32 %v13383_v19, %v1539_v12  ;;  %v1646_v48 = vadd.f32 %v13385_v31, %v1541_v54  ;;  %v1647_v14 = vadd.f32 %v13386_v23, %v1542_v16  ;;  %v13391_v38 = vld [vmem:[#allocation81_spill] sm:$0xff]  ;;  %v13398_v47 = vld [vmem:[#allocation88_spill] sm:$0xff]  ;;  %v13399_v29 = vld [vmem:[#allocation22_spill] sm:$0xff] }
 0xa2f   : > { %v7519_v36 = vpop.eup %7518  ;;  %v9806_v8 = vmul.f32 0.06666667, %v2444_v30  ;;  %v1544_v0 = vadd.f32 %v13382_v55, %v1439_v21  ;;  %v13384_v30 = vld [vmem:[#allocation96_spill] sm:$0xff]  ;;  %v1737_v4 = vadd.f32 %v13387_v28, %v1641_v20  ;;  %v13393_v10 = vld [vmem:[#allocation77_spill] sm:$0xff]  ;;  %v13400_v19 = vld [vmem:[#allocation91_spill] sm:$0xff] }
 0xa30   : > { %v2471_v3 = vmul.f32 %v7519_v36, %v9770_v40  ;;  %v1901_v56 = vadd.f32 %v13378_v59, %v1820_v61  ;;  %v1740_v50 = vadd.f32 %v13389_v2, %v1644_v39  ;;  %v1742_v61 = vadd.f32 %v13391_v38, %v1646_v48  ;;  %v13395_v12 = vld [vmem:[#allocation113_spill] sm:$0xff]  ;;  %v13402_v23 = vld [vmem:[#allocation84_spill] sm:$0xff] }
 0xa31   : > { %7520 = vrsqrt.f32 %v9806_v8  ;;  %v1649_v44 = vadd.f32 %v13388_v32, %v1544_v0  ;;  %v1818_v26 = vadd.f32 %v13393_v10, %v1737_v4  ;;  %v13404_v4 = vld [vmem:[#allocation106_spill] sm:$0xff]  ;;  %v13406_v38 = vld [vmem:[#allocation92_spill] sm:$0xff]  ;;  %vm2513_vm11 = vcmp.eq.f32.partialorder %v9806_v8, inf }
 0xa32   : > { %v2472_v37 = vmul.f32 %v7519_v36, %v2471_v3  ;;  %v2006_v45 = vadd.f32 %v13384_v30, %v1901_v56  ;;  %v13392_v3 = vld [vmem:[#allocation60_spill] sm:$0xff]  ;;  %v13396_v56 = vld [vmem:[#allocation78_spill] sm:$0xff]  ;;  %v1823_v54 = vadd.f32 %v13397_v22, %v1742_v61  ;;  %vm2515_vm12 = vcmp.eq.f32.partialorder %v9806_v8, 0.0 }
 0xa33   : > { %v1743_v42 = vadd.f32 %v13392_v3, %v1647_v14  ;;  %v1745_v52 = vadd.f32 %v13394_v6, %v1649_v44  ;;  %v1899_v16 = vadd.f32 %v13398_v47, %v1818_v26  ;;  %v13403_v14 = vld [vmem:[#allocation99_spill] sm:$0xff]  ;;  %v13405_v44 = vld [vmem:[#allocation90_spill] sm:$0xff]  ;;  %v13412_v22 = vld [vmem:[#allocation116_spill] sm:$0xff] }
 0xa34   : > { %v2473_v17 = vmul.f32 0.5, %v2472_v37  ;;  %v2428_v24 = vpop.permute.xlu2 %2427  ;;  %v2111_v41 = vadd.f32 %v13390_v9, %v2006_v45  ;;  %v1821_v37 = vadd.f32 %v13396_v56, %v1740_v50  ;;  %v1904_v39 = vadd.f32 %v13400_v19, %v1823_v54  ;;  %v13409_v26 = vld [vmem:[#allocation114_spill] sm:$0xff]  ;;  %v13411_v56 = vld [vmem:[#allocation101_spill] sm:$0xff] }
 0xa35   : > { %v2447_v27 = vadd.f32 %v2428_v24, %v2342_v33  ;;  %v1824_v20 = vadd.f32 %v13399_v29, %v1743_v42  ;;  %v2480_v45 = vand.u32 2147483648, %v9770_v40  ;;  %v13408_v42 = vld [vmem:[#allocation108_spill] sm:$0xff]  ;;  %v2516_v19 = vand.u32 2147483648, %v9806_v8 }
 0xa36   : > { %v2474_v49 = vsub.f32 1.5, %v2473_v17  ;;  %v2232_v43 = vadd.f32 %v13395_v12, %v2111_v41  ;;  %v2009_v28 = vadd.f32 %v13403_v14, %v1904_v39  ;;  %v1902_v2 = vadd.f32 %v13405_v44, %v1821_v37 }
 0xa37   : > { %v7521_v51 = vpop.eup %7520  ;;  %v9835_v58 = vmul.f32 0.06666667, %v2447_v27  ;;  %v1905_v61 = vadd.f32 %v13406_v38, %v1824_v20  ;;  %v13414_v20 = vld [vmem:[#allocation109_spill] sm:$0xff]  ;;  %v13419_v38 = vld [vmem:[#allocation119_spill] sm:$0xff] }
 0xa38   : > { %v2475_v21 = vmul.f32 %v7519_v36, %v2474_v49  ;;  %v2507_v59 = vmul.f32 %v7521_v51, %v9806_v8  ;;  %v2337_v33 = vadd.f32 %v9510_v53, %v2232_v43  ;;  %v13401_v36 = vld [vmem:[#allocation97_spill] sm:$0xff]  ;;  %v1826_v53 = vadd.f32 %v13402_v23, %v1745_v52  ;;  %v13410_v52 = vld [vmem:[#allocation100_spill] sm:$0xff] }
 0xa39   : > { %7522 = vrsqrt.f32 %v9835_v58  ;;  %v2004_v30 = vadd.f32 %v13401_v36, %v1899_v16  ;;  %v2114_v10 = vadd.f32 %v13408_v42, %v2009_v28  ;;  %v2007_v12 = vadd.f32 %v13410_v52, %v1902_v2  ;;  %v13413_v16 = vld [vmem:[#allocation102_spill] sm:$0xff]  ;;  %v13417_v28 = vld [vmem:[#allocation117_spill] sm:$0xff] }
 0xa3a   : > { %v2476_v55 = vmul.f32 %v2475_v21, %v9770_v40  ;;  %v2508_v0 = vmul.f32 %v7521_v51, %v2507_v59  ;;  %v2010_v29 = vadd.f32 %v13413_v16, %v1905_v61  ;;  %vm2549_vm13 = vcmp.eq.f32.partialorder %v9835_v58, inf }
 0xa3b   : > { %v2418_v17 = vpop.permute.xlu0 %2417  ;;  %v2109_v27 = vadd.f32 %v13404_v4, %v2004_v30  ;;  %v2235_v54 = vadd.f32 %v13412_v22, %v2114_v10  ;;  %vm2551_vm14 = vcmp.eq.f32.partialorder %v9835_v58, 0.0 }
 0xa3c   : > { %v2478_v24 = vsel %vm2477_vm9, %v9770_v40, %v2476_v55  ;;  %v2509_v31 = vmul.f32 0.5, %v2508_v0  ;;  %v2442_v48 = vadd.f32 %v2418_v17, %v2337_v33  ;;  %v13407_v40 = vld [vmem:[#allocation93_spill] sm:$0xff]  ;;  %v2112_v33 = vadd.f32 %v13414_v20, %v2007_v12  ;;  %v2722_v39 = vpop.permute.xlu2 %2721 }
 0xa3d   : > { %v2481_v32 = vsel %vm2479_vm10, %v2480_v45, %v2478_v24  ;;  %v1907_v3 = vadd.f32 %v13407_v40, %v1826_v53  ;;  %v2230_v6 = vadd.f32 %v13409_v26, %v2109_v27  ;;  %v13415_v45 = vld [vmem:[#allocation110_spill] sm:$0xff]  ;;  %v2747_v40 = vsub.f32 %v13209_v62, %v2722_v39 }
 0xa3e   : > { %v9857_v50 = vadd.f32 1e-08, %v2481_v32  ;;  %v2510_v9 = vsub.f32 1.5, %v2509_v31  ;;  %v9859_v41 = vmul.f32 0.06666667, %v2442_v48  ;;  %v13416_v31 = vld [vmem:[#allocation111_spill] sm:$0xff]  ;;  %v2233_v4 = vadd.f32 %v13417_v28, %v2112_v33 }
 0xa3f   : > { %v7523_v49 = vpop.eup %7522  ;;  %v2012_v37 = vadd.f32 %v13411_v56, %v1907_v3  ;;  %v2335_v47 = vadd.f32 %v9514_v18, %v2230_v6  ;;  %v2115_v48 = vadd.f32 %v13416_v31, %v2010_v29  ;;  %v13418_v27 = vld [vmem:[#allocation118_spill] sm:$0xff]  ;;  %v13420_v6 = vld [vmem:[#allocation120_spill] sm:$0xff]  ;;  %v9909_v56 = vand.u32 2147483647, %v2747_v40 }
 0xa40   : > { %7524 = vrcp.f32 %v9857_v50  ;;  %v2511_v43 = vmul.f32 %v7521_v51, %v2510_v9  ;;  %v2543_v21 = vmul.f32 %v7523_v49, %v9835_v58  ;;  %v2414_v59 = vpop.permute.xlu1 %2413  ;;  %v2340_v51 = vadd.f32 %v9516_v63, %v2235_v54 }
 0xa41   : > { %7526 = vrsqrt.f32 %v9859_v41  ;;  %v2440_v36 = vadd.f32 %v2414_v59, %v2335_v47  ;;  %v2117_v18 = vadd.f32 %v13415_v45, %v2012_v37  ;;  %v2236_v61 = vadd.f32 %v13419_v38, %v2115_v48 }
 0xa42   : > { %v2512_v55 = vmul.f32 %v2511_v43, %v9806_v8  ;;  %v2544_v0 = vmul.f32 %v7523_v49, %v2543_v21  ;;  %v2338_v3 = vadd.f32 %v9518_v57, %v2233_v4  ;;  %v2552_v57 = vand.u32 2147483648, %v9835_v58 }
 0xa43   : > { %v2424_v30 = vpop.permute.xlu0 %2423  ;;  %v9882_v53 = vmul.f32 0.06666667, %v2440_v36  ;;  %v2238_v32 = vadd.f32 %v13418_v27, %v2117_v18  ;;  %v9900_v52 = vadd.f32 %v13420_v6, %v2236_v61  ;;  %vm2489_vm15 = vcmp.eq.f32.partialorder %v9859_v41, inf }
 0xa44   : > { %v2514_v17 = vsel %vm2513_vm11, %v9806_v8, %v2512_v55  ;;  %v2545_v24 = vmul.f32 0.5, %v2544_v0  ;;  %v2445_v63 = vadd.f32 %v2424_v30, %v2340_v51  ;;  %vm2491_vm9 = vcmp.eq.f32.partialorder %v9859_v41, 0.0  ;;  %v9918_v33 = vpop.permute.xlu2 %2727 }
 0xa45   : > { %v2517_v23 = vsel %vm2515_vm12, %v2516_v19, %v2514_v17  ;;  %7528 = vrsqrt.f32 %v9882_v53  ;;  %v2343_v26 = vadd.f32 %v9520_v11, %v2238_v32  ;;  %v2492_v29 = vand.u32 2147483648, %v9859_v41 }
 0xa46   : > { %v9884_v14 = vpop.eup %7524  ;;  %v9888_v44 = vadd.f32 1e-08, %v2517_v23  ;;  %v2546_v2 = vsub.f32 1.5, %v2545_v24  ;;  %v9903_v12 = vmul.f32 0.06666667, %v2445_v63  ;;  %vm2595_vm10 = vweird.f32 %v9857_v50 }
 0xa47   : > { %v7527_v9 = vpop.eup %7526  ;;  %v2591_v8 = vmul.f32 %v9884_v14, %v9857_v50  ;;  %v2599_v20 = vand.u32 2147483647, %v9857_v50  ;;  %v2750_v24 = vsub.f32 %v8047_v60, %v9918_v33  ;;  %vm2596_vm11 = vweird.f32 %v9884_v14 }
 0xa48   : > { %7530 = vrcp.f32 %v9888_v44  ;;  %v2547_v42 = vmul.f32 %v7523_v49, %v2546_v2  ;;  %v2483_v10 = vmul.f32 %v7527_v9, %v9859_v41  ;;  %v2601_v49 = vand.u32 2147483648, %v9857_v50  ;;  %v2420_v11 = vpop.permute.xlu1 %2419 }
 0xa49   : > { %v2592_v59 = vsub.f32 1.0, %v2591_v8  ;;  %7532 = vrsqrt.f32 %v9903_v12  ;;  %v2443_v19 = vadd.f32 %v2420_v11, %v2338_v3  ;;  %vm9932_vm12 = vcmp.eq.f32.partialorder %v2599_v20, 8.507059e+37 }
 0xa4a   : > { %v2548_v43 = vmul.f32 %v2547_v42, %v9835_v58  ;;  %v2484_v21 = vmul.f32 %v7527_v9, %v2483_v10  ;;  %v2602_v36 = vor.u32 1.1754944e-38, %v2601_v49  ;;  %vm2640_vm3 = vweird.f32 %v9888_v44 }
 0xa4b   : > { %v2430_v54 = vpop.permute.xlu0 %2429  ;;  %v7529_v47 = vpop.eup %7528  ;;  %v2593_v39 = vmul.f32 %v9884_v14, %v2592_v59  ;;  %v9937_v63 = vmul.f32 0.06666667, %v2443_v19  ;;  %v2644_v42 = vand.u32 2147483647, %v9888_v44  ;;  %v2646_v10 = vand.u32 2147483648, %v9888_v44 }
 0xa4c   : > { %v2550_v37 = vsel %vm2549_vm13, %v9835_v58, %v2548_v43  ;;  %v2485_v22 = vmul.f32 0.5, %v2484_v21  ;;  %v2459_v51 = vmul.f32 %v7529_v47, %v9882_v53  ;;  %v2448_v45 = vadd.f32 %v2430_v54, %v2343_v26  ;;  %v2734_v48 = vpop.permute.xlu2 %2733 }
 0xa4d   : > { %v2553_v16 = vsel %vm2551_vm14, %v2552_v57, %v2550_v37  ;;  %vm2465_vm13 = vcmp.eq.f32.partialorder %v9882_v53, inf  ;;  %vm2467_vm14 = vcmp.eq.f32.partialorder %v9882_v53, 0.0  ;;  %v2594_v2 = vadd.f32 %v9884_v14, %v2593_v39 }
 0xa4e   : > { %v9920_v55 = vpop.eup %7530  ;;  %v9922_v0 = vadd.f32 1e-08, %v2553_v16  ;;  %v2486_v58 = vsub.f32 1.5, %v2485_v22  ;;  %v2460_v17 = vmul.f32 %v7529_v47, %v2459_v51  ;;  %v9942_v32 = vmul.f32 0.06666667, %v2448_v45 }
 0xa4f   : > { %v2636_v30 = vmul.f32 %v9920_v55, %v9888_v44  ;;  %v7533_v31 = vpop.eup %7532  ;;  %vm2641_vm2 = vweird.f32 %v9920_v55  ;;  %v2468_v59 = vand.u32 2147483648, %v9882_v53  ;;  %vm2527_vm7 = vcmp.eq.f32.partialorder %v9903_v12, 0.0 }
 0xa50   : > { %7534 = vrcp.f32 %v9922_v0  ;;  %v2487_v18 = vmul.f32 %v7527_v9, %v2486_v58  ;;  %v2461_v4 = vmul.f32 0.5, %v2460_v17  ;;  %v2519_v27 = vmul.f32 %v7533_v31, %v9903_v12 }
 0xa51   : > { %v2637_v23 = vsub.f32 1.0, %v2636_v30  ;;  %7536 = vrsqrt.f32 %v9937_v63  ;;  %v2528_v22 = vand.u32 2147483648, %v9903_v12  ;;  %v2647_v54 = vor.u32 1.1754944e-38, %v2646_v10 }
 0xa52   : > { %v2488_v28 = vmul.f32 %v2487_v18, %v9859_v41  ;;  %v2462_v61 = vsub.f32 1.5, %v2461_v4  ;;  %v2520_v8 = vmul.f32 %v7533_v31, %v2519_v27  ;;  %7538 = vrsqrt.f32 %v9942_v32  ;;  %v2426_v4 = vpop.permute.xlu1 %2425 }
 0xa53   : > { %v2638_v9 = vmul.f32 %v9920_v55, %v2637_v23  ;;  %v2759_v58 = vand.u32 2147483647, %v2750_v24  ;;  %v2689_v45 = vand.u32 2147483647, %v9922_v0  ;;  %v2446_v10 = vadd.f32 %v2426_v4, %v9900_v52 }
 0xa54   : > { %v2490_v38 = vsel %vm2489_vm15, %v9859_v41, %v2488_v28  ;;  %vm9963_vm15 = vmor %vm2595_vm10, %vm2596_vm11  ;;  %v2463_v57 = vmul.f32 %v7529_v47, %v2462_v61  ;;  %v2521_v41 = vmul.f32 0.5, %v2520_v8  ;;  %vm2645_vm11 = vcmp.eq.f32.partialorder %v2644_v42, 8.507059e+37 }
 0xa55   : > { %v2493_v40 = vsel %vm2491_vm9, %v2492_v29, %v2490_v38  ;;  %v2639_v3 = vadd.f32 %v9920_v55, %v2638_v9  ;;  %v2598_v21 = vsel %vm9963_vm15, %v9884_v14, %v2594_v2  ;;  %vm2525_vm9 = vcmp.eq.f32.partialorder %v9903_v12, inf  ;;  %vm9978_vm10 = vmor %vm2640_vm3, %vm2641_vm2 }
 0xa56   : > { %v7535_v26 = vpop.eup %7534  ;;  %v9957_v6 = vadd.f32 1e-08, %v2493_v40  ;;  %v2464_v49 = vmul.f32 %v2463_v57, %v9882_v53  ;;  %v2522_v11 = vsub.f32 1.5, %v2521_v41  ;;  %v2603_v47 = vsel %vm9932_vm12, %v2602_v36, %v2598_v21 }
 0xa57   : > { %v2643_v14 = vsel %vm9978_vm10, %v9920_v55, %v2639_v3  ;;  %v7537_v37 = vpop.eup %7536  ;;  %v2681_v44 = vmul.f32 %v7535_v26, %v9922_v0  ;;  %v2691_v36 = vand.u32 2147483648, %v9922_v0  ;;  %v10000_v18 = vmul.f32 3.3333333, %v2603_v47 }
 0xa58   : > { %7540 = vrcp.f32 %v9957_v6  ;;  %v2466_v16 = vsel %vm2465_vm13, %v9882_v53, %v2464_v49  ;;  %v2523_v29 = vmul.f32 %v7533_v31, %v2522_v11  ;;  %v2495_v20 = vmul.f32 %v7537_v37, %v9937_v63  ;;  %v7539_v19 = vpop.eup %7538 }
 0xa59   : > { %v2469_v33 = vsel %vm2467_vm14, %v2468_v59, %v2466_v16  ;;  %v2648_v55 = vsel %vm2645_vm11, %v2647_v54, %v2643_v14  ;;  %v2682_v51 = vsub.f32 1.0, %v2681_v44  ;;  %13427 = vst [vmem:[#allocation55_spill] sm:$0xff] %v10000_v18  ;;  %v2555_v17 = vmul.f32 %v7539_v19, %v9942_v32  ;;  %v2724_v16 = vpop.permute.xlu0 %2723 }
 0xa5a   : > { %v2524_v39 = vmul.f32 %v2523_v29, %v9903_v12  ;;  %v2496_v30 = vmul.f32 %v7537_v37, %v2495_v20  ;;  %vm2686_vm2 = vweird.f32 %v7535_v26  ;;  %v10005_v23 = vadd.f32 1e-08, %v2469_v33 }
 0xa5b   : > { %v2683_v31 = vmul.f32 %v7535_v26, %v2682_v51  ;;  %vm2685_vm3 = vweird.f32 %v9922_v0  ;;  %v10013_v2 = vmul.f32 3.3333333, %v2648_v55  ;;  %v2556_v9 = vmul.f32 %v7539_v19, %v2555_v17 }
 0xa5c   : > { %v2526_v24 = vsel %vm2525_vm9, %v9903_v12, %v2524_v39  ;;  %v2497_v28 = vmul.f32 0.5, %v2496_v30  ;;  %vm2687_vm12 = vmor %vm2685_vm3, %vm2686_vm2  ;;  %vm2690_vm13 = vcmp.eq.f32.partialorder %v2689_v45, 8.507059e+37  ;;  %v2692_v8 = vor.u32 1.1754944e-38, %v2691_v36 }
 0xa5d   : > { %v2529_v27 = vsel %vm2527_vm7, %v2528_v22, %v2526_v24  ;;  %13428 = vst [vmem:[#allocation70_spill] sm:$0xff] %v10013_v2  ;;  %v2684_v38 = vadd.f32 %v7535_v26, %v2683_v31  ;;  %v2753_v40 = vsub.f32 %v8053_v1, %v2734_v48  ;;  %v2557_v3 = vmul.f32 0.5, %v2556_v9 }
 0xa5e   : > { %v10003_v53 = vpop.eup %7540  ;;  %v2498_v61 = vsub.f32 1.5, %v2497_v28  ;;  %7542 = vrcp.f32 %v10005_v23  ;;  %v10020_v12 = vadd.f32 1e-08, %v2529_v27  ;;  %v10024_v59 = vmul.f32 0.06666667, %v2446_v10 }
 0xa5f   : > { %v2688_v42 = vsel %vm2687_vm12, %v7535_v26, %v2684_v38  ;;  %v2606_v0 = vmul.f32 %v10003_v53, %v9957_v6  ;;  %v2558_v41 = vsub.f32 1.5, %v2557_v3  ;;  %v2765_v26 = vmul.f32 %v9909_v56, %v10000_v18 }
 0xa60   : > { %v2499_v43 = vmul.f32 %v7537_v37, %v2498_v61  ;;  %v2693_v57 = vsel %vm2690_vm13, %v2692_v8, %v2688_v42  ;;  %vm2501_vm7 = vcmp.eq.f32.partialorder %v9937_v63, inf  ;;  %v2504_v49 = vand.u32 2147483648, %v9937_v63 }
 0xa61   : > { %v10022_v21 = vmul.f32 3.3333333, %v2693_v57  ;;  %v2607_v50 = vsub.f32 1.0, %v2606_v0  ;;  %v2768_v11 = vmul.f32 %v2759_v58, %v10013_v2  ;;  %v2559_v14 = vmul.f32 %v7539_v19, %v2558_v41 }
 0xa62   : > { %v2500_v52 = vmul.f32 %v2499_v43, %v9937_v63  ;;  %v2762_v37 = vand.u32 2147483647, %v2753_v40  ;;  %7544 = vrsqrt.f32 %v10024_v59  ;;  %vm2503_vm14 = vcmp.eq.f32.partialorder %v9937_v63, 0.0  ;;  %v2730_v43 = vpop.permute.xlu0 %2729 }
 0xa63   : > { %13429 = vst [vmem:[#allocation65_spill] sm:$0xff] %v10022_v21  ;;  %7546 = vrcp.f32 %v10020_v12  ;;  %v2608_v56 = vmul.f32 %v10003_v53, %v2607_v50  ;;  %v2560_v44 = vmul.f32 %v2559_v14, %v9942_v32  ;;  %vm2561_vm15 = vcmp.eq.f32.partialorder %v9942_v32, inf }
 0xa64   : > { %v2502_v22 = vsel %vm2501_vm7, %v9937_v63, %v2500_v52  ;;  %v2771_v47 = vmul.f32 %v2762_v37, %v10022_v21  ;;  %v10039_v29 = vpop.eup %7542  ;;  %vm2563_vm9 = vcmp.eq.f32.partialorder %v9942_v32, 0.0  ;;  %v2564_v33 = vand.u32 2147483648, %v9942_v32 }
 0xa65   : > { %v2505_v54 = vsel %vm2503_vm14, %v2504_v49, %v2502_v22  ;;  %v2777_v55 = vmul.f32 %v2768_v11, %v2768_v11  ;;  %v2562_v63 = vsel %vm2561_vm15, %v9942_v32, %v2560_v44  ;;  %v2609_v58 = vadd.f32 %v10003_v53, %v2608_v56 }
 0xa66   : > { %v10041_v20 = vadd.f32 1e-08, %v2505_v54  ;;  %vm2611_vm10 = vweird.f32 %v10003_v53  ;;  %v2774_v51 = vmul.f32 %v2765_v26, %v2765_v26  ;;  %v2565_v19 = vsel %vm2563_vm9, %v2564_v33, %v2562_v63  ;;  %v10072_v26 = vpop.permute.xlu1 %2719 }
 0xa67   : > { %vm2610_vm11 = vweird.f32 %v9957_v6  ;;  %v2616_v39 = vand.u32 2147483648, %v9957_v6  ;;  %v10052_v45 = vadd.f32 1e-08, %v2565_v19  ;;  %v2780_v36 = vmul.f32 %v2771_v47, %v2771_v47 }
 0xa68   : > { %v7545_v30 = vpop.eup %7544  ;;  %7548 = vrcp.f32 %v10041_v20  ;;  %v2614_v17 = vand.u32 2147483647, %v9957_v6  ;;  %vm2788_vm2 = vcmask 138248   ;;  %vm2612_vm3 = vmor %vm2610_vm11, %vm2611_vm10  ;;  %v2576_v48 = vmul.f32 %v10039_v29, %v10005_v23 }
 0xa69   : > { %v7547_v31 = vpop.eup %7546  ;;  %v2531_v32 = vmul.f32 %v7545_v30, %v10024_v59  ;;  %v2790_v24 = vsel %vm2788_vm2, %v2777_v55, 0.0  ;;  %v2613_v28 = vsel %vm2612_vm3, %v10003_v53, %v2609_v58  ;;  %7550 = vrcp.f32 %v10052_v45 }
 0xa6a   : > { %v2617_v27 = vor.u32 1.1754944e-38, %v2616_v39  ;;  %v2748_v9 = vsub.f32 %v8063_v7, %v2724_v16  ;;  %v2789_v6 = vsel %vm2788_vm2, %v2774_v51, 0.0  ;;  %v2792_v38 = vsel %vm2788_vm2, %v2780_v36, 0.0 }
 0xa6b   : > { %v2532_v4 = vmul.f32 %v7545_v30, %v2531_v32  ;;  %vm2615_vm12 = vcmp.eq.f32.partialorder %v2614_v17, 8.507059e+37  ;;  %v2651_v61 = vmul.f32 %v7547_v31, %v10020_v12  ;;  %v2791_v8 = vadd.f32 %v2790_v24, %v2789_v6  ;;  %v2736_v6 = vpop.permute.xlu0 %2735 }
 0xa6c   : > { %v2618_v3 = vsel %vm2615_vm12, %v2617_v27, %v2613_v28  ;;  %v2577_v42 = vsub.f32 1.0, %v2576_v48  ;;  %vm2537_vm13 = vcmp.eq.f32.partialorder %v10024_v59, inf  ;;  %vm2539_vm7 = vcmp.eq.f32.partialorder %v10024_v59, 0.0 }
 0xa6d   : > { %v2533_v40 = vmul.f32 0.5, %v2532_v4  ;;  %v2540_v53 = vand.u32 2147483648, %v10024_v59  ;;  %v2652_v0 = vsub.f32 1.0, %v2651_v61  ;;  %v10070_v57 = vadd.f32 %v2792_v38, %v2791_v8 }
 0xa6e   : > { %v10065_v10 = vpop.eup %7548  ;;  %v2757_v50 = vand.u32 2147483647, %v2748_v9  ;;  %v2661_v52 = vand.u32 2147483648, %v10020_v12  ;;  %v10075_v49 = vmul.f32 3.3333333, %v2618_v3  ;;  %vm2656_vm14 = vweird.f32 %v7547_v31 }
 0xa6f   : > { %v2534_v41 = vsub.f32 1.5, %v2533_v40  ;;  %v2653_v11 = vmul.f32 %v7547_v31, %v2652_v0  ;;  %v2659_v14 = vand.u32 2147483647, %v10020_v12  ;;  %v10078_v37 = vpop.eup %7550  ;;  %v2578_v56 = vmul.f32 %v10039_v29, %v2577_v42 }
 0xa70   : > { %13430 = vst [vmem:[#allocation37_spill] sm:$0xff] %v10075_v49  ;;  %vm2580_vm15 = vweird.f32 %v10005_v23  ;;  %v2621_v54 = vmul.f32 %v10065_v10, %v10041_v20  ;;  %vm2581_vm9 = vweird.f32 %v10039_v29  ;;  %vm2655_vm10 = vweird.f32 %v10020_v12 }
 0xa71   : > { %v2535_v22 = vmul.f32 %v7545_v30, %v2534_v41  ;;  %v2654_v44 = vadd.f32 %v7547_v31, %v2653_v11  ;;  %v2751_v47 = vsub.f32 %v8077_v15, %v2730_v43  ;;  %v2584_v33 = vand.u32 2147483647, %v10005_v23  ;;  %vm2657_vm11 = vmor %vm2655_vm10, %vm2656_vm14 }
 0xa72   : > { %v2662_v55 = vor.u32 1.1754944e-38, %v2661_v52  ;;  %v2622_v63 = vsub.f32 1.0, %v2621_v54  ;;  %v2586_v58 = vand.u32 2147483648, %v10005_v23  ;;  %vm2660_vm3 = vcmp.eq.f32.partialorder %v2659_v14, 8.507059e+37  ;;  %v2726_v23 = vpop.permute.xlu1 %2725 }
 0xa73   : > { %v2536_v16 = vmul.f32 %v2535_v22, %v10024_v59  ;;  %v2658_v51 = vsel %vm2657_vm11, %v7547_v31, %v2654_v44  ;;  %v2696_v19 = vmul.f32 %v10078_v37, %v10052_v45  ;;  %v2579_v39 = vadd.f32 %v10039_v29, %v2578_v56 }
 0xa74   : > { %v2663_v30 = vsel %vm2660_vm3, %v2662_v55, %v2658_v51  ;;  %v2623_v36 = vmul.f32 %v10065_v10, %v2622_v63  ;;  %v2760_v48 = vand.u32 2147483647, %v2751_v47  ;;  %vm2626_vm12 = vweird.f32 %v10065_v10 }
 0xa75   : > { %v2538_v12 = vsel %vm2537_vm13, %v10024_v59, %v2536_v16  ;;  %v10099_v32 = vmul.f32 3.3333333, %v2663_v30  ;;  %v2631_v28 = vand.u32 2147483648, %v10041_v20  ;;  %v2697_v4 = vsub.f32 1.0, %v2696_v19  ;;  %vm10110_vm13 = vmor %vm2580_vm15, %vm2581_vm9 }
 0xa76   : > { %v2541_v17 = vsel %vm2539_vm7, %v2540_v53, %v2538_v12  ;;  %v2624_v24 = vadd.f32 %v10065_v10, %v2623_v36  ;;  %vm2625_vm7 = vweird.f32 %v10041_v20  ;;  %v2629_v9 = vand.u32 2147483647, %v10041_v20 }
 0xa77   : > { %13431 = vst [vmem:[#allocation44_spill] sm:$0xff] %v10099_v32  ;;  %v10102_v31 = vadd.f32 1e-08, %v2541_v17  ;;  %v2769_v59 = vmul.f32 %v2760_v48, %v10099_v32  ;;  %vm2701_vm14 = vweird.f32 %v10078_v37  ;;  %vm10119_vm10 = vmor %vm2625_vm7, %vm2626_vm12  ;;  %v2698_v61 = vmul.f32 %v10078_v37, %v2697_v4 }
 0xa78   : > { %v2704_v8 = vand.u32 2147483647, %v10052_v45  ;;  %v2706_v40 = vand.u32 2147483648, %v10052_v45  ;;  %v2766_v3 = vmul.f32 %v2757_v50, %v10075_v49  ;;  %v2583_v20 = vsel %vm10110_vm13, %v10039_v29, %v2579_v39 }
 0xa79   : > { %7552 = vrcp.f32 %v10102_v31  ;;  %v2746_v42 = vsub.f32 %v8059_v5, %v10072_v26  ;;  %v2628_v53 = vsel %vm10119_vm10, %v10065_v10, %v2624_v24  ;;  %v2632_v0 = vor.u32 1.1754944e-38, %v2631_v28 }
 0xa7a   : > { %v2699_v43 = vadd.f32 %v10078_v37, %v2698_v61  ;;  %vm2700_vm15 = vweird.f32 %v10052_v45  ;;  %v2754_v41 = vsub.f32 %v13160_v46, %v2736_v6  ;;  %vm2585_vm9 = vcmp.eq.f32.partialorder %v2584_v33, 8.507059e+37  ;;  %v2732_v36 = vpop.permute.xlu1 %2731 }
 0xa7b   : > { %v2587_v50 = vor.u32 1.1754944e-38, %v2586_v58  ;;  %vm2630_vm11 = vcmp.eq.f32.partialorder %v2629_v9, 8.507059e+37  ;;  %vm2702_vm3 = vmor %vm2700_vm15, %vm2701_vm14  ;;  %v2707_v29 = vor.u32 1.1754944e-38, %v2706_v40  ;;  %v2778_v52 = vmul.f32 %v2769_v59, %v2769_v59 }
 0xa7c   : > { %v2633_v26 = vsel %vm2630_vm11, %v2632_v0, %v2628_v53  ;;  %v2703_v11 = vsel %vm2702_vm3, %v10078_v37, %v2699_v43  ;;  %vm2705_vm12 = vcmp.eq.f32.partialorder %v2704_v8, 8.507059e+37  ;;  %v2749_v14 = vsub.f32 %v8073_v13, %v2726_v23 }
 0xa7d   : > { %v2588_v10 = vsel %vm2585_vm9, %v2587_v50, %v2583_v20  ;;  %v2708_v22 = vsel %vm2705_vm12, %v2707_v29, %v2703_v11  ;;  %v10143_v45 = vmul.f32 -0.33333334, %v10070_v57  ;;  %v2775_v54 = vmul.f32 %v2766_v3, %v2766_v3  ;;  %v13440_v29 = vld [vmem:[#allocation121_spill] sm:$0xff]  ;;  %v13442_v11 = vld [vmem:[#allocation123_spill] sm:$0xff] }
 0xa7e   : > { %v10145_v44 = vmul.f32 3.3333333, %v2708_v22  ;;  %v2763_v47 = vand.u32 2147483647, %v2754_v41  ;;  %vm2794_vm13 = vcmask 131080   ;;  %v2676_v30 = vand.u32 2147483648, %v10102_v31 }
 0xa7f   : > { %v7553_v56 = vpop.eup %7552  ;;  %v10147_v16 = vmul.f32 3.3333333, %v2633_v26  ;;  %2808 = vrot.lane.b32.xlu2 %v10143_v45, %s7791_s7  ;;  %v10152_v37 = vmul.f32 3.3333333, %v2588_v10  ;;  %v2796_v55 = vsel %vm2794_vm13, %v2778_v52, 0.0  ;;  %v2795_v19 = vsel %vm2794_vm13, %v2775_v54, 0.0 }
 0xa80   : > { %13436 = vst [vmem:[#allocation34_spill] sm:$0xff] %v10145_v44  ;;  %v2666_v33 = vmul.f32 %v7553_v56, %v10102_v31  ;;  %v2772_v57 = vmul.f32 %v2763_v47, %v10145_v44  ;;  %v2755_v63 = vand.u32 2147483647, %v2746_v42  ;;  %v2758_v58 = vand.u32 2147483647, %v2749_v14  ;;  %v13441_v26 = vld [vmem:[#allocation127_spill] sm:$0xff] }
 0xa81   : > { %13437 = vst [vmem:[#allocation40_spill] sm:$0xff] %v10147_v16  ;;  %v2674_v39 = vand.u32 2147483647, %v10102_v31  ;;  %v2797_v17 = vadd.f32 %v2796_v55, %v2795_v19  ;;  %vm2671_vm7 = vweird.f32 %v7553_v56  ;;  %vm2670_vm14 = vweird.f32 %v10102_v31  ;;  %v13443_v10 = vld [vmem:[#allocation122_spill] sm:$0xff]  ;;  %v13444_v14 = vld [vmem:[#allocation125_spill] sm:$0xff]  ;;  %v13445_v22 = vld [vmem:[#allocation124_spill] sm:$0xff] }
 0xa82   : > { %13438 = vst [vmem:[#allocation51_spill] sm:$0xff] %v10152_v37  ;;  %v2667_v51 = vsub.f32 1.0, %v2666_v33  ;;  %v2781_v12 = vmul.f32 %v2772_v57, %v2772_v57  ;;  %v2767_v48 = vmul.f32 %v2758_v58, %v10147_v16  ;;  %v2764_v28 = vmul.f32 %v2755_v63, %v10152_v37  ;;  %vm2672_vm10 = vmor %vm2670_vm14, %vm2671_vm7 }
 0xa83   : > { %v2752_v9 = vsub.f32 %v13156_v34, %v2732_v36  ;;  %v2677_v6 = vor.u32 1.1754944e-38, %v2676_v30  ;;  %vm2675_vm15 = vcmp.eq.f32.partialorder %v2674_v39, 8.507059e+37  ;;  %vm2782_vm9 = vcmask 138249  }
 0xa84   : > { %v2668_v24 = vmul.f32 %v7553_v56, %v2667_v51  ;;  %v2798_v4 = vsel %vm2794_vm13, %v2781_v12, 0.0  ;;  %v2776_v38 = vmul.f32 %v2767_v48, %v2767_v48  ;;  %v2773_v40 = vmul.f32 %v2764_v28, %v2764_v28 }
 0xa85   : > { %v2799_v27 = vadd.f32 %v2798_v4, %v2797_v17  ;;  %v2761_v20 = vand.u32 2147483647, %v2752_v9  ;;  %vm2819_vm11 = vcmask 122880   ;;  %vm2815_vm3 = vcmask 130049  }
 0xa86   : > { %v2669_v59 = vadd.f32 %v7553_v56, %v2668_v24  ;;  %v2784_v31 = vsel %vm2782_vm9, %v2776_v38, 0.0  ;;  %v2783_v53 = vsel %vm2782_vm9, %v2773_v40, 0.0  ;;  %vm2926_vm12 = vcmask 146448  }
 0xa87   : > { %2823 = vrot.lane.b32.xlu2 %v9557_v25, %s7790_s19  ;;  %v10166_v61 = vmul.f32 -0.33333334, %v2799_v27  ;;  %v2785_v43 = vadd.f32 %v2784_v31, %v2783_v53  ;;  %vm2932_vm13 = vcmask 139280   ;;  %vm2920_vm7 = vcmask 146449  }
 0xa88   : > { %v2673_v23 = vsel %vm2672_vm10, %v7553_v56, %v2669_v59  ;;  %v13446_v56 = vld [vmem:[#allocation126_spill] sm:$0xff]  ;;  %vm3065_vm14 = vcmask 154648   ;;  %vm3071_vm10 = vcmask 147480  }
 0xa89   : > { %v2678_v8 = vsel %vm2675_vm15, %v2677_v6, %v2673_v23  ;;  %2810 = vrot.lane.b32.xlu0 %v10166_v61, %s7791_s7  ;;  %vm3059_vm15 = vcmask 154649  }
 0xa8a   : > { %v10168_v3 = vmul.f32 3.3333333, %v2678_v8 }
 0xa8c   : > { %13439 = vst [vmem:[#allocation85_spill] sm:$0xff] %v10168_v3  ;;  %v2770_v42 = vmul.f32 %v2761_v20, %v10168_v3 }
 0xa8e   : > { %v2779_v0 = vmul.f32 %v2770_v42, %v2770_v42 }
 0xa8f   : > { %2829 = vrot.lane.b32.xlu2 %v9574_v35, %s7790_s19 }
 0xa90   : > { %v2786_v41 = vsel %vm2782_vm9, %v2779_v0, 0.0  ;;  %vm3206_vm9 = vcmask 132104  }
 0xa91   : > { %v2787_v50 = vadd.f32 %v2786_v41, %v2785_v43  ;;  %2825 = vrot.lane.b32.xlu0 %v13440_v29, %s7790_s19 }
 0xa93   : > { %v10177_v52 = vmul.f32 -0.33333334, %v2787_v50 }
 0xa95   : > { %2806 = vrot.lane.b32.xlu1 %v10177_v52, %s7791_s7 }
 0xa97   : > { %2835 = vrot.lane.b32.xlu2 %v13441_v26, %s7790_s19 }
 0xa99   : > { %2831 = vrot.lane.b32.xlu0 %v13442_v11, %s7790_s19 }
 0xa9d   : > { %2821 = vrot.lane.b32.xlu1 %v13443_v10, %s7790_s19 }
 0xa9f   : > { %2877 = vrot.lane.b32.xlu2 %v10000_v18, %s7793_s14 }
 0xaa1   : > { %2837 = vrot.lane.b32.xlu0 %v13444_v14, %s7790_s19 }
 0xaa5   : > { %2827 = vrot.lane.b32.xlu1 %v13445_v22, %s7790_s19 }
 0xaa7   : > { %2883 = vrot.lane.b32.xlu2 %v10013_v2, %s7793_s14 }
 0xaa9   : > { %2879 = vrot.lane.b32.xlu0 %v10075_v49, %s7793_s14 }
 0xaad   : > { %2833 = vrot.lane.b32.xlu1 %v13446_v56, %s7790_s19 }
 0xaaf   : > { %2889 = vrot.lane.b32.xlu2 %v10022_v21, %s7793_s14 }
 0xab1   : > { %2885 = vrot.lane.b32.xlu0 %v10099_v32, %s7793_s14 }
 0xab5   : > { %2875 = vrot.lane.b32.xlu1 %v10152_v37, %s7793_s14 }
 0xab9   : > { %2891 = vrot.lane.b32.xlu0 %v10145_v44, %s7793_s14 }
 0xabd   : > { %2881 = vrot.lane.b32.xlu1 %v10147_v16, %s7793_s14 }
 0xac5   : > { %2887 = vrot.lane.b32.xlu1 %v10168_v3, %s7793_s14 }
 0xad9   : > { %v2809_v54 = vpop.permute.xlu2 %2808 }
 0xada   : > { %2818 = vst.msk [vmem:[#allocation2 + $0x7] sm:$0xff] %vm2817_vm0, %v2809_v54 }
 0xae1   : > { %v2824_v47 = vpop.permute.xlu2 %2823 }
 0xae2   : > { %v2849_v51 = vsub.f32 %v13209_v62, %v2824_v47 }
 0xae4   : > { %v2858_v39 = vand.u32 2147483647, %v2849_v51 }
 0xae9   : > { %v2830_v33 = vpop.permute.xlu2 %2829 }
 0xaea   : > { %v2852_v58 = vsub.f32 %v8047_v60, %v2830_v33 }
 0xaec   : > { %v2861_v19 = vand.u32 2147483647, %v2852_v58 }
 0xaf1   : > { %v2836_v55 = vpop.permute.xlu2 %2835 }
 0xaf2   : > { %v2855_v17 = vsub.f32 %v8053_v1, %v2836_v55 }
 0xaf4   : > { %v2864_v4 = vand.u32 2147483647, %v2855_v17 }
 0xaf9   : > { %v2878_v57 = vpop.permute.xlu2 %2877 }
 0xafa   : > { %v2903_v48 = vmul.f32 %v2878_v57, %v2858_v39 }
 0xafb   : > { %v2811_v63 = vpop.permute.xlu0 %2810 }
 0xafc   : > { %2820 = vst.msk [vmem:[#allocation2 + $0xf] sm:$0x1] %vm2819_vm11, %v2811_v63  ;;  %v2912_v27 = vmul.f32 %v2903_v48, %v2903_v48 }
 0xafe   : > { %v2927_v23 = vsel %vm2926_vm12, %v2912_v27, 0.0 }
 0xb01   : > { %v2884_v12 = vpop.permute.xlu2 %2883 }
 0xb02   : > { %v2906_v30 = vmul.f32 %v2884_v12, %v2861_v19 }
 0xb03   : > { %v2826_v36 = vpop.permute.xlu0 %2825 }
 0xb04   : > { %v2915_v24 = vmul.f32 %v2906_v30, %v2906_v30  ;;  %v2850_v47 = vsub.f32 %v8063_v7, %v2826_v36 }
 0xb06   : > { %v2928_v9 = vsel %vm2926_vm12, %v2915_v24, 0.0  ;;  %v2859_v57 = vand.u32 2147483647, %v2850_v47 }
 0xb07   : > { %v2807_v28 = vpop.permute.xlu1 %2806  ;;  %v2929_v40 = vadd.f32 %v2928_v9, %v2927_v23 }
 0xb08   : > { %2816 = vst.msk [vmem:[#allocation2 - $0x1] sm:$0xfe] %vm2815_vm3, %v2807_v28 }
 0xb09   : > { %v2890_v59 = vpop.permute.xlu2 %2889 }
 0xb0a   : > { %v2909_v6 = vmul.f32 %v2890_v59, %v2864_v4 }
 0xb0b   : > { %v2832_v38 = vpop.permute.xlu0 %2831 }
 0xb0c   : > { %v2918_v8 = vmul.f32 %v2909_v6, %v2909_v6  ;;  %v2853_v50 = vsub.f32 %v8077_v15, %v2832_v38 }
 0xb0e   : > { %v2930_v20 = vsel %vm2926_vm12, %v2918_v8, 0.0  ;;  %v2862_v33 = vand.u32 2147483647, %v2853_v50 }
 0xb0f   : > { %v2822_v31 = vpop.permute.xlu1 %2821  ;;  %v2931_v42 = vadd.f32 %v2930_v20, %v2929_v40 }
 0xb10   : > { %v2848_v48 = vsub.f32 %v8059_v5, %v2822_v31 }
 0xb11   : > { %v2939_v53 = vmul.f32 -0.33333334, %v2931_v42 }
 0xb12   : > { %v2857_v9 = vand.u32 2147483647, %v2848_v48 }
 0xb13   : > { %2946 = vrot.lane.b32.xlu2 %v2939_v53, %s7792_s8  ;;  %v2838_v0 = vpop.permute.xlu0 %2837 }
 0xb14   : > { %v2856_v58 = vsub.f32 %v13160_v46, %v2838_v0 }
 0xb16   : > { %v2865_v30 = vand.u32 2147483647, %v2856_v58 }
 0xb17   : > { %v2828_v43 = vpop.permute.xlu1 %2827 }
 0xb18   : > { %v2851_v39 = vsub.f32 %v8073_v13, %v2828_v43 }
 0xb1a   : > { %v2860_v28 = vand.u32 2147483647, %v2851_v39 }
 0xb1b   : > { %2959 = vrot.lane.b32.xlu2 %v2939_v53, %s7791_s7  ;;  %v2880_v41 = vpop.permute.xlu0 %2879 }
 0xb1c   : > { %v2904_v51 = vmul.f32 %v2880_v41, %v2859_v57 }
 0xb1e   : > { %v2913_v17 = vmul.f32 %v2904_v51, %v2904_v51 }
 0xb1f   : > { %v2834_v54 = vpop.permute.xlu1 %2833 }
 0xb20   : > { %v2933_v4 = vsel %vm2932_vm13, %v2913_v17, 0.0  ;;  %v2854_v8 = vsub.f32 %v13156_v34, %v2834_v54 }
 0xb22   : > { %v2863_v42 = vand.u32 2147483647, %v2854_v8 }
 0xb23   : > { %2971 = vrot.lane.b32.xlu2 %v9557_v25, %s7795_s29  ;;  %v2886_v55 = vpop.permute.xlu0 %2885 }
 0xb24   : > { %v2907_v63 = vmul.f32 %v2886_v55, %v2862_v33 }
 0xb26   : > { %v2916_v12 = vmul.f32 %v2907_v63, %v2907_v63 }
 0xb27   : > { %v2876_v19 = vpop.permute.xlu1 %2875 }
 0xb28   : > { %v2934_v25 = vsel %vm2932_vm13, %v2916_v12, 0.0  ;;  %v2902_v40 = vmul.f32 %v2876_v19, %v2857_v9 }
 0xb29   : > { %v2935_v6 = vadd.f32 %v2934_v25, %v2933_v4 }
 0xb2a   : > { %v2911_v53 = vmul.f32 %v2902_v40, %v2902_v40 }
 0xb2b   : > { %2977 = vrot.lane.b32.xlu2 %v9574_v35, %s7795_s29  ;;  %v2892_v36 = vpop.permute.xlu0 %2891 }
 0xb2c   : > { %v2910_v24 = vmul.f32 %v2892_v36, %v2865_v30  ;;  %v2921_v50 = vsel %vm2920_vm7, %v2911_v53, 0.0 }
 0xb2e   : > { %v2919_v59 = vmul.f32 %v2910_v24, %v2910_v24 }
 0xb2f   : > { %v2882_v27 = vpop.permute.xlu1 %2881 }
 0xb30   : > { %v2905_v38 = vmul.f32 %v2882_v27, %v2860_v28  ;;  %v2936_v23 = vsel %vm2932_vm13, %v2919_v59, 0.0  ;;  %vm3195_vm13 = vcmask 138250  }
 0xb31   : > { %v2937_v20 = vadd.f32 %v2936_v23, %v2935_v6 }
 0xb32   : > { %v2914_v31 = vmul.f32 %v2905_v38, %v2905_v38 }
 0xb33   : > { %2983 = vrot.lane.b32.xlu2 %v13441_v26, %s7795_s29  ;;  %v2940_v35 = vmul.f32 -0.33333334, %v2937_v20 }
 0xb34   : > { %v2922_v43 = vsel %vm2920_vm7, %v2914_v31, 0.0 }
 0xb35   : > { %2948 = vrot.lane.b32.xlu0 %v2940_v35, %s7792_s8  ;;  %v2923_v33 = vadd.f32 %v2922_v43, %v2921_v50  ;;  %v13449_v50 = vld [vmem:[#allocation21_spill] sm:$0xff] }
 0xb37   : > { %v2888_v0 = vpop.permute.xlu1 %2887 }
 0xb38   : > { %v2908_v41 = vmul.f32 %v2888_v0, %v2863_v42  ;;  %v13448_v0 = vld [vmem:[#allocation17_spill] sm:$0xff] }
 0xb3a   : > { %v2917_v47 = vmul.f32 %v2908_v41, %v2908_v41 }
 0xb3b   : > { %3016 = vrot.lane.b32.xlu2 %v10000_v18, %s7790_s19 }
 0xb3c   : > { %v2924_v54 = vsel %vm2920_vm7, %v2917_v47, 0.0  ;;  %vm3231_vm7 = vcmask 123904  }
 0xb3d   : > { %v2925_v55 = vadd.f32 %v2924_v54, %v2923_v33  ;;  %2961 = vrot.lane.b32.xlu0 %v2940_v35, %s7791_s7  ;;  %v13447_v35 = vld [vmem:[#allocation18_spill] sm:$0xff] }
 0xb3f   : > { %v2938_v26 = vmul.f32 -0.33333334, %v2925_v55 }
 0xb41   : > { %2944 = vrot.lane.b32.xlu1 %v2938_v26, %s7792_s8 }
 0xb43   : > { %3022 = vrot.lane.b32.xlu2 %v10013_v2, %s7790_s19 }
 0xb45   : > { %2973 = vrot.lane.b32.xlu0 %v13440_v29, %s7795_s29 }
 0xb49   : > { %2957 = vrot.lane.b32.xlu1 %v2938_v26, %s7791_s7 }
 0xb4b   : > { %3028 = vrot.lane.b32.xlu2 %v10022_v21, %s7790_s19 }
 0xb4d   : > { %2979 = vrot.lane.b32.xlu0 %v13442_v11, %s7795_s29 }
 0xb51   : > { %2969 = vrot.lane.b32.xlu1 %v13443_v10, %s7795_s29 }
 0xb55   : > { %2985 = vrot.lane.b32.xlu0 %v13444_v14, %s7795_s29 }
 0xb59   : > { %2975 = vrot.lane.b32.xlu1 %v13445_v22, %s7795_s29 }
 0xb5d   : > { %3018 = vrot.lane.b32.xlu0 %v10075_v49, %s7790_s19 }
 0xb61   : > { %2981 = vrot.lane.b32.xlu1 %v13446_v56, %s7795_s29 }
 0xb65   : > { %3024 = vrot.lane.b32.xlu0 %v10099_v32, %s7790_s19 }
 0xb69   : > { %3014 = vrot.lane.b32.xlu1 %v10152_v37, %s7790_s19 }
 0xb6d   : > { %v2947_v29 = vpop.permute.xlu2 %2946  ;;  %3030 = vrot.lane.b32.xlu0 %v10145_v44, %s7790_s19 }
 0xb6e   : > { %2955 = vst.msk [vmem:[#allocation2 + $0x17] sm:$0xff] %vm2817_vm0, %v2947_v29 }
 0xb71   : > { %3020 = vrot.lane.b32.xlu1 %v10147_v16, %s7790_s19 }
 0xb75   : > { %v10267_v11 = vpop.permute.xlu2 %2959 }
 0xb79   : > { %3026 = vrot.lane.b32.xlu1 %v10168_v3, %s7790_s19 }
 0xb7d   : > { %v2972_v10 = vpop.permute.xlu2 %2971 }
 0xb7e   : > { %v2997_v63 = vsub.f32 %v13209_v62, %v2972_v10 }
 0xb80   : > { %v3006_v19 = vand.u32 2147483647, %v2997_v63 }
 0xb85   : > { %v2978_v14 = vpop.permute.xlu2 %2977 }
 0xb86   : > { %v3000_v57 = vsub.f32 %v8047_v60, %v2978_v14 }
 0xb88   : > { %v3009_v58 = vand.u32 2147483647, %v3000_v57 }
 0xb8d   : > { %v2984_v22 = vpop.permute.xlu2 %2983 }
 0xb8e   : > { %v3003_v39 = vsub.f32 %v8053_v1, %v2984_v22 }
 0xb90   : > { %v3012_v48 = vand.u32 2147483647, %v3003_v39 }
 0xb95   : > { %v3017_v56 = vpop.permute.xlu2 %3016 }
 0xb96   : > { %v3042_v30 = vmul.f32 %v3017_v56, %v3006_v19 }
 0xb98   : > { %v3051_v36 = vmul.f32 %v3042_v30, %v3042_v30 }
 0xb9a   : > { %v3066_v27 = vsel %vm3065_vm14, %v3051_v36, 0.0 }
 0xb9d   : > { %v3023_v51 = vpop.permute.xlu2 %3022 }
 0xb9e   : > { %v3045_v12 = vmul.f32 %v3023_v51, %v3009_v58 }
 0xba0   : > { %v3054_v17 = vmul.f32 %v3045_v12, %v3045_v12 }
 0xba2   : > { %v3067_v24 = vsel %vm3065_vm14, %v3054_v17, 0.0 }
 0xba3   : > { %v3068_v9 = vadd.f32 %v3067_v24, %v3066_v27 }
 0xba5   : > { %v3029_v25 = vpop.permute.xlu2 %3028 }
 0xba6   : > { %v3048_v28 = vmul.f32 %v3029_v25, %v3012_v48 }
 0xba7   : > { %v2949_v4 = vpop.permute.xlu0 %2948 }
 0xba8   : > { %v3057_v59 = vmul.f32 %v3048_v28, %v3048_v28  ;;  %2956 = vst.msk [vmem:[#allocation2 + $0x1f] sm:$0x1] %vm2819_vm11, %v2949_v4 }
 0xbaa   : > { %v3069_v6 = vsel %vm3065_vm14, %v3057_v59, 0.0 }
 0xbab   : > { %v3070_v38 = vadd.f32 %v3069_v6, %v3068_v9 }
 0xbad   : > { %v3078_v23 = vmul.f32 -0.33333334, %v3070_v38 }
 0xbaf   : > { %3085 = vrot.lane.b32.xlu2 %v3078_v23, %s7794_s16  ;;  %v10279_v8 = vpop.permute.xlu0 %2961 }
 0xbb3   : > { %v2945_v40 = vpop.permute.xlu1 %2944 }
 0xbb4   : > { %2954 = vst.msk [vmem:[#allocation2 + $0xf] sm:$0xfe] %vm2815_vm3, %v2945_v40 }
 0xbb7   : > { %3098 = vrot.lane.b32.xlu2 %v3078_v23, %s7792_s8  ;;  %v2974_v20 = vpop.permute.xlu0 %2973 }
 0xbb8   : > { %v2998_v55 = vsub.f32 %v8063_v7, %v2974_v20 }
 0xbba   : > { %v3007_v10 = vand.u32 2147483647, %v2998_v55 }
 0xbbb   : > { %v10283_v31 = vpop.permute.xlu1 %2957 }
 0xbbf   : > { %3110 = vrot.lane.b32.xlu2 %v13447_v35, %s7793_s14  ;;  %v2980_v42 = vpop.permute.xlu0 %2979 }
 0xbc0   : > { %v3001_v33 = vsub.f32 %v8077_v15, %v2980_v42 }
 0xbc2   : > { %v3010_v26 = vand.u32 2147483647, %v3001_v33 }
 0xbc3   : > { %v2970_v53 = vpop.permute.xlu1 %2969 }
 0xbc4   : > { %v2996_v12 = vsub.f32 %v8059_v5, %v2970_v53 }
 0xbc6   : > { %v3005_v28 = vand.u32 2147483647, %v2996_v12 }
 0xbc7   : > { %3116 = vrot.lane.b32.xlu2 %v13448_v0, %s7793_s14  ;;  %v2986_v43 = vpop.permute.xlu0 %2985 }
 0xbc8   : > { %v3004_v22 = vsub.f32 %v13160_v46, %v2986_v43 }
 0xbca   : > { %v3013_v51 = vand.u32 2147483647, %v3004_v22  ;;  %v13452_v22 = vld [vmem:[#allocation16_spill] sm:$0xff] }
 0xbcb   : > { %v2976_v41 = vpop.permute.xlu1 %2975 }
 0xbcc   : > { %v2999_v58 = vsub.f32 %v8073_v13, %v2976_v41 }
 0xbce   : > { %v3008_v48 = vand.u32 2147483647, %v2999_v58 }
 0xbcf   : > { %3122 = vrot.lane.b32.xlu2 %v13449_v50, %s7793_s14  ;;  %v3019_v47 = vpop.permute.xlu0 %3018 }
 0xbd0   : > { %v3043_v56 = vmul.f32 %v3019_v47, %v3007_v10  ;;  %v13450_v10 = vld [vmem:[#allocation15_spill] sm:$0xff] }
 0xbd2   : > { %v3052_v19 = vmul.f32 %v3043_v56, %v3043_v56 }
 0xbd3   : > { %v2982_v54 = vpop.permute.xlu1 %2981 }
 0xbd4   : > { %v3072_v36 = vsel %vm3071_vm10, %v3052_v19, 0.0  ;;  %v3002_v9 = vsub.f32 %v13156_v34, %v2982_v54 }
 0xbd6   : > { %v3011_v20 = vand.u32 2147483647, %v3002_v9 }
 0xbd7   : > { %v3025_v29 = vpop.permute.xlu0 %3024 }
 0xbd8   : > { %v3046_v14 = vmul.f32 %v3025_v29, %v3010_v26 }
 0xbda   : > { %v3055_v63 = vmul.f32 %v3046_v14, %v3046_v14  ;;  %v13451_v14 = vld [vmem:[#allocation14_spill] sm:$0xff] }
 0xbdb   : > { %v3015_v57 = vpop.permute.xlu1 %3014 }
 0xbdc   : > { %v3073_v30 = vsel %vm3071_vm10, %v3055_v63, 0.0  ;;  %v3041_v6 = vmul.f32 %v3015_v57, %v3005_v28  ;;  %v13453_v57 = vld [vmem:[#allocation19_spill] sm:$0xff]  ;;  %v13454_v63 = vld [vmem:[#allocation13_spill] sm:$0xff]  ;;  %v3154_v28 = vrot.slane %v10000_v18, 7 }
 0xbdd   : > { %v3074_v4 = vadd.f32 %v3073_v30, %v3072_v36  ;;  %v3159_v36 = vrot.slane %v10013_v2, 7 }
 0xbde   : > { %v3050_v42 = vmul.f32 %v3041_v6, %v3041_v6  ;;  %v10337_v6 = vrot.slane %v10168_v3, 7 }
 0xbdf   : > { %v3031_v39 = vpop.permute.xlu0 %3030 }
 0xbe0   : > { %v3049_v17 = vmul.f32 %v3031_v39, %v3013_v51  ;;  %v3060_v47 = vsel %vm3059_vm15, %v3050_v42, 0.0  ;;  %v13455_v51 = vld [vmem:[#allocation20_spill] sm:$0xff]  ;;  %v10318_v39 = vrot.slane %v10147_v16, 7  ;;  %13460 = vst [vmem:[#allocation94_spill] sm:$0xff] %v10337_v6 }
 0xbe2   : > { %v3058_v24 = vmul.f32 %v3049_v17, %v3049_v17  ;;  %13456 = vst [vmem:[#allocation31_spill] sm:$0xff] %v10318_v39 }
 0xbe3   : > { %v3021_v25 = vpop.permute.xlu1 %3020 }
 0xbe4   : > { %v3044_v27 = vmul.f32 %v3021_v25, %v3008_v48  ;;  %v3075_v59 = vsel %vm3071_vm10, %v3058_v24, 0.0  ;;  %v10322_v48 = vrot.slane %v10152_v37, 7  ;;  %vm3228_vm10 = vcmask 130050  }
 0xbe5   : > { %v3076_v38 = vadd.f32 %v3075_v59, %v3074_v4  ;;  %v10328_v4 = vsel %vm628_vm6, %v10318_v39, %v3159_v36 }
 0xbe6   : > { %v3053_v23 = vmul.f32 %v3044_v27, %v3044_v27  ;;  %13457 = vst [vmem:[#allocation41_spill] sm:$0xff] %v10322_v48  ;;  %v10333_v59 = vsel %vm628_vm6, %v10322_v48, %v3154_v28 }
 0xbe7   : > { %v3079_v40 = vmul.f32 -0.33333334, %v3076_v38  ;;  %13458 = vst [vmem:[#allocation35_spill] sm:$0xff] %v10328_v4 }
 0xbe8   : > { %v3061_v43 = vsel %vm3059_vm15, %v3053_v23, 0.0  ;;  %13459 = vst [vmem:[#allocation48_spill] sm:$0xff] %v10333_v59 }
 0xbe9   : > { %3087 = vrot.lane.b32.xlu0 %v3079_v40, %s7794_s16  ;;  %v3062_v55 = vadd.f32 %v3061_v43, %v3060_v47 }
 0xbeb   : > { %v3027_v53 = vpop.permute.xlu1 %3026 }
 0xbec   : > { %v3047_v41 = vmul.f32 %v3027_v53, %v3011_v20  ;;  %v3164_v20 = vrot.slane %v10022_v21, 7 }
 0xbee   : > { %v3056_v33 = vmul.f32 %v3047_v41, %v3047_v41  ;;  %v10343_v43 = vsel %vm628_vm6, %v10337_v6, %v3164_v20 }
 0xbef   : > { %13461 = vst [vmem:[#allocation45_spill] sm:$0xff] %v10343_v43 }
 0xbf0   : > { %v3063_v26 = vsel %vm3059_vm15, %v3056_v33, 0.0  ;;  %vm3345_vm15 = vcmask 148504  }
 0xbf1   : > { %v3064_v29 = vadd.f32 %v3063_v26, %v3062_v55  ;;  %3100 = vrot.lane.b32.xlu0 %v3079_v40, %s7792_s8 }
 0xbf3   : > { %v3077_v54 = vmul.f32 -0.33333334, %v3064_v29 }
 0xbf5   : > { %3083 = vrot.lane.b32.xlu1 %v3077_v54, %s7794_s16 }
 0xbf9   : > { %3112 = vrot.lane.b32.xlu0 %v13450_v10, %s7793_s14 }
 0xbfd   : > { %3096 = vrot.lane.b32.xlu1 %v3077_v54, %s7792_s8 }
 0xc01   : > { %3118 = vrot.lane.b32.xlu0 %v13451_v14, %s7793_s14 }
 0xc05   : > { %3108 = vrot.lane.b32.xlu1 %v13452_v22, %s7793_s14 }
 0xc09   : > { %v3086_v56 = vpop.permute.xlu2 %3085  ;;  %3124 = vrot.lane.b32.xlu0 %v13453_v57, %s7793_s14 }
 0xc0a   : > { %3094 = vst.msk [vmem:[#allocation2 + $0x27] sm:$0xff] %vm2817_vm0, %v3086_v56 }
 0xc0d   : > { %3114 = vrot.lane.b32.xlu1 %v13454_v63, %s7793_s14 }
 0xc11   : > { %v10312_v58 = vpop.permute.xlu2 %3098 }
 0xc15   : > { %3120 = vrot.lane.b32.xlu1 %v13455_v51, %s7793_s14 }
 0xc19   : > { %v3111_v19 = vpop.permute.xlu2 %3110 }
 0xc1a   : > { %v3136_v12 = vsub.f32 %v13209_v62, %v3111_v19 }
 0xc1c   : > { %v3145_v25 = vand.u32 2147483647, %v3136_v12 }
 0xc1e   : > { %v3178_v9 = vmul.f32 %v10333_v59, %v3145_v25 }
 0xc20   : > { %v3187_v42 = vmul.f32 %v3178_v9, %v3178_v9 }
 0xc21   : > { %v3117_v30 = vpop.permute.xlu2 %3116 }
 0xc22   : > { %v3139_v17 = vsub.f32 %v8047_v60, %v3117_v30  ;;  %v3201_v33 = vsel %vm2788_vm2, %v3187_v42, 0.0 }
 0xc24   : > { %v3148_v24 = vand.u32 2147483647, %v3139_v17 }
 0xc26   : > { %v3181_v27 = vmul.f32 %v10328_v4, %v3148_v24 }
 0xc28   : > { %v3190_v23 = vmul.f32 %v3181_v27, %v3181_v27  ;;  %v3161_v27 = vrot.slane %v10099_v32, 7 }
 0xc29   : > { %v3123_v38 = vpop.permute.xlu2 %3122 }
 0xc2a   : > { %v3142_v40 = vsub.f32 %v8053_v1, %v3123_v38  ;;  %v3202_v41 = vsel %vm2788_vm2, %v3190_v23, 0.0  ;;  %v3156_v23 = vrot.slane %v10075_v49, 7 }
 0xc2b   : > { %v3203_v26 = vadd.f32 %v3202_v41, %v3201_v33  ;;  %v10376_v41 = vsel %vm628_vm6, %v3159_v36, %v3161_v27 }
 0xc2c   : > { %v3151_v53 = vand.u32 2147483647, %v3142_v40  ;;  %13462 = vst [vmem:[#allocation42_spill] sm:$0xff] %v10376_v41  ;;  %v10380_v33 = vsel %vm628_vm6, %v3154_v28, %v3156_v23 }
 0xc2d   : > { %13463 = vst [vmem:[#allocation53_spill] sm:$0xff] %v10380_v33 }
 0xc2e   : > { %v3184_v47 = vmul.f32 %v10343_v43, %v3151_v53 }
 0xc30   : > { %v3193_v55 = vmul.f32 %v3184_v47, %v3184_v47 }
 0xc32   : > { %v3204_v29 = vsel %vm2788_vm2, %v3193_v55, 0.0 }
 0xc33   : > { %v3205_v54 = vadd.f32 %v3204_v29, %v3203_v26  ;;  %v3166_v26 = vrot.slane %v10145_v44, 7 }
 0xc35   : > { %v10349_v56 = vmul.f32 -0.33333334, %v3205_v54  ;;  %v10388_v27 = vsel %vm628_vm6, %v3164_v20, %v3166_v26 }
 0xc36   : > { %13464 = vst [vmem:[#allocation103_spill] sm:$0xff] %v10388_v27 }
 0xc37   : > { %3220 = vrot.lane.b32.xlu2 %v10349_v56, %s7791_s7 }
 0xc3f   : > { %3246 = vrot.lane.b32.xlu2 %v13447_v35, %s7795_s29 }
 0xc47   : > { %3252 = vrot.lane.b32.xlu2 %v13448_v0, %s7795_s29 }
 0xc4f   : > { %3258 = vrot.lane.b32.xlu2 %v13449_v50, %s7795_s29 }
 0xc57   : > { %3291 = vrot.lane.b32.xlu2 %v10333_v59, %s7790_s19  ;;  %v3452_v59 = vrot.slane %v10022_v21, 6 }
 0xc5b   : > { %v3088_v19 = vpop.permute.xlu0 %3087 }
 0xc5c   : > { %3095 = vst.msk [vmem:[#allocation2 + $0x2f] sm:$0x1] %vm2819_vm11, %v3088_v19 }
 0xc5f   : > { %3297 = vrot.lane.b32.xlu2 %v10328_v4, %s7790_s19 }
 0xc63   : > { %v10364_v12 = vpop.permute.xlu0 %3100 }
 0xc67   : > { %v3084_v30 = vpop.permute.xlu1 %3083  ;;  %3303 = vrot.lane.b32.xlu2 %v10343_v43, %s7790_s19  ;;  %v3442_v43 = vrot.slane %v10000_v18, 6 }
 0xc68   : > { %3093 = vst.msk [vmem:[#allocation2 + $0x1f] sm:$0xfe] %vm2815_vm3, %v3084_v30 }
 0xc6b   : > { %v3113_v17 = vpop.permute.xlu0 %3112 }
 0xc6c   : > { %v3137_v24 = vsub.f32 %v8063_v7, %v3113_v17 }
 0xc6e   : > { %v3146_v40 = vand.u32 2147483647, %v3137_v24 }
 0xc6f   : > { %v10369_v25 = vpop.permute.xlu1 %3096 }
 0xc70   : > { %v3179_v55 = vmul.f32 %v10380_v33, %v3146_v40 }
 0xc72   : > { %v3188_v17 = vmul.f32 %v3179_v55, %v3179_v55 }
 0xc73   : > { %v3119_v9 = vpop.permute.xlu0 %3118 }
 0xc74   : > { %v3140_v38 = vsub.f32 %v8077_v15, %v3119_v9 }
 0xc76   : > { %v3149_v53 = vand.u32 2147483647, %v3140_v38 }
 0xc77   : > { %v3109_v42 = vpop.permute.xlu1 %3108 }
 0xc78   : > { %v3182_v47 = vmul.f32 %v10376_v41, %v3149_v53  ;;  %v3135_v30 = vsub.f32 %v8059_v5, %v3109_v42  ;;  %v3207_v53 = vsel %vm3206_vm9, %v3188_v17, 0.0 }
 0xc7a   : > { %v3191_v54 = vmul.f32 %v3182_v47, %v3182_v47  ;;  %v3144_v23 = vand.u32 2147483647, %v3135_v30 }
 0xc7b   : > { %v3125_v29 = vpop.permute.xlu0 %3124 }
 0xc7c   : > { %v3143_v19 = vsub.f32 %v13160_v46, %v3125_v29  ;;  %v3208_v28 = vsel %vm3206_vm9, %v3191_v54, 0.0  ;;  %v3177_v55 = vmul.f32 %v10322_v48, %v3144_v23 }
 0xc7d   : > { %v3209_v50 = vadd.f32 %v3208_v28, %v3207_v53 }
 0xc7e   : > { %v3152_v9 = vand.u32 2147483647, %v3143_v19  ;;  %v3186_v26 = vmul.f32 %v3177_v55, %v3177_v55 }
 0xc7f   : > { %v3115_v24 = vpop.permute.xlu1 %3114 }
 0xc80   : > { %v3138_v36 = vsub.f32 %v8073_v13, %v3115_v24  ;;  %v3185_v38 = vmul.f32 %v10388_v27, %v3152_v9  ;;  %v3196_v9 = vsel %vm3195_vm13, %v3186_v26, 0.0 }
 0xc82   : > { %v3147_v40 = vand.u32 2147483647, %v3138_v36  ;;  %v3194_v47 = vmul.f32 %v3185_v38, %v3185_v38 }
 0xc84   : > { %v3180_v29 = vmul.f32 %v10318_v39, %v3147_v40  ;;  %v3210_v42 = vsel %vm3206_vm9, %v3194_v47, 0.0  ;;  %vm3334_vm9 = vcmask 154650  }
 0xc85   : > { %v3211_v19 = vadd.f32 %v3210_v42, %v3209_v50  ;;  %v3234_v50 = vrot.slane %v10349_v56, 1 }
 0xc86   : > { %v3189_v0 = vmul.f32 %v3180_v29, %v3180_v29 }
 0xc87   : > { %v3121_v35 = vpop.permute.xlu1 %3120  ;;  %v10394_v20 = vmul.f32 -0.33333334, %v3211_v19 }
 0xc88   : > { %v3141_v24 = vsub.f32 %v13156_v34, %v3121_v35  ;;  %v3197_v30 = vsel %vm3195_vm13, %v3189_v0, 0.0 }
 0xc89   : > { %3222 = vrot.lane.b32.xlu0 %v10394_v20, %s7791_s7  ;;  %v3198_v28 = vadd.f32 %v3197_v30, %v3196_v9  ;;  %v12996_v23 = vrot.slane %v10394_v20, 1 }
 0xc8a   : > { %v3150_v54 = vand.u32 2147483647, %v3141_v24 }
 0xc8b   : > { %v10406_v53 = vsel %vm452_vm4, %v3234_v50, %v12996_v23 }
 0xc8c   : > { %v3183_v17 = vmul.f32 %v10337_v6, %v3150_v54 }
 0xc8e   : > { %v3192_v36 = vmul.f32 %v3183_v17, %v3183_v17 }
 0xc90   : > { %v3199_v38 = vsel %vm3195_vm13, %v3192_v36, 0.0  ;;  %vm3483_vm13 = vcmask 138251  }
 0xc91   : > { %v3200_v35 = vadd.f32 %v3199_v38, %v3198_v28  ;;  %v3221_v40 = vpop.permute.xlu2 %3220  ;;  %3248 = vrot.lane.b32.xlu0 %v13450_v10, %s7795_s29 }
 0xc92   : > { %3230 = vst.msk [vmem:[#allocation2 + $0x36] sm:$0xff] %vm2817_vm0, %v3221_v40 }
 0xc93   : > { %v3212_v0 = vmul.f32 -0.33333334, %v3200_v35 }
 0xc95   : > { %3218 = vrot.lane.b32.xlu1 %v3212_v0, %s7791_s7  ;;  %v3233_v47 = vrot.slane %v3212_v0, 1 }
 0xc97   : > { %v10413_v56 = vsel %vm452_vm4, %v3233_v47, %v3234_v50 }
 0xc99   : > { %v3247_v29 = vpop.permute.xlu2 %3246  ;;  %3254 = vrot.lane.b32.xlu0 %v13451_v14, %s7795_s29 }
 0xc9a   : > { %v3272_v26 = vsub.f32 %v13209_v62, %v3247_v29 }
 0xc9c   : > { %v3281_v17 = vand.u32 2147483647, %v3272_v26 }
 0xc9d   : > { %3244 = vrot.lane.b32.xlu1 %v13452_v22, %s7795_s29 }
 0xca1   : > { %v3253_v42 = vpop.permute.xlu2 %3252  ;;  %3260 = vrot.lane.b32.xlu0 %v13453_v57, %s7795_s29 }
 0xca2   : > { %v3275_v24 = vsub.f32 %v8047_v60, %v3253_v42 }
 0xca4   : > { %v3284_v54 = vand.u32 2147483647, %v3275_v24 }
 0xca5   : > { %3250 = vrot.lane.b32.xlu1 %v13454_v63, %s7795_s29 }
 0xca9   : > { %v3259_v55 = vpop.permute.xlu2 %3258  ;;  %3293 = vrot.lane.b32.xlu0 %v10380_v33, %s7790_s19 }
 0xcaa   : > { %v3278_v36 = vsub.f32 %v8053_v1, %v3259_v55 }
 0xcac   : > { %v3287_v50 = vand.u32 2147483647, %v3278_v36 }
 0xcad   : > { %3256 = vrot.lane.b32.xlu1 %v13455_v51, %s7795_s29 }
 0xcb1   : > { %v3292_v19 = vpop.permute.xlu2 %3291  ;;  %3299 = vrot.lane.b32.xlu0 %v10376_v41, %s7790_s19 }
 0xcb2   : > { %v3317_v28 = vmul.f32 %v3292_v19, %v3281_v17 }
 0xcb4   : > { %v3326_v35 = vmul.f32 %v3317_v28, %v3317_v28 }
 0xcb5   : > { %3289 = vrot.lane.b32.xlu1 %v10322_v48, %s7790_s19 }
 0xcb6   : > { %v3340_v29 = vsel %vm3065_vm14, %v3326_v35, 0.0 }
 0xcb9   : > { %v3298_v30 = vpop.permute.xlu2 %3297  ;;  %3305 = vrot.lane.b32.xlu0 %v10388_v27, %s7790_s19 }
 0xcba   : > { %v3320_v9 = vmul.f32 %v3298_v30, %v3284_v54 }
 0xcbc   : > { %v3329_v38 = vmul.f32 %v3320_v9, %v3320_v9 }
 0xcbd   : > { %3295 = vrot.lane.b32.xlu1 %v10318_v39, %s7790_s19 }
 0xcbe   : > { %v3341_v0 = vsel %vm3065_vm14, %v3329_v38, 0.0 }
 0xcbf   : > { %v3342_v24 = vadd.f32 %v3341_v0, %v3340_v29 }
 0xcc1   : > { %v3304_v40 = vpop.permute.xlu2 %3303 }
 0xcc2   : > { %v3323_v47 = vmul.f32 %v3304_v40, %v3287_v50 }
 0xcc4   : > { %v3332_v42 = vmul.f32 %v3323_v47, %v3323_v47 }
 0xcc5   : > { %3301 = vrot.lane.b32.xlu1 %v10337_v6, %s7790_s19 }
 0xcc6   : > { %v3343_v55 = vsel %vm3065_vm14, %v3332_v42, 0.0 }
 0xcc7   : > { %v3344_v19 = vadd.f32 %v3343_v55, %v3342_v24 }
 0xcc9   : > { %v10441_v26 = vmul.f32 -0.33333334, %v3344_v19 }
 0xccb   : > { %3359 = vrot.lane.b32.xlu2 %v10441_v26, %s7794_s16 }
 0xcfb   : > { %v3223_v54 = vpop.permute.xlu0 %3222 }
 0xcfc   : > { %3232 = vst.msk [vmem:[#allocation2 + $0x3e] sm:$0x3] %vm3231_vm7, %v3223_v54 }
 0xd03   : > { %v3249_v30 = vpop.permute.xlu0 %3248 }
 0xd04   : > { %v3273_v0 = vsub.f32 %v8063_v7, %v3249_v30 }
 0xd06   : > { %v3282_v42 = vand.u32 2147483647, %v3273_v0 }
 0xd07   : > { %v3219_v17 = vpop.permute.xlu1 %3218 }
 0xd08   : > { %3229 = vst.msk [vmem:[#allocation2 + $0x2e] sm:$0xfc] %vm3228_vm10, %v3219_v17 }
 0xd0b   : > { %v3255_v9 = vpop.permute.xlu0 %3254 }
 0xd0c   : > { %v3276_v35 = vsub.f32 %v8077_v15, %v3255_v9 }
 0xd0e   : > { %v3285_v47 = vand.u32 2147483647, %v3276_v35 }
 0xd0f   : > { %v3245_v36 = vpop.permute.xlu1 %3244 }
 0xd10   : > { %v3271_v9 = vsub.f32 %v8059_v5, %v3245_v36  ;;  %v3371_v36 = vrot.slane %v10441_v26, 1 }
 0xd13   : > { %v3261_v28 = vpop.permute.xlu0 %3260 }
 0xd14   : > { %v3279_v19 = vsub.f32 %v13160_v46, %v3261_v28  ;;  %v3280_v28 = vand.u32 2147483647, %v3271_v9 }
 0xd16   : > { %v3288_v10 = vand.u32 2147483647, %v3279_v19 }
 0xd17   : > { %v3251_v38 = vpop.permute.xlu1 %3250 }
 0xd18   : > { %v3274_v57 = vsub.f32 %v8073_v13, %v3251_v38 }
 0xd1a   : > { %v3283_v0 = vand.u32 2147483647, %v3274_v57 }
 0xd1b   : > { %v3294_v50 = vpop.permute.xlu0 %3293 }
 0xd1c   : > { %v3318_v54 = vmul.f32 %v3294_v50, %v3282_v42 }
 0xd1e   : > { %v3327_v14 = vmul.f32 %v3318_v54, %v3318_v54 }
 0xd1f   : > { %v3257_v40 = vpop.permute.xlu1 %3256 }
 0xd20   : > { %v3277_v42 = vsub.f32 %v13156_v34, %v3257_v40 }
 0xd23   : > { %v3300_v29 = vpop.permute.xlu0 %3299 }
 0xd24   : > { %v3321_v24 = vmul.f32 %v3300_v29, %v3285_v47  ;;  %v3346_v47 = vsel %vm3345_vm15, %v3327_v14, 0.0 }
 0xd25   : > { %v3360_v55 = vpop.permute.xlu2 %3359 }
 0xd26   : > { %3368 = vst.msk [vmem:[#allocation2 + $0x46] sm:$0xff] %vm2817_vm0, %v3360_v55  ;;  %v3330_v23 = vmul.f32 %v3321_v24, %v3321_v24 }
 0xd27   : > { %v3290_v17 = vpop.permute.xlu1 %3289 }
 0xd28   : > { %v3347_v35 = vsel %vm3345_vm15, %v3330_v23, 0.0  ;;  %v3316_v24 = vmul.f32 %v3290_v17, %v3280_v28  ;;  %v3286_v23 = vand.u32 2147483647, %v3277_v42  ;;  %v10459_v17 = vld [vmem:[%s7940_s6] sm:$0xff] }
 0xd29   : > { %v3348_v63 = vadd.f32 %v3347_v35, %v3346_v47  ;;  %13465 = vst [vmem:[#allocation66_spill] sm:$0xff] %v10459_v17  ;;  %v10462_v26 = vrot.slane %v10459_v17, 5 }
 0xd2b   : > { %v3306_v30 = vpop.permute.xlu0 %3305 }
 0xd2c   : > { %v3324_v51 = vmul.f32 %v3306_v30, %v3288_v10  ;;  %v3325_v10 = vmul.f32 %v3316_v24, %v3316_v24  ;;  %v10465_v30 = vld [vmem:[%s7940_s6 + $0x8] sm:$0xff]  ;;  %v10486_v24 = vld [vmem:[%s7940_s6 + $0x18] sm:$0xff] }
 0xd2d   : > { %13466 = vst [vmem:[#allocation61_spill] sm:$0xff] %v10465_v30  ;;  %v10468_v35 = vrot.slane %v10465_v30, 5 }
 0xd2e   : > { %v3333_v22 = vmul.f32 %v3324_v51, %v3324_v51  ;;  %13468 = vst [vmem:[#allocation52_spill] sm:$0xff] %v10486_v24 }
 0xd2f   : > { %v3296_v29 = vpop.permute.xlu1 %3295  ;;  %v10474_v28 = vsel %vm2118_vm8, %v10462_v26, %v10468_v35 }
 0xd30   : > { %v3319_v55 = vmul.f32 %v3296_v29, %v3283_v0  ;;  %v3349_v50 = vsel %vm3345_vm15, %v3333_v22, 0.0  ;;  %vm3519_vm15 = vcmask 124928  }
 0xd31   : > { %v3350_v38 = vadd.f32 %v3349_v50, %v3348_v63  ;;  %v3335_v63 = vsel %vm3334_vm9, %v3325_v10, 0.0  ;;  %v10480_v50 = vld [vmem:[%s7940_s6 + $0x10] sm:$0xff]  ;;  %v10503_v10 = vld [vmem:[%s7940_s6 + $0x20] sm:$0xff] }
 0xd32   : > { %v3328_v19 = vmul.f32 %v3319_v55, %v3319_v55  ;;  %13467 = vst [vmem:[#allocation29_spill] sm:$0xff] %v10480_v50  ;;  %v10483_v42 = vrot.slane %v10480_v50, 5 }
 0xd33   : > { %v3353_v54 = vmul.f32 -0.33333334, %v3350_v38  ;;  %v10489_v38 = vrot.slane %v10486_v24, 5  ;;  %13469 = vst [vmem:[#allocation86_spill] sm:$0xff] %v10503_v10 }
 0xd34   : > { %v3336_v51 = vsel %vm3334_vm9, %v3328_v19, 0.0 }
 0xd35   : > { %v3373_v57 = vrot.slane %v3353_v54, 1  ;;  %3361 = vrot.lane.b32.xlu0 %v3353_v54, %s7794_s16  ;;  %v3337_v0 = vadd.f32 %v3336_v51, %v3335_v63  ;;  %v10496_v54 = vsel %vm2118_vm8, %v10483_v42, %v10489_v38 }
 0xd37   : > { %v3302_v14 = vpop.permute.xlu1 %3301  ;;  %v3374_v22 = vsel %vm452_vm4, %v3371_v36, %v3373_v57 }
 0xd38   : > { %v3322_v9 = vmul.f32 %v3302_v14, %v3286_v23  ;;  %3377 = vrot.lane.b32.xlu2 %v3374_v22, %s7792_s8  ;;  %v10509_v14 = vld [vmem:[%s7940_s6 + $0x28] sm:$0xff] }
 0xd39   : > { %13470 = vst [vmem:[#allocation49_spill] sm:$0xff] %v10509_v14  ;;  %v10512_v51 = vrot.slane %v10509_v14, 5 }
 0xd3a   : > { %v3331_v40 = vmul.f32 %v3322_v9, %v3322_v9 }
 0xd3c   : > { %v3338_v47 = vsel %vm3334_vm9, %v3331_v40, 0.0  ;;  %v10535_v40 = vrot.slane %v10147_v16, 6  ;;  %vm3516_vm9 = vcmask 130051  }
 0xd3d   : > { %v3339_v29 = vadd.f32 %v3338_v47, %v3337_v0  ;;  %3379 = vrot.lane.b32.xlu0 %v3373_v57, %s7792_s8  ;;  %v10506_v57 = vrot.slane %v10503_v10, 5 }
 0xd3f   : > { %v3351_v55 = vmul.f32 -0.33333334, %v3339_v29  ;;  %v10539_v29 = vrot.slane %v10152_v37, 6 }
 0xd40   : > { %3398 = vrot.lane.b32.xlu2 %v10474_v28, %s7793_s14 }
 0xd41   : > { %3357 = vrot.lane.b32.xlu1 %v3351_v55, %s7794_s16  ;;  %v3370_v19 = vrot.slane %v3351_v55, 1  ;;  %v3447_v55 = vrot.slane %v10013_v2, 6  ;;  %v10550_v4 = vsel %vm224_vm1, %v10539_v29, %v3442_v43 }
 0xd43   : > { %v3372_v23 = vsel %vm452_vm4, %v3370_v19, %v3371_v36  ;;  %v10519_v36 = vsel %vm2118_vm8, %v10506_v57, %v10512_v51  ;;  %v10545_v27 = vsel %vm224_vm1, %v10535_v40, %v3447_v55 }
 0xd45   : > { %3400 = vrot.lane.b32.xlu0 %v10468_v35, %s7793_s14 }
 0xd48   : > { %3404 = vrot.lane.b32.xlu2 %v10496_v54, %s7793_s14 }
 0xd49   : > { %3375 = vrot.lane.b32.xlu1 %v3372_v23, %s7792_s8 }
 0xd4d   : > { %3406 = vrot.lane.b32.xlu0 %v10489_v38, %s7793_s14 }
 0xd50   : > { %3410 = vrot.lane.b32.xlu2 %v10519_v36, %s7793_s14 }
 0xd51   : > { %3396 = vrot.lane.b32.xlu1 %v10462_v26, %s7793_s14 }
 0xd55   : > { %3412 = vrot.lane.b32.xlu0 %v10512_v51, %s7793_s14 }
 0xd59   : > { %3402 = vrot.lane.b32.xlu1 %v10483_v42, %s7793_s14 }
 0xd61   : > { %3408 = vrot.lane.b32.xlu1 %v10506_v57, %s7793_s14 }
 0xd92   : > { %v10531_v9 = vpop.permute.xlu2 %3377 }
 0xd9a   : > { %v3399_v22 = vpop.permute.xlu2 %3398 }
 0xd9b   : > { %v3424_v63 = vsub.f32 %v13209_v62, %v3399_v22 }
 0xd9d   : > { %v3433_v19 = vand.u32 2147483647, %v3424_v63  ;;  %v10555_v63 = vrot.slane %v10168_v3, 6 }
 0xd9f   : > { %v10561_v48 = vsel %vm224_vm1, %v10555_v63, %v3452_v59 }
 0xda2   : > { %v3405_v0 = vpop.permute.xlu2 %3404 }
 0xda3   : > { %v3427_v47 = vsub.f32 %v8047_v60, %v3405_v0  ;;  %v3466_v0 = vmul.f32 %v10550_v4, %v3433_v19 }
 0xda5   : > { %v3436_v23 = vand.u32 2147483647, %v3427_v47  ;;  %v3475_v33 = vmul.f32 %v3466_v0, %v3466_v0 }
 0xda7   : > { %v3469_v22 = vmul.f32 %v10545_v27, %v3436_v23  ;;  %v3362_v6 = vpop.permute.xlu0 %3361  ;;  %v3489_v14 = vsel %vm2788_vm2, %v3475_v33, 0.0  ;;  %v3449_v33 = vrot.slane %v10099_v32, 6 }
 0xda8   : > { %3369 = vst.msk [vmem:[#allocation2 + $0x4e] sm:$0x3] %vm3231_vm7, %v3362_v6 }
 0xda9   : > { %v3478_v41 = vmul.f32 %v3469_v22, %v3469_v22 }
 0xdaa   : > { %v3411_v47 = vpop.permute.xlu2 %3410 }
 0xdab   : > { %v3430_v39 = vsub.f32 %v8053_v1, %v3411_v47  ;;  %v3490_v24 = vsel %vm2788_vm2, %v3478_v41, 0.0 }
 0xdac   : > { %v3491_v22 = vadd.f32 %v3490_v24, %v3489_v14 }
 0xdad   : > { %v3439_v23 = vand.u32 2147483647, %v3430_v39 }
 0xdaf   : > { %v3472_v6 = vmul.f32 %v10561_v48, %v3439_v23  ;;  %v10565_v19 = vpop.permute.xlu0 %3379 }
 0xdb1   : > { %v3481_v30 = vmul.f32 %v3472_v6, %v3472_v6 }
 0xdb3   : > { %v3358_v17 = vpop.permute.xlu1 %3357  ;;  %v3492_v47 = vsel %vm2788_vm2, %v3481_v30, 0.0  ;;  %vm3494_vm2 = vcmask 133128  }
 0xdb4   : > { %3367 = vst.msk [vmem:[#allocation2 + $0x3e] sm:$0xfc] %vm3228_vm10, %v3358_v17  ;;  %v3493_v39 = vadd.f32 %v3492_v47, %v3491_v22  ;;  %v3444_v17 = vrot.slane %v10075_v49, 6  ;;  %v10583_v47 = vsel %vm224_vm1, %v3447_v55, %v3449_v33 }
 0xdb6   : > { %v10570_v0 = vmul.f32 -0.33333334, %v3493_v39 }
 0xdb7   : > { %v3401_v10 = vpop.permute.xlu0 %3400 }
 0xdb8   : > { %3508 = vrot.lane.b32.xlu2 %v10570_v0, %s7791_s7  ;;  %v3425_v23 = vsub.f32 %v8063_v7, %v3401_v10  ;;  %v10587_v10 = vsel %vm224_vm1, %v3442_v43, %v3444_v17 }
 0xdba   : > { %v3434_v30 = vand.u32 2147483647, %v3425_v23 }
 0xdbb   : > { %v10574_v41 = vpop.permute.xlu1 %3375 }
 0xdbc   : > { %v3467_v50 = vmul.f32 %v10587_v10, %v3434_v30 }
 0xdbe   : > { %v3476_v55 = vmul.f32 %v3467_v50, %v3467_v50 }
 0xdbf   : > { %v3407_v6 = vpop.permute.xlu0 %3406 }
 0xdc0   : > { %v3428_v24 = vsub.f32 %v8077_v15, %v3407_v6  ;;  %3534 = vrot.lane.b32.xlu2 %v10474_v28, %s7790_s19  ;;  %v3454_v6 = vrot.slane %v10145_v44, 6 }
 0xdc2   : > { %v3437_v22 = vand.u32 2147483647, %v3428_v24  ;;  %v10597_v17 = vsel %vm224_vm1, %v3452_v59, %v3454_v6 }
 0xdc3   : > { %v3397_v14 = vpop.permute.xlu1 %3396 }
 0xdc4   : > { %v3470_v39 = vmul.f32 %v10583_v47, %v3437_v22  ;;  %v3423_v23 = vsub.f32 %v8059_v5, %v3397_v14 }
 0xdc6   : > { %v3479_v37 = vmul.f32 %v3470_v39, %v3470_v39  ;;  %v3432_v39 = vand.u32 2147483647, %v3423_v23 }
 0xdc7   : > { %v3413_v32 = vpop.permute.xlu0 %3412 }
 0xdc8   : > { %v3431_v21 = vsub.f32 %v13160_v46, %v3413_v32  ;;  %3540 = vrot.lane.b32.xlu2 %v10496_v54, %s7790_s19  ;;  %v3496_v30 = vsel %vm3494_vm2, %v3479_v37, 0.0  ;;  %v3495_v32 = vsel %vm3494_vm2, %v3476_v55, 0.0 }
 0xdc9   : > { %v3497_v2 = vadd.f32 %v3496_v30, %v3495_v32 }
 0xdca   : > { %v3440_v24 = vand.u32 2147483647, %v3431_v21  ;;  %v3465_v21 = vmul.f32 %v10539_v29, %v3432_v39  ;;  %v13471_v39 = vrot.slane %v10394_v20, 1 }
 0xdcb   : > { %v3403_v33 = vpop.permute.xlu1 %3402 }
 0xdcc   : > { %v3426_v43 = vsub.f32 %v8073_v13, %v3403_v33  ;;  %v3473_v22 = vmul.f32 %v10597_v17, %v3440_v24  ;;  %v3474_v24 = vmul.f32 %v3465_v21, %v3465_v21 }
 0xdce   : > { %v3435_v44 = vand.u32 2147483647, %v3426_v43  ;;  %v3482_v3 = vmul.f32 %v3473_v22, %v3473_v22 }
 0xdd0   : > { %v3468_v16 = vmul.f32 %v10535_v40, %v3435_v44  ;;  %v3498_v14 = vsel %vm3494_vm2, %v3482_v3, 0.0  ;;  %3546 = vrot.lane.b32.xlu2 %v10519_v36, %s7790_s19  ;;  %v2968_v3 = vmax.f32 %v10166_v61, %v10279_v8  ;;  %v3522_v8 = vrot.slane %v10570_v0, 2 }
 0xdd1   : > { %v3499_v50 = vadd.f32 %v3498_v14, %v3497_v2  ;;  %v3484_v2 = vsel %vm3483_vm13, %v3474_v24, 0.0  ;;  %vm3633_vm2 = vcmask 141328  }
 0xdd2   : > { %v3477_v59 = vmul.f32 %v3468_v16, %v3468_v16  ;;  %v3107_v16 = vmax.f32 %v2968_v3, %v10364_v12 }
 0xdd3   : > { %v3409_v33 = vpop.permute.xlu1 %3408  ;;  %v3502_v6 = vmul.f32 -0.33333334, %v3499_v50 }
 0xdd4   : > { %v3429_v37 = vsub.f32 %v13156_v34, %v3409_v33  ;;  %v3485_v55 = vsel %vm3483_vm13, %v3477_v59, 0.0  ;;  %v3243_v32 = vmax.f32 %v3107_v16, %v13471_v39 }
 0xdd5   : > { %3510 = vrot.lane.b32.xlu0 %v3502_v6, %s7791_s7  ;;  %v3486_v30 = vadd.f32 %v3485_v55, %v3484_v2  ;;  %v3524_v61 = vrot.slane %v3502_v6, 2 }
 0xdd6   : > { %v3438_v23 = vand.u32 2147483647, %v3429_v37  ;;  %v3386_v21 = vmax.f32 %v3243_v32, %v10565_v19 }
 0xdd7   : > { %v10624_v20 = vsel %vm522_vm5, %v3522_v8, %v3524_v61 }
 0xdd8   : > { %v3471_v44 = vmul.f32 %v10555_v63, %v3438_v23  ;;  %3579 = vrot.lane.b32.xlu2 %v10550_v4, %s7793_s14  ;;  %v10621_v12 = vmax.f32 %v3386_v21, %v3524_v61 }
 0xdda   : > { %v3480_v43 = vmul.f32 %v3471_v44, %v3471_v44  ;;  %13472 = vst [vmem:[#allocation27_spill] sm:$0xff] %v10621_v12 }
 0xddc   : > { %v3487_v22 = vsel %vm3483_vm13, %v3480_v43, 0.0  ;;  %vm3622_vm13 = vcmask 146451  }
 0xddd   : > { %v3488_v14 = vadd.f32 %v3487_v22, %v3486_v30  ;;  %3536 = vrot.lane.b32.xlu0 %v10468_v35, %s7790_s19 }
 0xddf   : > { %v3500_v50 = vmul.f32 -0.33333334, %v3488_v14 }
 0xde0   : > { %3585 = vrot.lane.b32.xlu2 %v10545_v27, %s7793_s14 }
 0xde1   : > { %3506 = vrot.lane.b32.xlu1 %v3500_v50, %s7791_s7  ;;  %v3521_v33 = vrot.slane %v3500_v50, 2 }
 0xde3   : > { %v10629_v19 = vsel %vm522_vm5, %v3521_v33, %v3522_v8 }
 0xde5   : > { %3542 = vrot.lane.b32.xlu0 %v10489_v38, %s7790_s19 }
 0xde8   : > { %3591 = vrot.lane.b32.xlu2 %v10561_v48, %s7793_s14 }
 0xde9   : > { %3532 = vrot.lane.b32.xlu1 %v10462_v26, %s7790_s19 }
 0xded   : > { %3548 = vrot.lane.b32.xlu0 %v10512_v51, %s7790_s19 }
 0xdf1   : > { %3538 = vrot.lane.b32.xlu1 %v10483_v42, %s7790_s19 }
 0xdf5   : > { %3581 = vrot.lane.b32.xlu0 %v10587_v10, %s7793_s14 }
 0xdf9   : > { %3544 = vrot.lane.b32.xlu1 %v10506_v57, %s7790_s19 }
 0xdfd   : > { %3587 = vrot.lane.b32.xlu0 %v10583_v47, %s7793_s14 }
 0xe01   : > { %3577 = vrot.lane.b32.xlu1 %v10539_v29, %s7793_s14 }
 0xe05   : > { %3593 = vrot.lane.b32.xlu0 %v10597_v17, %s7793_s14 }
 0xe09   : > { %3583 = vrot.lane.b32.xlu1 %v10535_v40, %s7793_s14 }
 0xe11   : > { %3589 = vrot.lane.b32.xlu1 %v10555_v63, %s7793_s14 }
 0xe12   : > { %v3509_v0 = vpop.permute.xlu2 %3508 }
 0xe13   : > { %3518 = vst.msk [vmem:[#allocation2 + $0x55] sm:$0xff] %vm2817_vm0, %v3509_v0 }
 0xe1a   : > { %v3535_v59 = vpop.permute.xlu2 %3534 }
 0xe1b   : > { %v3560_v55 = vsub.f32 %v13209_v62, %v3535_v59 }
 0xe1d   : > { %v3569_v2 = vand.u32 2147483647, %v3560_v55 }
 0xe22   : > { %v3541_v37 = vpop.permute.xlu2 %3540 }
 0xe23   : > { %v3563_v23 = vsub.f32 %v8047_v60, %v3541_v37 }
 0xe25   : > { %v3572_v44 = vand.u32 2147483647, %v3563_v23 }
 0xe2a   : > { %v3547_v6 = vpop.permute.xlu2 %3546 }
 0xe2b   : > { %v3566_v16 = vsub.f32 %v8053_v1, %v3547_v6 }
 0xe2d   : > { %v3575_v39 = vand.u32 2147483647, %v3566_v16 }
 0xe32   : > { %v3580_v24 = vpop.permute.xlu2 %3579 }
 0xe33   : > { %v3605_v30 = vmul.f32 %v3580_v24, %v3569_v2 }
 0xe35   : > { %v3614_v32 = vmul.f32 %v3605_v30, %v3605_v30 }
 0xe37   : > { %v3628_v61 = vsel %vm2926_vm12, %v3614_v32, 0.0 }
 0xe3a   : > { %v3586_v3 = vpop.permute.xlu2 %3585 }
 0xe3b   : > { %v3608_v43 = vmul.f32 %v3586_v3, %v3572_v44 }
 0xe3d   : > { %v3617_v22 = vmul.f32 %v3608_v43, %v3608_v43 }
 0xe3f   : > { %v3629_v21 = vsel %vm2926_vm12, %v3617_v22, 0.0 }
 0xe40   : > { %v3630_v33 = vadd.f32 %v3629_v21, %v3628_v61 }
 0xe42   : > { %v3592_v14 = vpop.permute.xlu2 %3591 }
 0xe43   : > { %v3611_v50 = vmul.f32 %v3592_v14, %v3575_v39 }
 0xe45   : > { %v3620_v8 = vmul.f32 %v3611_v50, %v3611_v50 }
 0xe47   : > { %v3631_v0 = vsel %vm2926_vm12, %v3620_v8, 0.0  ;;  %v3511_v59 = vpop.permute.xlu0 %3510 }
 0xe48   : > { %v3632_v37 = vadd.f32 %v3631_v0, %v3630_v33  ;;  %3520 = vst.msk [vmem:[#allocation2 + $0x5d] sm:$0x7] %vm3519_vm15, %v3511_v59 }
 0xe4a   : > { %v10661_v6 = vmul.f32 -0.33333334, %v3632_v37 }
 0xe4c   : > { %3647 = vrot.lane.b32.xlu2 %v10661_v6, %s7792_s8 }
 0xe4f   : > { %v3537_v24 = vpop.permute.xlu0 %3536 }
 0xe50   : > { %v3561_v22 = vsub.f32 %v8063_v7, %v3537_v24 }
 0xe52   : > { %v3570_v14 = vand.u32 2147483647, %v3561_v22 }
 0xe53   : > { %v3507_v23 = vpop.permute.xlu1 %3506 }
 0xe54   : > { %3517 = vst.msk [vmem:[#allocation2 + $0x4d] sm:$0xf8] %vm3516_vm9, %v3507_v23 }
 0xe57   : > { %v3543_v55 = vpop.permute.xlu0 %3542 }
 0xe58   : > { %v3564_v16 = vsub.f32 %v8077_v15, %v3543_v55 }
 0xe5a   : > { %v3573_v39 = vand.u32 2147483647, %v3564_v16 }
 0xe5b   : > { %v3533_v44 = vpop.permute.xlu1 %3532 }
 0xe5c   : > { %v3559_v23 = vsub.f32 %v8059_v5, %v3533_v44  ;;  %v3659_v44 = vrot.slane %v10661_v6, 2 }
 0xe5f   : > { %v3549_v3 = vpop.permute.xlu0 %3548 }
 0xe60   : > { %v3567_v50 = vsub.f32 %v13160_v46, %v3549_v3 }
 0xe62   : > { %v3576_v59 = vand.u32 2147483647, %v3567_v50 }
 0xe63   : > { %v3539_v2 = vpop.permute.xlu1 %3538 }
 0xe64   : > { %v3562_v0 = vsub.f32 %v8073_v13, %v3539_v2 }
 0xe66   : > { %v3571_v24 = vand.u32 2147483647, %v3562_v0 }
 0xe67   : > { %v3582_v43 = vpop.permute.xlu0 %3581 }
 0xe68   : > { %v3606_v61 = vmul.f32 %v3582_v43, %v3570_v14 }
 0xe6a   : > { %v3615_v37 = vmul.f32 %v3606_v61, %v3606_v61 }
 0xe6b   : > { %v3545_v30 = vpop.permute.xlu1 %3544 }
 0xe6c   : > { %v3634_v16 = vsel %vm3633_vm2, %v3615_v37, 0.0  ;;  %v3565_v14 = vsub.f32 %v13156_v34, %v3545_v30 }
 0xe6e   : > { %v3574_v5 = vand.u32 2147483647, %v3565_v14 }
 0xe6f   : > { %v3588_v32 = vpop.permute.xlu0 %3587 }
 0xe70   : > { %v3609_v21 = vmul.f32 %v3588_v32, %v3573_v39  ;;  %v3568_v39 = vand.u32 2147483647, %v3559_v23 }
 0xe72   : > { %v3618_v33 = vmul.f32 %v3609_v21, %v3609_v21 }
 0xe73   : > { %v3578_v8 = vpop.permute.xlu1 %3577 }
 0xe74   : > { %v3635_v12 = vsel %vm3633_vm2, %v3618_v33, 0.0  ;;  %v3604_v21 = vmul.f32 %v3578_v8, %v3568_v39 }
 0xe75   : > { %v3636_v32 = vadd.f32 %v3635_v12, %v3634_v16 }
 0xe76   : > { %v3613_v13 = vmul.f32 %v3604_v21, %v3604_v21 }
 0xe77   : > { %v3594_v55 = vpop.permute.xlu0 %3593 }
 0xe78   : > { %v3612_v18 = vmul.f32 %v3594_v55, %v3576_v59  ;;  %v3623_v12 = vsel %vm3622_vm13, %v3613_v13, 0.0 }
 0xe7a   : > { %v3621_v22 = vmul.f32 %v3612_v18, %v3612_v18 }
 0xe7b   : > { %v3584_v49 = vpop.permute.xlu1 %3583 }
 0xe7c   : > { %v3607_v3 = vmul.f32 %v3584_v49, %v3571_v24  ;;  %v3637_v43 = vsel %vm3633_vm2, %v3621_v22, 0.0  ;;  %vm3765_vm2 = vcmask 154651  }
 0xe7d   : > { %v3638_v2 = vadd.f32 %v3637_v43, %v3636_v32 }
 0xe7e   : > { %v3616_v50 = vmul.f32 %v3607_v3, %v3607_v3 }
 0xe7f   : > { %v3641_v61 = vmul.f32 -0.33333334, %v3638_v2 }
 0xe80   : > { %v3624_v18 = vsel %vm3622_vm13, %v3616_v50, 0.0 }
 0xe81   : > { %v3661_v33 = vrot.slane %v3641_v61, 2  ;;  %3649 = vrot.lane.b32.xlu0 %v3641_v61, %s7792_s8  ;;  %v3625_v8 = vadd.f32 %v3624_v18, %v3623_v12 }
 0xe83   : > { %v3590_v0 = vpop.permute.xlu1 %3589  ;;  %v3662_v49 = vsel %vm522_vm5, %v3659_v44, %v3661_v33 }
 0xe84   : > { %v3610_v59 = vmul.f32 %v3590_v0, %v3574_v5  ;;  %3665 = vrot.lane.b32.xlu2 %v3662_v49, %s7791_s7 }
 0xe86   : > { %v3619_v30 = vmul.f32 %v3610_v59, %v3610_v59 }
 0xe88   : > { %v3626_v37 = vsel %vm3622_vm13, %v3619_v30, 0.0  ;;  %vm4313_vm13 = vcmask 156704  }
 0xe89   : > { %v3627_v23 = vadd.f32 %v3626_v37, %v3625_v8  ;;  %3667 = vrot.lane.b32.xlu0 %v3661_v33, %s7791_s7 }
 0xe8b   : > { %v3639_v6 = vmul.f32 -0.33333334, %v3627_v23 }
 0xe8c   : > { %3677 = vrot.lane.b32.xlu2 %v10474_v28, %s7795_s29 }
 0xe8d   : > { %3645 = vrot.lane.b32.xlu1 %v3639_v6, %s7792_s8  ;;  %v3658_v55 = vrot.slane %v3639_v6, 2 }
 0xe8f   : > { %v3660_v5 = vsel %vm522_vm5, %v3658_v55, %v3659_v44 }
 0xe91   : > { %3679 = vrot.lane.b32.xlu0 %v10468_v35, %s7795_s29 }
 0xe94   : > { %3683 = vrot.lane.b32.xlu2 %v10496_v54, %s7795_s29 }
 0xe95   : > { %3663 = vrot.lane.b32.xlu1 %v3660_v5, %s7791_s7 }
 0xe99   : > { %3685 = vrot.lane.b32.xlu0 %v10489_v38, %s7795_s29 }
 0xe9c   : > { %3689 = vrot.lane.b32.xlu2 %v10519_v36, %s7795_s29 }
 0xe9d   : > { %3675 = vrot.lane.b32.xlu1 %v10462_v26, %s7795_s29 }
 0xea1   : > { %3691 = vrot.lane.b32.xlu0 %v10512_v51, %s7795_s29 }
 0xea4   : > { %3722 = vrot.lane.b32.xlu2 %v10550_v4, %s7790_s19  ;;  %v2967_v4 = vmax.f32 %v10143_v45, %v10267_v11  ;;  %v2966_v45 = vmax.f32 %v10177_v52, %v10283_v31 }
 0xea5   : > { %3681 = vrot.lane.b32.xlu1 %v10483_v42, %s7795_s29 }
 0xea6   : > { %v3648_v13 = vpop.permute.xlu2 %3647 }
 0xea7   : > { %3656 = vst.msk [vmem:[#allocation2 + $0x65] sm:$0xff] %vm2817_vm0, %v3648_v13 }
 0xea9   : > { %3724 = vrot.lane.b32.xlu0 %v10587_v10, %s7790_s19 }
 0xeac   : > { %3728 = vrot.lane.b32.xlu2 %v10545_v27, %s7790_s19  ;;  %v3106_v27 = vmax.f32 %v2967_v4, %v10312_v58 }
 0xead   : > { %3687 = vrot.lane.b32.xlu1 %v10506_v57, %s7795_s29 }
 0xeae   : > { %v3242_v26 = vmax.f32 %v3106_v27, %v10531_v9  ;;  %v13473_v27 = vld [vmem:[#allocation24_spill] sm:$0xff] }
 0xeb0   : > { %v3385_v35 = vmax.f32 %v3242_v26, %v10406_v53  ;;  %v3105_v53 = vmax.f32 %v2966_v45, %v10369_v25 }
 0xeb1   : > { %3730 = vrot.lane.b32.xlu0 %v10583_v47, %s7790_s19 }
 0xeb2   : > { %v3241_v9 = vmax.f32 %v3105_v53, %v10574_v41 }
 0xeb4   : > { %3734 = vrot.lane.b32.xlu2 %v10561_v48, %s7790_s19  ;;  %v3384_v47 = vmax.f32 %v3241_v9, %v10413_v56 }
 0xeb5   : > { %3720 = vrot.lane.b32.xlu1 %v10539_v29, %s7790_s19 }
 0xeb9   : > { %3736 = vrot.lane.b32.xlu0 %v10597_v17, %s7790_s19 }
 0xebd   : > { %3726 = vrot.lane.b32.xlu1 %v10535_v40, %s7790_s19 }
 0xec5   : > { %3732 = vrot.lane.b32.xlu1 %v10555_v63, %s7790_s19 }
 0xede   : > { %v3666_v28 = vpop.permute.xlu2 %3665 }
 0xedf   : > { %v3530_v48 = vmax.f32 %v3385_v35, %v3666_v28 }
 0xee1   : > { %v10723_v42 = vmax.f32 %v3530_v48, %v10624_v20  ;;  %v13474_v48 = vld [vmem:[#allocation23_spill] sm:$0xff] }
 0xee6   : > { %v3678_v38 = vpop.permute.xlu2 %3677 }
 0xee7   : > { %v3703_v29 = vsub.f32 %v13209_v62, %v3678_v38 }
 0xee9   : > { %v3712_v24 = vand.u32 2147483647, %v3703_v29 }
 0xeee   : > { %v3684_v54 = vpop.permute.xlu2 %3683 }
 0xeef   : > { %v3706_v40 = vsub.f32 %v8047_v60, %v3684_v54 }
 0xef1   : > { %v3715_v10 = vand.u32 2147483647, %v3706_v40 }
 0xef3   : > { %v3650_v57 = vpop.permute.xlu0 %3649 }
 0xef4   : > { %3657 = vst.msk [vmem:[#allocation2 + $0x6d] sm:$0x7] %vm3519_vm15, %v3650_v57 }
 0xef6   : > { %v3690_v51 = vpop.permute.xlu2 %3689 }
 0xef7   : > { %v3709_v16 = vsub.f32 %v8053_v1, %v3690_v51 }
 0xef9   : > { %v3718_v32 = vand.u32 2147483647, %v3709_v16 }
 0xefb   : > { %v10726_v36 = vpop.permute.xlu0 %3667 }
 0xefe   : > { %v3723_v58 = vpop.permute.xlu2 %3722 }
 0xeff   : > { %v3646_v11 = vpop.permute.xlu1 %3645  ;;  %v3748_v25 = vmul.f32 %v3723_v58, %v3712_v24 }
 0xf00   : > { %3655 = vst.msk [vmem:[#allocation2 + $0x5d] sm:$0xf8] %vm3516_vm9, %v3646_v11 }
 0xf01   : > { %v3757_v3 = vmul.f32 %v3748_v25, %v3748_v25 }
 0xf03   : > { %v3680_v63 = vpop.permute.xlu0 %3679  ;;  %v3771_v2 = vsel %vm3065_vm14, %v3757_v3, 0.0 }
 0xf04   : > { %v3704_v30 = vsub.f32 %v8063_v7, %v3680_v63 }
 0xf06   : > { %v3729_v20 = vpop.permute.xlu2 %3728  ;;  %v3713_v23 = vand.u32 2147483647, %v3704_v30 }
 0xf07   : > { %v3664_v17 = vpop.permute.xlu1 %3663  ;;  %v3751_v31 = vmul.f32 %v3729_v20, %v3715_v10 }
 0xf08   : > { %v3529_v52 = vmax.f32 %v3384_v47, %v3664_v17 }
 0xf09   : > { %v3760_v41 = vmul.f32 %v3751_v31, %v3751_v31 }
 0xf0a   : > { %v10738_v22 = vmax.f32 %v3529_v52, %v10629_v19 }
 0xf0b   : > { %v3686_v39 = vpop.permute.xlu0 %3685  ;;  %v3772_v56 = vsel %vm3065_vm14, %v3760_v41, 0.0 }
 0xf0c   : > { %v3773_v61 = vadd.f32 %v3772_v56, %v3771_v2  ;;  %v3707_v49 = vsub.f32 %v8077_v15, %v3686_v39  ;;  %v13475_v2 = vld [vmem:[#allocation37_spill] sm:$0xff] }
 0xf0e   : > { %v3735_v14 = vpop.permute.xlu2 %3734  ;;  %v3716_v8 = vand.u32 2147483647, %v3707_v49  ;;  %v13478_v49 = vld [vmem:[#allocation70_spill] sm:$0xff] }
 0xf0f   : > { %v3676_v43 = vpop.permute.xlu1 %3675  ;;  %v3754_v21 = vmul.f32 %v3735_v14, %v3718_v32 }
 0xf10   : > { %v3702_v38 = vsub.f32 %v13474_v48, %v3676_v43 }
 0xf11   : > { %v3763_v50 = vmul.f32 %v3754_v21, %v3754_v21 }
 0xf12   : > { %v3711_v9 = vand.u32 2147483647, %v3702_v38 }
 0xf13   : > { %v3774_v44 = vsel %vm3065_vm14, %v3763_v50, 0.0  ;;  %v3692_v33 = vpop.permute.xlu0 %3691  ;;  %vm3776_vm14 = vcmask 149528   ;;  %v3833_v50 = vrot.slane %v13475_v2, 1 }
 0xf14   : > { %v3775_v0 = vadd.f32 %v3774_v44, %v3773_v61  ;;  %v3710_v55 = vsub.f32 %v13160_v46, %v3692_v33  ;;  %v13476_v44 = vld [vmem:[#allocation55_spill] sm:$0xff] }
 0xf15   : > { %v3831_v33 = vrot.slane %v13476_v44, 1 }
 0xf16   : > { %v10743_v18 = vmul.f32 -0.33333334, %v3775_v0  ;;  %v3719_v35 = vand.u32 2147483647, %v3710_v55 }
 0xf17   : > { %v3682_v19 = vpop.permute.xlu1 %3681 }
 0xf18   : > { %3790 = vrot.lane.b32.xlu2 %v10743_v18, %s7794_s16  ;;  %v3705_v26 = vsub.f32 %v13473_v27, %v3682_v19  ;;  %v3802_v52 = vrot.slane %v10743_v18, 2  ;;  %v10761_v18 = vsel %vm452_vm4, %v3831_v33, %v3833_v50  ;;  %v13477_v19 = vld [vmem:[#allocation40_spill] sm:$0xff] }
 0xf1a   : > { %v3714_v45 = vand.u32 2147483647, %v3705_v26 }
 0xf1b   : > { %v3725_v59 = vpop.permute.xlu0 %3724 }
 0xf1c   : > { %v3749_v5 = vmul.f32 %v3725_v59, %v3713_v23  ;;  %v3835_v59 = vrot.slane %v13477_v19, 1 }
 0xf1e   : > { %v3758_v28 = vmul.f32 %v3749_v5, %v3749_v5 }
 0xf1f   : > { %v3688_v12 = vpop.permute.xlu1 %3687 }
 0xf20   : > { %v3777_v11 = vsel %vm3776_vm14, %v3758_v28, 0.0  ;;  %v3708_v47 = vsub.f32 %v13156_v34, %v3688_v12  ;;  %v3836_v12 = vrot.slane %v13478_v49, 1 }
 0xf22   : > { %v3717_v31 = vand.u32 2147483647, %v3708_v47  ;;  %v10770_v23 = vsel %vm452_vm4, %v3835_v59, %v3836_v12 }
 0xf23   : > { %v3731_v37 = vpop.permute.xlu0 %3730 }
 0xf24   : > { %v3752_v6 = vmul.f32 %v3731_v37, %v3716_v8  ;;  %v13479_v8 = vld [vmem:[#allocation85_spill] sm:$0xff] }
 0xf25   : > { %v3840_v37 = vrot.slane %v13479_v8, 1 }
 0xf26   : > { %v3761_v4 = vmul.f32 %v3752_v6, %v3752_v6  ;;  %v13480_v6 = vld [vmem:[#allocation65_spill] sm:$0xff] }
 0xf27   : > { %v3721_v13 = vpop.permute.xlu1 %3720  ;;  %v3841_v55 = vrot.slane %v13480_v6, 1 }
 0xf28   : > { %v3778_v57 = vsel %vm3776_vm14, %v3761_v4, 0.0  ;;  %v3747_v10 = vmul.f32 %v3721_v13, %v3711_v9  ;;  %v13481_v4 = vld [vmem:[#allocation34_spill] sm:$0xff] }
 0xf29   : > { %v3779_v40 = vadd.f32 %v3778_v57, %v3777_v11  ;;  %v10777_v13 = vsel %vm452_vm4, %v3840_v37, %v3841_v55  ;;  %v3843_v26 = vrot.slane %v13481_v4, 1  ;;  %v13483_v57 = vld [vmem:[#allocation44_spill] sm:$0xff]  ;;  %v13508_v4 = vld [vmem:[#allocation21_spill] sm:$0xff] }
 0xf2a   : > { %v3756_v16 = vmul.f32 %v3747_v10, %v3747_v10 }
 0xf2b   : > { %v3737_v54 = vpop.permute.xlu0 %3736  ;;  %v10785_v38 = vsel %vm452_vm4, %v3841_v55, %v3843_v26  ;;  %v13490_v26 = vld [vmem:[#allocation52_spill] sm:$0xff] }
 0xf2c   : > { %v3755_v51 = vmul.f32 %v3737_v54, %v3719_v35  ;;  %v3766_v43 = vsel %vm3765_vm2, %v3756_v16, 0.0  ;;  %v13482_v35 = vld [vmem:[#allocation51_spill] sm:$0xff] }
 0xf2d   : > { %v3830_v28 = vrot.slane %v13482_v35, 1 }
 0xf2e   : > { %v3764_v53 = vmul.f32 %v3755_v51, %v3755_v51  ;;  %v3838_v51 = vrot.slane %v13483_v57, 1 }
 0xf2f   : > { %v3727_v58 = vpop.permute.xlu1 %3726  ;;  %v10790_v54 = vsel %vm452_vm4, %v3830_v28, %v3831_v33  ;;  %v3821_v28 = vsub.f32 %v8047_v60, %v13490_v26 }
 0xf30   : > { %v3750_v29 = vmul.f32 %v3727_v58, %v3714_v45  ;;  %v3780_v63 = vsel %vm3776_vm14, %v3764_v53, 0.0  ;;  %v10796_v45 = vsel %vm452_vm4, %v3836_v12, %v3838_v51  ;;  %v13489_v12 = vld [vmem:[#allocation49_spill] sm:$0xff]  ;;  %vm4355_vm14 = vcmask 1043456  }
 0xf31   : > { %v3781_v17 = vadd.f32 %v3780_v63, %v3779_v40  ;;  %v13484_v40 = vld [vmem:[#allocation27_spill] sm:$0xff] }
 0xf32   : > { %v3759_v20 = vmul.f32 %v3750_v29, %v3750_v29  ;;  %v3674_v29 = vmax.f32 %v13484_v40, %v10726_v36 }
 0xf33   : > { %v3784_v24 = vmul.f32 -0.33333334, %v3781_v17 }
 0xf34   : > { %v3767_v39 = vsel %vm3765_vm2, %v3759_v20, 0.0  ;;  %v13485_v20 = vld [vmem:[#allocation29_spill] sm:$0xff] }
 0xf35   : > { %v3804_v25 = vrot.slane %v3784_v24, 2  ;;  %3792 = vrot.lane.b32.xlu0 %v3784_v24, %s7794_s16  ;;  %v3768_v56 = vadd.f32 %v3767_v39, %v3766_v43  ;;  %v3820_v24 = vsub.f32 %v13473_v27, %v13485_v20  ;;  %v13487_v39 = vld [vmem:[#allocation66_spill] sm:$0xff] }
 0xf37   : > { %v3733_v41 = vpop.permute.xlu1 %3732  ;;  %v3805_v3 = vsel %vm522_vm5, %v3802_v52, %v3804_v25  ;;  %v3826_v36 = vand.u32 2147483647, %v3820_v24 }
 0xf38   : > { %v3753_v32 = vmul.f32 %v3733_v41, %v3717_v31  ;;  %3808 = vrot.lane.b32.xlu2 %v3805_v3, %s7792_s8  ;;  %v13486_v31 = vld [vmem:[#allocation86_spill] sm:$0xff] }
 0xf39   : > { %v3822_v16 = vsub.f32 %v13156_v34, %v13486_v31 }
 0xf3a   : > { %v3762_v14 = vmul.f32 %v3753_v32, %v3753_v32  ;;  %v3818_v32 = vsub.f32 %v13474_v48, %v13487_v39 }
 0xf3b   : > { %v3828_v43 = vand.u32 2147483647, %v3822_v16  ;;  %v3827_v16 = vand.u32 2147483647, %v3821_v28 }
 0xf3c   : > { %v3769_v21 = vsel %vm3765_vm2, %v3762_v14, 0.0  ;;  %vm4452_vm2 = vcmask 130052  }
 0xf3d   : > { %v3770_v61 = vadd.f32 %v3769_v21, %v3768_v56  ;;  %3810 = vrot.lane.b32.xlu0 %v3804_v25, %s7792_s8  ;;  %v13488_v56 = vld [vmem:[#allocation61_spill] sm:$0xff] }
 0xf3e   : > { %v3819_v21 = vsub.f32 %v13209_v62, %v13488_v56 }
 0xf3f   : > { %v3782_v0 = vmul.f32 -0.33333334, %v3770_v61  ;;  %v3824_v61 = vand.u32 2147483647, %v3818_v32 }
 0xf40   : > { %3847 = vrot.lane.b32.xlu2 %v10761_v18, %s7791_s7  ;;  %v3825_v37 = vand.u32 2147483647, %v3819_v21 }
 0xf41   : > { %3788 = vrot.lane.b32.xlu1 %v3782_v0, %s7794_s16  ;;  %v3801_v30 = vrot.slane %v3782_v0, 2 }
 0xf43   : > { %v3803_v5 = vsel %vm522_vm5, %v3801_v30, %v3802_v52  ;;  %v3823_v30 = vsub.f32 %v8053_v1, %v13489_v12 }
 0xf45   : > { %3849 = vrot.lane.b32.xlu0 %v10770_v23, %s7791_s7 }
 0xf48   : > { %3853 = vrot.lane.b32.xlu2 %v10777_v13, %s7791_s7 }
 0xf49   : > { %3806 = vrot.lane.b32.xlu1 %v3803_v5, %s7792_s8 }
 0xf4d   : > { %3855 = vrot.lane.b32.xlu0 %v10785_v38, %s7791_s7 }
 0xf51   : > { %3845 = vrot.lane.b32.xlu1 %v10790_v54, %s7791_s7 }
 0xf59   : > { %3851 = vrot.lane.b32.xlu1 %v10796_v45, %s7791_s7 }
 0xf72   : > { %v3791_v11 = vpop.permute.xlu2 %3790 }
 0xf73   : > { %3799 = vst.msk [vmem:[#allocation2 + $0x75] sm:$0xff] %vm2817_vm0, %v3791_v11 }
 0xf92   : > { %v10801_v58 = vpop.permute.xlu2 %3808 }
 0xf93   : > { %v3816_v53 = vmax.f32 %v10723_v42, %v10801_v58 }
 0xf9a   : > { %v3848_v17 = vpop.permute.xlu2 %3847 }
 0xf9b   : > { %v3864_v11 = vmul.f32 %v3848_v17, %v3825_v37 }
 0xf9d   : > { %v3870_v32 = vmul.f32 %v3864_v11, %v3864_v11 }
 0xfa2   : > { %v3854_v3 = vpop.permute.xlu2 %3853 }
 0xfa3   : > { %v3867_v50 = vmul.f32 %v3854_v3, %v3828_v43 }
 0xfa5   : > { %v3873_v55 = vmul.f32 %v3867_v50, %v3867_v50  ;;  %v3880_v50 = vsel %vm2817_vm0, %v3870_v32, 0.0 }
 0xfa7   : > { %v3793_v9 = vpop.permute.xlu0 %3792 }
 0xfa8   : > { %3800 = vst.msk [vmem:[#allocation2 + $0x7d] sm:$0x7] %vm3519_vm15, %v3793_v9  ;;  %vm4065_vm15 = vcmask 162848  }
 0xfaf   : > { %v3811_v63 = vpop.permute.xlu0 %3810 }
 0xfb0   : > { %v10808_v47 = vmax.f32 %v3674_v29, %v3811_v63  ;;  %v3829_v29 = vand.u32 2147483647, %v3823_v30 }
 0xfb3   : > { %v3789_v10 = vpop.permute.xlu1 %3788 }
 0xfb4   : > { %3798 = vst.msk [vmem:[#allocation2 + $0x6d] sm:$0xf8] %vm3516_vm9, %v3789_v10  ;;  %v3878_v10 = vsel %vm2817_vm0, %v3873_v55, 0.0  ;;  %vm4302_vm9 = vcmask 162850  }
 0xfb7   : > { %v3850_v41 = vpop.permute.xlu0 %3849 }
 0xfb8   : > { %v3865_v14 = vmul.f32 %v3850_v41, %v3826_v36 }
 0xfba   : > { %v3871_v0 = vmul.f32 %v3865_v14, %v3865_v14 }
 0xfbb   : > { %v10813_v52 = vpop.permute.xlu1 %3806 }
 0xfbc   : > { %v3815_v25 = vmax.f32 %v10738_v22, %v10813_v52  ;;  %v3876_v9 = vsel %vm2817_vm0, %v3871_v0, 0.0 }
 0xfbf   : > { %v3856_v51 = vpop.permute.xlu0 %3855 }
 0xfc0   : > { %v3868_v24 = vmul.f32 %v3856_v51, %v3829_v29 }
 0xfc2   : > { %v3874_v14 = vmul.f32 %v3868_v24, %v3868_v24 }
 0xfc3   : > { %v3846_v33 = vpop.permute.xlu1 %3845 }
 0xfc4   : > { %v3863_v59 = vmul.f32 %v3846_v33, %v3824_v61  ;;  %v3883_v0 = vsel %vm2817_vm0, %v3874_v14, 0.0 }
 0xfc6   : > { %v3869_v5 = vmul.f32 %v3863_v59, %v3863_v59 }
 0xfc8   : > { %v3875_v40 = vsel %vm2817_vm0, %v3869_v5, 0.0 }
 0xfc9   : > { %v3877_v63 = vadd.f32 %v3876_v9, %v3875_v40 }
 0xfcb   : > { %v3879_v41 = vadd.f32 %v3878_v10, %v3877_v63  ;;  %v3852_v36 = vpop.permute.xlu1 %3851 }
 0xfcc   : > { %v3866_v3 = vmul.f32 %v3852_v36, %v3827_v16 }
 0xfcd   : > { %v3885_v43 = vmul.f32 -0.33333334, %v3879_v41 }
 0xfce   : > { %v3872_v21 = vmul.f32 %v3866_v3, %v3866_v3 }
 0xfcf   : > { %3888 = vst.msk [vmem:[#allocation2 + $0x80] sm:$0xff] %vm2817_vm0, %v3885_v43  ;;  %v3892_v17 = vrot.slane %v3885_v43, 7 }
 0xfd0   : > { %v3881_v61 = vsel %vm2817_vm0, %v3872_v21, 0.0 }
 0xfd1   : > { %v3882_v33 = vadd.f32 %v3881_v61, %v3880_v50  ;;  %3895 = vrot.lane.b32.xlu1 %v3892_v17, %s7793_s14 }
 0xfd3   : > { %v3884_v59 = vadd.f32 %v3883_v0, %v3882_v33 }
 0xfd5   : > { %v3886_v30 = vmul.f32 -0.33333334, %v3884_v59 }
 0xfd7   : > { %3889 = vst.msk [vmem:[#allocation2 + $0x88] sm:$0xff] %vm2817_vm0, %v3886_v30  ;;  %v3893_v37 = vrot.slane %v3886_v30, 7 }
 0xfd9   : > { %3907 = vrot.lane.b32.xlu1 %v13487_v39, %s7790_s19  ;;  %3899 = vrot.lane.b32.xlu0 %v3893_v37, %s7793_s14  ;;  %v3894_v55 = vsel %vm628_vm6, %v3892_v17, %v3893_v37 }
 0xfda   : > { %3897 = vrot.lane.b32.xlu2 %v3894_v55, %s7793_s14 }
 0xfe1   : > { %3913 = vrot.lane.b32.xlu1 %v13490_v26, %s7790_s19  ;;  %3911 = vrot.lane.b32.xlu0 %v13485_v20, %s7790_s19 }
 0xfe2   : > { %3909 = vrot.lane.b32.xlu2 %v13488_v56, %s7790_s19 }
 0xfe9   : > { %3937 = vrot.lane.b32.xlu1 %v10790_v54, %s7793_s14  ;;  %3917 = vrot.lane.b32.xlu0 %v13489_v12, %s7790_s19 }
 0xfea   : > { %3915 = vrot.lane.b32.xlu2 %v13486_v31, %s7790_s19 }
 0xff1   : > { %3943 = vrot.lane.b32.xlu1 %v10796_v45, %s7793_s14  ;;  %3941 = vrot.lane.b32.xlu0 %v10770_v23, %s7793_s14 }
 0xff2   : > { %3939 = vrot.lane.b32.xlu2 %v10761_v18, %s7793_s14 }
 0xff9   : > { %3947 = vrot.lane.b32.xlu0 %v10785_v38, %s7793_s14 }
 0xffa   : > { %3945 = vrot.lane.b32.xlu2 %v10777_v13, %s7793_s14 }
0x1034   : > { %v3898_v20 = vpop.permute.xlu2 %3897 }
0x1035   : > { %v10866_v39 = vmax.f32 %v3816_v53, %v3898_v20 }
0x103c   : > { %v3910_v56 = vpop.permute.xlu2 %3909 }
0x103d   : > { %v3926_v16 = vsub.f32 %v13209_v62, %v3910_v56 }
0x103f   : > { %v3932_v17 = vand.u32 2147483647, %v3926_v16 }
0x1043   : > { %v3896_v5 = vpop.permute.xlu1 %3895 }
0x1044   : > { %v10871_v26 = vmax.f32 %v3815_v25, %v3896_v5  ;;  %v3916_v28 = vpop.permute.xlu2 %3915 }
0x1045   : > { %v3929_v10 = vsub.f32 %v13156_v34, %v3916_v28 }
0x1047   : > { %v3935_v41 = vand.u32 2147483647, %v3929_v10 }
0x104b   : > { %v10873_v51 = vpop.permute.xlu0 %3899  ;;  %v3908_v11 = vpop.permute.xlu1 %3907 }
0x104c   : > { %v3906_v9 = vmax.f32 %v10808_v47, %v10873_v51  ;;  %v3940_v63 = vpop.permute.xlu2 %3939  ;;  %v3925_v42 = vsub.f32 %v13474_v48, %v3908_v11 }
0x104d   : > { %v3956_v0 = vmul.f32 %v3940_v63, %v3932_v17 }
0x104e   : > { %v3931_v24 = vand.u32 2147483647, %v3925_v42 }
0x104f   : > { %v3962_v28 = vmul.f32 %v3956_v0, %v3956_v0 }
0x1053   : > { %v3912_v40 = vpop.permute.xlu0 %3911  ;;  %v3914_v29 = vpop.permute.xlu1 %3913 }
0x1054   : > { %v3927_v22 = vsub.f32 %v13473_v27, %v3912_v40  ;;  %v3928_v52 = vsub.f32 %v8047_v60, %v3914_v29  ;;  %v3946_v25 = vpop.permute.xlu2 %3945 }
0x1055   : > { %v3959_v43 = vmul.f32 %v3946_v25, %v3935_v41 }
0x1056   : > { %v3933_v32 = vand.u32 2147483647, %v3927_v22  ;;  %v3934_v3 = vand.u32 2147483647, %v3928_v52 }
0x1057   : > { %v3965_v59 = vmul.f32 %v3959_v43, %v3959_v43  ;;  %v10901_v43 = vld [vmem:[%s7940_s6 + $0x8] sm:$0xff] }
0x1059   : > { %v3970_v11 = vsel %vm2926_vm12, %v3965_v59, 0.0 }
0x105b   : > { %v3918_v58 = vpop.permute.xlu0 %3917  ;;  %v3938_v53 = vpop.permute.xlu1 %3937 }
0x105c   : > { %v3955_v36 = vmul.f32 %v3938_v53, %v3931_v24  ;;  %v3930_v30 = vsub.f32 %v8053_v1, %v3918_v58  ;;  %v3972_v58 = vsel %vm2926_vm12, %v3962_v28, 0.0 }
0x105e   : > { %v3961_v50 = vmul.f32 %v3955_v36, %v3955_v36  ;;  %v3936_v40 = vand.u32 2147483647, %v3930_v30 }
0x1060   : > { %v3967_v55 = vsel %vm2926_vm12, %v3961_v50, 0.0 }
0x1063   : > { %v3942_v14 = vpop.permute.xlu0 %3941  ;;  %v3944_v21 = vpop.permute.xlu1 %3943 }
0x1064   : > { %v3957_v61 = vmul.f32 %v3942_v14, %v3933_v32  ;;  %v3958_v33 = vmul.f32 %v3944_v21, %v3934_v3  ;;  %v10895_v3 = vld [vmem:[%s7940_s6] sm:$0xff]  ;;  %v10906_v14 = vld [vmem:[%s7940_s6 + $0x18] sm:$0xff]  ;;  %v10911_v21 = vld [vmem:[%s7940_s6 + $0x10] sm:$0xff] }
0x1066   : > { %v3963_v37 = vmul.f32 %v3957_v61, %v3957_v61  ;;  %v3964_v56 = vmul.f32 %v3958_v33, %v3958_v33 }
0x1068   : > { %v3968_v20 = vsel %vm2926_vm12, %v3963_v37, 0.0  ;;  %v3973_v53 = vsel %vm2926_vm12, %v3964_v56, 0.0 }
0x1069   : > { %v3969_v5 = vadd.f32 %v3968_v20, %v3967_v55  ;;  %v3974_v22 = vadd.f32 %v3973_v53, %v3972_v58 }
0x106b   : > { %v3971_v29 = vadd.f32 %v3970_v11, %v3969_v5  ;;  %v3948_v42 = vpop.permute.xlu0 %3947 }
0x106c   : > { %v3960_v63 = vmul.f32 %v3948_v42, %v3936_v40 }
0x106d   : > { %v3977_v10 = vmul.f32 -0.33333334, %v3971_v29 }
0x106e   : > { %v3966_v24 = vmul.f32 %v3960_v63, %v3960_v63 }
0x106f   : > { %3981 = vrot.lane.b32.xlu1 %v3977_v10, %s7792_s8  ;;  %v3990_v52 = vrot.slane %v3977_v10, 7 }
0x1070   : > { %v3975_v25 = vsel %vm2926_vm12, %v3966_v24, 0.0 }
0x1071   : > { %v3976_v16 = vadd.f32 %v3975_v25, %v3974_v22  ;;  %3993 = vrot.lane.b32.xlu0 %v3990_v52, %s7791_s7 }
0x1073   : > { %v3978_v41 = vmul.f32 -0.33333334, %v3976_v16 }
0x1075   : > { %v3991_v36 = vrot.slane %v3978_v41, 7  ;;  %3983 = vrot.lane.b32.xlu2 %v3978_v41, %s7792_s8 }
0x1077   : > { %v3992_v32 = vsel %vm628_vm6, %v3990_v52, %v3991_v36 }
0x1078   : > { %3995 = vrot.lane.b32.xlu1 %v3992_v32, %s7791_s7 }
0x1079   : > { %4005 = vrot.lane.b32.xlu0 %v10895_v3, %s7796_s3 }
0x107d   : > { %3997 = vrot.lane.b32.xlu2 %v3991_v36, %s7791_s7 }
0x1080   : > { %4007 = vrot.lane.b32.xlu1 %v10901_v43, %s7796_s3 }
0x1081   : > { %4011 = vrot.lane.b32.xlu0 %v10906_v14, %s7796_s3 }
0x1085   : > { %4009 = vrot.lane.b32.xlu2 %v10911_v21, %s7796_s3 }
0x1088   : > { %4013 = vrot.lane.b32.xlu1 %v13486_v31, %s7796_s3 }
0x1089   : > { %4035 = vrot.lane.b32.xlu0 %v10790_v54, %s7795_s29 }
0x108d   : > { %4015 = vrot.lane.b32.xlu2 %v13489_v12, %s7796_s3 }
0x1090   : > { %4037 = vrot.lane.b32.xlu1 %v10761_v18, %s7795_s29 }
0x1091   : > { %4041 = vrot.lane.b32.xlu0 %v10796_v45, %s7795_s29 }
0x1095   : > { %4039 = vrot.lane.b32.xlu2 %v10770_v23, %s7795_s29 }
0x1098   : > { %4043 = vrot.lane.b32.xlu1 %v10777_v13, %s7795_s29 }
0x109d   : > { %4045 = vrot.lane.b32.xlu2 %v10785_v38, %s7795_s29 }
0x10cf   : > { %v3984_v31 = vpop.permute.xlu2 %3983 }
0x10d0   : > { %3989 = vst.msk [vmem:[#allocation2 + $0x98] sm:$0xff] %vm2817_vm0, %v3984_v31 }
0x10d7   : > { %v3998_v54 = vpop.permute.xlu2 %3997 }
0x10d8   : > { %v10935_v18 = vmax.f32 %v3906_v9, %v3998_v54 }
0x10df   : > { %v4010_v12 = vpop.permute.xlu2 %4009 }
0x10e0   : > { %v4025_v20 = vsub.f32 %v13473_v27, %v4010_v12 }
0x10e1   : > { %v3982_v45 = vpop.permute.xlu1 %3981 }
0x10e2   : > { %3988 = vst.msk [vmem:[#allocation2 + $0x90] sm:$0xff] %vm2817_vm0, %v3982_v45  ;;  %v4031_v53 = vand.u32 2147483647, %v4025_v20 }
0x10e3   : > { %v10938_v23 = vpop.permute.xlu0 %3993 }
0x10e4   : > { %v4002_v13 = vmax.f32 %v10871_v26, %v10938_v23 }
0x10e7   : > { %v4016_v38 = vpop.permute.xlu2 %4015 }
0x10e8   : > { %v4028_v59 = vsub.f32 %v8053_v1, %v4016_v38 }
0x10ea   : > { %v10942_v17 = vpop.permute.xlu1 %3995  ;;  %v4034_v5 = vand.u32 2147483647, %v4028_v59 }
0x10eb   : > { %v4003_v50 = vmax.f32 %v10866_v39, %v10942_v17  ;;  %v4006_v61 = vpop.permute.xlu0 %4005  ;;  %v13506_v17 = vld [vmem:[#allocation18_spill] sm:$0xff] }
0x10ec   : > { %v4023_v30 = vsub.f32 %v13474_v48, %v4006_v61 }
0x10ee   : > { %v4029_v28 = vand.u32 2147483647, %v4023_v30 }
0x10ef   : > { %v4040_v51 = vpop.permute.xlu2 %4039 }
0x10f0   : > { %v4055_v22 = vmul.f32 %v4040_v51, %v4031_v53  ;;  %v13495_v53 = vld [vmem:[#allocation42_spill] sm:$0xff] }
0x10f2   : > { %v4008_v33 = vpop.permute.xlu1 %4007  ;;  %v4061_v54 = vmul.f32 %v4055_v22, %v4055_v22 }
0x10f3   : > { %v4012_v47 = vpop.permute.xlu0 %4011  ;;  %v4024_v37 = vsub.f32 %v13209_v62, %v4008_v33 }
0x10f4   : > { %v4026_v55 = vsub.f32 %v8047_v60, %v4012_v47 }
0x10f5   : > { %v4030_v11 = vand.u32 2147483647, %v4024_v37 }
0x10f6   : > { %v4032_v40 = vand.u32 2147483647, %v4026_v55 }
0x10f7   : > { %v4046_v56 = vpop.permute.xlu2 %4045 }
0x10f8   : > { %v4058_v29 = vmul.f32 %v4046_v56, %v4034_v5 }
0x10fa   : > { %v4014_v9 = vpop.permute.xlu1 %4013  ;;  %v4064_v16 = vmul.f32 %v4058_v29, %v4058_v29  ;;  %v13493_v29 = vld [vmem:[#allocation48_spill] sm:$0xff] }
0x10fb   : > { %v4036_v0 = vpop.permute.xlu0 %4035  ;;  %v4027_v52 = vsub.f32 %v13156_v34, %v4014_v9  ;;  %v4067_v9 = vsel %vm4065_vm15, %v4061_v54, 0.0 }
0x10fc   : > { %v4053_v63 = vmul.f32 %v4036_v0, %v4029_v28  ;;  %v4074_v38 = vsel %vm4065_vm15, %v4064_v16, 0.0  ;;  %v13500_v16 = vld [vmem:[#allocation13_spill] sm:$0xff] }
0x10fd   : > { %v4033_v12 = vand.u32 2147483647, %v4027_v52 }
0x10fe   : > { %v4059_v36 = vmul.f32 %v4053_v63, %v4053_v63  ;;  %v13496_v63 = vld [vmem:[#allocation35_spill] sm:$0xff] }
0x1100   : > { %v4066_v33 = vsel %vm4065_vm15, %v4059_v36, 0.0  ;;  %v13501_v36 = vld [vmem:[#allocation16_spill] sm:$0xff] }
0x1101   : > { %v4068_v30 = vadd.f32 %v4067_v9, %v4066_v33  ;;  %v13502_v33 = vld [vmem:[#allocation20_spill] sm:$0xff] }
0x1102   : > { %v4038_v42 = vpop.permute.xlu1 %4037  ;;  %v4113_v26 = vsub.f32 %v13156_v34, %v13502_v33 }
0x1103   : > { %v4054_v10 = vmul.f32 %v4038_v42, %v4030_v11  ;;  %v4042_v58 = vpop.permute.xlu0 %4041  ;;  %v13491_v11 = vld [vmem:[#allocation41_spill] sm:$0xff]  ;;  %v13494_v42 = vld [vmem:[#allocation31_spill] sm:$0xff] }
0x1104   : > { %v4056_v24 = vmul.f32 %v4042_v58, %v4032_v40  ;;  %v13492_v40 = vld [vmem:[#allocation53_spill] sm:$0xff]  ;;  %v13498_v58 = vld [vmem:[#allocation103_spill] sm:$0xff] }
0x1105   : > { %v4060_v25 = vmul.f32 %v4054_v10, %v4054_v10  ;;  %v13497_v10 = vld [vmem:[#allocation94_spill] sm:$0xff] }
0x1106   : > { %v4062_v41 = vmul.f32 %v4056_v24, %v4056_v24  ;;  %v13499_v24 = vld [vmem:[#allocation45_spill] sm:$0xff] }
0x1107   : > { %v4071_v32 = vsel %vm4065_vm15, %v4060_v25, 0.0 }
0x1108   : > { %v4072_v31 = vsel %vm4065_vm15, %v4062_v41, 0.0  ;;  %v4110_v41 = vsub.f32 %v13473_v27, %v13500_v16 }
0x1109   : > { %v4073_v45 = vadd.f32 %v4072_v31, %v4071_v32  ;;  %v4107_v32 = vsub.f32 %v13474_v48, %v13501_v36 }
0x110a   : > { %v4044_v61 = vpop.permute.xlu1 %4043  ;;  %v4119_v31 = vand.u32 2147483647, %v4110_v41 }
0x110b   : > { %v4075_v47 = vadd.f32 %v4074_v38, %v4073_v45  ;;  %v4057_v51 = vmul.f32 %v4044_v61, %v4033_v12  ;;  %v4116_v12 = vand.u32 2147483647, %v4107_v32 }
0x110d   : > { %v4077_v0 = vmul.f32 -0.33333334, %v4075_v47  ;;  %v4063_v59 = vmul.f32 %v4057_v51, %v4057_v51  ;;  %v4122_v51 = vand.u32 2147483647, %v4113_v26 }
0x110f   : > { %v4069_v37 = vsel %vm4065_vm15, %v4063_v59, 0.0  ;;  %4082 = vrot.lane.b32.xlu1 %v4077_v0, %s7797_s4  ;;  %v4090_v5 = vrot.slane %v4077_v0, 7 }
0x1110   : > { %v4070_v55 = vadd.f32 %v4069_v37, %v4068_v30 }
0x1112   : > { %v4076_v20 = vmul.f32 -0.33333334, %v4070_v55 }
0x1114   : > { %v4089_v56 = vrot.slane %v4076_v20, 7  ;;  %4080 = vrot.lane.b32.xlu0 %v4076_v20, %s7797_s4 }
0x1116   : > { %4092 = vrot.lane.b32.xlu2 %v4089_v56, %s7794_s16  ;;  %v4091_v28 = vsel %vm628_vm6, %v4089_v56, %v4090_v5 }
0x1117   : > { %4096 = vrot.lane.b32.xlu1 %v4090_v5, %s7794_s16 }
0x111c   : > { %4094 = vrot.lane.b32.xlu0 %v4091_v28, %s7794_s16 }
0x111e   : > { %4125 = vrot.lane.b32.xlu2 %v13491_v11, %s7791_s7 }
0x111f   : > { %4129 = vrot.lane.b32.xlu1 %v13492_v40, %s7791_s7 }
0x1124   : > { %4127 = vrot.lane.b32.xlu0 %v13493_v29, %s7791_s7 }
0x1126   : > { %4131 = vrot.lane.b32.xlu2 %v13494_v42, %s7791_s7 }
0x1127   : > { %4135 = vrot.lane.b32.xlu1 %v13495_v53, %s7791_s7 }
0x112c   : > { %4133 = vrot.lane.b32.xlu0 %v13496_v63, %s7791_s7 }
0x112e   : > { %4137 = vrot.lane.b32.xlu2 %v13497_v10, %s7791_s7 }
0x112f   : > { %4141 = vrot.lane.b32.xlu1 %v13498_v58, %s7791_s7 }
0x1134   : > { %4139 = vrot.lane.b32.xlu0 %v13499_v24, %s7791_s7 }
0x1170   : > { %v4093_v22 = vpop.permute.xlu2 %4092 }
0x1171   : > { %v10985_v52 = vmax.f32 %v4002_v13, %v4093_v22 }
0x1178   : > { %v4126_v25 = vpop.permute.xlu2 %4125 }
0x1179   : > { %v4152_v61 = vmul.f32 %v4126_v25, %v4116_v12  ;;  %v13504_v12 = vld [vmem:[#allocation15_spill] sm:$0xff] }
0x117b   : > { %v4161_v47 = vmul.f32 %v4152_v61, %v4152_v61 }
0x117d   : > { %v4170_v55 = vsel %vm3228_vm10, %v4161_v47, 0.0 }
0x1180   : > { %v4132_v54 = vpop.permute.xlu2 %4131 }
0x1181   : > { %v4155_v45 = vmul.f32 %v4132_v54, %v4119_v31  ;;  %v4083_v38 = vpop.permute.xlu1 %4082  ;;  %v13503_v31 = vld [vmem:[#allocation14_spill] sm:$0xff] }
0x1182   : > { %4088 = vst.msk [vmem:[#allocation2 + $0xa8] sm:$0xff] %vm2817_vm0, %v4083_v38  ;;  %v4112_v54 = vsub.f32 %v8077_v15, %v13503_v31 }
0x1183   : > { %v4164_v23 = vmul.f32 %v4155_v45, %v4155_v45  ;;  %v4109_v45 = vsub.f32 %v8063_v7, %v13504_v12 }
0x1184   : > { %v4121_v61 = vand.u32 2147483647, %v4112_v54 }
0x1185   : > { %v4171_v0 = vsel %vm3228_vm10, %v4164_v23, 0.0  ;;  %v13505_v23 = vld [vmem:[#allocation17_spill] sm:$0xff]  ;;  %v4118_v47 = vand.u32 2147483647, %v4109_v45  ;;  %v4114_v45 = vsub.f32 %v8053_v1, %v13508_v4 }
0x1186   : > { %v4081_v13 = vpop.permute.xlu0 %4080  ;;  %v4172_v56 = vadd.f32 %v4171_v0, %v4170_v55 }
0x1187   : > { %4087 = vst.msk [vmem:[#allocation2 + $0xa0] sm:$0xff] %vm2817_vm0, %v4081_v13  ;;  %v4111_v13 = vsub.f32 %v8047_v60, %v13505_v23 }
0x1188   : > { %v4138_v9 = vpop.permute.xlu2 %4137 }
0x1189   : > { %v4158_v59 = vmul.f32 %v4138_v9, %v4122_v51  ;;  %v10996_v30 = vpop.permute.xlu1 %4096  ;;  %v13507_v9 = vld [vmem:[#allocation19_spill] sm:$0xff] }
0x118a   : > { %v4115_v0 = vsub.f32 %v13160_v46, %v13507_v9 }
0x118b   : > { %v4167_v20 = vmul.f32 %v4158_v59, %v4158_v59  ;;  %v4120_v59 = vand.u32 2147483647, %v4111_v13 }
0x118d   : > { %v4173_v5 = vsel %vm3228_vm10, %v4167_v20, 0.0 }
0x118e   : > { %v4174_v28 = vadd.f32 %v4173_v5, %v4172_v56  ;;  %v4095_v22 = vpop.permute.xlu0 %4094 }
0x118f   : > { %v11005_v25 = vmax.f32 %v4003_v50, %v4095_v22  ;;  %v4108_v50 = vsub.f32 %v13209_v62, %v13506_v17  ;;  %v4124_v22 = vand.u32 2147483647, %v4115_v0 }
0x1190   : > { %v4185_v41 = vmul.f32 -0.33333334, %v4174_v28 }
0x1191   : > { %v4130_v32 = vpop.permute.xlu1 %4129  ;;  %v4117_v56 = vand.u32 2147483647, %v4108_v50 }
0x1192   : > { %4189 = vst.msk [vmem:[#allocation2 + $0xae] sm:$0xfc] %vm3228_vm10, %v4185_v41  ;;  %v4154_v51 = vmul.f32 %v4130_v32, %v4118_v47 }
0x1194   : > { %v4163_v28 = vmul.f32 %v4154_v51, %v4154_v51 }
0x1196   : > { %v4128_v38 = vpop.permute.xlu0 %4127  ;;  %v4180_v32 = vsel %vm3231_vm7, %v4163_v28, 0.0 }
0x1197   : > { %v4153_v54 = vmul.f32 %v4128_v38, %v4117_v56 }
0x1199   : > { %v4136_v26 = vpop.permute.xlu1 %4135  ;;  %v4162_v8 = vmul.f32 %v4153_v54, %v4153_v54  ;;  %v4195_v54 = vrot.slane %v4185_v41, 1 }
0x119a   : > { %v4157_v39 = vmul.f32 %v4136_v26, %v4121_v61 }
0x119c   : > { %v4166_v55 = vmul.f32 %v4157_v39, %v4157_v39  ;;  %v4123_v39 = vand.u32 2147483647, %v4114_v45 }
0x119e   : > { %v4134_v20 = vpop.permute.xlu0 %4133  ;;  %v4181_v61 = vsel %vm3231_vm7, %v4166_v55, 0.0 }
0x119f   : > { %v4156_v5 = vmul.f32 %v4134_v20, %v4120_v59  ;;  %v4182_v13 = vadd.f32 %v4181_v61, %v4180_v32  ;;  %v4175_v20 = vsel %vm2817_vm0, %v4162_v8, 0.0 }
0x11a1   : > { %v4142_v37 = vpop.permute.xlu1 %4141  ;;  %v4165_v6 = vmul.f32 %v4156_v5, %v4156_v5 }
0x11a2   : > { %v4160_v26 = vmul.f32 %v4142_v37, %v4124_v22 }
0x11a3   : > { %v4176_v51 = vsel %vm2817_vm0, %v4165_v6, 0.0 }
0x11a4   : > { %v4169_v47 = vmul.f32 %v4160_v26, %v4160_v26  ;;  %v4177_v55 = vadd.f32 %v4176_v51, %v4175_v20 }
0x11a6   : > { %v4183_v50 = vsel %vm3231_vm7, %v4169_v47, 0.0  ;;  %v4140_v59 = vpop.permute.xlu0 %4139 }
0x11a7   : > { %v4184_v38 = vadd.f32 %v4183_v50, %v4182_v13  ;;  %v4159_v0 = vmul.f32 %v4140_v59, %v4123_v39 }
0x11a9   : > { %v4187_v56 = vmul.f32 -0.33333334, %v4184_v38  ;;  %v4168_v57 = vmul.f32 %v4159_v0, %v4159_v0 }
0x11ab   : > { %4191 = vst.msk [vmem:[#allocation2 + $0xbe] sm:$0x3] %vm3231_vm7, %v4187_v56  ;;  %v4198_v37 = vrot.slane %v4187_v56, 1  ;;  %v4178_v5 = vsel %vm2817_vm0, %v4168_v57, 0.0 }
0x11ac   : > { %v4179_v28 = vadd.f32 %v4178_v5, %v4177_v55 }
0x11ad   : > { %4204 = vrot.lane.b32.xlu1 %v4198_v37, %s7793_s14 }
0x11ae   : > { %v4186_v22 = vmul.f32 -0.33333334, %v4179_v28 }
0x11b0   : > { %4190 = vst.msk [vmem:[#allocation2 + $0xb6] sm:$0xff] %vm2817_vm0, %v4186_v22  ;;  %v4196_v6 = vrot.slane %v4186_v22, 1 }
0x11b2   : > { %v4197_v45 = vsel %vm452_vm4, %v4195_v54, %v4196_v6  ;;  %v4199_v8 = vsel %vm452_vm4, %v4196_v6, %v4198_v37 }
0x11b3   : > { %4200 = vrot.lane.b32.xlu2 %v4197_v45, %s7793_s14  ;;  %4202 = vrot.lane.b32.xlu0 %v4199_v8, %s7793_s14 }
0x11b5   : > { %4216 = vrot.lane.b32.xlu1 %v13504_v12, %s7796_s3 }
0x11bb   : > { %4212 = vrot.lane.b32.xlu2 %v13501_v36, %s7796_s3  ;;  %4214 = vrot.lane.b32.xlu0 %v13506_v17, %s7796_s3 }
0x11bd   : > { %4222 = vrot.lane.b32.xlu1 %v13503_v31, %s7796_s3 }
0x11c3   : > { %4218 = vrot.lane.b32.xlu2 %v13500_v16, %s7796_s3  ;;  %4220 = vrot.lane.b32.xlu0 %v13505_v23, %s7796_s3 }
0x11c5   : > { %4228 = vrot.lane.b32.xlu1 %v13507_v9, %s7796_s3 }
0x11cb   : > { %4224 = vrot.lane.b32.xlu2 %v13502_v33, %s7796_s3  ;;  %4226 = vrot.lane.b32.xlu0 %v13508_v4, %s7796_s3 }
0x11cd   : > { %4261 = vrot.lane.b32.xlu1 %v13492_v40, %s7795_s29 }
0x11d3   : > { %4257 = vrot.lane.b32.xlu2 %v13491_v11, %s7795_s29  ;;  %4259 = vrot.lane.b32.xlu0 %v13493_v29, %s7795_s29 }
0x11d5   : > { %4267 = vrot.lane.b32.xlu1 %v13495_v53, %s7795_s29 }
0x11db   : > { %4263 = vrot.lane.b32.xlu2 %v13494_v42, %s7795_s29  ;;  %4265 = vrot.lane.b32.xlu0 %v13496_v63, %s7795_s29  ;;  %v13509_v42 = vmax.f32 %v10935_v18, %v10996_v30 }
0x11dd   : > { %4273 = vrot.lane.b32.xlu1 %v13498_v58, %s7795_s29 }
0x11e3   : > { %4269 = vrot.lane.b32.xlu2 %v13497_v10, %s7795_s29  ;;  %4271 = vrot.lane.b32.xlu0 %v13499_v24, %s7795_s29 }
0x120d   : > { %v11069_v4 = vpop.permute.xlu2 %4200 }
0x120e   : > { %v4209_v57 = vmax.f32 %v10985_v52, %v11069_v4 }
0x1215   : > { %v4213_v11 = vpop.permute.xlu2 %4212 }
0x1216   : > { %v4239_v31 = vsub.f32 %v13474_v48, %v4213_v11 }
0x1218   : > { %v4248_v18 = vand.u32 2147483647, %v4239_v31 }
0x121d   : > { %v4219_v40 = vpop.permute.xlu2 %4218 }
0x121e   : > { %v4242_v41 = vsub.f32 %v13473_v27, %v4219_v40 }
0x121f   : > { %v4205_v29 = vpop.permute.xlu1 %4204 }
0x1220   : > { %v11076_v53 = vmax.f32 %v13509_v42, %v4205_v29  ;;  %v4251_v12 = vand.u32 2147483647, %v4242_v41 }
0x1225   : > { %v4225_v63 = vpop.permute.xlu2 %4224  ;;  %v11078_v58 = vpop.permute.xlu0 %4202 }
0x1226   : > { %v4210_v10 = vmax.f32 %v11005_v25, %v11078_v58  ;;  %v4245_v61 = vsub.f32 %v13156_v34, %v4225_v63 }
0x1227   : > { %v4217_v24 = vpop.permute.xlu1 %4216 }
0x1228   : > { %v4254_v47 = vand.u32 2147483647, %v4245_v61  ;;  %v4241_v28 = vsub.f32 %v8063_v7, %v4217_v24 }
0x122a   : > { %v4250_v8 = vand.u32 2147483647, %v4241_v28 }
0x122d   : > { %v4258_v16 = vpop.permute.xlu2 %4257  ;;  %v4215_v36 = vpop.permute.xlu0 %4214 }
0x122e   : > { %v4284_v26 = vmul.f32 %v4258_v16, %v4248_v18  ;;  %v4240_v29 = vsub.f32 %v13209_v62, %v4215_v36 }
0x122f   : > { %v4223_v33 = vpop.permute.xlu1 %4222 }
0x1230   : > { %v4293_v13 = vmul.f32 %v4284_v26, %v4284_v26  ;;  %v4244_v55 = vsub.f32 %v8077_v15, %v4223_v33  ;;  %v4249_v31 = vand.u32 2147483647, %v4240_v29 }
0x1232   : > { %v4303_v0 = vsel %vm4302_vm9, %v4293_v13, 0.0  ;;  %v4253_v6 = vand.u32 2147483647, %v4244_v55 }
0x1235   : > { %v4264_v23 = vpop.permute.xlu2 %4263  ;;  %v4221_v17 = vpop.permute.xlu0 %4220 }
0x1236   : > { %v4287_v30 = vmul.f32 %v4264_v23, %v4251_v12  ;;  %v4243_v11 = vsub.f32 %v8047_v60, %v4221_v17 }
0x1237   : > { %v4229_v9 = vpop.permute.xlu1 %4228 }
0x1238   : > { %v4296_v32 = vmul.f32 %v4287_v30, %v4287_v30  ;;  %v4247_v42 = vsub.f32 %v13160_v46, %v4229_v9  ;;  %v4252_v16 = vand.u32 2147483647, %v4243_v11 }
0x123a   : > { %v4304_v59 = vsel %vm4302_vm9, %v4296_v32, 0.0  ;;  %v4256_v24 = vand.u32 2147483647, %v4247_v42 }
0x123b   : > { %v4305_v56 = vadd.f32 %v4304_v59, %v4303_v0 }
0x123d   : > { %v4270_v39 = vpop.permute.xlu2 %4269  ;;  %v4227_v50 = vpop.permute.xlu0 %4226 }
0x123e   : > { %v4290_v51 = vmul.f32 %v4270_v39, %v4254_v47  ;;  %v4246_v30 = vsub.f32 %v8053_v1, %v4227_v50 }
0x123f   : > { %v4262_v38 = vpop.permute.xlu1 %4261 }
0x1240   : > { %v4299_v20 = vmul.f32 %v4290_v51, %v4290_v51  ;;  %v4286_v63 = vmul.f32 %v4262_v38, %v4250_v8  ;;  %v4255_v9 = vand.u32 2147483647, %v4246_v30 }
0x1242   : > { %v4306_v37 = vsel %vm4302_vm9, %v4299_v20, 0.0  ;;  %v4295_v12 = vmul.f32 %v4286_v63, %v4286_v63  ;;  %v4393_v63 = vrot.slane %v13476_v44, 5  ;;  %vm13514_vm9 = vcmask 1044480  }
0x1243   : > { %v4307_v5 = vadd.f32 %v4306_v37, %v4305_v56 }
0x1244   : > { %v4314_v32 = vsel %vm4313_vm13, %v4295_v12, 0.0 }
0x1245   : > { %v4319_v22 = vmul.f32 -0.33333334, %v4307_v5  ;;  %v4260_v54 = vpop.permute.xlu0 %4259 }
0x1246   : > { %v4285_v61 = vmul.f32 %v4260_v54, %v4249_v31  ;;  %v11100_v54 = vrot.slane %v10895_v3, 4 }
0x1247   : > { %4325 = vrot.lane.b32.xlu2 %v4319_v22, %s7797_s4  ;;  %v4268_v45 = vpop.permute.xlu1 %4267  ;;  %v4338_v8 = vrot.slane %v4319_v22, 1  ;;  %v11119_v22 = vrot.slane %v10906_v14, 4  ;;  %v4392_v14 = vrot.slane %v13482_v35, 5  ;;  %v4397_v35 = vrot.slane %v13477_v19, 5  ;;  %v13510_v19 = vld [vmem:[#allocation44_spill] sm:$0xff] }
0x1248   : > { %v4289_v40 = vmul.f32 %v4268_v45, %v4253_v6  ;;  %v4294_v39 = vmul.f32 %v4285_v61, %v4285_v61  ;;  %v11103_v6 = vrot.slane %v10901_v43, 4  ;;  %v11116_v43 = vrot.slane %v10911_v21, 4  ;;  %v13511_v61 = vld [vmem:[#allocation85_spill] sm:$0xff] }
0x124a   : > { %v4298_v33 = vmul.f32 %v4289_v40, %v4289_v40  ;;  %v4308_v55 = vsel %vm4065_vm15, %v4294_v39, 0.0  ;;  %v11109_v40 = vsel %vm4355_vm14, %v11100_v54, %v11103_v6  ;;  %v11126_v29 = vsel %vm4355_vm14, %v11116_v43, %v11119_v22 }
0x124c   : > { %v4315_v26 = vsel %vm4313_vm13, %v4298_v33, 0.0  ;;  %v4395_v33 = vrot.slane %v13475_v2, 5  ;;  %v4400_v2 = vrot.slane %v13510_v19, 5 }
0x124d   : > { %v4266_v41 = vpop.permute.xlu0 %4265  ;;  %v4316_v13 = vadd.f32 %v4315_v26, %v4314_v32  ;;  %v4402_v26 = vrot.slane %v13511_v61, 5  ;;  %v4378_v61 = vsub.f32 %v8047_v60, %v11126_v29 }
0x124e   : > { %v4288_v23 = vmul.f32 %v4266_v41, %v4252_v16  ;;  %v4394_v16 = vsel %vm2118_vm8, %v4392_v14, %v4393_v63  ;;  %v4398_v41 = vrot.slane %v13478_v49, 5  ;;  %v4396_v31 = vsel %vm2118_vm8, %v4393_v63, %v4395_v33 }
0x124f   : > { %v4274_v18 = vpop.permute.xlu1 %4273 }
0x1250   : > { %v4292_v17 = vmul.f32 %v4274_v18, %v4256_v24  ;;  %v4297_v47 = vmul.f32 %v4288_v23, %v4288_v23  ;;  %v4399_v44 = vsel %vm2118_vm8, %v4397_v35, %v4398_v41  ;;  %v7638_v24 = vld [vmem:[%s7940_s6 + $0x20] sm:$0xff]  ;;  %v7639_v23 = vld [vmem:[%s7940_s6 + $0x28] sm:$0xff]  ;;  %v4401_v30 = vsel %vm2118_vm8, %v4398_v41, %v4400_v2 }
0x1251   : > { %v11155_v12 = vrot.slane %v7638_v24, 4  ;;  %v11158_v18 = vrot.slane %v7639_v23, 4 }
0x1252   : > { %v4301_v36 = vmul.f32 %v4292_v17, %v4292_v17  ;;  %v4309_v0 = vsel %vm4065_vm15, %v4297_v47, 0.0  ;;  %v13512_v17 = vld [vmem:[#allocation65_spill] sm:$0xff] }
0x1253   : > { %v4310_v37 = vadd.f32 %v4309_v0, %v4308_v55  ;;  %v11165_v49 = vsel %vm4355_vm14, %v11155_v12, %v11158_v18  ;;  %v4403_v32 = vrot.slane %v13512_v17, 5 }
0x1254   : > { %v4317_v59 = vsel %vm4313_vm13, %v4301_v36, 0.0  ;;  %v13513_v36 = vld [vmem:[#allocation34_spill] sm:$0xff]  ;;  %vm13515_vm13 = vmmov %vm13514_vm9 }
0x1255   : > { %v4318_v51 = vadd.f32 %v4317_v59, %v4316_v13  ;;  %v4272_v38 = vpop.permute.xlu0 %4271  ;;  %v4404_v47 = vsel %vm2118_vm8, %v4402_v26, %v4403_v32  ;;  %v4405_v13 = vrot.slane %v13513_v36, 5 }
0x1256   : > { %v4291_v20 = vmul.f32 %v4272_v38, %v4255_v9 }
0x1257   : > { %v11093_v56 = vmul.f32 -0.33333334, %v4318_v51  ;;  %v4406_v39 = vsel %vm2118_vm8, %v4403_v32, %v4405_v13  ;;  %v4387_v13 = vand.u32 2147483647, %v4378_v61 }
0x1258   : > { %v4300_v50 = vmul.f32 %v4291_v20, %v4291_v20 }
0x1259   : > { %4329 = vrot.lane.b32.xlu1 %v11093_v56, %s7797_s4  ;;  %v4341_v21 = vrot.slane %v11093_v56, 1  ;;  %v4379_v56 = vsub.f32 %v8077_v15, %v11119_v22 }
0x125a   : > { %v4311_v5 = vsel %vm4065_vm15, %v4300_v50, 0.0 }
0x125b   : > { %v4312_v28 = vadd.f32 %v4311_v5, %v4310_v37  ;;  %v4388_v63 = vand.u32 2147483647, %v4379_v56 }
0x125d   : > { %v4320_v45 = vmul.f32 -0.33333334, %v4312_v28 }
0x125f   : > { %v4339_v11 = vrot.slane %v4320_v45, 1  ;;  %4327 = vrot.lane.b32.xlu0 %v4320_v45, %s7797_s4 }
0x1261   : > { %4498 = vrot.lane.b32.xlu1 %v11109_v40, %s7790_s19  ;;  %v4340_v3 = vsel %vm452_vm4, %v4338_v8, %v4339_v11  ;;  %v11137_v42 = vsel %vm452_vm4, %v4339_v11, %v4341_v21 }
0x1262   : > { %4343 = vrot.lane.b32.xlu2 %v4340_v3, %s7794_s16 }
0x1267   : > { %4496 = vrot.lane.b32.xlu0 %v11100_v54, %s7790_s19 }
0x1269   : > { %4504 = vrot.lane.b32.xlu1 %v11126_v29, %s7790_s19 }
0x126a   : > { %4500 = vrot.lane.b32.xlu2 %v11103_v6, %s7790_s19 }
0x126f   : > { %4502 = vrot.lane.b32.xlu0 %v11116_v43, %s7790_s19 }
0x1271   : > { %4409 = vrot.lane.b32.xlu1 %v4394_v16, %s7791_s7 }
0x1272   : > { %4506 = vrot.lane.b32.xlu2 %v11119_v22, %s7790_s19 }
0x1277   : > { %4407 = vrot.lane.b32.xlu0 %v4392_v14, %s7791_s7 }
0x1279   : > { %4415 = vrot.lane.b32.xlu1 %v4399_v44, %s7791_s7 }
0x127a   : > { %4411 = vrot.lane.b32.xlu2 %v4396_v31, %s7791_s7 }
0x127f   : > { %4413 = vrot.lane.b32.xlu0 %v4397_v35, %s7791_s7 }
0x1281   : > { %4510 = vrot.lane.b32.xlu1 %v11165_v49, %s7790_s19 }
0x1282   : > { %4417 = vrot.lane.b32.xlu2 %v4401_v30, %s7791_s7 }
0x1287   : > { %4508 = vrot.lane.b32.xlu0 %v11155_v12, %s7790_s19 }
0x1289   : > { %4641 = vrot.lane.b32.xlu1 %v11109_v40, %s7796_s3 }
0x128a   : > { %4512 = vrot.lane.b32.xlu2 %v11158_v18, %s7790_s19 }
0x128f   : > { %4639 = vrot.lane.b32.xlu0 %v11100_v54, %s7796_s3 }
0x1291   : > { %4647 = vrot.lane.b32.xlu1 %v11126_v29, %s7796_s3 }
0x1292   : > { %4643 = vrot.lane.b32.xlu2 %v11103_v6, %s7796_s3 }
0x1297   : > { %4645 = vrot.lane.b32.xlu0 %v11116_v43, %s7796_s3 }
0x1299   : > { %4421 = vrot.lane.b32.xlu1 %v4404_v47, %s7791_s7 }
0x129a   : > { %4649 = vrot.lane.b32.xlu2 %v11119_v22, %s7796_s3 }
0x129f   : > { %4419 = vrot.lane.b32.xlu0 %v4402_v26, %s7791_s7 }
0x12a1   : > { %v4326_v9 = vpop.permute.xlu2 %4325  ;;  %4543 = vrot.lane.b32.xlu1 %v4394_v16, %s7793_s14 }
0x12a2   : > { %4335 = vst.msk [vmem:[#allocation2 + $0xbe] sm:$0xfc] %vm3228_vm10, %v4326_v9  ;;  %4423 = vrot.lane.b32.xlu2 %v4406_v39, %s7791_s7  ;;  %vm4597_vm10 = vcmask 142352  }
0x12a7   : > { %4541 = vrot.lane.b32.xlu0 %v4392_v14, %s7793_s14 }
0x12a9   : > { %4549 = vrot.lane.b32.xlu1 %v4399_v44, %s7793_s14 }
0x12aa   : > { %4545 = vrot.lane.b32.xlu2 %v4396_v31, %s7793_s14 }
0x12af   : > { %4547 = vrot.lane.b32.xlu0 %v4397_v35, %s7793_s14 }
0x12b1   : > { %4653 = vrot.lane.b32.xlu1 %v11165_v49, %s7796_s3 }
0x12b2   : > { %4551 = vrot.lane.b32.xlu2 %v4401_v30, %s7793_s14 }
0x12b7   : > { %4651 = vrot.lane.b32.xlu0 %v11155_v12, %s7796_s3 }
0x12b9   : > { %4555 = vrot.lane.b32.xlu1 %v4404_v47, %s7793_s14 }
0x12ba   : > { %4655 = vrot.lane.b32.xlu2 %v11158_v18, %s7796_s3 }
0x12bc   : > { %v4344_v59 = vpop.permute.xlu2 %4343 }
0x12bd   : > { %v11212_v51 = vmax.f32 %v4209_v57, %v4344_v59 }
0x12bf   : > { %4553 = vrot.lane.b32.xlu0 %v4402_v26, %s7793_s14 }
0x12c1   : > { %4686 = vrot.lane.b32.xlu1 %v4394_v16, %s7795_s29 }
0x12c2   : > { %4557 = vrot.lane.b32.xlu2 %v4406_v39, %s7793_s14 }
0x12c4   : > { %v11217_v38 = vpop.permute.xlu2 %4500 }
0x12c7   : > { %4684 = vrot.lane.b32.xlu0 %v4392_v14, %s7795_s29 }
0x12c9   : > { %4692 = vrot.lane.b32.xlu1 %v4399_v44, %s7795_s29  ;;  %v4382_v44 = vsub.f32 %v13160_v46, %v11158_v18  ;;  %v4375_v18 = vsub.f32 %v13209_v62, %v11109_v40  ;;  %v4374_v40 = vsub.f32 %v13474_v48, %v11100_v54 }
0x12ca   : > { %4688 = vrot.lane.b32.xlu2 %v4396_v31, %s7795_s29 }
0x12cb   : > { %v4330_v0 = vpop.permute.xlu1 %4329  ;;  %v4391_v19 = vand.u32 2147483647, %v4382_v44  ;;  %v4383_v44 = vand.u32 2147483647, %v4374_v40 }
0x12cc   : > { %4337 = vst.msk [vmem:[#allocation2 + $0xce] sm:$0x3] %vm3231_vm7, %v4330_v0  ;;  %v11223_v52 = vpop.permute.xlu2 %4506  ;;  %vm4463_vm7 = vcmask 125952   ;;  %v4384_v0 = vand.u32 2147483647, %v4375_v18 }
0x12cf   : > { %4690 = vrot.lane.b32.xlu0 %v4397_v35, %s7795_s29 }
0x12d1   : > { %4698 = vrot.lane.b32.xlu1 %v4404_v47, %s7795_s29  ;;  %v4328_v4 = vpop.permute.xlu0 %4327 }
0x12d2   : > { %4336 = vst.msk [vmem:[#allocation2 + $0xc6] sm:$0xff] %vm2817_vm0, %v4328_v4  ;;  %4694 = vrot.lane.b32.xlu2 %v4401_v30, %s7795_s29  ;;  %v4377_v4 = vsub.f32 %v13473_v27, %v11116_v43 }
0x12d3   : > { %v11229_v57 = vpop.permute.xlu1 %4498 }
0x12d4   : > { %v4412_v20 = vpop.permute.xlu2 %4411 }
0x12d7   : > { %4696 = vrot.lane.b32.xlu0 %v4402_v26, %s7795_s29 }
0x12d9   : > { %4347 = vrot.lane.b32.xlu1 %v4341_v21, %s7794_s16  ;;  %v11235_v55 = vpop.permute.xlu0 %4496  ;;  %v4376_v21 = vsub.f32 %v8063_v7, %v11103_v6 }
0x12da   : > { %4700 = vrot.lane.b32.xlu2 %v4406_v39, %s7795_s29  ;;  %v4525_v39 = vsub.f32 %v8063_v7, %v11217_v38 }
0x12db   : > { %v11238_v50 = vpop.permute.xlu1 %4504  ;;  %v4385_v35 = vand.u32 2147483647, %v4376_v21 }
0x12dc   : > { %v4418_v37 = vpop.permute.xlu2 %4417  ;;  %v4534_v38 = vand.u32 2147483647, %v4525_v39 }
0x12dd   : > { %v4439_v33 = vmul.f32 %v4418_v37, %v4388_v63  ;;  %v4436_v41 = vmul.f32 %v4412_v20, %v4385_v35  ;;  %v4381_v63 = vsub.f32 %v8053_v1, %v11165_v49  ;;  %v4528_v35 = vsub.f32 %v8077_v15, %v11223_v52 }
0x12de   : > { %v4380_v52 = vsub.f32 %v13156_v34, %v11155_v12 }
0x12df   : > { %4345 = vrot.lane.b32.xlu0 %v11137_v42, %s7794_s16  ;;  %v4448_v31 = vmul.f32 %v4439_v33, %v4439_v33  ;;  %v4445_v23 = vmul.f32 %v4436_v41, %v4436_v41  ;;  %v4386_v33 = vand.u32 2147483647, %v4377_v4  ;;  %v4524_v4 = vsub.f32 %v13209_v62, %v11229_v57 }
0x12e1   : > { %v11242_v5 = vpop.permute.xlu0 %4502  ;;  %v4465_v2 = vsel %vm4463_vm7, %v4448_v31, 0.0  ;;  %v4464_v26 = vsel %vm4463_vm7, %v4445_v23, 0.0  ;;  %v4390_v31 = vand.u32 2147483647, %v4381_v63  ;;  %v4537_v23 = vand.u32 2147483647, %v4528_v35 }
0x12e2   : > { %v4466_v32 = vadd.f32 %v4465_v2, %v4464_v26 }
0x12e3   : > { %v4410_v28 = vpop.permute.xlu1 %4409 }
0x12e4   : > { %v11244_v45 = vpop.permute.xlu2 %4512  ;;  %v4435_v56 = vmul.f32 %v4410_v28, %v4384_v0 }
0x12e6   : > { %v4444_v28 = vmul.f32 %v4435_v56, %v4435_v56 }
0x12e9   : > { %v4408_v8 = vpop.permute.xlu0 %4407 }
0x12eb   : > { %v4416_v11 = vpop.permute.xlu1 %4415 }
0x12ec   : > { %v11246_v3 = vpop.permute.xlu2 %4643  ;;  %v4438_v29 = vmul.f32 %v4416_v11, %v4387_v13 }
0x12ee   : > { %v4447_v11 = vmul.f32 %v4438_v29, %v4438_v29 }
0x12f0   : > { %v4459_v49 = vsel %vm2817_vm0, %v4447_v11, 0.0 }
0x12f1   : > { %v4414_v14 = vpop.permute.xlu0 %4413 }
0x12f2   : > { %v4437_v54 = vmul.f32 %v4414_v14, %v4386_v33 }
0x12f3   : > { %v11252_v16 = vpop.permute.xlu1 %4510 }
0x12f4   : > { %v11254_v42 = vpop.permute.xlu2 %4649 }
0x12f9   : > { %v11258_v24 = vpop.permute.xlu0 %4508 }
0x12fb   : > { %v11260_v22 = vpop.permute.xlu1 %4641 }
0x12fc   : > { %v4424_v6 = vpop.permute.xlu2 %4423 }
0x12fd   : > { %v4442_v30 = vmul.f32 %v4424_v6, %v4391_v19  ;;  %v4434_v6 = vmul.f32 %v4408_v8, %v4383_v44  ;;  %v4389_v8 = vand.u32 2147483647, %v4380_v52  ;;  %v4527_v44 = vsub.f32 %v8047_v60, %v11238_v50 }
0x12ff   : > { %v4451_v17 = vmul.f32 %v4442_v30, %v4442_v30  ;;  %v4443_v13 = vmul.f32 %v4434_v6, %v4434_v6 }
0x1301   : > { %v4467_v47 = vsel %vm4463_vm7, %v4451_v17, 0.0  ;;  %v11269_v36 = vpop.permute.xlu0 %4639  ;;  %v4458_v17 = vsel %vm2817_vm0, %v4444_v28, 0.0  ;;  %v4533_v28 = vand.u32 2147483647, %v4524_v4 }
0x1302   : > { %v4468_v9 = vadd.f32 %v4467_v47, %v4466_v32  ;;  %v4446_v32 = vmul.f32 %v4437_v54, %v4437_v54  ;;  %v4460_v47 = vadd.f32 %v4459_v49, %v4458_v17  ;;  %v4531_v54 = vsub.f32 %v13160_v46, %v11244_v45 }
0x1303   : > { %v11273_v59 = vpop.permute.xlu1 %4647  ;;  %v4526_v45 = vsub.f32 %v13473_v27, %v11242_v5 }
0x1304   : > { %v4471_v20 = vmul.f32 -0.33333334, %v4468_v9  ;;  %v4546_v37 = vpop.permute.xlu2 %4545  ;;  %v4540_v52 = vand.u32 2147483647, %v4531_v54 }
0x1305   : > { %v4570_v43 = vmul.f32 %v4546_v37, %v4534_v38  ;;  %v4453_v38 = vsel %vm4452_vm2, %v4443_v13, 0.0 }
0x1306   : > { %4475 = vst.msk [vmem:[#allocation2 + $0xdc] sm:$0xf] %vm4463_vm7, %v4471_v20  ;;  %v4482_v21 = vrot.slane %v4471_v20, 3  ;;  %v4454_v20 = vsel %vm4452_vm2, %v4446_v32, 0.0 }
0x1307   : > { %v4579_v61 = vmul.f32 %v4570_v43, %v4570_v43  ;;  %v4455_v33 = vadd.f32 %v4454_v20, %v4453_v38 }
0x1308   : > { %4488 = vrot.lane.b32.xlu1 %v4482_v21, %s7793_s14 }
0x1309   : > { %v11285_v41 = vpop.permute.xlu0 %4645  ;;  %v4598_v39 = vsel %vm4597_vm10, %v4579_v61, 0.0 }
0x130b   : > { %v4422_v19 = vpop.permute.xlu1 %4421 }
0x130c   : > { %v4441_v2 = vmul.f32 %v4422_v19, %v4390_v31  ;;  %v4552_v30 = vpop.permute.xlu2 %4551  ;;  %v4523_v19 = vsub.f32 %v13474_v48, %v11235_v55 }
0x130d   : > { %v4573_v26 = vmul.f32 %v4552_v30, %v4537_v23  ;;  %v4536_v30 = vand.u32 2147483647, %v4527_v44 }
0x130e   : > { %v4450_v18 = vmul.f32 %v4441_v2, %v4441_v2 }
0x130f   : > { %v4582_v14 = vmul.f32 %v4573_v26, %v4573_v26  ;;  %v4532_v26 = vand.u32 2147483647, %v4523_v19  ;;  %v4529_v19 = vsub.f32 %v13156_v34, %v11258_v24 }
0x1310   : > { %v4461_v9 = vsel %vm2817_vm0, %v4450_v18, 0.0 }
0x1311   : > { %v4462_v0 = vadd.f32 %v4461_v9, %v4460_v47  ;;  %v4599_v29 = vsel %vm4597_vm10, %v4582_v14, 0.0  ;;  %v4420_v12 = vpop.permute.xlu0 %4419  ;;  %v4535_v9 = vand.u32 2147483647, %v4526_v45 }
0x1312   : > { %v4600_v37 = vadd.f32 %v4599_v29, %v4598_v39  ;;  %v4440_v56 = vmul.f32 %v4420_v12, %v4389_v8 }
0x1313   : > { %v4470_v40 = vmul.f32 -0.33333334, %v4462_v0  ;;  %v4544_v63 = vpop.permute.xlu1 %4543 }
0x1314   : > { %v4449_v35 = vmul.f32 %v4440_v56, %v4440_v56  ;;  %v11298_v11 = vpop.permute.xlu2 %4655  ;;  %v4569_v6 = vmul.f32 %v4544_v63, %v4533_v28 }
0x1315   : > { %4474 = vst.msk [vmem:[#allocation2 + $0xd4] sm:$0xff] %vm2817_vm0, %v4470_v40  ;;  %v4480_v43 = vrot.slane %v4470_v40, 3 }
0x1316   : > { %v4456_v57 = vsel %vm4452_vm2, %v4449_v35, 0.0  ;;  %v4578_v17 = vmul.f32 %v4569_v6, %v4569_v6  ;;  %v4530_v35 = vsub.f32 %v8053_v1, %v11252_v16 }
0x1317   : > { %v4457_v31 = vadd.f32 %v4456_v57, %v4455_v33  ;;  %v4483_v23 = vsel %vm13514_vm9, %v4480_v43, %v4482_v21  ;;  %vm4586_vm9 = vcmask 146452   ;;  %v4668_v57 = vsub.f32 %v8063_v7, %v11246_v3 }
0x1318   : > { %4486 = vrot.lane.b32.xlu0 %v4483_v23, %s7793_s14  ;;  %v4592_v8 = vsel %vm2926_vm12, %v4578_v17, 0.0 }
0x1319   : > { %v4469_v49 = vmul.f32 -0.33333334, %v4457_v31  ;;  %v4542_v2 = vpop.permute.xlu0 %4541  ;;  %v4539_v31 = vand.u32 2147483647, %v4530_v35 }
0x131a   : > { %v4568_v47 = vmul.f32 %v4542_v2, %v4532_v26  ;;  %v4677_v2 = vand.u32 2147483647, %v4668_v57 }
0x131b   : > { %4473 = vst.msk [vmem:[#allocation2 + $0xcc] sm:$0xf0] %vm4452_vm2, %v4469_v49  ;;  %v4479_v50 = vrot.slane %v4469_v49, 3  ;;  %v4550_v61 = vpop.permute.xlu1 %4549 }
0x131c   : > { %v4572_v21 = vmul.f32 %v4550_v61, %v4536_v30  ;;  %v4558_v32 = vpop.permute.xlu2 %4557  ;;  %v4577_v12 = vmul.f32 %v4568_v47, %v4568_v47 }
0x131d   : > { %v4576_v18 = vmul.f32 %v4558_v32, %v4540_v52  ;;  %v4481_v55 = vsel %vm13515_vm13, %v4479_v50, %v4480_v43  ;;  %v4538_v50 = vand.u32 2147483647, %v4529_v19 }
0x131e   : > { %v4581_v14 = vmul.f32 %v4572_v21, %v4572_v21  ;;  %4484 = vrot.lane.b32.xlu2 %v4481_v55, %s7793_s14  ;;  %v4587_v33 = vsel %vm4586_vm9, %v4577_v12, 0.0 }
0x131f   : > { %v4585_v13 = vmul.f32 %v4576_v18, %v4576_v18 }
0x1320   : > { %v4593_v39 = vsel %vm2926_vm12, %v4581_v14, 0.0  ;;  %v4670_v14 = vsub.f32 %v8047_v60, %v11273_v59 }
0x1321   : > { %v4594_v0 = vadd.f32 %v4593_v39, %v4592_v8  ;;  %v4601_v29 = vsel %vm4597_vm10, %v4585_v13, 0.0  ;;  %v4548_v5 = vpop.permute.xlu0 %4547  ;;  %vm4740_vm10 = vcmask 158752  }
0x1322   : > { %v4602_v4 = vadd.f32 %v4601_v29, %v4600_v37  ;;  %v4571_v20 = vmul.f32 %v4548_v5, %v4535_v9  ;;  %v4671_v37 = vsub.f32 %v8077_v15, %v11254_v42  ;;  %v4674_v15 = vsub.f32 %v13160_v46, %v11298_v11 }
0x1323   : > { %v11318_v56 = vpop.permute.xlu1 %4653  ;;  %v4667_v29 = vsub.f32 %v13209_v62, %v11260_v22  ;;  %v4666_v22 = vsub.f32 %v13474_v48, %v11269_v36 }
0x1324   : > { %v11320_v40 = vmul.f32 -0.33333334, %v4602_v4  ;;  %v4580_v63 = vmul.f32 %v4571_v20, %v4571_v20  ;;  %v4689_v38 = vpop.permute.xlu2 %4688  ;;  %v4680_v23 = vand.u32 2147483647, %v4671_v37  ;;  %v4683_v17 = vand.u32 2147483647, %v4674_v15 }
0x1325   : > { %v4713_v42 = vmul.f32 %v4689_v38, %v4677_v2  ;;  %v4676_v35 = vand.u32 2147483647, %v4667_v29  ;;  %v4673_v37 = vsub.f32 %v8053_v1, %v11318_v56 }
0x1326   : > { %v4625_v43 = vrot.slane %v11320_v40, 3  ;;  %v4588_v28 = vsel %vm4586_vm9, %v4580_v63, 0.0  ;;  %v4679_v63 = vand.u32 2147483647, %v4670_v14 }
0x1327   : > { %v4589_v44 = vadd.f32 %v4588_v28, %v4587_v33  ;;  %v4722_v21 = vmul.f32 %v4713_v42, %v4713_v42  ;;  %v4669_v33 = vsub.f32 %v13473_v27, %v11285_v41  ;;  %v4675_v41 = vand.u32 2147483647, %v4666_v22 }
0x1328   : > { %4631 = vrot.lane.b32.xlu1 %v4625_v43, %s7791_s7 }
0x1329   : > { %v11332_v54 = vpop.permute.xlu0 %4651  ;;  %v4741_v9 = vsel %vm4740_vm10, %v4722_v21, 0.0 }
0x132a   : > { %v4672_v48 = vsub.f32 %v13156_v34, %v11332_v54 }
0x132b   : > { %v4556_v16 = vpop.permute.xlu1 %4555 }
0x132c   : > { %v4575_v6 = vmul.f32 %v4556_v16, %v4539_v31  ;;  %v4695_v49 = vpop.permute.xlu2 %4694  ;;  %v4678_v31 = vand.u32 2147483647, %v4669_v33  ;;  %v4682_v16 = vand.u32 2147483647, %v4673_v37  ;;  %v4681_v42 = vand.u32 2147483647, %v4672_v48 }
0x132d   : > { %v4716_v30 = vmul.f32 %v4695_v49, %v4680_v23  ;;  %v4856_v48 = vld [vmem:[#allocation2 + $0x50] sm:$0xff] }
0x132e   : > { %v4584_v52 = vmul.f32 %v4575_v6, %v4575_v6 }
0x132f   : > { %v4725_v61 = vmul.f32 %v4716_v30, %v4716_v30 }
0x1330   : > { %v4595_v7 = vsel %vm2926_vm12, %v4584_v52, 0.0  ;;  %vm13516_vm12 = vmmov %vm13515_vm13 }
0x1331   : > { %v4596_v3 = vadd.f32 %v4595_v7, %v4594_v0  ;;  %v4554_v26 = vpop.permute.xlu0 %4553  ;;  %v4742_v46 = vsel %vm4740_vm10, %v4725_v61, 0.0  ;;  %vm13517_vm13 = vmmov %vm13516_vm12 }
0x1332   : > { %v4574_v45 = vmul.f32 %v4554_v26, %v4538_v50  ;;  %v4743_v5 = vadd.f32 %v4742_v46, %v4741_v9 }
0x1333   : > { %v11339_v32 = vmul.f32 -0.33333334, %v4596_v3  ;;  %v4687_v24 = vpop.permute.xlu1 %4686 }
0x1334   : > { %v4583_v18 = vmul.f32 %v4574_v45, %v4574_v45  ;;  %v4701_v55 = vpop.permute.xlu2 %4700 }
0x1335   : > { %v4623_v47 = vrot.slane %v11339_v32, 3  ;;  %v4719_v11 = vmul.f32 %v4701_v55, %v4683_v17 }
0x1336   : > { %v4590_v13 = vsel %vm4586_vm9, %v4583_v18, 0.0  ;;  %vm4729_vm9 = vcmask 162852  }
0x1337   : > { %v4591_v8 = vadd.f32 %v4590_v13, %v4589_v44  ;;  %v4728_v39 = vmul.f32 %v4719_v11, %v4719_v11  ;;  %v4626_v0 = vsel %vm13516_vm12, %v4623_v47, %v4625_v43  ;;  %v4712_v44 = vmul.f32 %v4687_v24, %v4676_v35 }
0x1338   : > { %4629 = vrot.lane.b32.xlu0 %v4626_v0, %s7791_s7 }
0x1339   : > { %v4603_v12 = vmul.f32 -0.33333334, %v4591_v8  ;;  %v4744_v4 = vsel %vm4740_vm10, %v4728_v39, 0.0  ;;  %v4685_v20 = vpop.permute.xlu0 %4684  ;;  %v4721_v19 = vmul.f32 %v4712_v44, %v4712_v44  ;;  %vm13518_vm10 = vmmov %vm13516_vm12 }
0x133a   : > { %v4745_v60 = vadd.f32 %v4744_v4, %v4743_v5  ;;  %v4711_v36 = vmul.f32 %v4685_v20, %v4675_v41 }
0x133b   : > { %v4622_v59 = vrot.slane %v4603_v12, 3  ;;  %v4693_v38 = vpop.permute.xlu1 %4692  ;;  %v4735_v2 = vsel %vm4065_vm15, %v4721_v19, 0.0  ;;  %v4832_v19 = vld [vmem:[#allocation2 + $0x30] sm:$0xff] }
0x133c   : > { %v11354_v28 = vmul.f32 -0.33333334, %v4745_v60  ;;  %v4715_v43 = vmul.f32 %v4693_v38, %v4679_v63  ;;  %v4720_v50 = vmul.f32 %v4711_v36, %v4711_v36 }
0x133d   : > { %v4624_v62 = vsel %vm13517_vm13, %v4622_v59, %v4623_v47 }
0x133e   : > { %v4768_v57 = vrot.slane %v11354_v28, 3  ;;  %4627 = vrot.lane.b32.xlu2 %v4624_v62, %s7791_s7  ;;  %v4724_v23 = vmul.f32 %v4715_v43, %v4715_v43  ;;  %v4730_v45 = vsel %vm4729_vm9, %v4720_v50, 0.0 }
0x1340   : > { %4774 = vrot.lane.b32.xlu1 %v4768_v57, %s7794_s16  ;;  %v4736_v1 = vsel %vm4065_vm15, %v4724_v23, 0.0 }
0x1341   : > { %v4691_v27 = vpop.permute.xlu0 %4690  ;;  %v4737_v15 = vadd.f32 %v4736_v1, %v4735_v2 }
0x1342   : > { %v4714_v6 = vmul.f32 %v4691_v27, %v4678_v31 }
0x1343   : > { %v4699_v49 = vpop.permute.xlu1 %4698 }
0x1344   : > { %v4718_v56 = vmul.f32 %v4699_v49, %v4682_v16  ;;  %v4723_v30 = vmul.f32 %v4714_v6, %v4714_v6  ;;  %v4820_v16 = vld [vmem:[#allocation2 + $0x20] sm:$0xff] }
0x1345   : > { %v4844_v49 = vld [vmem:[#allocation2 + $0x40] sm:$0xff] }
0x1346   : > { %v4727_v52 = vmul.f32 %v4718_v56, %v4718_v56  ;;  %v4731_v26 = vsel %vm4729_vm9, %v4723_v30, 0.0  ;;  %v4868_v56 = vld [vmem:[#allocation2 + $0x60] sm:$0xff] }
0x1347   : > { %v4732_v21 = vadd.f32 %v4731_v26, %v4730_v45  ;;  %v4904_v26 = vld [vmem:[#allocation2 + $0x90] sm:$0xff]  ;;  %v4916_v45 = vld [vmem:[#allocation2 + $0xa0] sm:$0xff] }
0x1348   : > { %v4738_v7 = vsel %vm4065_vm15, %v4727_v52, 0.0  ;;  %4609 = vrot.lane.b32.xlu1 %v4603_v12, %s7792_s8  ;;  %vm13519_vm15 = vmmov %vm13518_vm10 }
0x1349   : > { %v4739_v3 = vadd.f32 %v4738_v7, %v4737_v15  ;;  %v4697_v61 = vpop.permute.xlu0 %4696  ;;  %v4892_v7 = vld [vmem:[#allocation2 + $0x80] sm:$0xff] }
0x134a   : > { %v4717_v34 = vmul.f32 %v4697_v61, %v4681_v42 }
0x134b   : > { %v4747_v54 = vmul.f32 -0.33333334, %v4739_v3  ;;  %v4348_v13 = vpop.permute.xlu1 %4347 }
0x134c   : > { %v4726_v17 = vmul.f32 %v4717_v34, %v4717_v34  ;;  %v4354_v63 = vmax.f32 %v11076_v53, %v4348_v13 }
0x134d   : > { %v4766_v24 = vrot.slane %v4747_v54, 3 }
0x134e   : > { %v4733_v18 = vsel %vm4729_vm9, %v4726_v17, 0.0 }
0x134f   : > { %v4734_v55 = vadd.f32 %v4733_v18, %v4732_v21  ;;  %v4769_v47 = vsel %vm13518_vm10, %v4766_v24, %v4768_v57 }
0x1350   : > { %4772 = vrot.lane.b32.xlu0 %v4769_v47, %s7794_s16  ;;  %v4940_v47 = vld [vmem:[#allocation2 + $0xc0] sm:$0xff] }
0x1351   : > { %v4746_v46 = vmul.f32 -0.33333334, %v4734_v55  ;;  %v4346_v8 = vpop.permute.xlu0 %4345 }
0x1352   : > { %v4353_v60 = vmax.f32 %v4210_v10, %v4346_v8  ;;  %v4782_v10 = vld [vmem:[#allocation2] sm:$0xff]  ;;  %v4952_v8 = vld [vmem:[#allocation2 + $0xd0] sm:$0xff] }
0x1353   : > { %v4765_v11 = vrot.slane %v4746_v46, 3  ;;  %4752 = vrot.lane.b32.xlu1 %v4746_v46, %s7797_s4 }
0x1355   : > { %v4767_v14 = vsel %vm13519_vm15, %v4765_v11, %v4766_v24  ;;  %v4928_v24 = vld [vmem:[#allocation2 + $0xb0] sm:$0xff] }
0x1356   : > { %4770 = vrot.lane.b32.xlu2 %v4767_v14, %s7794_s16 }
0x1378   : > { %v4485_v0 = vpop.permute.xlu2 %4484 }
0x1379   : > { %v4493_v59 = vmax.f32 %v11212_v51, %v4485_v0  ;;  %v4808_v51 = vld [vmem:[#allocation2 + $0x10] sm:$0xff] }
0x137a   : > { %v4489_v9 = vpop.permute.xlu1 %4488 }
0x137b   : > { %v4495_v38 = vmax.f32 %v4354_v63, %v4489_v9 }
0x138a   : > { %v4487_v29 = vpop.permute.xlu0 %4486 }
0x138b   : > { %v4494_v33 = vmax.f32 %v4353_v60, %v4487_v29 }
0x1398   : > { %v4628_v12 = vpop.permute.xlu2 %4627 }
0x1399   : > { %v4636_v43 = vmax.f32 %v4493_v59, %v4628_v12 }
0x139a   : > { %v4632_v39 = vpop.permute.xlu1 %4631 }
0x139b   : > { %v4638_v62 = vmax.f32 %v4495_v38, %v4632_v39 }
0x13aa   : > { %v4630_v4 = vpop.permute.xlu0 %4629 }
0x13ab   : > { %v4637_v22 = vmax.f32 %v4494_v33, %v4630_v4 }
0x13b0   : > { %v4771_v35 = vpop.permute.xlu2 %4770 }
0x13b1   : > { %v4779_v37 = vmax.f32 %v4636_v43, %v4771_v35 }
0x13b2   : > { %v4775_v5 = vpop.permute.xlu1 %4774 }
0x13b3   : > { %v4781_v44 = vmax.f32 %v4638_v62, %v4775_v5  ;;  %v4787_v23 = vrot.slane %v4779_v37, 1 }
0x13b5   : > { %v4790_v53 = vrot.slane %v4781_v44, 1 }
0x13ba   : > { %v4610_v20 = vpop.permute.xlu1 %4609 }
0x13bb   : > { %4619 = vst.msk [vmem:[#allocation2 + $0xdc] sm:$0xf0] %vm4452_vm2, %v4610_v20 }
0x13c2   : > { %v4773_v57 = vpop.permute.xlu0 %4772 }
0x13c3   : > { %v4780_v31 = vmax.f32 %v4637_v22, %v4773_v57 }
0x13c5   : > { %v4788_v27 = vrot.slane %v4780_v31, 1  ;;  %v4753_v41 = vpop.permute.xlu1 %4752 }
0x13c6   : > { %4762 = vst.msk [vmem:[#allocation2 + $0xec] sm:$0xf0] %vm4452_vm2, %v4753_v41 }
0x13c7   : > { %v4791_v25 = vsel %vm452_vm4, %v4788_v27, %v4790_v53  ;;  %v4789_v58 = vsel %vm452_vm4, %v4787_v23, %v4788_v27 }
0x13c8   : > { %4794 = vrot.lane.b32.xlu0 %v4791_v25, %s7791_s7  ;;  %4792 = vrot.lane.b32.xlu2 %v4789_v58, %s7791_s7 }
0x13d0   : > { %4613 = vrot.lane.b32.xlu0 %v11320_v40, %s7792_s8  ;;  %4611 = vrot.lane.b32.xlu2 %v11339_v32, %s7792_s8 }
0x13d8   : > { %4756 = vrot.lane.b32.xlu0 %v11354_v28, %s7797_s4  ;;  %4754 = vrot.lane.b32.xlu2 %v4747_v54, %s7797_s4  ;;  %v4880_v28 = vld [vmem:[#allocation2 + $0x70] sm:$0xff] }
0x1422   : > { %v11393_v6 = vpop.permute.xlu2 %4792 }
0x1423   : > { %v4798_v36 = vsub.f32 %v4782_v10, %v11393_v6  ;;  %v4810_v40 = vsub.f32 %v4808_v51, %v11393_v6  ;;  %v4822_v1 = vsub.f32 %v4820_v16, %v11393_v6  ;;  %v4834_v32 = vsub.f32 %v4832_v19, %v11393_v6 }
0x1424   : > { %v4846_v2 = vsub.f32 %v4844_v49, %v11393_v6  ;;  %v4858_v30 = vsub.f32 %v4856_v48, %v11393_v6  ;;  %v4870_v50 = vsub.f32 %v4868_v56, %v11393_v6  ;;  %v4882_v61 = vsub.f32 %v4880_v28, %v11393_v6 }
0x1425   : > { %v4800_v52 = vmul.f32 1.442695, %v4798_v36  ;;  %v4812_v15 = vmul.f32 1.442695, %v4810_v40  ;;  %v4824_v42 = vmul.f32 1.442695, %v4822_v1  ;;  %v4894_v54 = vsub.f32 %v4892_v7, %v11393_v6 }
0x1426   : > { %v4836_v3 = vmul.f32 1.442695, %v4834_v32  ;;  %v4848_v34 = vmul.f32 1.442695, %v4846_v2  ;;  %v4860_v17 = vmul.f32 1.442695, %v4858_v30  ;;  %v4906_v21 = vsub.f32 %v4904_v26, %v11393_v6 }
0x1427   : > { %7554 = vpow2.f32 %v4800_v52  ;;  %v4872_v18 = vmul.f32 1.442695, %v4870_v50  ;;  %v4918_v55 = vsub.f32 %v4916_v45, %v11393_v6  ;;  %v4884_v46 = vmul.f32 1.442695, %v4882_v61  ;;  %v4783_v30 = vld [vmem:[#allocation2 + $0x8] sm:$0xff]  ;;  %v4809_v52 = vld [vmem:[#allocation2 + $0x18] sm:$0xff] }
0x1428   : > { %7556 = vpow2.f32 %v4812_v15  ;;  %v4930_v11 = vsub.f32 %v4928_v24, %v11393_v6  ;;  %v4896_v13 = vmul.f32 1.442695, %v4894_v54  ;;  %v4942_v9 = vsub.f32 %v4940_v47, %v11393_v6  ;;  %v4821_v15 = vld [vmem:[#allocation2 + $0x28] sm:$0xff]  ;;  %v4833_v7 = vld [vmem:[#allocation2 + $0x38] sm:$0xff] }
0x1429   : > { %7558 = vpow2.f32 %v4824_v42  ;;  %v4908_v39 = vmul.f32 1.442695, %v4906_v21  ;;  %v4954_v0 = vsub.f32 %v4952_v8, %v11393_v6  ;;  %v4920_v5 = vmul.f32 1.442695, %v4918_v55  ;;  %v4857_v61 = vld [vmem:[#allocation2 + $0x58] sm:$0xff] }
0x142a   : > { %7560 = vpow2.f32 %v4836_v3  ;;  %v4612_v14 = vpop.permute.xlu2 %4611  ;;  %v4932_v4 = vmul.f32 1.442695, %v4930_v11  ;;  %v4944_v60 = vmul.f32 1.442695, %v4942_v9  ;;  %v4845_v3 = vld [vmem:[#allocation2 + $0x48] sm:$0xff] }
0x142b   : > { %7562 = vpow2.f32 %v4848_v34  ;;  %4620 = vst.msk [vmem:[#allocation2 + $0xe4] sm:$0xff] %vm2817_vm0, %v4612_v14  ;;  %v4956_v38 = vmul.f32 1.442695, %v4954_v0 }
0x142c   : > { %7564 = vpow2.f32 %v4860_v17  ;;  %v4869_v17 = vld [vmem:[#allocation2 + $0x68] sm:$0xff] }
0x142d   : > { %v7555_v29 = vpop.eup %7554  ;;  %7566 = vpow2.f32 %v4872_v18 }
0x142e   : > { %v7557_v12 = vpop.eup %7556  ;;  %4804 = vst.msk [vmem:[#allocation2] sm:$0xff] %vm2817_vm0, %v7555_v29  ;;  %7568 = vpow2.f32 %v4884_v46 }
0x142f   : > { %v7559_v20 = vpop.eup %7558  ;;  %4816 = vst.msk [vmem:[#allocation2 + $0x10] sm:$0xff] %vm2817_vm0, %v7557_v12  ;;  %v4818_v63 = vadd.f32 %v7557_v12, %v7555_v29  ;;  %7570 = vpow2.f32 %v4896_v13 }
0x1430   : > { %v7561_v59 = vpop.eup %7560  ;;  %4828 = vst.msk [vmem:[#allocation2 + $0x20] sm:$0xff] %vm2817_vm0, %v7559_v20  ;;  %7572 = vpow2.f32 %v4908_v39 }
0x1431   : > { %v7563_v35 = vpop.eup %7562  ;;  %v4830_v33 = vadd.f32 %v7559_v20, %v4818_v63  ;;  %4840 = vst.msk [vmem:[#allocation2 + $0x30] sm:$0xff] %vm2817_vm0, %v7561_v59  ;;  %7574 = vpow2.f32 %v4920_v5 }
0x1432   : > { %v7565_v43 = vpop.eup %7564  ;;  %4852 = vst.msk [vmem:[#allocation2 + $0x40] sm:$0xff] %vm2817_vm0, %v7563_v35  ;;  %7576 = vpow2.f32 %v4932_v4  ;;  %v4964_v62 = vld [vmem:[#allocation2 + $0xe0] sm:$0xff]  ;;  %v4755_v16 = vpop.permute.xlu2 %4754 }
0x1433   : > { %v7567_v22 = vpop.eup %7566  ;;  %v4842_v37 = vadd.f32 %v7561_v59, %v4830_v33  ;;  %4864 = vst.msk [vmem:[#allocation2 + $0x50] sm:$0xff] %vm2817_vm0, %v7565_v43  ;;  %7578 = vpow2.f32 %v4944_v60  ;;  %v4966_v44 = vsub.f32 %v4964_v62, %v11393_v6  ;;  %v4881_v60 = vld [vmem:[#allocation2 + $0x78] sm:$0xff] }
0x1434   : > { %v7569_v57 = vpop.eup %7568  ;;  %4876 = vst.msk [vmem:[#allocation2 + $0x60] sm:$0xff] %vm2817_vm0, %v7567_v22  ;;  %7580 = vpow2.f32 %v4956_v38  ;;  %v4893_v38 = vld [vmem:[#allocation2 + $0x88] sm:$0xff]  ;;  %v4905_v62 = vld [vmem:[#allocation2 + $0x98] sm:$0xff] }
0x1435   : > { %v7571_v31 = vpop.eup %7570  ;;  %v4854_v23 = vadd.f32 %v7563_v35, %v4842_v37  ;;  %4888 = vst.msk [vmem:[#allocation2 + $0x70] sm:$0xff] %vm2817_vm0, %v7569_v57  ;;  %v4968_v53 = vmul.f32 1.442695, %v4966_v44  ;;  %v4990_v37 = vld [vmem:[#allocation2] sm:$0xff] }
0x1436   : > { %v7573_v27 = vpop.eup %7572  ;;  %4900 = vst.msk [vmem:[#allocation2 + $0x80] sm:$0xff] %vm2817_vm0, %v7571_v31 }
0x1437   : > { %v7575_v41 = vpop.eup %7574  ;;  %v4866_v25 = vadd.f32 %v7565_v43, %v4854_v23  ;;  %4912 = vst.msk [vmem:[#allocation2 + $0x90] sm:$0xff] %vm2817_vm0, %v7573_v27  ;;  %7582 = vpow2.f32 %v4968_v53  ;;  %v5006_v23 = vld [vmem:[#allocation2 + $0x20] sm:$0xff] }
0x1438   : > { %v7577_v58 = vpop.eup %7576  ;;  %4924 = vst.msk [vmem:[#allocation2 + $0xa0] sm:$0xff] %vm2817_vm0, %v7575_v41  ;;  %v5014_v53 = vld [vmem:[#allocation2 + $0x30] sm:$0xff] }
0x1439   : > { %v7579_v10 = vpop.eup %7578  ;;  %v4878_v51 = vadd.f32 %v7567_v22, %v4866_v25  ;;  %4936 = vst.msk [vmem:[#allocation2 + $0xb0] sm:$0xff] %vm2817_vm0, %v7577_v58  ;;  %v4917_v22 = vld [vmem:[#allocation2 + $0xa8] sm:$0xff] }
0x143a   : > { %v7581_v19 = vpop.eup %7580  ;;  %4948 = vst.msk [vmem:[#allocation2 + $0xc0] sm:$0xff] %vm2817_vm0, %v7579_v10  ;;  %v11428_v50 = vpop.permute.xlu0 %4794 }
0x143b   : > { %v4890_v49 = vadd.f32 %v7569_v57, %v4878_v51  ;;  %4960 = vst.msk [vmem:[#allocation2 + $0xd0] sm:$0xff] %vm2817_vm0, %v7581_v19  ;;  %v4799_v34 = vsub.f32 %v4783_v30, %v11428_v50  ;;  %v4811_v54 = vsub.f32 %v4809_v52, %v11428_v50  ;;  %v4823_v45 = vsub.f32 %v4821_v15, %v11428_v50  ;;  %v5030_v51 = vld [vmem:[#allocation2 + $0x50] sm:$0xff] }
0x143c   : > { %4763 = vst.msk [vmem:[#allocation2 + $0xf4] sm:$0xff] %vm2817_vm0, %v4755_v16  ;;  %v4847_v21 = vsub.f32 %v4845_v3, %v11428_v50  ;;  %v4859_v24 = vsub.f32 %v4857_v61, %v11428_v50  ;;  %v4871_v11 = vsub.f32 %v4869_v17, %v11428_v50  ;;  %v4883_v33 = vsub.f32 %v4881_v60, %v11428_v50 }
0x143d   : > { %v7583_v48 = vpop.eup %7582  ;;  %v4902_v36 = vadd.f32 %v7571_v31, %v4890_v49  ;;  %v4802_v18 = vmul.f32 1.442695, %v4799_v34  ;;  %v4814_v55 = vmul.f32 1.442695, %v4811_v54  ;;  %v4826_v47 = vmul.f32 1.442695, %v4823_v45 }
0x143e   : > { %4972 = vst.msk [vmem:[#allocation2 + $0xe0] sm:$0xff] %vm2817_vm0, %v7583_v48  ;;  %v4850_v13 = vmul.f32 1.442695, %v4847_v21  ;;  %v4862_v9 = vmul.f32 1.442695, %v4859_v24  ;;  %v4998_v31 = vld [vmem:[#allocation2 + $0x10] sm:$0xff]  ;;  %v4919_v25 = vsub.f32 %v4917_v22, %v11428_v50 }
0x143f   : > { %v4914_v40 = vadd.f32 %v7573_v27, %v4902_v36  ;;  %v4874_v39 = vmul.f32 1.442695, %v4871_v11  ;;  %v4895_v27 = vsub.f32 %v4893_v38, %v11428_v50  ;;  %v5038_v36 = vld [vmem:[#allocation2 + $0x60] sm:$0xff]  ;;  %v4941_v45 = vld [vmem:[#allocation2 + $0xc8] sm:$0xff] }
0x1440   : > { %v5078_v24 = vld [vmem:[#allocation2 + $0xb0] sm:$0xff] }
0x1441   : > { %v4926_v1 = vadd.f32 %v7575_v41, %v4914_v40  ;;  %v4907_v41 = vsub.f32 %v4905_v62, %v11428_v50  ;;  %v5046_v40 = vld [vmem:[#allocation2 + $0x70] sm:$0xff]  ;;  %v4898_v61 = vmul.f32 1.442695, %v4895_v27  ;;  %v5086_v11 = vld [vmem:[#allocation2 + $0xc0] sm:$0xff] }
0x1442   : > { %v4614_v0 = vpop.permute.xlu0 %4613 }
0x1443   : > { %v4938_v32 = vadd.f32 %v7577_v58, %v4926_v1  ;;  %v4976_v56 = vld [vmem:[#allocation2 + $0xf0] sm:$0xff]  ;;  %4621 = vst.msk [vmem:[#allocation2 + $0xec] sm:$0xf] %vm4463_vm7, %v4614_v0  ;;  %v4910_v21 = vmul.f32 1.442695, %v4907_v41 }
0x1444   : > { %v4978_v28 = vsub.f32 %v4976_v56, %v11393_v6  ;;  %v4835_v6 = vsub.f32 %v4833_v7, %v11428_v50 }
0x1445   : > { %v4950_v2 = vadd.f32 %v7579_v10, %v4938_v32  ;;  %v5022_v10 = vld [vmem:[#allocation2 + $0x40] sm:$0xff] }
0x1446   : > { %v4980_v42 = vmul.f32 1.442695, %v4978_v28  ;;  %v4838_v46 = vmul.f32 1.442695, %v4835_v6  ;;  %v4886_v28 = vmul.f32 1.442695, %v4883_v33 }
0x1447   : > { %v4962_v26 = vadd.f32 %v7581_v19, %v4950_v2 }
0x1448   : > { %7584 = vpow2.f32 %v4980_v42  ;;  %v4929_v42 = vld [vmem:[#allocation2 + $0xb8] sm:$0xff] }
0x1449   : > { %v4974_v14 = vadd.f32 %v7583_v48, %v4962_v26  ;;  %7586 = vpow2.f32 %v4802_v18  ;;  %v5062_v26 = vld [vmem:[#allocation2 + $0x90] sm:$0xff]  ;;  %v4931_v54 = vsub.f32 %v4929_v42, %v11428_v50 }
0x144a   : > { %7588 = vpow2.f32 %v4814_v55  ;;  %v4757_v44 = vpop.permute.xlu0 %4756 }
0x144b   : > { %7590 = vpow2.f32 %v4826_v47  ;;  %4764 = vst.msk [vmem:[#allocation2 + $0xfc] sm:$0xf] %vm4463_vm7, %v4757_v44  ;;  %v4922_v47 = vmul.f32 1.442695, %v4919_v25  ;;  %v4934_v60 = vmul.f32 1.442695, %v4931_v54 }
0x144c   : > { %7592 = vpow2.f32 %v4838_v46  ;;  %v5054_v46 = vld [vmem:[#allocation2 + $0x80] sm:$0xff] }
0x144d   : > { %7594 = vpow2.f32 %v4850_v13 }
0x144e   : > { %v7585_v8 = vpop.eup %7584  ;;  %7596 = vpow2.f32 %v4862_v9  ;;  %v4943_v9 = vsub.f32 %v4941_v45, %v11428_v50 }
0x144f   : > { %4984 = vst.msk [vmem:[#allocation2 + $0xf0] sm:$0xff] %vm2817_vm0, %v7585_v8  ;;  %v4986_v29 = vadd.f32 %v7585_v8, %v4974_v14  ;;  %v7587_v5 = vpop.eup %7586  ;;  %v4965_v8 = vld [vmem:[#allocation2 + $0xe8] sm:$0xff] }
0x1450   : > { %v7589_v12 = vpop.eup %7588  ;;  %4805 = vst.msk [vmem:[#allocation2 + $0x8] sm:$0xff] %vm2817_vm0, %v7587_v5  ;;  %v4967_v62 = vsub.f32 %v4965_v8, %v11428_v50 }
0x1451   : > { %7598 = vrcp.f32 %v4986_v29  ;;  %v7591_v4 = vpop.eup %7590  ;;  %4817 = vst.msk [vmem:[#allocation2 + $0x18] sm:$0xff] %vm2817_vm0, %v7589_v12  ;;  %v4819_v20 = vadd.f32 %v7589_v12, %v7587_v5  ;;  %v4953_v12 = vld [vmem:[#allocation2 + $0xd8] sm:$0xff] }
0x1452   : > { %7600 = vpow2.f32 %v4874_v39  ;;  %v7593_v63 = vpop.eup %7592  ;;  %4829 = vst.msk [vmem:[#allocation2 + $0x28] sm:$0xff] %vm2817_vm0, %v7591_v4  ;;  %v5070_v39 = vld [vmem:[#allocation2 + $0xa0] sm:$0xff] }
0x1453   : > { %v7595_v59 = vpop.eup %7594  ;;  %v4831_v35 = vadd.f32 %v7591_v4, %v4819_v20  ;;  %4841 = vst.msk [vmem:[#allocation2 + $0x38] sm:$0xff] %vm2817_vm0, %v7593_v63  ;;  %7602 = vpow2.f32 %v4886_v28  ;;  %v4977_v4 = vld [vmem:[#allocation2 + $0xf8] sm:$0xff]  ;;  %v5102_v20 = vld [vmem:[#allocation2 + $0xe0] sm:$0xff] }
0x1454   : > { %v11444_v43 = vpop.eup %7596  ;;  %4853 = vst.msk [vmem:[#allocation2 + $0x48] sm:$0xff] %vm2817_vm0, %v7595_v59  ;;  %7604 = vpow2.f32 %v4898_v61  ;;  %v4979_v44 = vsub.f32 %v4977_v4, %v11428_v50 }
0x1455   : > { %4865 = vst.msk [vmem:[#allocation2 + $0x58] sm:$0xff] %vm2817_vm0, %v11444_v43  ;;  %v4843_v56 = vadd.f32 %v7593_v63, %v4831_v35  ;;  %7606 = vpow2.f32 %v4910_v21 }
0x1456   : > { %7608 = vpow2.f32 %v4922_v47 }
0x1457   : > { %v11447_v57 = vpop.eup %7598  ;;  %v4855_v55 = vadd.f32 %v7595_v59, %v4843_v56  ;;  %v4955_v59 = vsub.f32 %v4953_v12, %v11428_v50  ;;  %7610 = vpow2.f32 %v4934_v60 }
0x1458   : > { %v7601_v58 = vpop.eup %7600  ;;  %v4992_v16 = vmul.f32 %v11447_v57, %v4990_v37  ;;  %v5000_v19 = vmul.f32 %v11447_v57, %v4998_v31  ;;  %v5008_v49 = vmul.f32 %v11447_v57, %v5006_v23  ;;  %v5016_v48 = vmul.f32 %v11447_v57, %v5014_v53  ;;  %v5094_v31 = vld [vmem:[#allocation2 + $0xd0] sm:$0xff]  ;;  %v4999_v61 = vld [vmem:[#allocation2 + $0x18] sm:$0xff] }
0x1459   : > { %v5024_v1 = vmul.f32 %v11447_v57, %v5022_v10  ;;  %v5032_v32 = vmul.f32 %v11447_v57, %v5030_v51  ;;  %4877 = vst.msk [vmem:[#allocation2 + $0x68] sm:$0xff] %vm2817_vm0, %v7601_v58  ;;  %v5040_v15 = vmul.f32 %v11447_v57, %v5038_v36  ;;  %v5048_v3 = vmul.f32 %v11447_v57, %v5046_v40  ;;  %v5110_v10 = vld [vmem:[#allocation2 + $0xf0] sm:$0xff] }
0x145a   : > { %v4994_v2 = vadd.f32 6.3597337e-13, %v4992_v16  ;;  %v5002_v30 = vadd.f32 0.0025, %v5000_v19  ;;  %v5010_v52 = vadd.f32 6.3597337e-13, %v5008_v49  ;;  %v5064_v6 = vmul.f32 %v11447_v57, %v5062_v26 }
0x145b   : > { %v5018_v7 = vadd.f32 0.0025, %v5016_v48  ;;  %v5026_v34 = vadd.f32 0.0025, %v5024_v1  ;;  %v5034_v17 = vadd.f32 6.3597337e-13, %v5032_v32  ;;  %v5080_v13 = vmul.f32 %v11447_v57, %v5078_v24 }
0x145c   : > { %4996 = vst.msk [vmem:[#allocation2] sm:$0xff] %vm2817_vm0, %v4994_v2  ;;  %v5042_v18 = vadd.f32 0.0025, %v5040_v15  ;;  %v5050_v14 = vadd.f32 6.3597337e-13, %v5048_v3  ;;  %v5056_v0 = vmul.f32 %v11447_v57, %v5054_v46  ;;  %v5088_v29 = vmul.f32 %v11447_v57, %v5086_v11  ;;  %v5007_v26 = vld [vmem:[#allocation2 + $0x28] sm:$0xff] }
0x145d   : > { %5004 = vst.msk [vmem:[#allocation2 + $0x10] sm:$0xff] %vm2817_vm0, %v5002_v30  ;;  %v4867_v5 = vadd.f32 %v11444_v43, %v4855_v55  ;;  %v5066_v63 = vadd.f32 4.1156346e-32, %v5064_v6  ;;  %v5072_v38 = vmul.f32 %v11447_v57, %v5070_v39  ;;  %v5104_v35 = vmul.f32 %v11447_v57, %v5102_v20  ;;  %v7603_v43 = vpop.eup %7602  ;;  %v5023_v54 = vld [vmem:[#allocation2 + $0x48] sm:$0xff]  ;;  %v5031_v45 = vld [vmem:[#allocation2 + $0x58] sm:$0xff] }
0x145e   : > { %5012 = vst.msk [vmem:[#allocation2 + $0x20] sm:$0xff] %vm2817_vm0, %v5010_v52  ;;  %v5082_v22 = vadd.f32 4.1156346e-32, %v5080_v13  ;;  %v4946_v37 = vmul.f32 1.442695, %v4943_v9  ;;  %v7605_v27 = vpop.eup %7604  ;;  %v5096_v41 = vmul.f32 %v11447_v57, %v5094_v31  ;;  %v5112_v50 = vmul.f32 %v11447_v57, %v5110_v10 }
0x145f   : > { %5020 = vst.msk [vmem:[#allocation2 + $0x30] sm:$0xff] %vm2817_vm0, %v5018_v7  ;;  %v4879_v33 = vadd.f32 %v7601_v58, %v4867_v5  ;;  %v5090_v23 = vadd.f32 4.1156346e-32, %v5088_v29  ;;  %v4958_v25 = vmul.f32 1.442695, %v4955_v59  ;;  %v7607_v19 = vpop.eup %7606  ;;  %v4991_v7 = vld [vmem:[#allocation2 + $0x8] sm:$0xff] }
0x1460   : > { %5028 = vst.msk [vmem:[#allocation2 + $0x40] sm:$0xff] %vm2817_vm0, %v5026_v34  ;;  %v5106_v58 = vadd.f32 4.1156346e-32, %v5104_v35  ;;  %v4970_v16 = vmul.f32 1.442695, %v4967_v62  ;;  %7612 = vpow2.f32 %v4946_v37  ;;  %v7609_v36 = vpop.eup %7608  ;;  %v5015_v34 = vld [vmem:[#allocation2 + $0x38] sm:$0xff] }
0x1461   : > { %5036 = vst.msk [vmem:[#allocation2 + $0x50] sm:$0xff] %vm2817_vm0, %v5034_v17  ;;  %v4891_v53 = vadd.f32 %v7603_v43, %v4879_v33  ;;  %v4982_v49 = vmul.f32 1.442695, %v4979_v44  ;;  %7614 = vpow2.f32 %v4958_v25  ;;  %v7611_v1 = vpop.eup %7610 }
0x1462   : > { %5044 = vst.msk [vmem:[#allocation2 + $0x60] sm:$0xff] %vm2817_vm0, %v5042_v18  ;;  %7616 = vpow2.f32 %v4970_v16  ;;  %v5039_v18 = vld [vmem:[#allocation2 + $0x68] sm:$0xff] }
0x1463   : > { %5052 = vst.msk [vmem:[#allocation2 + $0x70] sm:$0xff] %vm2817_vm0, %v5050_v14  ;;  %v4903_v51 = vadd.f32 %v7605_v27, %v4891_v53  ;;  %7618 = vpow2.f32 %v4982_v49 }
0x1464   : > { %5060 = vst.msk [vmem:[#allocation2 + $0x80] sm:$0xff] %vm2817_vm0, %v5056_v0 }
0x1465   : > { %5068 = vst.msk [vmem:[#allocation2 + $0x90] sm:$0xff] %vm2817_vm0, %v5066_v63  ;;  %v4915_v48 = vadd.f32 %v7607_v19, %v4903_v51 }
0x1466   : > { %5076 = vst.msk [vmem:[#allocation2 + $0xa0] sm:$0xff] %vm2817_vm0, %v5072_v38  ;;  %v7613_v32 = vpop.eup %7612 }
0x1467   : > { %5084 = vst.msk [vmem:[#allocation2 + $0xb0] sm:$0xff] %vm2817_vm0, %v5082_v22  ;;  %v4927_v40 = vadd.f32 %v7609_v36, %v4915_v48  ;;  %v7615_v28 = vpop.eup %7614 }
0x1468   : > { %5092 = vst.msk [vmem:[#allocation2 + $0xc0] sm:$0xff] %vm2817_vm0, %v5090_v23  ;;  %v7617_v2 = vpop.eup %7616 }
0x1469   : > { %5100 = vst.msk [vmem:[#allocation2 + $0xd0] sm:$0xff] %vm2817_vm0, %v5096_v41  ;;  %v4939_v57 = vadd.f32 %v7611_v1, %v4927_v40  ;;  %v7619_v52 = vpop.eup %7618 }
0x146a   : > { %5108 = vst.msk [vmem:[#allocation2 + $0xe0] sm:$0xff] %vm2817_vm0, %v5106_v58 }
0x146b   : > { %5116 = vst.msk [vmem:[#allocation2 + $0xf0] sm:$0xff] %vm2817_vm0, %v5112_v50  ;;  %v4951_v56 = vadd.f32 %v7613_v32, %v4939_v57 }
0x146c   : > { %4889 = vst.msk [vmem:[#allocation2 + $0x78] sm:$0xff] %vm2817_vm0, %v7603_v43 }
0x146d   : > { %4901 = vst.msk [vmem:[#allocation2 + $0x88] sm:$0xff] %vm2817_vm0, %v7605_v27  ;;  %v4963_v30 = vadd.f32 %v7615_v28, %v4951_v56 }
0x146e   : > { %4913 = vst.msk [vmem:[#allocation2 + $0x98] sm:$0xff] %vm2817_vm0, %v7607_v19 }
0x146f   : > { %4925 = vst.msk [vmem:[#allocation2 + $0xa8] sm:$0xff] %vm2817_vm0, %v7609_v36  ;;  %v4975_v15 = vadd.f32 %v7617_v2, %v4963_v30 }
0x1470   : > { %4937 = vst.msk [vmem:[#allocation2 + $0xb8] sm:$0xff] %vm2817_vm0, %v7611_v1 }
0x1471   : > { %4949 = vst.msk [vmem:[#allocation2 + $0xc8] sm:$0xff] %vm2817_vm0, %v7613_v32  ;;  %v4987_v42 = vadd.f32 %v7619_v52, %v4975_v15 }
0x1472   : > { %4961 = vst.msk [vmem:[#allocation2 + $0xd8] sm:$0xff] %vm2817_vm0, %v7615_v28 }
0x1473   : > { %4973 = vst.msk [vmem:[#allocation2 + $0xe8] sm:$0xff] %vm2817_vm0, %v7617_v2  ;;  %7620 = vrcp.f32 %v4987_v42  ;;  %v5047_v55 = vld [vmem:[#allocation2 + $0x78] sm:$0xff] }
0x1474   : > { %4985 = vst.msk [vmem:[#allocation2 + $0xf8] sm:$0xff] %vm2817_vm0, %v7619_v52  ;;  %v5055_v63 = vld [vmem:[#allocation2 + $0x88] sm:$0xff] }
0x1475   : > { %v5063_v0 = vld [vmem:[#allocation2 + $0x98] sm:$0xff] }
0x1476   : > { %v5071_v62 = vld [vmem:[#allocation2 + $0xa8] sm:$0xff] }
0x1477   : > { %v5079_v4 = vld [vmem:[#allocation2 + $0xb8] sm:$0xff] }
0x1478   : > { %v5087_v60 = vld [vmem:[#allocation2 + $0xc8] sm:$0xff] }
0x1479   : > { %v7621_v3 = vpop.eup %7620  ;;  %v5095_v23 = vld [vmem:[#allocation2 + $0xd8] sm:$0xff] }
0x147a   : > { %v4993_v17 = vmul.f32 %v7621_v3, %v4991_v7  ;;  %v5001_v6 = vmul.f32 %v7621_v3, %v4999_v61  ;;  %v5009_v21 = vmul.f32 %v7621_v3, %v5007_v26  ;;  %v5017_v24 = vmul.f32 %v7621_v3, %v5015_v34  ;;  %v5103_v43 = vld [vmem:[#allocation2 + $0xe8] sm:$0xff] }
0x147b   : > { %v5025_v47 = vmul.f32 %v7621_v3, %v5023_v54  ;;  %v5033_v46 = vmul.f32 %v7621_v3, %v5031_v45  ;;  %v5041_v9 = vmul.f32 %v7621_v3, %v5039_v18  ;;  %v5049_v39 = vmul.f32 %v7621_v3, %v5047_v55  ;;  %v5111_v25 = vld [vmem:[#allocation2 + $0xf8] sm:$0xff] }
0x147c   : > { %v4995_v11 = vadd.f32 6.3597337e-13, %v4993_v17  ;;  %v5003_v14 = vadd.f32 0.0025, %v5001_v6  ;;  %v5011_v13 = vadd.f32 6.3597337e-13, %v5009_v21  ;;  %v5065_v12 = vmul.f32 %v7621_v3, %v5063_v0 }
0x147d   : > { %v5019_v8 = vadd.f32 0.0025, %v5017_v24  ;;  %v5027_v29 = vadd.f32 0.0025, %v5025_v47  ;;  %v5035_v5 = vadd.f32 6.3597337e-13, %v5033_v46  ;;  %v5081_v38 = vmul.f32 %v7621_v3, %v5079_v4 }
0x147e   : > { %4997 = vst.msk [vmem:[#allocation2 + $0x8] sm:$0xff] %vm2817_vm0, %v4995_v11  ;;  %v5043_v20 = vadd.f32 0.0025, %v5041_v9  ;;  %v5051_v59 = vadd.f32 6.3597337e-13, %v5049_v39  ;;  %v5057_v35 = vmul.f32 %v7621_v3, %v5055_v63  ;;  %v5089_v33 = vmul.f32 %v7621_v3, %v5087_v60 }
0x147f   : > { %5005 = vst.msk [vmem:[#allocation2 + $0x18] sm:$0xff] %vm2817_vm0, %v5003_v14  ;;  %v5067_v22 = vadd.f32 4.1156346e-32, %v5065_v12  ;;  %v5073_v37 = vmul.f32 %v7621_v3, %v5071_v62  ;;  %v5105_v44 = vmul.f32 %v7621_v3, %v5103_v43  ;;  %v5083_v31 = vadd.f32 4.1156346e-32, %v5081_v38 }
0x1480   : > { %5013 = vst.msk [vmem:[#allocation2 + $0x28] sm:$0xff] %vm2817_vm0, %v5011_v13  ;;  %v5091_v53 = vadd.f32 4.1156346e-32, %v5089_v33  ;;  %v5097_v27 = vmul.f32 %v7621_v3, %v5095_v23  ;;  %v5113_v58 = vmul.f32 %v7621_v3, %v5111_v25 }
0x1481   : > { %5021 = vst.msk [vmem:[#allocation2 + $0x38] sm:$0xff] %vm2817_vm0, %v5019_v8  ;;  %v5107_v41 = vadd.f32 4.1156346e-32, %v5105_v44 }
0x1482   : > { %5029 = vst.msk [vmem:[#allocation2 + $0x48] sm:$0xff] %vm2817_vm0, %v5027_v29 }
0x1483   : > { %5037 = vst.msk [vmem:[#allocation2 + $0x58] sm:$0xff] %vm2817_vm0, %v5035_v5 }
0x1484   : > { %5045 = vst.msk [vmem:[#allocation2 + $0x68] sm:$0xff] %vm2817_vm0, %v5043_v20 }
0x1485   : > { %5053 = vst.msk [vmem:[#allocation2 + $0x78] sm:$0xff] %vm2817_vm0, %v5051_v59 }
0x1486   : > { %5061 = vst.msk [vmem:[#allocation2 + $0x88] sm:$0xff] %vm2817_vm0, %v5057_v35 }
0x1487   : > { %5069 = vst.msk [vmem:[#allocation2 + $0x98] sm:$0xff] %vm2817_vm0, %v5067_v22 }
0x1488   : > { %5077 = vst.msk [vmem:[#allocation2 + $0xa8] sm:$0xff] %vm2817_vm0, %v5073_v37 }
0x1489   : > { %5085 = vst.msk [vmem:[#allocation2 + $0xb8] sm:$0xff] %vm2817_vm0, %v5083_v31 }
0x148a   : > { %5093 = vst.msk [vmem:[#allocation2 + $0xc8] sm:$0xff] %vm2817_vm0, %v5091_v53 }
0x148b   : > { %5101 = vst.msk [vmem:[#allocation2 + $0xd8] sm:$0xff] %vm2817_vm0, %v5097_v27 }
0x148c   : > { %5109 = vst.msk [vmem:[#allocation2 + $0xe8] sm:$0xff] %vm2817_vm0, %v5107_v41 }
0x148d   : > { %5117 = vst.msk [vmem:[#allocation2 + $0xf8] sm:$0xff] %vm2817_vm0, %v5113_v58 }
0x148e LB: >> { %v5146_v10 = vld [vmem:[#allocation3 + $0x10] sm:$0xff]  ;;  %v5147_v51 = vld [vmem:[#allocation3 + $0x18] sm:$0xff]  ;;  %v5145_v16 = vld [vmem:[#allocation3 + $0x8] sm:$0xff]  ;;  %v7798_v19 = vmov 0   ;;  %v7799_v63 = vmov 15   ;;  %s7800_s27 = smov 2   ;;  %s7784_s30 = sphi %s11523_s30, %s5143_s30  }
0x148f   : >> { %7642 = vset.pattern.permute.xlu2 %v7798_v19  ;;  %7641 = vset.pattern.permute.xlu1 %v7798_v19  ;;  %v5177_v50 = vrot.slane %v5146_v10, 6  ;;  %v5178_v49 = vrot.slane %v5147_v51, 6  ;;  %v5159_v48 = vperm.slane %v5145_v16, 7  ;;  %v5175_v36 = vrot.slane %v5145_v16, 6  ;;  %v5144_v40 = vld [vmem:[#allocation3] sm:$0xff]  ;;  %v5149_v7 = vld [vmem:[#allocation3 + $0x28] sm:$0xff] }
0x1490   : >> { %7640 = vset.pattern.permute.xlu0 %v7798_v19  ;;  %v5154_v1 = vperm.slane %v5144_v40, 0  ;;  %v5174_v57 = vrot.slane %v5144_v40, 6  ;;  %v5160_v2 = vperm.slane %v5147_v51, 7  ;;  %v5155_v30 = vperm.slane %v5146_v10, 0  ;;  %v5148_v3 = vld [vmem:[#allocation3 + $0x20] sm:$0xff]  ;;  %v5151_v21 = vld [vmem:[#allocation3 + $0x38] sm:$0xff] }
0x1491   : >> { %v11529_v32 = vsel %vm224_vm1, %v5177_v50, %v5178_v49  ;;  %v11532_v56 = vsel %vm224_vm1, %v5175_v36, %v5159_v48  ;;  %v5161_v61 = vperm.slane %v5149_v7, 7  ;;  %v5181_v26 = vrot.slane %v5149_v7, 6  ;;  %v5150_v24 = vld [vmem:[#allocation3 + $0x30] sm:$0xff]  ;;  %v5153_v9 = vld [vmem:[#allocation3 + $0x48] sm:$0xff]  ;;  %v5152_v8 = vld [vmem:[#allocation3 + $0x40] sm:$0xff]  ;;  %s7801_s22 = smov 1  }
0x1492   : >> { %5229 = vperm.xlu2 %7642, %v11529_v32   ;;  %5220 = vperm.xlu1 %7641, %v11532_v56   ;;  %v11537_v28 = vsel %vm224_vm1, %v5154_v1, %v5174_v57  ;;  %v11541_v52 = vsel %vm224_vm1, %v5178_v49, %v5160_v2  ;;  %v11544_v15 = vsel %vm224_vm1, %v5155_v30, %v5177_v50  ;;  %v5180_v34 = vrot.slane %v5148_v3, 6  ;;  %v5414_v35 = vld [vmem:[#allocation2] sm:$0xff]  ;;  %v5415_v33 = vld [vmem:[#allocation2 + $0x8] sm:$0xff]  ;;  %v5445_v23 = vld [vmem:[#allocation2 + $0x10] sm:$0xff]  ;;  %s7802_s5 = smov 127   ;;  %s7803_s23 = smov 3  }
0x1493   : >> { %5211 = vperm.xlu0 %7640, %v11537_v28   ;;  %v5176_v42 = vsel %vm224_vm1, %v5174_v57, %v5175_v36  ;;  %v5156_v54 = vperm.slane %v5148_v3, 0  ;;  %v5206_v45 = vsel %vm224_vm1, %v5181_v26, %v5161_v61  ;;  %v5162_v18 = vperm.slane %v5151_v21, 7  ;;  %v5446_v53 = vld [vmem:[#allocation2 + $0x18] sm:$0xff]  ;;  %s7804_s6 = smov 126   ;;  %s7805_s28 = smov 4  }
0x1494   : >> { %v5182_v17 = vsel %vm224_vm1, %v5180_v34, %v5181_v26  ;;  %v5184_v55 = vrot.slane %v5151_v21, 6  ;;  %v5183_v47 = vrot.slane %v5150_v24, 6  ;;  %v5157_v46 = vperm.slane %v5150_v24, 0  ;;  %s7806_s24 = smov 125   ;;  %s5143_s30 = sadd.s32 1, %s7784_s30  }
0x1495   : >> { %v5201_v6 = vsel %vm224_vm1, %v5156_v54, %v5180_v34  ;;  %v5163_v39 = vperm.slane %v5153_v9, 7  ;;  %v5187_v0 = vrot.slane %v5153_v9, 6  ;;  %v5186_v29 = vrot.slane %v5152_v8, 6  ;;  %p5140_p6 = scmp.ge.s32.totalorder %s5143_s30, 2  }
0x1496   : >> { %v5207_v11 = vsel %vm224_vm1, %v5184_v55, %v5162_v18  ;;  %v5185_v14 = vsel %vm224_vm1, %v5183_v47, %v5184_v55  ;;  %v5202_v13 = vsel %vm224_vm1, %v5157_v46, %v5183_v47  ;;  %v5158_v5 = vperm.slane %v5152_v8, 0  ;;  %s7429_s26 = smul.u32 (%p5140_p6), 80, %s7845_s13  ;;  %s7310_s13 = sshll.u32 (%p5140_p6), %s11521_s17, 4  ;;  %s7311_s13 = int_to_ptr.vmem [resolvable:$true] %s7310_s13 }
0x1497   : >> { %v5208_v12 = vsel %vm224_vm1, %v5187_v0, %v5163_v39  ;;  %v5188_v4 = vsel %vm224_vm1, %v5186_v29, %v5187_v0  ;;  %v5418_v22 = vrot.slane %v5414_v35, 7  ;;  %v5419_v37 = vrot.slane %v5415_v33, 7  ;;  %s7298_s16 = scalar_lea.sflag (%p5140_p6), [#allocation6], %s7936_s25 }
0x1498   : >> { %v5203_v20 = vsel %vm224_vm1, %v5158_v5, %v5186_v29  ;;  %v5449_v25 = vrot.slane %v5445_v23, 7  ;;  %v5450_v58 = vrot.slane %v5446_v53, 7  ;;  %vm13520_vm7 = vcmask 15360   ;;  %s7309_s8 = scalar_lea.hbm (%p5140_p6), %s12923_s2, %s7429_s26 }
0x1499   : >> { %v5420_v31 = vsel %vm628_vm6, %v5418_v22, %v5419_v37  ;;  %vm13521_vm2 = vcmask 146432   ;;  %vm13522_vm12 = vmmov %vm13520_vm7  ;;  %s7312_s14 = sshll.u32 (%p5140_p6), %s7309_s8, 4  ;;  %s7313_s14 = int_to_ptr.hbm [resolvable:$true] %s7312_s14 }
0x149a   : >> { %5234 = vperm.xlu2 %7642, %v11541_v52   ;;  %5225 = vperm.xlu1 %7641, %v11544_v15   ;;  %v5451_v51 = vsel %vm628_vm6, %v5449_v25, %v5450_v58  ;;  %vm13523_vm13 = vmmov %vm13521_vm2  ;;  %s7720_s29 = sshra.s32 (%p5140_p6), %s7313_s14, 4  ;;  %s7721_s29 = int_to_ptr.hbm [resolvable:$true] %s7720_s29 }
0x149b   : >> { %5215 = vperm.xlu0 %7640, %v5176_v42   ;;  %vm13524_vm9 = vmmov %vm13520_vm7  ;;  %s7722_s3 = scalar_lea.hbm (%p5140_p6), %s7721_s29, 80  ;;  %p7727_p3 = scmp.lt.s32.totalorder (%p5140_p6), %s7721_s29, %s12923_s2 }
0x149c   : >> { %vm13525_vm10 = vmmov %vm13521_vm2  ;;  %p7723_p13 = scmp.ne.s32.totalorder (%p5140_p6), %s7721_s29, %s7722_s3 }
0x149d   : >> { %vm13526_vm15 = vmmov %vm13520_vm7 }
0x149e   : > { %p7724_p1 = pnand (%p5140_p6), %p7723_p13, %p7870_p11 }
0x14a0   : > { %p7725_p2 = pneg (%p5140_p6), %p7724_p1 }
0x14a2   : >> { %5248 = vperm.xlu2 %7642, %v5206_v45   ;;  %5243 = vperm.xlu1 %7641, %v5182_v17  }
0x14a3   : >> { %5239 = vperm.xlu0 %7640, %v5201_v6  }
0x14aa   : >> { %5262 = vperm.xlu2 %7642, %v5207_v11   ;;  %5257 = vperm.xlu1 %7641, %v5185_v14  }
0x14ab   : >> { %5253 = vperm.xlu0 %7640, %v5202_v13  }
0x14b2   : >> { %5276 = vperm.xlu2 %7642, %v5208_v12   ;;  %5271 = vperm.xlu1 %7641, %v5188_v4  }
0x14b3   : >> { %5267 = vperm.xlu0 %7640, %v5203_v20  }
0x14ba   : >> { %7645 = vset.pattern.permute.xlu2 %v7799_v63  ;;  %7644 = vset.pattern.permute.xlu1 %v7799_v63 }
0x14bb   : >> { %7643 = vset.pattern.permute.xlu0 %v7799_v63  ;;  %5288 = vperm.xlu2 %7645, %v11532_v56  }
0x14bc   : >> { %5284 = vperm.xlu1 %7644, %v5176_v42   ;;  %5280 = vperm.xlu0 %7643, %v11537_v28  }
0x14c3   : >> { %5296 = vperm.xlu2 %7645, %v11529_v32  }
0x14c4   : >> { %5292 = vperm.xlu1 %7644, %v11544_v15   ;;  %5300 = vperm.xlu0 %7643, %v11541_v52  }
0x14cb   : >> { %5308 = vperm.xlu2 %7645, %v5182_v17  }
0x14cc   : >> { %5304 = vperm.xlu1 %7644, %v5201_v6   ;;  %5312 = vperm.xlu0 %7643, %v5206_v45  }
0x14d3   : >> { %5320 = vperm.xlu2 %7645, %v5185_v14  }
0x14d4   : >> { %5316 = vperm.xlu1 %7644, %v5202_v13   ;;  %5324 = vperm.xlu0 %7643, %v5207_v11  }
0x14db   : >> { %5332 = vperm.xlu2 %7645, %v5188_v4  }
0x14dc   : >> { %5328 = vperm.xlu1 %7644, %v5203_v20   ;;  %5336 = vperm.xlu0 %7643, %v5208_v12  }
0x14e3   : >> { %5341 = vrot.lane.b32.xlu2 %v5176_v42, %s7800_s27 }
0x14e4   : >> { %5339 = vrot.lane.b32.xlu1 %v11537_v28, %s7800_s27  ;;  %5343 = vrot.lane.b32.xlu0 %v11532_v56, %s7800_s27 }
0x14eb   : >> { %5347 = vrot.lane.b32.xlu2 %v11529_v32, %s7800_s27 }
0x14ec   : >> { %5345 = vrot.lane.b32.xlu1 %v11544_v15, %s7800_s27  ;;  %5349 = vrot.lane.b32.xlu0 %v11541_v52, %s7800_s27  ;;  %v11574_v60 = vpop.permute.xlu2 %5229 }
0x14f3   : >> { %5353 = vrot.lane.b32.xlu2 %v5182_v17, %s7800_s27 }
0x14f4   : >> { %5351 = vrot.lane.b32.xlu1 %v5201_v6, %s7800_s27  ;;  %5355 = vrot.lane.b32.xlu0 %v5206_v45, %s7800_s27  ;;  %v11579_v59 = vpop.permute.xlu2 %5234 }
0x14fb   : >> { %5359 = vrot.lane.b32.xlu2 %v5185_v14, %s7800_s27 }
0x14fc   : >> { %5357 = vrot.lane.b32.xlu1 %v5202_v13, %s7800_s27  ;;  %5361 = vrot.lane.b32.xlu0 %v5207_v11, %s7800_s27  ;;  %v11584_v38 = vpop.permute.xlu2 %5248 }
0x1503   : >> { %5365 = vrot.lane.b32.xlu2 %v5188_v4, %s7800_s27 }
0x1504   : >> { %5363 = vrot.lane.b32.xlu1 %v5203_v20, %s7800_s27  ;;  %5367 = vrot.lane.b32.xlu0 %v5208_v12, %s7800_s27  ;;  %v11589_v62 = vpop.permute.xlu1 %5220  ;;  %v11591_v43 = vpop.permute.xlu2 %5262 }
0x1505   : >> { %v11593_v44 = vpop.permute.xlu0 %5211 }
0x150b   : >> { %5423 = vrot.lane.b32.xlu2 %v5420_v31, %s7801_s22 }
0x150c   : >> { %5421 = vrot.lane.b32.xlu1 %v5418_v22, %s7801_s22  ;;  %5425 = vrot.lane.b32.xlu0 %v5419_v37, %s7801_s22  ;;  %v11599_v27 = vpop.permute.xlu1 %5225  ;;  %v11601_v41 = vpop.permute.xlu2 %5276 }
0x150d   : >> { %v5216_v10 = vpop.permute.xlu0 %5215 }
0x1513   : >> { %5454 = vrot.lane.b32.xlu2 %v5451_v51, %s7800_s27 }
0x1514   : >> { %5452 = vrot.lane.b32.xlu1 %v5449_v25, %s7800_s27  ;;  %5456 = vrot.lane.b32.xlu0 %v5450_v58, %s7800_s27  ;;  %v5244_v16 = vpop.permute.xlu1 %5243 }
0x1515   : >> { %v11607_v19 = vpop.permute.xlu0 %5239  ;;  %v5289_v50 = vpop.permute.xlu2 %5288 }
0x151c   : >> { %v5258_v49 = vpop.permute.xlu1 %5257 }
0x151d   : >> { %v11609_v48 = vpop.permute.xlu0 %5253  ;;  %v5297_v36 = vpop.permute.xlu2 %5296 }
0x1524   : >> { %v5272_v40 = vpop.permute.xlu1 %5271 }
0x1525   : >> { %v11611_v1 = vpop.permute.xlu0 %5267  ;;  %v5309_v57 = vpop.permute.xlu2 %5308 }
0x152d   : >> { %v5321_v32 = vpop.permute.xlu2 %5320 }
0x152e   : >> { %v5285_v56 = vpop.permute.xlu1 %5284  ;;  %v5281_v28 = vpop.permute.xlu0 %5280 }
0x1535   : >> { %v5333_v2 = vpop.permute.xlu2 %5332 }
0x1536   : >> { %v5293_v30 = vpop.permute.xlu1 %5292  ;;  %v5301_v52 = vpop.permute.xlu0 %5300 }
0x153d   : >> { %v5342_v15 = vpop.permute.xlu2 %5341 }
0x153e   : >> { %v11613_v42 = vpop.permute.xlu1 %5304  ;;  %v11615_v7 = vpop.permute.xlu0 %5312  ;;  %v5385_v14 = vsel %vm13520_vm7, %v5216_v10, %v5342_v15  ;;  %v5551_v15 = vld [vmem:[#allocation2 + $0x20] sm:$0xff] }
0x153f   : >> { %v11629_v13 = vsel %vm13521_vm2, %v5385_v14, %v5285_v56  ;;  %vm13527_vm2 = vmmov %vm13520_vm7 }
0x1545   : >> { %v5348_v3 = vpop.permute.xlu2 %5347 }
0x1546   : >> { %v11617_v61 = vpop.permute.xlu1 %5316  ;;  %v11619_v26 = vpop.permute.xlu0 %5324  ;;  %v5388_v29 = vsel %vm13522_vm12, %v11574_v60, %v5348_v3  ;;  %vm13528_vm12 = vmmov %vm13525_vm10  ;;  %v5552_v3 = vld [vmem:[#allocation2 + $0x28] sm:$0xff] }
0x1547   : >> { %v11636_v5 = vsel %vm13523_vm13, %v5388_v29, %v5297_v36  ;;  %vm13529_vm13 = vmmov %vm13525_vm10 }
0x154d   : >> { %v5354_v34 = vpop.permute.xlu2 %5353 }
0x154e   : >> { %v11621_v54 = vpop.permute.xlu1 %5328  ;;  %v11623_v45 = vpop.permute.xlu0 %5336  ;;  %v5391_v63 = vsel %vm13524_vm9, %v5244_v16, %v5354_v34  ;;  %vm13531_vm9 = vmmov %vm13525_vm10 }
0x154f   : >> { %v11642_v35 = vsel %vm13525_vm10, %v5391_v63, %v5309_v57  ;;  %vm13533_vm10 = vmmov %vm13527_vm2 }
0x1555   : >> { %v5360_v17 = vpop.permute.xlu2 %5359 }
0x1556   : >> { %v5340_v6 = vpop.permute.xlu1 %5339  ;;  %v5344_v21 = vpop.permute.xlu0 %5343  ;;  %v5394_v37 = vsel %vm13526_vm15, %v5258_v49, %v5360_v17  ;;  %vm13534_vm15 = vmmov %vm13527_vm2 }
0x1557   : >> { %v5384_v31 = vsel %vm13520_vm7, %v11593_v44, %v5340_v6  ;;  %v5386_v23 = vsel %vm13527_vm2, %v11589_v62, %v5344_v21  ;;  %v11656_v53 = vsel %vm13528_vm12, %v5394_v37, %v5321_v32  ;;  %vm13535_vm7 = vmmov %vm13527_vm2 }
0x1558   : >> { %v11659_v25 = vsel %vm13529_vm13, %v5384_v31, %v5281_v28  ;;  %v11662_v58 = vsel %vm13531_vm9, %v5386_v23, %v5289_v50  ;;  %vm13536_vm2 = vmmov %vm13531_vm9 }
0x1559   : >> { %13530 = vst [vmem:[#allocation128_spill] sm:$0xff] %v11659_v25  ;;  %vm13537_vm12 = vmmov %vm13536_vm2 }
0x155a   : >> { %13532 = vst [vmem:[#allocation129_spill] sm:$0xff] %v11662_v58  ;;  %vm13538_vm13 = vmmov %vm13536_vm2 }
0x155b   : >> { %vm13540_vm9 = vmmov %vm13535_vm7 }
0x155d   : >> { %v5366_v24 = vpop.permute.xlu2 %5365 }
0x155e   : >> { %v5346_v18 = vpop.permute.xlu1 %5345  ;;  %v5350_v55 = vpop.permute.xlu0 %5349  ;;  %v5397_v62 = vsel %vm13533_vm10, %v5272_v40, %v5366_v24  ;;  %vm13541_vm10 = vmmov %vm13535_vm7 }
0x155f   : >> { %v5387_v50 = vsel %vm13534_vm15, %v11599_v27, %v5346_v18  ;;  %v5389_v36 = vsel %vm13535_vm7, %v11579_v59, %v5350_v55  ;;  %v11676_v57 = vsel %vm13536_vm2, %v5397_v62, %v5333_v2  ;;  %v5555_v59 = vrot.slane %v5551_v15, 7  ;;  %vm13542_vm15 = vmmov %vm13536_vm2  ;;  %v5759_v15 = vld [vmem:[#allocation2 + $0x48] sm:$0xff] }
0x1560   : >> { %v11679_v32 = vsel %vm13537_vm12, %v5387_v50, %v5293_v30  ;;  %v11682_v56 = vsel %vm13538_vm13, %v5389_v36, %v5301_v52  ;;  %v5556_v2 = vrot.slane %v5552_v3, 7  ;;  %vm13543_vm7 = vmmov %vm13536_vm2 }
0x1561   : >> { %13539 = vst [vmem:[#allocation130_spill] sm:$0xff] %v11682_v56  ;;  %vm13544_vm2 = vmmov %vm13540_vm9 }
0x1562   : >> { %v5557_v34 = vsel %vm628_vm6, %v5555_v59, %v5556_v2  ;;  %vm13545_vm12 = vmmov %vm13544_vm2 }
0x1563   : >> { %vm13546_vm13 = vmmov %vm13543_vm7 }
0x1565   : >> { %v11625_v47 = vpop.permute.xlu2 %5423 }
0x1566   : >> { %v5352_v46 = vpop.permute.xlu1 %5351  ;;  %v5356_v11 = vpop.permute.xlu0 %5355 }
0x1567   : >> { %v5390_v30 = vsel %vm13540_vm9, %v11607_v19, %v5352_v46  ;;  %v5392_v52 = vsel %vm13541_vm10, %v11584_v38, %v5356_v11  ;;  %vm13547_vm9 = vmmov %vm13543_vm7 }
0x1568   : >> { %v11697_v17 = vsel %vm13542_vm15, %v5390_v30, %v11613_v42  ;;  %v11701_v6 = vsel %vm13543_vm7, %v5392_v52, %v11615_v7  ;;  %vm13548_vm10 = vmmov %vm13544_vm2 }
0x1569   : >> { %vm13549_vm15 = vmmov %vm13544_vm2 }
0x156d   : >> { %v5455_v9 = vpop.permute.xlu2 %5454 }
0x156e   : >> { %v5358_v8 = vpop.permute.xlu1 %5357  ;;  %v5362_v39 = vpop.permute.xlu0 %5361  ;;  %v5462_v0 = vmul.f32 %v5455_v9, %v11629_v13  ;;  %v5465_v20 = vmul.f32 %v5455_v9, %v11636_v5  ;;  %v5468_v60 = vmul.f32 %v5455_v9, %v11642_v35  ;;  %v5471_v16 = vmul.f32 %v5455_v9, %v11656_v53 }
0x156f   : >> { %v5474_v28 = vmul.f32 %v5455_v9, %v11676_v57  ;;  %v5393_v38 = vsel %vm13544_vm2, %v11609_v48, %v5358_v8  ;;  %v5395_v19 = vsel %vm13545_vm12, %v11591_v43, %v5362_v39  ;;  %vm13550_vm2 = vmmov %vm13543_vm7  ;;  %vm13672_vm12 = vcmask 1044480  }
0x1570   : >> { %5493 = vrot.lane.b32.xlu2 %v5462_v0, %s7802_s5  ;;  %v11714_v42 = vsel %vm13546_vm13, %v5393_v38, %v11617_v61  ;;  %v11718_v7 = vsel %vm13547_vm9, %v5395_v19, %v11619_v26  ;;  %vm13673_vm13 = vmmov %vm13672_vm12 }
0x1571   : >> { %vm13674_vm9 = vmmov %vm13672_vm12 }
0x1576   : >> { %v5364_v12 = vpop.permute.xlu1 %5363  ;;  %v5368_v4 = vpop.permute.xlu0 %5367 }
0x1577   : >> { %v5396_v48 = vsel %vm13548_vm10, %v11611_v1, %v5364_v12  ;;  %v5398_v43 = vsel %vm13549_vm15, %v11601_v41, %v5368_v4  ;;  %vm13675_vm10 = vmmov %vm13674_vm9 }
0x1578   : >> { %5499 = vrot.lane.b32.xlu2 %v5465_v20, %s7802_s5  ;;  %v11730_v61 = vsel %vm13543_vm7, %v5396_v48, %v11621_v54  ;;  %v11734_v26 = vsel %vm13550_vm2, %v5398_v43, %v11623_v45  ;;  %vm13676_vm15 = vmmov %vm13674_vm9 }
0x1579   : >> { %13551 = vst [vmem:[#allocation131_spill] sm:$0xff] %v11734_v26  ;;  %vm13677_vm7 = vmmov %vm13674_vm9 }
0x157a   : >> { %vm13678_vm2 = vmmov %vm13677_vm7 }
0x157e   : >> { %v11644_v33 = vpop.permute.xlu1 %5421  ;;  %v11646_v22 = vpop.permute.xlu0 %5425 }
0x1580   : >> { %5505 = vrot.lane.b32.xlu2 %v5468_v60, %s7802_s5 }
0x1586   : >> { %v5453_v10 = vpop.permute.xlu1 %5452  ;;  %v5457_v51 = vpop.permute.xlu0 %5456 }
0x1587   : >> { %v5461_v49 = vmul.f32 %v5453_v10, %v11659_v25  ;;  %v5463_v44 = vmul.f32 %v5457_v51, %v11662_v58  ;;  %v5464_v40 = vmul.f32 %v5453_v10, %v11679_v32  ;;  %v5466_v27 = vmul.f32 %v5457_v51, %v11682_v56 }
0x1588   : >> { %5511 = vrot.lane.b32.xlu2 %v5471_v16, %s7802_s5  ;;  %v5467_v21 = vmul.f32 %v5453_v10, %v11697_v17  ;;  %v5469_v24 = vmul.f32 %v5457_v51, %v11701_v6  ;;  %v5470_v18 = vmul.f32 %v5453_v10, %v11714_v42  ;;  %v5472_v55 = vmul.f32 %v5457_v51, %v11718_v7  ;;  %v5658_v16 = vld [vmem:[#allocation2 + $0x38] sm:$0xff] }
0x1589   : >> { %5491 = vrot.lane.b32.xlu1 %v5461_v49, %s7802_s5  ;;  %5495 = vrot.lane.b32.xlu0 %v5463_v44, %s7802_s5  ;;  %v5473_v46 = vmul.f32 %v5453_v10, %v11730_v61  ;;  %v5475_v11 = vmul.f32 %v5457_v51, %v11734_v26  ;;  %v5657_v51 = vld [vmem:[#allocation2 + $0x30] sm:$0xff]  ;;  %v5662_v44 = vrot.slane %v5658_v16, 6 }
0x158a   : >> { %v5661_v49 = vrot.slane %v5657_v51, 6 }
0x158c   : >> { %v5663_v62 = vsel %vm224_vm1, %v5661_v49, %v5662_v44 }
0x1590   : >> { %5517 = vrot.lane.b32.xlu2 %v5474_v28, %s7802_s5  ;;  %v5758_v28 = vld [vmem:[#allocation2 + $0x40] sm:$0xff] }
0x1591   : >> { %5497 = vrot.lane.b32.xlu1 %v5464_v40, %s7802_s5  ;;  %5501 = vrot.lane.b32.xlu0 %v5466_v27, %s7802_s5  ;;  %v5762_v3 = vrot.slane %v5758_v28, 6  ;;  %v5763_v40 = vrot.slane %v5759_v15, 6 }
0x1593   : >> { %v5764_v27 = vsel %vm224_vm1, %v5762_v3, %v5763_v40 }
0x1598   : >> { %5560 = vrot.lane.b32.xlu2 %v5557_v34, %s7803_s23 }
0x1599   : >> { %5503 = vrot.lane.b32.xlu1 %v5467_v21, %s7802_s5  ;;  %5507 = vrot.lane.b32.xlu0 %v5469_v24, %s7802_s5 }
0x15a1   : >> { %5509 = vrot.lane.b32.xlu1 %v5470_v18, %s7802_s5  ;;  %5513 = vrot.lane.b32.xlu0 %v5472_v55, %s7802_s5 }
0x15a9   : >> { %5515 = vrot.lane.b32.xlu1 %v5473_v46, %s7802_s5  ;;  %5519 = vrot.lane.b32.xlu0 %v5475_v11, %s7802_s5 }
0x15b1   : >> { %5558 = vrot.lane.b32.xlu1 %v5555_v59, %s7803_s23  ;;  %5562 = vrot.lane.b32.xlu0 %v5556_v2, %s7803_s23 }
0x15ca   : >> { %v11742_v41 = vpop.permute.xlu2 %5493 }
0x15d2   : >> { %v11744_v1 = vpop.permute.xlu2 %5499 }
0x15da   : >> { %v11746_v54 = vpop.permute.xlu2 %5505 }
0x15db   : >> { %13552 = vst [vmem:[#allocation132_spill] sm:$0xff] %v11746_v54 }
0x15e2   : >> { %v11748_v45 = vpop.permute.xlu2 %5511 }
0x15e3   : >> { %13553 = vst [vmem:[#allocation133_spill] sm:$0xff] %v11748_v45 }
0x15ea   : >> { %v11750_v14 = vpop.permute.xlu2 %5517 }
0x15eb   : >> { %13554 = vst [vmem:[#allocation134_spill] sm:$0xff] %v11750_v14 }
0x15f2   : >> { %v5561_v9 = vpop.permute.xlu2 %5560 }
0x15f3   : >> { %v5568_v8 = vmul.f32 %v5561_v9, %v11629_v13  ;;  %v5571_v29 = vmul.f32 %v5561_v9, %v11636_v5  ;;  %v5574_v20 = vmul.f32 %v5561_v9, %v11642_v35  ;;  %v5577_v37 = vmul.f32 %v5561_v9, %v11656_v53 }
0x15f4   : >> { %v5580_v10 = vmul.f32 %v5561_v9, %v11676_v57 }
0x15f5   : >> { %5599 = vrot.lane.b32.xlu2 %v5568_v8, %s7804_s6 }
0x15fb   : >> { %v11754_v39 = vpop.permute.xlu1 %5491  ;;  %v11756_v0 = vpop.permute.xlu0 %5495 }
0x15fc   : >> { %13555 = vst [vmem:[#allocation135_spill] sm:$0xff] %v11754_v39 }
0x15fd   : >> { %5605 = vrot.lane.b32.xlu2 %v5571_v29, %s7804_s6 }
0x1603   : >> { %v11760_v12 = vpop.permute.xlu1 %5497  ;;  %v11762_v4 = vpop.permute.xlu0 %5501 }
0x1605   : >> { %5611 = vrot.lane.b32.xlu2 %v5574_v20, %s7804_s6 }
0x160b   : >> { %v11766_v63 = vpop.permute.xlu1 %5503  ;;  %v11768_v60 = vpop.permute.xlu0 %5507 }
0x160c   : >> { %13556 = vst [vmem:[#allocation136_spill] sm:$0xff] %v11766_v63 }
0x160d   : >> { %5617 = vrot.lane.b32.xlu2 %v5577_v37, %s7804_s6 }
0x1613   : >> { %v11772_v31 = vpop.permute.xlu1 %5509  ;;  %v11774_v23 = vpop.permute.xlu0 %5513 }
0x1614   : >> { %13557 = vst [vmem:[#allocation137_spill] sm:$0xff] %v11772_v31 }
0x1615   : >> { %5623 = vrot.lane.b32.xlu2 %v5580_v10, %s7804_s6 }
0x161b   : >> { %v11779_v50 = vpop.permute.xlu1 %5515  ;;  %v11781_v36 = vpop.permute.xlu0 %5519 }
0x161c   : >> { %13558 = vst [vmem:[#allocation138_spill] sm:$0xff] %v11779_v50 }
0x161d   : >> { %13559 = vst [vmem:[#allocation139_spill] sm:$0xff] %v11781_v36  ;;  %5666 = vrot.lane.b32.xlu2 %v5663_v62, %s7801_s22 }
0x1623   : >> { %v5559_v59 = vpop.permute.xlu1 %5558  ;;  %v5563_v2 = vpop.permute.xlu0 %5562 }
0x1624   : >> { %v5567_v30 = vmul.f32 %v5559_v59, %v11659_v25  ;;  %v5569_v52 = vmul.f32 %v5563_v2, %v11662_v58  ;;  %v5570_v34 = vmul.f32 %v5559_v59, %v11679_v32  ;;  %v5572_v21 = vmul.f32 %v5563_v2, %v11682_v56 }
0x1625   : >> { %5767 = vrot.lane.b32.xlu2 %v5764_v27, %s7803_s23  ;;  %v5573_v24 = vmul.f32 %v5559_v59, %v11697_v17  ;;  %v5575_v38 = vmul.f32 %v5563_v2, %v11701_v6  ;;  %v5576_v19 = vmul.f32 %v5559_v59, %v11714_v42  ;;  %v5578_v18 = vmul.f32 %v5563_v2, %v11718_v7 }
0x1626   : >> { %5597 = vrot.lane.b32.xlu1 %v5567_v30, %s7804_s6  ;;  %5601 = vrot.lane.b32.xlu0 %v5569_v52, %s7804_s6  ;;  %v5579_v55 = vmul.f32 %v5559_v59, %v11730_v61  ;;  %v5581_v48 = vmul.f32 %v5563_v2, %v11734_v26 }
0x162e   : >> { %5603 = vrot.lane.b32.xlu1 %v5570_v34, %s7804_s6  ;;  %5607 = vrot.lane.b32.xlu0 %v5572_v21, %s7804_s6 }
0x1636   : >> { %5609 = vrot.lane.b32.xlu1 %v5573_v24, %s7804_s6  ;;  %5613 = vrot.lane.b32.xlu0 %v5575_v38, %s7804_s6 }
0x163e   : >> { %5615 = vrot.lane.b32.xlu1 %v5576_v19, %s7804_s6  ;;  %5619 = vrot.lane.b32.xlu0 %v5578_v18, %s7804_s6 }
0x1646   : >> { %5621 = vrot.lane.b32.xlu1 %v5579_v55, %s7804_s6  ;;  %5625 = vrot.lane.b32.xlu0 %v5581_v48, %s7804_s6 }
0x164e   : >> { %5664 = vrot.lane.b32.xlu1 %v5661_v49, %s7801_s22  ;;  %5668 = vrot.lane.b32.xlu0 %v5662_v44, %s7801_s22 }
0x164f   : >> { %v11810_v43 = vpop.permute.xlu2 %5599 }
0x1656   : >> { %5765 = vrot.lane.b32.xlu1 %v5762_v3, %s7803_s23  ;;  %5769 = vrot.lane.b32.xlu0 %v5763_v40, %s7803_s23 }
0x1657   : >> { %v11812_v46 = vpop.permute.xlu2 %5605 }
0x165f   : >> { %v11818_v8 = vpop.permute.xlu2 %5611 }
0x1660   : >> { %13561 = vst [vmem:[#allocation141_spill] sm:$0xff] %v11818_v8 }
0x1667   : >> { %v11824_v37 = vpop.permute.xlu2 %5617 }
0x1668   : >> { %13562 = vst [vmem:[#allocation142_spill] sm:$0xff] %v11824_v37 }
0x166f   : >> { %v11830_v16 = vpop.permute.xlu2 %5623 }
0x1670   : >> { %13564 = vst [vmem:[#allocation144_spill] sm:$0xff] %v11830_v16 }
0x1677   : >> { %v11840_v15 = vpop.permute.xlu2 %5666 }
0x167f   : >> { %v5768_v27 = vpop.permute.xlu2 %5767 }
0x1680   : >> { %v5775_v59 = vmul.f32 %v5768_v27, %v11629_v13 }
0x1682   : >> { %v5805_v38 = vrot.slane %v5775_v59, 1 }
0x1698   : >> { %v11814_v11 = vpop.permute.xlu1 %5597  ;;  %v11816_v9 = vpop.permute.xlu0 %5601 }
0x1699   : >> { %13560 = vst [vmem:[#allocation140_spill] sm:$0xff] %v11814_v11  ;;  %v5889_v11 = vld [vmem:[#allocation2 + $0x50] sm:$0xff] }
0x16a0   : >> { %v11820_v29 = vpop.permute.xlu1 %5603  ;;  %v11822_v20 = vpop.permute.xlu0 %5607 }
0x16a8   : >> { %v11826_v10 = vpop.permute.xlu1 %5609  ;;  %v11828_v51 = vpop.permute.xlu0 %5613 }
0x16a9   : >> { %13563 = vst [vmem:[#allocation143_spill] sm:$0xff] %v11826_v10  ;;  %v6121_v10 = vld [vmem:[#allocation2 + $0x70] sm:$0xff] }
0x16b0   : >> { %v11832_v49 = vpop.permute.xlu1 %5615  ;;  %v11834_v44 = vpop.permute.xlu0 %5619 }
0x16b1   : >> { %13565 = vst [vmem:[#allocation145_spill] sm:$0xff] %v11832_v49 }
0x16b8   : >> { %v11836_v62 = vpop.permute.xlu1 %5621  ;;  %v11838_v28 = vpop.permute.xlu0 %5625 }
0x16b9   : >> { %13566 = vst [vmem:[#allocation146_spill] sm:$0xff] %v11836_v62 }
0x16ba   : >> { %13567 = vst [vmem:[#allocation147_spill] sm:$0xff] %v11838_v28  ;;  %v5778_v28 = vmul.f32 %v5768_v27, %v11636_v5 }
0x16c0   : >> { %v11842_v3 = vpop.permute.xlu1 %5664  ;;  %v11844_v40 = vpop.permute.xlu0 %5668 }
0x16c8   : >> { %v5766_v2 = vpop.permute.xlu1 %5765  ;;  %v5770_v30 = vpop.permute.xlu0 %5769 }
0x16c9   : >> { %v5776_v52 = vmul.f32 %v5770_v30, %v11662_v58  ;;  %v5774_v34 = vmul.f32 %v5766_v2, %v11659_v25  ;;  %v5779_v55 = vmul.f32 %v5770_v30, %v11682_v56  ;;  %v5777_v48 = vmul.f32 %v5766_v2, %v11679_v32 }
0x16cb   : >> { %v5807_v21 = vrot.slane %v5776_v52, 1  ;;  %v5804_v24 = vrot.slane %v5774_v34, 1  ;;  %v5812_v36 = vrot.slane %v5779_v55, 1  ;;  %v5809_v52 = vrot.slane %v5777_v48, 1 }
0x16cc   : >> { %v5810_v34 = vrot.slane %v5778_v28, 1 }
0x16cd   : >> { %5833 = vrot.lane.b32.xlu0 %v5807_v21, %s7804_s6  ;;  %v5806_v19 = vsel %vm452_vm4, %v5804_v24, %v5805_v38  ;;  %v5808_v18 = vsel %vm452_vm4, %v5805_v38, %v5807_v21  ;;  %v5782_v21 = vmul.f32 %v5770_v30, %v11701_v6  ;;  %v5780_v38 = vmul.f32 %v5766_v2, %v11697_v17 }
0x16ce   : >> { %5829 = vrot.lane.b32.xlu1 %v5806_v19, %s7804_s6  ;;  %5831 = vrot.lane.b32.xlu2 %v5808_v18, %s7804_s6  ;;  %v5811_v59 = vsel %vm452_vm4, %v5809_v52, %v5810_v34  ;;  %v5813_v24 = vsel %vm452_vm4, %v5810_v34, %v5812_v36  ;;  %v5781_v19 = vmul.f32 %v5768_v27, %v11642_v35 }
0x16cf   : >> { %v5817_v18 = vrot.slane %v5782_v21, 1  ;;  %v5814_v55 = vrot.slane %v5780_v38, 1  ;;  %v5783_v34 = vmul.f32 %v5766_v2, %v11714_v42 }
0x16d0   : >> { %v5815_v48 = vrot.slane %v5781_v19, 1 }
0x16d1   : >> { %v5819_v21 = vrot.slane %v5783_v34, 1 }
0x16d2   : >> { %v5816_v28 = vsel %vm452_vm4, %v5814_v55, %v5815_v48  ;;  %v5818_v52 = vsel %vm452_vm4, %v5815_v48, %v5817_v18  ;;  %v5786_v48 = vmul.f32 %v5766_v2, %v11730_v61 }
0x16d5   : >> { %5839 = vrot.lane.b32.xlu0 %v5812_v36, %s7804_s6  ;;  %v5785_v36 = vmul.f32 %v5770_v30, %v11718_v7 }
0x16d6   : >> { %5835 = vrot.lane.b32.xlu1 %v5811_v59, %s7804_s6  ;;  %5837 = vrot.lane.b32.xlu2 %v5813_v24, %s7804_s6  ;;  %v5784_v59 = vmul.f32 %v5768_v27, %v11656_v53 }
0x16d7   : >> { %v5822_v24 = vrot.slane %v5785_v36, 1  ;;  %v5824_v36 = vrot.slane %v5786_v48, 1 }
0x16d8   : >> { %v5820_v38 = vrot.slane %v5784_v59, 1  ;;  %v5890_v59 = vld [vmem:[#allocation2 + $0x58] sm:$0xff] }
0x16d9   : >> { %v5894_v2 = vrot.slane %v5890_v59, 5 }
0x16da   : >> { %v5821_v19 = vsel %vm452_vm4, %v5819_v21, %v5820_v38  ;;  %v5823_v55 = vsel %vm452_vm4, %v5820_v38, %v5822_v24 }
0x16dd   : >> { %5845 = vrot.lane.b32.xlu0 %v5817_v18, %s7804_s6  ;;  %v5788_v18 = vmul.f32 %v5770_v30, %v11734_v26  ;;  %v5893_v30 = vrot.slane %v5889_v11, 5 }
0x16de   : >> { %5841 = vrot.lane.b32.xlu1 %v5816_v28, %s7804_s6  ;;  %5843 = vrot.lane.b32.xlu2 %v5818_v52, %s7804_s6  ;;  %v5787_v28 = vmul.f32 %v5768_v27, %v11676_v57  ;;  %v5991_v27 = vld [vmem:[#allocation2 + $0x68] sm:$0xff] }
0x16df   : >> { %v5827_v52 = vrot.slane %v5788_v18, 1  ;;  %v5895_v38 = vsel %vm2118_vm8, %v5893_v30, %v5894_v2 }
0x16e0   : >> { %v5825_v34 = vrot.slane %v5787_v28, 1 }
0x16e2   : >> { %v5826_v21 = vsel %vm452_vm4, %v5824_v36, %v5825_v34 }
0x16e5   : >> { %5851 = vrot.lane.b32.xlu0 %v5822_v24, %s7804_s6  ;;  %v5828_v24 = vsel %vm452_vm4, %v5825_v34, %v5827_v52 }
0x16e6   : >> { %5847 = vrot.lane.b32.xlu1 %v5821_v19, %s7804_s6  ;;  %5849 = vrot.lane.b32.xlu2 %v5823_v55, %s7804_s6  ;;  %v5990_v19 = vld [vmem:[#allocation2 + $0x60] sm:$0xff]  ;;  %v5995_v55 = vrot.slane %v5991_v27, 5 }
0x16e7   : >> { %v5994_v18 = vrot.slane %v5990_v19, 5 }
0x16e9   : >> { %v5996_v48 = vsel %vm2118_vm8, %v5994_v18, %v5995_v55 }
0x16ed   : >> { %5857 = vrot.lane.b32.xlu0 %v5827_v52, %s7804_s6 }
0x16ee   : >> { %5853 = vrot.lane.b32.xlu1 %v5826_v21, %s7804_s6  ;;  %5855 = vrot.lane.b32.xlu2 %v5828_v24, %s7804_s6 }
0x16f5   : >> { %5900 = vrot.lane.b32.xlu0 %v5894_v2, %s7801_s22 }
0x16f6   : >> { %5896 = vrot.lane.b32.xlu1 %v5893_v30, %s7801_s22  ;;  %5898 = vrot.lane.b32.xlu2 %v5895_v38, %s7801_s22 }
0x16fd   : >> { %6001 = vrot.lane.b32.xlu0 %v5995_v55, %s7800_s27 }
0x16fe   : >> { %5997 = vrot.lane.b32.xlu1 %v5994_v18, %s7800_s27  ;;  %5999 = vrot.lane.b32.xlu2 %v5996_v48, %s7800_s27 }
0x1728   : >> { %v11894_v11 = vpop.permute.xlu2 %5831 }
0x1730   : >> { %v11896_v28 = vpop.permute.xlu2 %5837 }
0x1731   : >> { %13568 = vst [vmem:[#allocation148_spill] sm:$0xff] %v11896_v28 }
0x1738   : >> { %v11902_v34 = vpop.permute.xlu2 %5843 }
0x1739   : >> { %13570 = vst [vmem:[#allocation150_spill] sm:$0xff] %v11902_v34 }
0x173f   : >> { %v11898_v52 = vpop.permute.xlu0 %5833 }
0x1740   : >> { %v11900_v36 = vpop.permute.xlu1 %5829  ;;  %v11908_v24 = vpop.permute.xlu2 %5849 }
0x1741   : >> { %13569 = vst [vmem:[#allocation149_spill] sm:$0xff] %v11900_v36 }
0x1742   : >> { %13572 = vst [vmem:[#allocation152_spill] sm:$0xff] %v11908_v24 }
0x1747   : >> { %v11904_v59 = vpop.permute.xlu0 %5839 }
0x1748   : >> { %v11906_v21 = vpop.permute.xlu1 %5835  ;;  %v11914_v38 = vpop.permute.xlu2 %5855 }
0x1749   : >> { %13571 = vst [vmem:[#allocation151_spill] sm:$0xff] %v11906_v21  ;;  %v6253_v21 = vld [vmem:[#allocation2 + $0x88] sm:$0xff] }
0x174a   : >> { %13574 = vst [vmem:[#allocation154_spill] sm:$0xff] %v11914_v38 }
0x174f   : >> { %v11910_v2 = vpop.permute.xlu0 %5845 }
0x1750   : >> { %v11912_v30 = vpop.permute.xlu1 %5841  ;;  %v11924_v48 = vpop.permute.xlu2 %5898 }
0x1751   : >> { %13573 = vst [vmem:[#allocation153_spill] sm:$0xff] %v11912_v30 }
0x1757   : >> { %v11916_v27 = vpop.permute.xlu0 %5851 }
0x1758   : >> { %v11918_v19 = vpop.permute.xlu1 %5847  ;;  %v6000_v16 = vpop.permute.xlu2 %5999 }
0x1759   : >> { %13575 = vst [vmem:[#allocation155_spill] sm:$0xff] %v11918_v19  ;;  %v6007_v62 = vmul.f32 %v6000_v16, %v11629_v13  ;;  %v6010_v31 = vmul.f32 %v6000_v16, %v11636_v5 }
0x175b   : >> { %v6037_v49 = vrot.slane %v6007_v62, 2  ;;  %v6042_v62 = vrot.slane %v6010_v31, 2 }
0x175f   : >> { %v11920_v55 = vpop.permute.xlu0 %5857 }
0x1760   : >> { %13576 = vst [vmem:[#allocation156_spill] sm:$0xff] %v11920_v55  ;;  %v11922_v18 = vpop.permute.xlu1 %5853 }
0x1761   : >> { %13577 = vst [vmem:[#allocation157_spill] sm:$0xff] %v11922_v18 }
0x1767   : >> { %v11926_v36 = vpop.permute.xlu0 %5900 }
0x1768   : >> { %v11928_v39 = vpop.permute.xlu1 %5896 }
0x176f   : >> { %v6002_v50 = vpop.permute.xlu0 %6001 }
0x1770   : >> { %v5998_v14 = vpop.permute.xlu1 %5997  ;;  %v6008_v38 = vmul.f32 %v6002_v50, %v11662_v58  ;;  %v6011_v37 = vmul.f32 %v6002_v50, %v11682_v56 }
0x1771   : >> { %v6006_v24 = vmul.f32 %v5998_v14, %v11659_v25  ;;  %v6009_v30 = vmul.f32 %v5998_v14, %v11679_v32 }
0x1772   : >> { %v6039_v19 = vrot.slane %v6008_v38, 2  ;;  %v6044_v45 = vrot.slane %v6011_v37, 2 }
0x1773   : >> { %v6036_v55 = vrot.slane %v6006_v24, 2  ;;  %v6041_v38 = vrot.slane %v6009_v30, 2 }
0x1774   : >> { %6065 = vrot.lane.b32.xlu0 %v6039_v19, %s7802_s5  ;;  %v6040_v18 = vsel %vm522_vm5, %v6037_v49, %v6039_v19  ;;  %v6045_v24 = vsel %vm522_vm5, %v6042_v62, %v6044_v45  ;;  %v6014_v19 = vmul.f32 %v6002_v50, %v11701_v6 }
0x1775   : >> { %6063 = vrot.lane.b32.xlu2 %v6040_v18, %s7802_s5  ;;  %v6038_v34 = vsel %vm522_vm5, %v6036_v55, %v6037_v49  ;;  %v6043_v18 = vsel %vm522_vm5, %v6041_v38, %v6042_v62  ;;  %v6012_v49 = vmul.f32 %v5998_v14, %v11697_v17  ;;  %v6015_v38 = vmul.f32 %v5998_v14, %v11714_v42 }
0x1776   : >> { %6061 = vrot.lane.b32.xlu1 %v6038_v34, %s7802_s5  ;;  %v6013_v34 = vmul.f32 %v6000_v16, %v11642_v35  ;;  %v6049_v55 = vrot.slane %v6014_v19, 2  ;;  %v6016_v62 = vmul.f32 %v6000_v16, %v11656_v53 }
0x1777   : >> { %v6046_v37 = vrot.slane %v6012_v49, 2  ;;  %v6051_v19 = vrot.slane %v6015_v38, 2 }
0x1778   : >> { %v6047_v30 = vrot.slane %v6013_v34, 2  ;;  %v6052_v49 = vrot.slane %v6016_v62, 2  ;;  %v6122_v62 = vld [vmem:[#allocation2 + $0x78] sm:$0xff] }
0x177a   : >> { %v6050_v31 = vsel %vm522_vm5, %v6047_v30, %v6049_v55 }
0x177c   : >> { %6071 = vrot.lane.b32.xlu0 %v6044_v45, %s7802_s5  ;;  %v6017_v45 = vmul.f32 %v6002_v50, %v11718_v7 }
0x177d   : >> { %6069 = vrot.lane.b32.xlu2 %v6045_v24, %s7802_s5  ;;  %v6048_v24 = vsel %vm522_vm5, %v6046_v37, %v6047_v30  ;;  %v6018_v37 = vmul.f32 %v5998_v14, %v11730_v61  ;;  %v6019_v30 = vmul.f32 %v6000_v16, %v11676_v57  ;;  %v6126_v14 = vrot.slane %v6122_v62, 5 }
0x177e   : >> { %6067 = vrot.lane.b32.xlu1 %v6043_v18, %s7802_s5  ;;  %v6054_v18 = vrot.slane %v6017_v45, 2 }
0x177f   : >> { %v6056_v45 = vrot.slane %v6018_v37, 2  ;;  %v6057_v38 = vrot.slane %v6019_v30, 2 }
0x1780   : >> { %v6055_v34 = vsel %vm522_vm5, %v6052_v49, %v6054_v18 }
0x1784   : >> { %6077 = vrot.lane.b32.xlu0 %v6049_v55, %s7802_s5  ;;  %v6020_v55 = vmul.f32 %v6002_v50, %v11734_v26  ;;  %v6058_v50 = vsel %vm522_vm5, %v6056_v45, %v6057_v38 }
0x1785   : >> { %6075 = vrot.lane.b32.xlu2 %v6050_v31, %s7802_s5  ;;  %v6053_v31 = vsel %vm522_vm5, %v6051_v19, %v6052_v49  ;;  %v6125_v19 = vrot.slane %v6121_v10, 5 }
0x1786   : >> { %6073 = vrot.lane.b32.xlu1 %v6048_v24, %s7802_s5  ;;  %v6059_v24 = vrot.slane %v6020_v55, 2 }
0x1787   : >> { %v6127_v49 = vsel %vm2118_vm8, %v6125_v19, %v6126_v14 }
0x178c   : >> { %6083 = vrot.lane.b32.xlu0 %v6054_v18, %s7802_s5  ;;  %v6060_v18 = vsel %vm522_vm5, %v6057_v38, %v6059_v24 }
0x178d   : >> { %6081 = vrot.lane.b32.xlu2 %v6055_v34, %s7802_s5 }
0x178e   : >> { %6079 = vrot.lane.b32.xlu1 %v6053_v31, %s7802_s5 }
0x1794   : >> { %6089 = vrot.lane.b32.xlu0 %v6059_v24, %s7802_s5 }
0x1795   : >> { %6087 = vrot.lane.b32.xlu2 %v6060_v18, %s7802_s5 }
0x1796   : >> { %6085 = vrot.lane.b32.xlu1 %v6058_v50, %s7802_s5 }
0x179c   : >> { %6132 = vrot.lane.b32.xlu0 %v6126_v14, %s7803_s23 }
0x179d   : >> { %6130 = vrot.lane.b32.xlu2 %v6127_v49, %s7803_s23 }
0x179e   : >> { %6128 = vrot.lane.b32.xlu1 %v6125_v19, %s7803_s23 }
0x17cf   : >> { %v11974_v16 = vpop.permute.xlu2 %6063 }
0x17d7   : >> { %v11976_v34 = vpop.permute.xlu2 %6069 }
0x17d8   : >> { %13578 = vst [vmem:[#allocation158_spill] sm:$0xff] %v11976_v34 }
0x17df   : >> { %v11982_v37 = vpop.permute.xlu2 %6075 }
0x17e0   : >> { %13580 = vst [vmem:[#allocation160_spill] sm:$0xff] %v11982_v37 }
0x17e6   : >> { %v11978_v55 = vpop.permute.xlu0 %6065 }
0x17e7   : >> { %v11988_v24 = vpop.permute.xlu2 %6081 }
0x17e8   : >> { %v11980_v31 = vpop.permute.xlu1 %6061  ;;  %13582 = vst [vmem:[#allocation162_spill] sm:$0xff] %v11988_v24 }
0x17e9   : >> { %13579 = vst [vmem:[#allocation159_spill] sm:$0xff] %v11980_v31 }
0x17ee   : >> { %v11984_v30 = vpop.permute.xlu0 %6071 }
0x17ef   : >> { %v11996_v18 = vpop.permute.xlu2 %6087 }
0x17f0   : >> { %v11986_v10 = vpop.permute.xlu1 %6067  ;;  %13584 = vst [vmem:[#allocation164_spill] sm:$0xff] %v11996_v18 }
0x17f1   : >> { %13581 = vst [vmem:[#allocation161_spill] sm:$0xff] %v11986_v10 }
0x17f6   : >> { %v11990_v45 = vpop.permute.xlu0 %6077 }
0x17f7   : >> { %v6131_v49 = vpop.permute.xlu2 %6130 }
0x17f8   : >> { %v11992_v38 = vpop.permute.xlu1 %6073  ;;  %v6138_v31 = vmul.f32 %v6131_v49, %v11629_v13  ;;  %v6141_v63 = vmul.f32 %v6131_v49, %v11636_v5 }
0x17f9   : >> { %13583 = vst [vmem:[#allocation163_spill] sm:$0xff] %v11992_v38 }
0x17fa   : >> { %v6168_v8 = vrot.slane %v6138_v31, 2 }
0x17fe   : >> { %v11994_v62 = vpop.permute.xlu0 %6083 }
0x1800   : >> { %v11998_v50 = vpop.permute.xlu1 %6079 }
0x1801   : >> { %13585 = vst [vmem:[#allocation165_spill] sm:$0xff] %v11998_v50 }
0x1806   : >> { %v12000_v14 = vpop.permute.xlu0 %6089 }
0x1807   : >> { %13586 = vst [vmem:[#allocation166_spill] sm:$0xff] %v12000_v14 }
0x1808   : >> { %v12002_v19 = vpop.permute.xlu1 %6085 }
0x1809   : >> { %13587 = vst [vmem:[#allocation167_spill] sm:$0xff] %v12002_v19 }
0x180e   : >> { %v6133_v37 = vpop.permute.xlu0 %6132 }
0x180f   : >> { %v6139_v24 = vmul.f32 %v6133_v37, %v11662_v58  ;;  %v6142_v14 = vmul.f32 %v6133_v37, %v11682_v56 }
0x1810   : >> { %v6129_v34 = vpop.permute.xlu1 %6128 }
0x1811   : >> { %v6170_v10 = vrot.slane %v6139_v24, 2  ;;  %v6137_v38 = vmul.f32 %v6129_v34, %v11659_v25  ;;  %v6140_v28 = vmul.f32 %v6129_v34, %v11679_v32  ;;  %v6175_v31 = vrot.slane %v6142_v14, 2 }
0x1812   : >> { %v6173_v24 = vrot.slane %v6141_v63, 2 }
0x1813   : >> { %6196 = vrot.lane.b32.xlu0 %v6170_v10, %s7804_s6  ;;  %v6171_v18 = vsel %vm522_vm5, %v6168_v8, %v6170_v10  ;;  %v6167_v50 = vrot.slane %v6137_v38, 2  ;;  %v6172_v54 = vrot.slane %v6140_v28, 2  ;;  %v6145_v38 = vmul.f32 %v6133_v37, %v11701_v6 }
0x1814   : >> { %6194 = vrot.lane.b32.xlu2 %v6171_v18, %s7804_s6  ;;  %v6176_v10 = vsel %vm522_vm5, %v6173_v24, %v6175_v31 }
0x1815   : >> { %v6169_v19 = vsel %vm522_vm5, %v6167_v50, %v6168_v8  ;;  %v6174_v18 = vsel %vm522_vm5, %v6172_v54, %v6173_v24  ;;  %v6144_v8 = vmul.f32 %v6131_v49, %v11642_v35  ;;  %v6143_v50 = vmul.f32 %v6129_v34, %v11697_v17 }
0x1816   : >> { %6192 = vrot.lane.b32.xlu1 %v6169_v19, %s7804_s6  ;;  %v6180_v19 = vrot.slane %v6145_v38, 2  ;;  %v6147_v54 = vmul.f32 %v6131_v49, %v11656_v53  ;;  %v6146_v24 = vmul.f32 %v6129_v34, %v11714_v42 }
0x1817   : >> { %v6178_v14 = vrot.slane %v6144_v8, 2  ;;  %v6177_v63 = vrot.slane %v6143_v50, 2 }
0x1818   : >> { %v6183_v38 = vrot.slane %v6147_v54, 2  ;;  %v6182_v8 = vrot.slane %v6146_v24, 2 }
0x1819   : >> { %v6181_v28 = vsel %vm522_vm5, %v6178_v14, %v6180_v19 }
0x181b   : >> { %6202 = vrot.lane.b32.xlu0 %v6175_v31, %s7804_s6  ;;  %v6148_v31 = vmul.f32 %v6133_v37, %v11718_v7 }
0x181c   : >> { %6200 = vrot.lane.b32.xlu2 %v6176_v10, %s7804_s6  ;;  %v6179_v10 = vsel %vm522_vm5, %v6177_v63, %v6178_v14  ;;  %v6150_v14 = vmul.f32 %v6131_v49, %v11676_v57  ;;  %v6149_v63 = vmul.f32 %v6129_v34, %v11730_v61  ;;  %v6255_v49 = vmul.f32 %v6253_v21, %v11629_v13 }
0x181e   : >> { %6198 = vrot.lane.b32.xlu1 %v6174_v18, %s7804_s6  ;;  %v6185_v18 = vrot.slane %v6148_v31, 2  ;;  %v6252_v31 = vld [vmem:[#allocation2 + $0x80] sm:$0xff]  ;;  %v6188_v54 = vrot.slane %v6150_v14, 2  ;;  %v6187_v24 = vrot.slane %v6149_v63, 2 }
0x1820   : >> { %v6186_v50 = vsel %vm522_vm5, %v6183_v38, %v6185_v18 }
0x1823   : >> { %6208 = vrot.lane.b32.xlu0 %v6180_v19, %s7804_s6  ;;  %v6151_v19 = vmul.f32 %v6133_v37, %v11734_v26  ;;  %v6254_v37 = vmul.f32 %v6252_v31, %v11659_v25 }
0x1824   : >> { %6206 = vrot.lane.b32.xlu2 %v6181_v28, %s7804_s6  ;;  %v6184_v28 = vsel %vm522_vm5, %v6182_v8, %v6183_v38  ;;  %v6189_v38 = vsel %vm522_vm5, %v6187_v24, %v6188_v54  ;;  %v6275_v8 = vrot.slane %v6255_v49, 7  ;;  %v6259_v24 = vmul.f32 %v6253_v21, %v11642_v35 }
0x1825   : >> { %v6274_v34 = vrot.slane %v6254_v37, 7  ;;  %v6260_v49 = vmul.f32 %v6252_v31, %v11714_v42 }
0x1826   : >> { %6204 = vrot.lane.b32.xlu1 %v6179_v10, %s7804_s6  ;;  %v6190_v10 = vrot.slane %v6151_v19, 2  ;;  %v6256_v19 = vmul.f32 %v6252_v31, %v11679_v32  ;;  %v6281_v37 = vrot.slane %v6259_v24, 7  ;;  %v6350_v24 = vld [vmem:[#allocation2 + $0x98] sm:$0xff] }
0x1828   : >> { %v6277_v14 = vrot.slane %v6256_v19, 7 }
0x182b   : >> { %6214 = vrot.lane.b32.xlu0 %v6185_v18, %s7804_s6  ;;  %v6191_v18 = vsel %vm522_vm5, %v6188_v54, %v6190_v10  ;;  %v6258_v54 = vmul.f32 %v6252_v31, %v11697_v17 }
0x182c   : >> { %6212 = vrot.lane.b32.xlu2 %v6186_v50, %s7804_s6  ;;  %v6276_v50 = vsel %vm628_vm6, %v6274_v34, %v6275_v8 }
0x182e   : >> { %6210 = vrot.lane.b32.xlu1 %v6184_v28, %s7804_s6  ;;  %v6257_v28 = vmul.f32 %v6253_v21, %v11636_v5 }
0x1830   : >> { %v6278_v63 = vrot.slane %v6257_v28, 7  ;;  %v6262_v28 = vmul.f32 %v6252_v31, %v11730_v61 }
0x1833   : >> { %6220 = vrot.lane.b32.xlu0 %v6190_v10, %s7804_s6  ;;  %v6279_v10 = vsel %vm628_vm6, %v6277_v14, %v6278_v63 }
0x1834   : >> { %6218 = vrot.lane.b32.xlu2 %v6191_v18, %s7804_s6  ;;  %v6280_v18 = vrot.slane %v6258_v54, 7 }
0x1836   : >> { %6216 = vrot.lane.b32.xlu1 %v6189_v38, %s7804_s6  ;;  %v6282_v38 = vsel %vm628_vm6, %v6280_v18, %v6281_v37 }
0x183b   : >> { %6293 = vrot.lane.b32.xlu0 %v6275_v8, %s7801_s22  ;;  %v6283_v8 = vrot.slane %v6260_v49, 7 }
0x183c   : >> { %6291 = vrot.lane.b32.xlu2 %v6276_v50, %s7801_s22 }
0x183e   : >> { %6289 = vrot.lane.b32.xlu1 %v6274_v34, %s7801_s22  ;;  %v6261_v34 = vmul.f32 %v6253_v21, %v11656_v53 }
0x1840   : >> { %v6284_v50 = vrot.slane %v6261_v34, 7 }
0x1842   : >> { %v6285_v19 = vsel %vm628_vm6, %v6283_v8, %v6284_v50 }
0x1843   : >> { %6299 = vrot.lane.b32.xlu0 %v6278_v63, %s7801_s22  ;;  %v6286_v63 = vrot.slane %v6262_v28, 7 }
0x1844   : >> { %6297 = vrot.lane.b32.xlu2 %v6279_v10, %s7801_s22 }
0x1846   : >> { %6295 = vrot.lane.b32.xlu1 %v6277_v14, %s7801_s22  ;;  %v6263_v14 = vmul.f32 %v6253_v21, %v11676_v57 }
0x1848   : >> { %v6287_v10 = vrot.slane %v6263_v14, 7 }
0x184a   : >> { %v6288_v54 = vsel %vm628_vm6, %v6286_v63, %v6287_v10 }
0x184b   : >> { %6305 = vrot.lane.b32.xlu0 %v6281_v37, %s7801_s22 }
0x184c   : >> { %6303 = vrot.lane.b32.xlu2 %v6282_v38, %s7801_s22 }
0x184e   : >> { %6301 = vrot.lane.b32.xlu1 %v6280_v18, %s7801_s22  ;;  %v6349_v18 = vld [vmem:[#allocation2 + $0x90] sm:$0xff] }
0x1853   : >> { %6311 = vrot.lane.b32.xlu0 %v6284_v50, %s7801_s22 }
0x1854   : >> { %6309 = vrot.lane.b32.xlu2 %v6285_v19, %s7801_s22 }
0x1856   : >> { %6307 = vrot.lane.b32.xlu1 %v6283_v8, %s7801_s22 }
0x185b   : >> { %6317 = vrot.lane.b32.xlu0 %v6287_v10, %s7801_s22 }
0x185c   : >> { %6315 = vrot.lane.b32.xlu2 %v6288_v54, %s7801_s22 }
0x185e   : >> { %6313 = vrot.lane.b32.xlu1 %v6286_v63, %s7801_s22 }
0x1864   : >> { %6355 = vrot.lane.b32.xlu2 %v6350_v24, %s7800_s27 }
0x1866   : >> { %6353 = vrot.lane.b32.xlu1 %v6349_v18, %s7800_s27 }
0x186e   : >> { %v12076_v31 = vpop.permute.xlu2 %6194 }
0x1876   : >> { %v12078_v21 = vpop.permute.xlu2 %6200 }
0x1877   : >> { %13588 = vst [vmem:[#allocation168_spill] sm:$0xff] %v12078_v21 }
0x187e   : >> { %v12080_v37 = vpop.permute.xlu2 %6206 }
0x187f   : >> { %13589 = vst [vmem:[#allocation169_spill] sm:$0xff] %v12080_v37 }
0x1886   : >> { %v12082_v38 = vpop.permute.xlu2 %6212 }
0x1887   : >> { %13590 = vst [vmem:[#allocation170_spill] sm:$0xff] %v12082_v38 }
0x1888   : >> { %v12084_v49 = vpop.permute.xlu1 %6192 }
0x1889   : >> { %13591 = vst [vmem:[#allocation171_spill] sm:$0xff] %v12084_v49 }
0x188e   : >> { %v12086_v34 = vpop.permute.xlu2 %6218 }
0x188f   : >> { %13592 = vst [vmem:[#allocation172_spill] sm:$0xff] %v12086_v34 }
0x1890   : >> { %v12088_v8 = vpop.permute.xlu1 %6198 }
0x1891   : >> { %13593 = vst [vmem:[#allocation173_spill] sm:$0xff] %v12088_v8 }
0x1896   : >> { %v12090_v50 = vpop.permute.xlu2 %6291 }
0x1898   : >> { %v12092_v19 = vpop.permute.xlu1 %6204 }
0x1899   : >> { %13594 = vst [vmem:[#allocation174_spill] sm:$0xff] %v12092_v19 }
0x189e   : >> { %v12094_v28 = vpop.permute.xlu2 %6297 }
0x189f   : >> { %13595 = vst [vmem:[#allocation175_spill] sm:$0xff] %v12094_v28 }
0x18a0   : >> { %v12096_v14 = vpop.permute.xlu1 %6210 }
0x18a1   : >> { %13596 = vst [vmem:[#allocation176_spill] sm:$0xff] %v12096_v14 }
0x18a6   : >> { %v12098_v63 = vpop.permute.xlu2 %6303 }
0x18a7   : >> { %13597 = vst [vmem:[#allocation177_spill] sm:$0xff] %v12098_v63 }
0x18a8   : >> { %v12100_v10 = vpop.permute.xlu1 %6216 }
0x18a9   : >> { %13598 = vst [vmem:[#allocation178_spill] sm:$0xff] %v12100_v10 }
0x18ae   : >> { %v12102_v54 = vpop.permute.xlu2 %6309 }
0x18af   : >> { %13599 = vst [vmem:[#allocation179_spill] sm:$0xff] %v12102_v54 }
0x18b0   : >> { %v12104_v24 = vpop.permute.xlu1 %6289 }
0x18b1   : >> { %13600 = vst [vmem:[#allocation180_spill] sm:$0xff] %v12104_v24 }
0x18b6   : >> { %v12106_v18 = vpop.permute.xlu2 %6315 }
0x18b7   : >> { %13601 = vst [vmem:[#allocation181_spill] sm:$0xff] %v12106_v18 }
0x18b8   : >> { %v12108_v49 = vpop.permute.xlu1 %6295 }
0x18b9   : >> { %13602 = vst [vmem:[#allocation182_spill] sm:$0xff] %v12108_v49 }
0x18be   : >> { %v6356_v34 = vpop.permute.xlu2 %6355 }
0x18bf   : >> { %v6360_v38 = vmul.f32 %v6356_v34, %v11629_v13  ;;  %v6362_v14 = vmul.f32 %v6356_v34, %v11636_v5  ;;  %v6364_v24 = vmul.f32 %v6356_v34, %v11642_v35  ;;  %v6366_v28 = vmul.f32 %v6356_v34, %v11656_v53 }
0x18c0   : >> { %v12111_v37 = vpop.permute.xlu1 %6301 }
0x18c1   : >> { %13603 = vst [vmem:[#allocation183_spill] sm:$0xff] %v12111_v37  ;;  %v6380_v19 = vrot.slane %v6360_v38, 7  ;;  %v6383_v10 = vrot.slane %v6362_v14, 7  ;;  %v6386_v54 = vrot.slane %v6364_v24, 7  ;;  %v6389_v38 = vrot.slane %v6366_v28, 7  ;;  %v6197_v24 = vpop.permute.xlu0 %6196 }
0x18c3   : >> { %6398 = vrot.lane.b32.xlu2 %v6380_v19, %s7802_s5 }
0x18c8   : >> { %v12115_v63 = vpop.permute.xlu1 %6307 }
0x18c9   : >> { %13604 = vst [vmem:[#allocation184_spill] sm:$0xff] %v12115_v63  ;;  %v6368_v63 = vmul.f32 %v6356_v34, %v11676_v57 }
0x18cb   : >> { %6404 = vrot.lane.b32.xlu2 %v6383_v10, %s7802_s5  ;;  %v6392_v21 = vrot.slane %v6368_v63, 7 }
0x18d0   : >> { %v12119_v18 = vpop.permute.xlu1 %6313 }
0x18d1   : >> { %13605 = vst [vmem:[#allocation185_spill] sm:$0xff] %v12119_v18 }
0x18d3   : >> { %6410 = vrot.lane.b32.xlu2 %v6386_v54, %s7802_s5 }
0x18d8   : >> { %v6354_v37 = vpop.permute.xlu1 %6353 }
0x18d9   : >> { %v6359_v26 = vmul.f32 %v6354_v37, %v11659_v25  ;;  %v6361_v18 = vmul.f32 %v6354_v37, %v11679_v32  ;;  %v12189_v25 = vmul.f32 %v11844_v40, %v11701_v6 }
0x18db   : >> { %6416 = vrot.lane.b32.xlu2 %v6389_v38, %s7802_s5  ;;  %v6379_v49 = vrot.slane %v6359_v26, 7  ;;  %v6382_v8 = vrot.slane %v6361_v18, 7  ;;  %v6363_v26 = vmul.f32 %v6354_v37, %v11697_v17 }
0x18dd   : >> { %6394 = vrot.lane.b32.xlu0 %v6379_v49, %s7802_s5  ;;  %v6381_v14 = vsel %vm628_vm6, %v6379_v49, %v6380_v19  ;;  %v6384_v28 = vsel %vm628_vm6, %v6382_v8, %v6383_v10  ;;  %v6385_v49 = vrot.slane %v6363_v26, 7  ;;  %v6203_v19 = vpop.permute.xlu0 %6202  ;;  %v6367_v10 = vmul.f32 %v6354_v37, %v11730_v61 }
0x18de   : >> { %6396 = vrot.lane.b32.xlu1 %v6381_v14, %s7802_s5  ;;  %v6365_v14 = vmul.f32 %v6354_v37, %v11714_v42  ;;  %v12156_v37 = vmul.f32 %v11844_v40, %v11662_v58 }
0x18df   : >> { %v6387_v34 = vsel %vm628_vm6, %v6385_v49, %v6386_v54 }
0x18e0   : >> { %v6388_v63 = vrot.slane %v6365_v14, 7 }
0x18e3   : >> { %6422 = vrot.lane.b32.xlu2 %v6392_v21, %s7802_s5 }
0x18e5   : >> { %6400 = vrot.lane.b32.xlu0 %v6382_v8, %s7802_s5  ;;  %v12139_v18 = vpop.permute.xlu0 %6208  ;;  %v6390_v8 = vsel %vm628_vm6, %v6388_v63, %v6389_v38 }
0x18e6   : >> { %6402 = vrot.lane.b32.xlu1 %v6384_v28, %s7802_s5  ;;  %v6391_v28 = vrot.slane %v6367_v10, 7 }
0x18e8   : >> { %v6393_v54 = vsel %vm628_vm6, %v6391_v28, %v6392_v21  ;;  %v5432_v21 = vmul.f32 %v11646_v22, %v11662_v58 }
0x18ea   : >> { %v5538_v14 = vadd.f32 %v11756_v0, %v5432_v21  ;;  %v5435_v0 = vmul.f32 %v11646_v22, %v11682_v56 }
0x18ec   : >> { %v5644_v10 = vadd.f32 %v11816_v9, %v5538_v14  ;;  %v12181_v9 = vmul.f32 %v11926_v36, %v11682_v56 }
0x18ed   : >> { %6406 = vrot.lane.b32.xlu0 %v6385_v49, %s7802_s5  ;;  %v12148_v26 = vpop.permute.xlu0 %6214  ;;  %v6454_v49 = vld [vmem:[#allocation2 + $0xa0] sm:$0xff] }
0x18ee   : >> { %6408 = vrot.lane.b32.xlu1 %v6387_v34, %s7802_s5  ;;  %v6455_v34 = vld [vmem:[#allocation2 + $0xa8] sm:$0xff] }
0x18f5   : >> { %6412 = vrot.lane.b32.xlu0 %v6388_v63, %s7802_s5  ;;  %v12152_v38 = vpop.permute.xlu0 %6220  ;;  %v13059_v63 = vrot.slane %v12156_v37, 1 }
0x18f6   : >> { %6414 = vrot.lane.b32.xlu1 %v6390_v8, %s7802_s5  ;;  %13606 = vst [vmem:[#allocation186_spill] sm:$0xff] %v12152_v38  ;;  %v12164_v8 = vmul.f32 %v11926_v36, %v11662_v58  ;;  %v5541_v38 = vadd.f32 %v11762_v4, %v5435_v0  ;;  %v5438_v0 = vmul.f32 %v11646_v22, %v11701_v6 }
0x18fd   : >> { %6418 = vrot.lane.b32.xlu0 %v6391_v28, %s7802_s5  ;;  %v12169_v28 = vmul.f32 %v11844_v40, %v11682_v56 }
0x18fe   : >> { %6420 = vrot.lane.b32.xlu1 %v6393_v54, %s7802_s5  ;;  %v5745_v54 = vadd.f32 %v13059_v63, %v5644_v10  ;;  %v5647_v10 = vadd.f32 %v11822_v20, %v5541_v38  ;;  %v5544_v20 = vadd.f32 %v11768_v60, %v5438_v0  ;;  %v12211_v60 = vmul.f32 %v11844_v40, %v11718_v7 }
0x18ff   : >> { %v5711_v58 = vrot.slane %v12169_v28, 1  ;;  %v5441_v0 = vmul.f32 %v11646_v22, %v11718_v7 }
0x1900   : >> { %v5876_v21 = vadd.f32 %v11898_v52, %v5745_v54  ;;  %v5943_v52 = vrot.slane %v12181_v9, 2 }
0x1901   : >> { %v5748_v4 = vadd.f32 %v5711_v58, %v5647_v10 }
0x1903   : >> { %v5879_v56 = vadd.f32 %v11904_v59, %v5748_v4 }
0x1905   : >> { %6458 = vrot.lane.b32.xlu0 %v6454_v49, %s7805_s28  ;;  %v13064_v49 = vrot.slane %v12164_v8, 2  ;;  %v5980_v10 = vadd.f32 %v5943_v52, %v5879_v56 }
0x1906   : >> { %6460 = vrot.lane.b32.xlu1 %v6455_v34, %s7805_s28  ;;  %v6294_v34 = vpop.permute.xlu0 %6293 }
0x1907   : >> { %v5977_v14 = vadd.f32 %v13064_v49, %v5876_v21  ;;  %v12201_v49 = vmul.f32 %v11926_v36, %v11701_v6  ;;  %v6111_v59 = vadd.f32 %v11984_v30, %v5980_v10  ;;  %v5721_v30 = vrot.slane %v12211_v60, 1 }
0x1909   : >> { %v6108_v63 = vadd.f32 %v11978_v55, %v5977_v14  ;;  %v13065_v14 = vrot.slane %v12189_v25, 1  ;;  %v5948_v4 = vrot.slane %v12201_v49, 2 }
0x190b   : >> { %v6239_v54 = vadd.f32 %v6197_v24, %v6108_v63  ;;  %v5650_v63 = vadd.f32 %v11828_v51, %v5544_v20  ;;  %v5547_v51 = vadd.f32 %v11774_v23, %v5441_v0 }
0x190d   : >> { %v6336_v21 = vadd.f32 %v6294_v34, %v6239_v54  ;;  %v5751_v34 = vadd.f32 %v13065_v14, %v5650_v63  ;;  %v6242_v54 = vadd.f32 %v6203_v19, %v6111_v59  ;;  %v5653_v59 = vadd.f32 %v11834_v44, %v5547_v51 }
0x190e   : >> { %v6300_v38 = vpop.permute.xlu0 %6299 }
0x190f   : >> { %v5882_v56 = vadd.f32 %v11910_v2, %v5751_v34  ;;  %v5754_v23 = vadd.f32 %v5721_v30, %v5653_v59 }
0x1911   : >> { %v5983_v10 = vadd.f32 %v5948_v4, %v5882_v56 }
0x1913   : >> { %v6114_v2 = vadd.f32 %v11990_v45, %v5983_v10 }
0x1915   : >> { %v6245_v34 = vadd.f32 %v12139_v18, %v6114_v2  ;;  %v12246_v18 = vmul.f32 %v11840_v15, %v11629_v13  ;;  %v13607_v2 = vrot.slane %v12156_v37, 1  ;;  %v13608_v37 = vrot.slane %v12164_v8, 2 }
0x1916   : >> { %v6306_v19 = vpop.permute.xlu0 %6305  ;;  %v5679_v8 = vmul.f32 %v11842_v3, %v11697_v17 }
0x1917   : >> { %v6342_v0 = vadd.f32 %v6306_v19, %v6245_v34  ;;  %v13067_v19 = vrot.slane %v12246_v18, 1 }
0x191d   : >> { %v6399_v55 = vpop.permute.xlu2 %6398 }
0x191e   : >> { %v12205_v24 = vadd.f32 %v6399_v55, %v6336_v21  ;;  %v6339_v21 = vadd.f32 %v6300_v38, %v6242_v54  ;;  %v12223_v55 = vmul.f32 %v11926_v36, %v11718_v7  ;;  %v5885_v54 = vadd.f32 %v11916_v27, %v5754_v23  ;;  %v6312_v51 = vpop.permute.xlu0 %6311 }
0x191f   : >> { %v5431_v27 = vmul.f32 %v11625_v47, %v11629_v13  ;;  %v5707_v23 = vsel %vm452_vm4, %v13067_v19, %v13607_v2  ;;  %v13619_v19 = vld [vmem:[#allocation137_spill] sm:$0xff] }
0x1920   : >> { %v13068_v38 = vrot.slane %v12223_v55, 2 }
0x1922   : >> { %v5986_v56 = vadd.f32 %v13068_v38, %v5885_v54  ;;  %v5677_v54 = vmul.f32 %v11840_v15, %v11636_v5 }
0x1924   : >> { %v6117_v44 = vadd.f32 %v11994_v62, %v5986_v56  ;;  %v5537_v62 = vadd.f32 %v11742_v41, %v5431_v27  ;;  %v5908_v41 = vmul.f32 %v11928_v39, %v11679_v32  ;;  %v5909_v27 = vmul.f32 %v11924_v48, %v11636_v5 }
0x1925   : >> { %v6405_v20 = vpop.permute.xlu2 %6404 }
0x1926   : >> { %v12227_v63 = vadd.f32 %v6405_v20, %v6339_v21  ;;  %v6248_v45 = vadd.f32 %v12148_v26, %v6117_v44  ;;  %v5676_v26 = vmul.f32 %v11842_v3, %v11679_v32  ;;  %v5643_v34 = vadd.f32 %v11810_v43, %v5537_v62  ;;  %v12281_v62 = vpop.permute.xlu0 %6317 }
0x1927   : >> { %v5434_v43 = vmul.f32 %v11625_v47, %v11636_v5 }
0x1928   : >> { %v6345_v20 = vadd.f32 %v6312_v51, %v6248_v45  ;;  %v5744_v56 = vadd.f32 %v5707_v23, %v5643_v34  ;;  %v5708_v44 = vrot.slane %v5676_v26, 1  ;;  %v5433_v51 = vmul.f32 %v11644_v33, %v11679_v32 }
0x1929   : >> { %v5540_v2 = vadd.f32 %v11744_v1, %v5434_v43  ;;  %v5911_v43 = vmul.f32 %v11928_v39, %v11697_v17 }
0x192a   : >> { %v5539_v26 = vadd.f32 %v11760_v12, %v5433_v51  ;;  %v5437_v12 = vmul.f32 %v11625_v47, %v11642_v35  ;;  %v5941_v51 = vrot.slane %v5909_v27, 2 }
0x192d   : >> { %v6411_v14 = vpop.permute.xlu2 %6410 }
0x192e   : >> { %v12238_v21 = vadd.f32 %v6411_v14, %v6342_v0  ;;  %v12253_v14 = vmul.f32 %v11924_v48, %v11629_v13 }
0x1930   : >> { %v13066_v0 = vrot.slane %v12253_v14, 2 }
0x1932   : >> { %v5939_v45 = vsel %vm522_vm5, %v13066_v0, %v13608_v37  ;;  %v5940_v37 = vrot.slane %v5908_v41, 2  ;;  %v5645_v0 = vadd.f32 %v11820_v29, %v5539_v26  ;;  %v5436_v29 = vmul.f32 %v11644_v33, %v11697_v17 }
0x1933   : >> { %v5713_v41 = vrot.slane %v5679_v8, 1  ;;  %v5944_v26 = vsel %vm522_vm5, %v5941_v51, %v5943_v52 }
0x1935   : >> { %v6417_v10 = vpop.permute.xlu2 %6416 }
0x1936   : >> { %v12242_v59 = vadd.f32 %v6417_v10, %v6345_v20  ;;  %v5875_v20 = vadd.f32 %v11894_v11, %v5744_v56  ;;  %v5709_v10 = vrot.slane %v5677_v54, 1  ;;  %v5680_v54 = vmul.f32 %v11840_v15, %v11642_v35 }
0x1937   : >> { %v5646_v56 = vadd.f32 %v11812_v46, %v5540_v2  ;;  %v5439_v46 = vmul.f32 %v11644_v33, %v11714_v42  ;;  %v13611_v2 = vld [vmem:[#allocation148_spill] sm:$0xff] }
0x1938   : >> { %v5710_v23 = vsel %vm452_vm4, %v5708_v44, %v5709_v10  ;;  %v5976_v34 = vadd.f32 %v5939_v45, %v5875_v20  ;;  %v5712_v11 = vsel %vm452_vm4, %v5709_v10, %v5711_v58  ;;  %v5440_v44 = vmul.f32 %v11625_v47, %v11656_v53  ;;  %v13609_v10 = vld [vmem:[#allocation151_spill] sm:$0xff] }
0x1939   : >> { %v5746_v28 = vadd.f32 %v5710_v23, %v5645_v0  ;;  %v5747_v58 = vadd.f32 %v5712_v11, %v5646_v56  ;;  %v5942_v45 = vsel %vm522_vm5, %v5940_v37, %v5941_v51  ;;  %v13610_v0 = vld [vmem:[#allocation132_spill] sm:$0xff]  ;;  %v5545_v38 = vadd.f32 %v13619_v19, %v5439_v46  ;;  %v13623_v19 = vld [vmem:[#allocation182_spill] sm:$0xff] }
0x193a   : >> { %v6107_v1 = vadd.f32 %v11974_v16, %v5976_v34  ;;  %v5714_v16 = vrot.slane %v5680_v54, 1  ;;  %v5543_v8 = vadd.f32 %v13610_v0, %v5437_v12  ;;  %v5912_v34 = vmul.f32 %v11924_v48, %v11642_v35  ;;  %v13612_v11 = vld [vmem:[#allocation136_spill] sm:$0xff]  ;;  %v13615_v0 = vld [vmem:[#allocation143_spill] sm:$0xff] }
0x193b   : >> { %v5877_v27 = vadd.f32 %v13609_v10, %v5746_v28  ;;  %v5878_v23 = vadd.f32 %v13611_v2, %v5747_v58  ;;  %v5542_v56 = vadd.f32 %v13612_v11, %v5436_v29  ;;  %v13613_v54 = vrot.slane %v12189_v25, 1  ;;  %v13616_v29 = vld [vmem:[#allocation161_spill] sm:$0xff] }
0x193c   : >> { %v6238_v20 = vadd.f32 %v12076_v31, %v6107_v1  ;;  %v5715_v9 = vsel %vm452_vm4, %v5713_v41, %v5714_v16  ;;  %v5682_v12 = vmul.f32 %v11842_v3, %v11714_v42  ;;  %v5945_v58 = vrot.slane %v5911_v43, 2 }
0x193d   : >> { %v5717_v1 = vsel %vm452_vm4, %v5714_v16, %v13613_v54  ;;  %v5978_v52 = vadd.f32 %v5942_v45, %v5877_v27  ;;  %v5979_v28 = vadd.f32 %v5944_v26, %v5878_v23  ;;  %v5648_v2 = vadd.f32 %v13615_v0, %v5542_v56  ;;  %v13617_v54 = vld [vmem:[#allocation133_spill] sm:$0xff]  ;;  %v13618_v45 = vld [vmem:[#allocation158_spill] sm:$0xff] }
0x193e   : >> { %v6335_v37 = vadd.f32 %v12090_v50, %v6238_v20  ;;  %v13614_v50 = vld [vmem:[#allocation141_spill] sm:$0xff]  ;;  %v5683_v25 = vmul.f32 %v11840_v15, %v11656_v53  ;;  %v5546_v41 = vadd.f32 %v13617_v54, %v5440_v44  ;;  %v5946_v27 = vrot.slane %v5912_v34, 2 }
0x193f   : >> { %v5649_v20 = vadd.f32 %v13614_v50, %v5543_v8  ;;  %v6109_v11 = vadd.f32 %v13616_v29, %v5978_v52  ;;  %v6110_v16 = vadd.f32 %v13618_v45, %v5979_v28  ;;  %v5749_v43 = vadd.f32 %v5715_v9, %v5648_v2  ;;  %v13620_v23 = vld [vmem:[#allocation173_spill] sm:$0xff]  ;;  %v13621_v50 = vld [vmem:[#allocation168_spill] sm:$0xff]  ;;  %v13625_v28 = vld [vmem:[#allocation131_spill] sm:$0xff] }
0x1940   : >> { %v5947_v8 = vsel %vm522_vm5, %v5945_v58, %v5946_v27  ;;  %v5914_v56 = vmul.f32 %v11928_v39, %v11714_v42  ;;  %v5719_v52 = vrot.slane %v5683_v25, 1  ;;  %v13622_v29 = vld [vmem:[#allocation153_spill] sm:$0xff]  ;;  %v5949_v34 = vsel %vm522_vm5, %v5946_v27, %v5948_v4 }
0x1941   : >> { %v5750_v26 = vadd.f32 %v5717_v1, %v5649_v20  ;;  %v6241_v0 = vadd.f32 %v13621_v50, %v6110_v16  ;;  %v5880_v44 = vadd.f32 %v13622_v29, %v5749_v43  ;;  %v13624_v1 = vld [vmem:[#allocation150_spill] sm:$0xff]  ;;  %v5915_v58 = vmul.f32 %v11924_v48, %v11656_v53  ;;  %v13626_v20 = vld [vmem:[#allocation175_spill] sm:$0xff] }
0x1942   : >> { %v5722_v49 = vsel %vm452_vm4, %v5719_v52, %v5721_v30  ;;  %v5685_v4 = vmul.f32 %v11842_v3, %v11730_v61  ;;  %v5950_v27 = vrot.slane %v5914_v56, 2  ;;  %v5443_v43 = vmul.f32 %v11625_v47, %v11676_v57  ;;  %v13629_v50 = vld [vmem:[#allocation163_spill] sm:$0xff]  ;;  %v13631_v47 = vld [vmem:[#allocation174_spill] sm:$0xff] }
0x1943   : >> { %v5881_v9 = vadd.f32 %v13624_v1, %v5750_v26  ;;  %v6338_v2 = vadd.f32 %v13626_v20, %v6241_v0  ;;  %v5686_v29 = vmul.f32 %v11840_v15, %v11676_v57  ;;  %v5951_v56 = vrot.slane %v5915_v58, 2 }
0x1944   : >> { %v5917_v1 = vmul.f32 %v11928_v39, %v11730_v61  ;;  %v13634_v15 = vrot.slane %v12223_v55, 2  ;;  %v13639_v55 = vld [vmem:[#allocation138_spill] sm:$0xff] }
0x1945   : >> { %v5982_v16 = vadd.f32 %v5949_v34, %v5881_v9  ;;  %v13632_v9 = vld [vmem:[#allocation169_spill] sm:$0xff] }
0x1946   : >> { %v5954_v58 = vsel %vm522_vm5, %v5951_v56, %v13634_v15 }
0x194f   : >> { %v12317_v31 = vpop.permute.xlu0 %6394 }
0x1950   : >> { %v6397_v51 = vpop.permute.xlu1 %6396 }
0x1951   : >> { %v12326_v10 = vadd.f32 %v6397_v51, %v6335_v37  ;;  %v6240_v37 = vadd.f32 %v13620_v23, %v6109_v11  ;;  %v5718_v51 = vrot.slane %v5682_v12, 1  ;;  %v12349_v12 = vmul.f32 %v11844_v40, %v13625_v28  ;;  %v13627_v23 = vld [vmem:[#allocation142_spill] sm:$0xff] }
0x1952   : >> { %v5981_v11 = vadd.f32 %v5947_v8, %v5880_v44  ;;  %v5652_v60 = vadd.f32 %v13627_v23, %v5546_v41  ;;  %v5442_v8 = vmul.f32 %v11644_v33, %v11730_v61  ;;  %v5723_v41 = vrot.slane %v5685_v4, 1  ;;  %v13636_v4 = vld [vmem:[#allocation152_spill] sm:$0xff]  ;;  %v13637_v23 = vld [vmem:[#allocation177_spill] sm:$0xff] }
0x1953   : >> { %v6337_v46 = vadd.f32 %v13623_v19, %v6240_v37  ;;  %v5720_v40 = vsel %vm452_vm4, %v5718_v51, %v5719_v52  ;;  %v13628_v37 = vld [vmem:[#allocation145_spill] sm:$0xff]  ;;  %v13630_v51 = vld [vmem:[#allocation160_spill] sm:$0xff]  ;;  %v5726_v34 = vrot.slane %v12349_v12, 1 }
0x1954   : >> { %v5651_v30 = vadd.f32 %v13628_v37, %v5545_v38  ;;  %v6112_v0 = vadd.f32 %v13629_v50, %v5981_v11  ;;  %v6113_v52 = vadd.f32 %v13630_v51, %v5982_v16  ;;  %v5753_v44 = vadd.f32 %v5722_v49, %v5652_v60  ;;  %v13635_v11 = vld [vmem:[#allocation183_spill] sm:$0xff] }
0x1955   : >> { %v5952_v38 = vsel %vm522_vm5, %v5950_v27, %v5951_v56  ;;  %v12386_v49 = vmul.f32 %v11926_v36, %v13625_v28  ;;  %v5724_v16 = vrot.slane %v5686_v29, 1  ;;  %v5918_v27 = vmul.f32 %v11924_v48, %v11676_v57  ;;  %v13640_v29 = vld [vmem:[#allocation146_spill] sm:$0xff] }
0x1956   : >> { %v5752_v19 = vadd.f32 %v5720_v40, %v5651_v30  ;;  %v6244_v20 = vadd.f32 %v13632_v9, %v6113_v52  ;;  %v5884_v40 = vadd.f32 %v13636_v4, %v5753_v44  ;;  %v13638_v30 = vld [vmem:[#allocation134_spill] sm:$0xff]  ;;  %v13641_v9 = vld [vmem:[#allocation165_spill] sm:$0xff] }
0x1957   : >> { %v6401_v25 = vpop.permute.xlu0 %6400  ;;  %v5549_v50 = vadd.f32 %v13638_v30, %v5443_v43  ;;  %v5725_v56 = vsel %vm452_vm4, %v5723_v41, %v5724_v16  ;;  %v5727_v48 = vsel %vm452_vm4, %v5724_v16, %v5726_v34  ;;  %v5958_v43 = vrot.slane %v12386_v49, 2  ;;  %v13645_v4 = vld [vmem:[#allocation170_spill] sm:$0xff] }
0x1958   : >> { %v12359_v54 = vadd.f32 %v6401_v25, %v6337_v46  ;;  %v6403_v45 = vpop.permute.xlu1 %6402  ;;  %v6243_v46 = vadd.f32 %v13631_v47, %v6112_v0  ;;  %v6341_v60 = vadd.f32 %v13637_v23, %v6244_v20  ;;  %v5548_v0 = vadd.f32 %v13639_v55, %v5442_v8  ;;  %v13646_v23 = vld [vmem:[#allocation157_spill] sm:$0xff] }
0x1959   : >> { %v12362_v26 = vadd.f32 %v6403_v45, %v6338_v2  ;;  %v13633_v2 = vld [vmem:[#allocation155_spill] sm:$0xff]  ;;  %v5955_v47 = vrot.slane %v5917_v1, 2  ;;  %v5956_v15 = vrot.slane %v5918_v27, 2 }
0x195a   : >> { %v5883_v25 = vadd.f32 %v13633_v2, %v5752_v19  ;;  %v6340_v45 = vadd.f32 %v13635_v11, %v6243_v46  ;;  %v5985_v19 = vadd.f32 %v5954_v58, %v5884_v40  ;;  %v5654_v46 = vadd.f32 %v13640_v29, %v5548_v0  ;;  %v13643_v2 = vld [vmem:[#allocation162_spill] sm:$0xff]  ;;  %v13644_v58 = vld [vmem:[#allocation176_spill] sm:$0xff]  ;;  %v13649_v0 = vld [vmem:[#allocation179_spill] sm:$0xff] }
0x195b   : >> { %v5959_v16 = vsel %vm522_vm5, %v5956_v15, %v5958_v43 }
0x195c   : >> { %v5984_v51 = vadd.f32 %v5952_v38, %v5883_v25  ;;  %v13642_v38 = vld [vmem:[#allocation144_spill] sm:$0xff]  ;;  %v6116_v25 = vadd.f32 %v13643_v2, %v5985_v19  ;;  %v5755_v41 = vadd.f32 %v5725_v56, %v5654_v46  ;;  %v13650_v46 = vld [vmem:[#allocation167_spill] sm:$0xff] }
0x195d   : >> { %v5655_v20 = vadd.f32 %v13642_v38, %v5549_v50  ;;  %v13648_v50 = vld [vmem:[#allocation154_spill] sm:$0xff]  ;;  %v13653_v2 = vld [vmem:[#allocation172_spill] sm:$0xff] }
0x195e   : >> { %v6115_v8 = vadd.f32 %v13641_v9, %v5984_v51  ;;  %v6247_v40 = vadd.f32 %v13645_v4, %v6116_v25  ;;  %v13651_v9 = vld [vmem:[#allocation164_spill] sm:$0xff]  ;;  %v13652_v38 = vld [vmem:[#allocation178_spill] sm:$0xff] }
0x195f   : >> { %v6407_v37 = vpop.permute.xlu0 %6406  ;;  %v5756_v11 = vadd.f32 %v5727_v48, %v5655_v20 }
0x1960   : >> { %v12395_v52 = vadd.f32 %v6407_v37, %v6340_v45  ;;  %v6409_v36 = vpop.permute.xlu1 %6408  ;;  %v6246_v1 = vadd.f32 %v13644_v58, %v6115_v8  ;;  %v5957_v45 = vsel %vm522_vm5, %v5955_v47, %v5956_v15  ;;  %v13647_v37 = vld [vmem:[#allocation184_spill] sm:$0xff]  ;;  %v6344_v27 = vadd.f32 %v13649_v0, %v6247_v40  ;;  %v13654_v15 = vld [vmem:[#allocation185_spill] sm:$0xff] }
0x1961   : >> { %v12398_v44 = vadd.f32 %v6409_v36, %v6341_v60  ;;  %v5886_v60 = vadd.f32 %v13646_v23, %v5755_v41  ;;  %v5887_v55 = vadd.f32 %v13648_v50, %v5756_v11  ;;  %v13655_v58 = vld [vmem:[#allocation181_spill] sm:$0xff] }
0x1962   : >> { %v6343_v30 = vadd.f32 %v13647_v37, %v6246_v1 }
0x1963   : >> { %v5987_v36 = vadd.f32 %v5957_v45, %v5886_v60  ;;  %v5988_v47 = vadd.f32 %v5959_v16, %v5887_v55  ;;  %v13656_v16 = vld [vmem:[#allocation128_spill] sm:$0xff] }
0x1965   : >> { %v6118_v48 = vadd.f32 %v13650_v46, %v5987_v36  ;;  %v6119_v8 = vadd.f32 %v13651_v9, %v5988_v47 }
0x1967   : >> { %v6413_v51 = vpop.permute.xlu0 %6412  ;;  %v6249_v20 = vadd.f32 %v13652_v38, %v6118_v48  ;;  %v6250_v25 = vadd.f32 %v13653_v2, %v6119_v8 }
0x1968   : >> { %v12418_v56 = vadd.f32 %v6413_v51, %v6343_v30  ;;  %v6415_v19 = vpop.permute.xlu1 %6414 }
0x1969   : >> { %v12420_v29 = vadd.f32 %v6415_v19, %v6344_v27  ;;  %v6346_v41 = vadd.f32 %v13654_v15, %v6249_v20  ;;  %v6347_v1 = vadd.f32 %v13655_v58, %v6250_v25  ;;  %v6560_v58 = vld [vmem:[#allocation2 + $0xb8] sm:$0xff] }
0x196f   : >> { %v6419_v11 = vpop.permute.xlu0 %6418 }
0x1970   : >> { %v12428_v45 = vadd.f32 %v6419_v11, %v6346_v41  ;;  %v6421_v4 = vpop.permute.xlu1 %6420  ;;  %v6559_v41 = vld [vmem:[#allocation2 + $0xb0] sm:$0xff] }
0x1971   : >> { %v12430_v40 = vadd.f32 %v6421_v4, %v6347_v1 }
0x1977   : >> { %v6459_v23 = vpop.permute.xlu0 %6458 }
0x1978   : >> { %v6461_v60 = vpop.permute.xlu1 %6460  ;;  %v6464_v37 = vmul.f32 %v6459_v23, %v13656_v16  ;;  %v6466_v27 = vmul.f32 %v6459_v23, %v11679_v32  ;;  %v6468_v46 = vmul.f32 %v6459_v23, %v11697_v17  ;;  %v6470_v20 = vmul.f32 %v6459_v23, %v11714_v42 }
0x1979   : >> { %v6465_v30 = vmul.f32 %v6461_v60, %v11629_v13  ;;  %v6467_v51 = vmul.f32 %v6461_v60, %v11636_v5  ;;  %v6469_v48 = vmul.f32 %v6461_v60, %v11642_v35  ;;  %v6471_v2 = vmul.f32 %v6461_v60, %v11656_v53 }
0x197a   : >> { %v6484_v50 = vrot.slane %v6464_v37, 7  ;;  %v6487_v36 = vrot.slane %v6466_v27, 7  ;;  %v6490_v9 = vrot.slane %v6468_v46, 7  ;;  %v6493_v25 = vrot.slane %v6470_v20, 7  ;;  %v13658_v20 = vld [vmem:[#allocation130_spill] sm:$0xff] }
0x197b   : >> { %v6485_v55 = vrot.slane %v6465_v30, 7  ;;  %v6488_v19 = vrot.slane %v6467_v51, 7  ;;  %v6491_v8 = vrot.slane %v6469_v48, 7  ;;  %v6494_v15 = vrot.slane %v6471_v2, 7 }
0x197c   : >> { %6499 = vrot.lane.b32.xlu2 %v6484_v50, %s7806_s24  ;;  %v6472_v11 = vmul.f32 %v6459_v23, %v11730_v61  ;;  %v6473_v4 = vmul.f32 %v6461_v60, %v11676_v57  ;;  %v6563_v37 = vrot.slane %v6559_v41, 6  ;;  %v6564_v30 = vrot.slane %v6560_v58, 6 }
0x197d   : >> { %6503 = vrot.lane.b32.xlu1 %v6485_v55, %s7806_s24  ;;  %v6486_v0 = vsel %vm628_vm6, %v6484_v50, %v6485_v55  ;;  %v6489_v47 = vsel %vm628_vm6, %v6487_v36, %v6488_v19  ;;  %v6492_v38 = vsel %vm628_vm6, %v6490_v9, %v6491_v8  ;;  %v6495_v1 = vsel %vm628_vm6, %v6493_v25, %v6494_v15 }
0x197e   : >> { %6501 = vrot.lane.b32.xlu0 %v6486_v0, %s7806_s24  ;;  %v6496_v50 = vrot.slane %v6472_v11, 7  ;;  %v6497_v55 = vrot.slane %v6473_v4, 7  ;;  %v6565_v0 = vsel %vm224_vm1, %v6563_v37, %v6564_v30  ;;  %v6569_v27 = vmul.f32 %v6563_v37, %v13656_v16 }
0x197f   : >> { %v6570_v23 = vmul.f32 %v6565_v0, %v11629_v13  ;;  %v6574_v2 = vmul.f32 %v6564_v30, %v13658_v20  ;;  %v6576_v4 = vmul.f32 %v6565_v0, %v11642_v35 }
0x1980   : >> { %v6498_v51 = vsel %vm628_vm6, %v6496_v50, %v6497_v55 }
0x1981   : >> { %v6607_v41 = vrot.slane %v6574_v2, 1  ;;  %v6581_v2 = vmul.f32 %v6563_v37, %v11730_v61 }
0x1984   : >> { %6505 = vrot.lane.b32.xlu2 %v6487_v36, %s7806_s24  ;;  %v13657_v36 = vld [vmem:[#allocation129_spill] sm:$0xff] }
0x1985   : >> { %6509 = vrot.lane.b32.xlu1 %v6488_v19, %s7806_s24  ;;  %v6571_v60 = vmul.f32 %v6564_v30, %v13657_v36  ;;  %v6599_v19 = vrot.slane %v6569_v27, 1  ;;  %v6610_v27 = vrot.slane %v6576_v4, 1 }
0x1986   : >> { %6507 = vrot.lane.b32.xlu0 %v6489_v47, %s7806_s24  ;;  %v6600_v47 = vrot.slane %v6570_v23, 1 }
0x1987   : >> { %v6602_v46 = vrot.slane %v6571_v60, 1  ;;  %v6578_v60 = vmul.f32 %v6563_v37, %v11714_v42 }
0x1988   : >> { %v6601_v48 = vsel %vm452_vm4, %v6599_v19, %v6600_v47 }
0x198c   : >> { %6511 = vrot.lane.b32.xlu2 %v6490_v9, %s7806_s24  ;;  %v6572_v9 = vmul.f32 %v6563_v37, %v11679_v32 }
0x198d   : >> { %6515 = vrot.lane.b32.xlu1 %v6491_v8, %s7806_s24  ;;  %v6603_v8 = vsel %vm452_vm4, %v6600_v47, %v6602_v46  ;;  %v6579_v47 = vmul.f32 %v6565_v0, %v11656_v53 }
0x198e   : >> { %6513 = vrot.lane.b32.xlu0 %v6492_v38, %s7806_s24  ;;  %v6573_v38 = vmul.f32 %v6565_v0, %v11636_v5 }
0x1994   : >> { %6517 = vrot.lane.b32.xlu2 %v6493_v25, %s7806_s24  ;;  %v6604_v25 = vrot.slane %v6572_v9, 1  ;;  %v6615_v9 = vrot.slane %v6579_v47, 1 }
0x1995   : >> { %6521 = vrot.lane.b32.xlu1 %v6494_v15, %s7806_s24  ;;  %v6605_v15 = vrot.slane %v6573_v38, 1 }
0x1996   : >> { %6519 = vrot.lane.b32.xlu0 %v6495_v1, %s7806_s24  ;;  %v6575_v1 = vmul.f32 %v6563_v37, %v11697_v17  ;;  %v5905_v37 = vmul.f32 %v11928_v39, %v13656_v16 }
0x1997   : >> { %v6606_v58 = vsel %vm452_vm4, %v6604_v25, %v6605_v15  ;;  %v6608_v11 = vsel %vm452_vm4, %v6605_v15, %v6607_v41  ;;  %v6582_v15 = vmul.f32 %v6565_v0, %v11676_v57  ;;  %v6685_v0 = vld [vmem:[#allocation2 + $0xc8] sm:$0xff] }
0x1998   : >> { %v5935_v39 = vrot.slane %v5905_v37, 2 }
0x199c   : >> { %6523 = vrot.lane.b32.xlu2 %v6496_v50, %s7806_s24  ;;  %v6577_v50 = vmul.f32 %v6564_v30, %v11701_v6 }
0x199d   : >> { %6527 = vrot.lane.b32.xlu1 %v6497_v55, %s7806_s24  ;;  %v6609_v55 = vrot.slane %v6575_v1, 1  ;;  %v6619_v1 = vrot.slane %v6581_v2, 1  ;;  %v13663_v2 = vld [vmem:[#allocation149_spill] sm:$0xff] }
0x199e   : >> { %6525 = vrot.lane.b32.xlu0 %v6498_v51, %s7806_s24  ;;  %v6612_v51 = vrot.slane %v6577_v50, 1 }
0x199f   : >> { %v6611_v23 = vsel %vm452_vm4, %v6609_v55, %v6610_v27  ;;  %v5430_v55 = vmul.f32 %v11644_v33, %v13656_v16  ;;  %v13661_v33 = vld [vmem:[#allocation140_spill] sm:$0xff] }
0x19a0   : >> { %v6613_v19 = vsel %vm452_vm4, %v6610_v27, %v6612_v51 }
0x19a4   : >> { %6624 = vrot.lane.b32.xlu2 %v6601_v48, %s7801_s22  ;;  %v6614_v48 = vrot.slane %v6578_v60, 1  ;;  %v13660_v60 = vrot.slane %v12246_v18, 1 }
0x19a5   : >> { %6628 = vrot.lane.b32.xlu1 %v6602_v46, %s7801_s22  ;;  %v6580_v46 = vmul.f32 %v6564_v30, %v11718_v7 }
0x19a6   : >> { %6626 = vrot.lane.b32.xlu0 %v6603_v8, %s7801_s22  ;;  %v6616_v38 = vsel %vm452_vm4, %v6614_v48, %v6615_v9  ;;  %v6689_v48 = vrot.slane %v6685_v0, 6 }
0x19a7   : >> { %v6617_v8 = vrot.slane %v6580_v46, 1 }
0x19a9   : >> { %v6618_v25 = vsel %vm452_vm4, %v6615_v9, %v6617_v8 }
0x19ac   : >> { %6630 = vrot.lane.b32.xlu2 %v6606_v58, %s7801_s22  ;;  %v5673_v58 = vmul.f32 %v11842_v3, %v13656_v16 }
0x19ad   : >> { %6634 = vrot.lane.b32.xlu1 %v6607_v41, %s7801_s22  ;;  %v6583_v41 = vmul.f32 %v6564_v30, %v13625_v28  ;;  %v6684_v30 = vld [vmem:[#allocation2 + $0xc0] sm:$0xff] }
0x19ae   : >> { %6632 = vrot.lane.b32.xlu0 %v6608_v11, %s7801_s22  ;;  %v6620_v11 = vrot.slane %v6582_v15, 1  ;;  %v5703_v50 = vrot.slane %v5673_v58, 1  ;;  %v6688_v46 = vrot.slane %v6684_v30, 6  ;;  %v13664_v58 = vld [vmem:[#allocation159_spill] sm:$0xff] }
0x19af   : >> { %v6622_v4 = vrot.slane %v6583_v41, 1  ;;  %v12521_v41 = vpop.permute.xlu2 %6422 }
0x19b0   : >> { %v6621_v27 = vsel %vm452_vm4, %v6619_v1, %v6620_v11  ;;  %v6690_v15 = vsel %vm224_vm1, %v6688_v46, %v6689_v48 }
0x19b4   : >> { %6636 = vrot.lane.b32.xlu2 %v6611_v23, %s7801_s22  ;;  %v6623_v23 = vsel %vm452_vm4, %v6620_v11, %v6622_v4  ;;  %v13665_v11 = vld [vmem:[#allocation171_spill] sm:$0xff] }
0x19b5   : >> { %6640 = vrot.lane.b32.xlu1 %v6612_v51, %s7801_s22  ;;  %v13659_v51 = vld [vmem:[#allocation135_spill] sm:$0xff] }
0x19b6   : >> { %6638 = vrot.lane.b32.xlu0 %v6613_v19, %s7801_s22  ;;  %v5536_v3 = vadd.f32 %v13659_v51, %v5430_v55  ;;  %v5705_v19 = vsel %vm452_vm4, %v5703_v50, %v13660_v60 }
0x19b8   : >> { %v5642_v47 = vadd.f32 %v13661_v33, %v5536_v3 }
0x19ba   : >> { %v5743_v9 = vadd.f32 %v5705_v19, %v5642_v47 }
0x19bc   : >> { %6642 = vrot.lane.b32.xlu2 %v6616_v38, %s7801_s22 }
0x19bd   : >> { %6646 = vrot.lane.b32.xlu1 %v6617_v8, %s7801_s22  ;;  %v13662_v8 = vrot.slane %v12253_v14, 2  ;;  %v13666_v14 = vld [vmem:[#allocation180_spill] sm:$0xff] }
0x19be   : >> { %6644 = vrot.lane.b32.xlu0 %v6618_v25, %s7801_s22  ;;  %v5874_v25 = vadd.f32 %v13663_v2, %v5743_v9 }
0x19bf   : >> { %v5937_v38 = vsel %vm522_vm5, %v5935_v39, %v13662_v8 }
0x19c0   : >> { %v5975_v18 = vadd.f32 %v5937_v38, %v5874_v25 }
0x19c2   : >> { %v6106_v1 = vadd.f32 %v13664_v58, %v5975_v18 }
0x19c4   : >> { %6648 = vrot.lane.b32.xlu2 %v6621_v27, %s7801_s22 }
0x19c5   : >> { %6652 = vrot.lane.b32.xlu1 %v6622_v4, %s7801_s22  ;;  %v6237_v4 = vadd.f32 %v13665_v11, %v6106_v1 }
0x19c6   : >> { %6650 = vrot.lane.b32.xlu0 %v6623_v23, %s7801_s22 }
0x19c7   : >> { %v6334_v50 = vadd.f32 %v13666_v14, %v6237_v4 }
0x19c9   : >> { %v6439_v37 = vadd.f32 %v12317_v31, %v6334_v50 }
0x19cc   : >> { %6691 = vrot.lane.b32.xlu2 %v6688_v46, %s7805_s28 }
0x19cd   : >> { %6695 = vrot.lane.b32.xlu1 %v6689_v48, %s7805_s28 }
0x19ce   : >> { %6693 = vrot.lane.b32.xlu0 %v6690_v15, %s7805_s28 }
0x19d6   : >> { %v6500_v55 = vpop.permute.xlu2 %6499 }
0x19d7   : >> { %v6544_v27 = vadd.f32 %v6500_v55, %v6439_v37 }
0x19de   : >> { %v6506_v30 = vpop.permute.xlu2 %6505 }
0x19df   : >> { %v6547_v0 = vadd.f32 %v6506_v30, %v12359_v54 }
0x19e6   : >> { %v6512_v51 = vpop.permute.xlu2 %6511 }
0x19e7   : >> { %v6550_v3 = vadd.f32 %v6512_v51, %v12395_v52 }
0x19ee   : >> { %v6518_v23 = vpop.permute.xlu2 %6517 }
0x19ef   : >> { %v6553_v60 = vadd.f32 %v6518_v23, %v12418_v56  ;;  %v6504_v19 = vpop.permute.xlu1 %6503  ;;  %v13667_v23 = vld [vmem:[#allocation139_spill] sm:$0xff] }
0x19f0   : >> { %v6546_v39 = vadd.f32 %v6504_v19, %v12205_v24  ;;  %v6502_v33 = vpop.permute.xlu0 %6501  ;;  %v13668_v19 = vld [vmem:[#allocation147_spill] sm:$0xff] }
0x19f1   : >> { %v6545_v47 = vadd.f32 %v6502_v33, %v12326_v10 }
0x19f6   : >> { %v6524_v46 = vpop.permute.xlu2 %6523 }
0x19f7   : >> { %v6556_v31 = vadd.f32 %v6524_v46, %v12428_v45  ;;  %v6510_v48 = vpop.permute.xlu1 %6509 }
0x19f8   : >> { %v6549_v9 = vadd.f32 %v6510_v48, %v12227_v63  ;;  %v6508_v8 = vpop.permute.xlu0 %6507 }
0x19f9   : >> { %v6548_v54 = vadd.f32 %v6508_v8, %v12362_v26 }
0x19fe   : >> { %v6625_v38 = vpop.permute.xlu2 %6624 }
0x19ff   : >> { %v12536_v52 = vadd.f32 %v6625_v38, %v6544_v27  ;;  %v6516_v2 = vpop.permute.xlu1 %6515  ;;  %v13670_v38 = vld [vmem:[#allocation166_spill] sm:$0xff] }
0x1a00   : >> { %v6552_v56 = vadd.f32 %v6516_v2, %v12238_v21  ;;  %v6514_v25 = vpop.permute.xlu0 %6513 }
0x1a01   : >> { %v6551_v24 = vadd.f32 %v6514_v25, %v12398_v44  ;;  %v13671_v25 = vld [vmem:[#allocation186_spill] sm:$0xff] }
0x1a06   : >> { %v6631_v15 = vpop.permute.xlu2 %6630 }
0x1a07   : >> { %v12540_v10 = vadd.f32 %v6631_v15, %v6547_v0  ;;  %v6522_v18 = vpop.permute.xlu1 %6521 }
0x1a08   : >> { %v6555_v45 = vadd.f32 %v6522_v18, %v12242_v59  ;;  %v6520_v58 = vpop.permute.xlu0 %6519 }
0x1a09   : >> { %v6554_v63 = vadd.f32 %v6520_v58, %v12420_v29 }
0x1a0e   : >> { %v6637_v1 = vpop.permute.xlu2 %6636 }
0x1a0f   : >> { %v12544_v26 = vadd.f32 %v6637_v1, %v6550_v3  ;;  %v6528_v11 = vpop.permute.xlu1 %6527 }
0x1a10   : >> { %v6526_v4 = vpop.permute.xlu0 %6525 }
0x1a11   : >> { %v6557_v14 = vadd.f32 %v6526_v4, %v12430_v40  ;;  %v5444_v40 = vmul.f32 %v11646_v22, %v13625_v28 }
0x1a16   : >> { %v6643_v21 = vpop.permute.xlu2 %6642 }
0x1a17   : >> { %v12547_v50 = vadd.f32 %v6643_v21, %v6553_v60  ;;  %v6629_v44 = vpop.permute.xlu1 %6628  ;;  %v5550_v60 = vadd.f32 %v13667_v23, %v5444_v40 }
0x1a18   : >> { %v12549_v37 = vadd.f32 %v6629_v44, %v6546_v39  ;;  %v6627_v55 = vpop.permute.xlu0 %6626 }
0x1a19   : >> { %v12551_v27 = vadd.f32 %v6627_v55, %v6545_v47  ;;  %v5656_v39 = vadd.f32 %v13668_v19, %v5550_v60 }
0x1a1b   : >> { %v5757_v47 = vadd.f32 %v5726_v34, %v5656_v39 }
0x1a1e   : >> { %v6649_v59 = vpop.permute.xlu2 %6648 }
0x1a1f   : >> { %v12553_v30 = vadd.f32 %v6649_v59, %v6556_v31  ;;  %v6635_v29 = vpop.permute.xlu1 %6634 }
0x1a20   : >> { %v12555_v0 = vadd.f32 %v6635_v29, %v6549_v9  ;;  %v6633_v51 = vpop.permute.xlu0 %6632  ;;  %v13669_v9 = vld [vmem:[#allocation156_spill] sm:$0xff] }
0x1a21   : >> { %v12557_v3 = vadd.f32 %v6633_v51, %v6548_v54  ;;  %v5888_v8 = vadd.f32 %v13669_v9, %v5757_v47 }
0x1a23   : >> { %v5989_v54 = vadd.f32 %v5958_v43, %v5888_v8 }
0x1a25   : >> { %v6120_v22 = vadd.f32 %v13670_v38, %v5989_v54 }
0x1a26   : >> { %v6692_v21 = vpop.permute.xlu2 %6691 }
0x1a27   : >> { %v6641_v33 = vpop.permute.xlu1 %6640  ;;  %v6251_v15 = vadd.f32 %v13671_v25, %v6120_v22  ;;  %v6700_v55 = vmul.f32 %v6692_v21, %v13656_v16  ;;  %v6703_v23 = vmul.f32 %v6692_v21, %v11679_v32  ;;  %v6706_v8 = vmul.f32 %v6692_v21, %v11697_v17 }
0x1a28   : >> { %v12565_v46 = vadd.f32 %v6641_v33, %v6552_v56  ;;  %v6639_v31 = vpop.permute.xlu0 %6638 }
0x1a29   : >> { %v12567_v48 = vadd.f32 %v6639_v31, %v6551_v24  ;;  %v6348_v34 = vadd.f32 %v12281_v62, %v6251_v15  ;;  %v6730_v51 = vrot.slane %v6700_v55, 1  ;;  %v6735_v39 = vrot.slane %v6703_v23, 1 }
0x1a2a   : >> { %v6740_v22 = vrot.slane %v6706_v8, 1 }
0x1a2b   : >> { %v6453_v56 = vadd.f32 %v12521_v41, %v6348_v34  ;;  %v6709_v34 = vmul.f32 %v6692_v21, %v11714_v42 }
0x1a2d   : >> { %v6558_v24 = vadd.f32 %v6528_v11, %v6453_v56 }
0x1a2f   : >> { %v6647_v2 = vpop.permute.xlu1 %6646 }
0x1a30   : >> { %v12574_v18 = vadd.f32 %v6647_v2, %v6555_v45  ;;  %v6645_v58 = vpop.permute.xlu0 %6644 }
0x1a31   : >> { %v12576_v12 = vadd.f32 %v6645_v58, %v6554_v63 }
0x1a37   : >> { %v6653_v1 = vpop.permute.xlu1 %6652 }
0x1a38   : >> { %v12580_v4 = vadd.f32 %v6653_v1, %v6558_v24  ;;  %v6651_v49 = vpop.permute.xlu0 %6650  ;;  %v6745_v1 = vrot.slane %v6709_v34, 1 }
0x1a39   : >> { %v12582_v43 = vadd.f32 %v6651_v49, %v6557_v14 }
0x1a3f   : >> { %v6696_v44 = vpop.permute.xlu1 %6695 }
0x1a40   : >> { %v6694_v45 = vpop.permute.xlu0 %6693  ;;  %v6702_v59 = vmul.f32 %v6696_v44, %v13657_v36  ;;  %v6705_v14 = vmul.f32 %v6696_v44, %v13658_v20  ;;  %v6708_v31 = vmul.f32 %v6696_v44, %v11701_v6  ;;  %v6711_v15 = vmul.f32 %v6696_v44, %v11718_v7 }
0x1a41   : >> { %v6701_v63 = vmul.f32 %v6694_v45, %v11629_v13  ;;  %v6704_v40 = vmul.f32 %v6694_v45, %v11636_v5  ;;  %v6707_v9 = vmul.f32 %v6694_v45, %v11642_v35  ;;  %v6710_v58 = vmul.f32 %v6694_v45, %v11656_v53 }
0x1a42   : >> { %v6733_v29 = vrot.slane %v6702_v59, 1  ;;  %v6738_v60 = vrot.slane %v6705_v14, 1  ;;  %v6743_v54 = vrot.slane %v6708_v31, 1  ;;  %v6748_v56 = vrot.slane %v6711_v15, 1 }
0x1a43   : >> { %v6731_v62 = vrot.slane %v6701_v63, 1  ;;  %v6736_v19 = vrot.slane %v6704_v40, 1  ;;  %v6741_v38 = vrot.slane %v6707_v9, 1  ;;  %v6746_v24 = vrot.slane %v6710_v58, 1 }
0x1a44   : >> { %6759 = vrot.lane.b32.xlu1 %v6733_v29, %s7806_s24  ;;  %v6714_v59 = vmul.f32 %v6696_v44, %v13625_v28  ;;  %v6713_v63 = vmul.f32 %v6694_v45, %v11676_v57 }
0x1a45   : >> { %v6734_v41 = vsel %vm452_vm4, %v6731_v62, %v6733_v29  ;;  %v6732_v11 = vsel %vm452_vm4, %v6730_v51, %v6731_v62  ;;  %v6739_v33 = vsel %vm452_vm4, %v6736_v19, %v6738_v60  ;;  %v6737_v47 = vsel %vm452_vm4, %v6735_v39, %v6736_v19  ;;  %v6816_v29 = vld [vmem:[#allocation2 + $0xd8] sm:$0xff]  ;;  %v6815_v62 = vld [vmem:[#allocation2 + $0xd0] sm:$0xff] }
0x1a46   : >> { %6757 = vrot.lane.b32.xlu0 %v6734_v41, %s7806_s24  ;;  %6755 = vrot.lane.b32.xlu2 %v6732_v11, %s7806_s24  ;;  %v6744_v2 = vsel %vm452_vm4, %v6741_v38, %v6743_v54  ;;  %v6742_v25 = vsel %vm452_vm4, %v6740_v22, %v6741_v38  ;;  %v6749_v49 = vsel %vm452_vm4, %v6746_v24, %v6748_v56  ;;  %v6820_v41 = vrot.slane %v6816_v29, 4 }
0x1a47   : >> { %v6747_v55 = vsel %vm452_vm4, %v6745_v1, %v6746_v24  ;;  %v6712_v51 = vmul.f32 %v6692_v21, %v11730_v61  ;;  %v6819_v11 = vrot.slane %v6815_v62, 4  ;;  %v6753_v14 = vrot.slane %v6714_v59, 1 }
0x1a48   : >> { %v6751_v40 = vrot.slane %v6713_v63, 1  ;;  %v6827_v19 = vmul.f32 %v6820_v41, %v13657_v36  ;;  %v6836_v62 = vmul.f32 %v6820_v41, %v11718_v7 }
0x1a49   : >> { %v6750_v23 = vrot.slane %v6712_v51, 1  ;;  %v6825_v39 = vmul.f32 %v6819_v11, %v13656_v16  ;;  %v6828_v38 = vmul.f32 %v6819_v11, %v11679_v32  ;;  %v6831_v24 = vmul.f32 %v6819_v11, %v11697_v17 }
0x1a4a   : >> { %v6754_v44 = vsel %vm452_vm4, %v6751_v40, %v6753_v14  ;;  %v6834_v51 = vmul.f32 %v6819_v11, %v11714_v42 }
0x1a4b   : >> { %v6752_v45 = vsel %vm452_vm4, %v6750_v23, %v6751_v40  ;;  %v6873_v40 = vrot.slane %v6836_v62, 3 }
0x1a4c   : >> { %6765 = vrot.lane.b32.xlu1 %v6738_v60, %s7806_s24  ;;  %v6821_v60 = vsel %vm4355_vm14, %v6819_v11, %v6820_v41  ;;  %v6870_v23 = vrot.slane %v6834_v51, 3 }
0x1a4d   : >> { %v6826_v21 = vmul.f32 %v6821_v60, %v11629_v13  ;;  %v6829_v22 = vmul.f32 %v6821_v60, %v11636_v5  ;;  %v6832_v1 = vmul.f32 %v6821_v60, %v11642_v35 }
0x1a4e   : >> { %6763 = vrot.lane.b32.xlu0 %v6739_v33, %s7806_s24  ;;  %6761 = vrot.lane.b32.xlu2 %v6737_v47, %s7806_s24  ;;  %v6858_v33 = vrot.slane %v6827_v19, 3  ;;  %v6855_v47 = vrot.slane %v6825_v39, 3  ;;  %v6839_v39 = vmul.f32 %v6820_v41, %v13625_v28 }
0x1a4f   : >> { %v6856_v31 = vrot.slane %v6826_v21, 3  ;;  %v6861_v15 = vrot.slane %v6829_v22, 3  ;;  %v6866_v59 = vrot.slane %v6832_v1, 3  ;;  %v6837_v21 = vmul.f32 %v6819_v11, %v11730_v61 }
0x1a51   : >> { %v6859_v9 = vsel %vm13672_vm12, %v6856_v31, %v6858_v33  ;;  %v6857_v8 = vsel %vm13673_vm13, %v6855_v47, %v6856_v31  ;;  %vm13679_vm12 = vmmov %vm13678_vm2  ;;  %v6878_v47 = vrot.slane %v6839_v39, 3  ;;  %v6875_v31 = vrot.slane %v6837_v21, 3 }
0x1a52   : >> { %vm13680_vm13 = vmmov %vm13678_vm2 }
0x1a54   : >> { %6771 = vrot.lane.b32.xlu1 %v6743_v54, %s7806_s24  ;;  %v6830_v54 = vmul.f32 %v6820_v41, %v13658_v20 }
0x1a56   : >> { %6769 = vrot.lane.b32.xlu0 %v6744_v2, %s7806_s24  ;;  %6767 = vrot.lane.b32.xlu2 %v6742_v25, %s7806_s24  ;;  %v6863_v2 = vrot.slane %v6830_v54, 3  ;;  %v6860_v25 = vrot.slane %v6828_v38, 3  ;;  %v6940_v54 = vld [vmem:[#allocation2 + $0xe0] sm:$0xff] }
0x1a57   : >> { %v6944_v11 = vrot.slane %v6940_v54, 4 }
0x1a58   : >> { %v6864_v58 = vsel %vm13674_vm9, %v6861_v15, %v6863_v2  ;;  %v6862_v34 = vsel %vm13675_vm10, %v6860_v25, %v6861_v15  ;;  %vm13681_vm9 = vmmov %vm13678_vm2 }
0x1a59   : >> { %vm13682_vm10 = vmmov %vm13678_vm2 }
0x1a5c   : >> { %6777 = vrot.lane.b32.xlu1 %v6748_v56, %s7806_s24  ;;  %v6833_v56 = vmul.f32 %v6820_v41, %v11701_v6 }
0x1a5e   : >> { %6775 = vrot.lane.b32.xlu0 %v6749_v49, %s7806_s24  ;;  %6773 = vrot.lane.b32.xlu2 %v6747_v55, %s7806_s24  ;;  %v6868_v49 = vrot.slane %v6833_v56, 3  ;;  %v6865_v55 = vrot.slane %v6831_v24, 3 }
0x1a60   : >> { %v6869_v63 = vsel %vm13676_vm15, %v6866_v59, %v6868_v49  ;;  %v6867_v29 = vsel %vm13677_vm7, %v6865_v55, %v6866_v59  ;;  %vm13683_vm15 = vmmov %vm13678_vm2 }
0x1a61   : >> { %vm13684_vm7 = vmmov %vm13678_vm2 }
0x1a64   : >> { %6783 = vrot.lane.b32.xlu1 %v6753_v14, %s7806_s24  ;;  %v6835_v14 = vmul.f32 %v6821_v60, %v11656_v53 }
0x1a66   : >> { %6781 = vrot.lane.b32.xlu0 %v6754_v44, %s7806_s24  ;;  %6779 = vrot.lane.b32.xlu2 %v6752_v45, %s7806_s24  ;;  %v6871_v44 = vrot.slane %v6835_v14, 3 }
0x1a68   : >> { %v6874_v45 = vsel %vm13678_vm2, %v6871_v44, %v6873_v40  ;;  %v6872_v19 = vsel %vm13679_vm12, %v6870_v23, %v6871_v44  ;;  %vm13685_vm12 = vmmov %vm13678_vm2 }
0x1a6c   : >> { %6884 = vrot.lane.b32.xlu1 %v6858_v33, %s7801_s22  ;;  %v6838_v33 = vmul.f32 %v6821_v60, %v11676_v57 }
0x1a6e   : >> { %6882 = vrot.lane.b32.xlu0 %v6859_v9, %s7801_s22  ;;  %6880 = vrot.lane.b32.xlu2 %v6857_v8, %s7801_s22  ;;  %v6876_v9 = vrot.slane %v6838_v33, 3  ;;  %v6941_v8 = vld [vmem:[#allocation2 + $0xe8] sm:$0xff] }
0x1a6f   : >> { %v6945_v41 = vrot.slane %v6941_v8, 4 }
0x1a70   : >> { %v6879_v38 = vsel %vm13680_vm13, %v6876_v9, %v6878_v47  ;;  %v6877_v22 = vsel %vm13681_vm9, %v6875_v31, %v6876_v9  ;;  %vm13686_vm13 = vmmov %vm13678_vm2 }
0x1a71   : >> { %vm13687_vm9 = vmmov %vm13678_vm2 }
0x1a74   : >> { %6890 = vrot.lane.b32.xlu1 %v6863_v2, %s7801_s22  ;;  %v6946_v2 = vsel %vm4355_vm14, %v6944_v11, %v6945_v41 }
0x1a76   : >> { %6888 = vrot.lane.b32.xlu0 %v6864_v58, %s7801_s22  ;;  %6886 = vrot.lane.b32.xlu2 %v6862_v34, %s7801_s22 }
0x1a7c   : >> { %6896 = vrot.lane.b32.xlu1 %v6868_v49, %s7801_s22 }
0x1a7e   : >> { %6894 = vrot.lane.b32.xlu0 %v6869_v63, %s7801_s22  ;;  %6892 = vrot.lane.b32.xlu2 %v6867_v29, %s7801_s22 }
0x1a84   : >> { %6902 = vrot.lane.b32.xlu1 %v6873_v40, %s7801_s22 }
0x1a86   : >> { %6900 = vrot.lane.b32.xlu0 %v6874_v45, %s7801_s22  ;;  %6898 = vrot.lane.b32.xlu2 %v6872_v19, %s7801_s22 }
0x1a8c   : >> { %6908 = vrot.lane.b32.xlu1 %v6878_v47, %s7801_s22 }
0x1a8e   : >> { %6906 = vrot.lane.b32.xlu0 %v6879_v38, %s7801_s22  ;;  %6904 = vrot.lane.b32.xlu2 %v6877_v22, %s7801_s22 }
0x1a94   : >> { %6951 = vrot.lane.b32.xlu1 %v6945_v41, %s7800_s27 }
0x1a96   : >> { %6949 = vrot.lane.b32.xlu0 %v6946_v2, %s7800_s27  ;;  %6947 = vrot.lane.b32.xlu2 %v6944_v11, %s7800_s27  ;;  %s7726_s27 = scalar_lea.hbm (%p5140_p6), %s12923_s2, 160 }
0x1a97   : > { %p7728_p4 = scmp.lt.s32.totalorder (%p5140_p6), %s7726_s27, %s7722_s3 }
0x1a99   : > { %p7729_p5 = por (%p5140_p6), %p7728_p4, %p7727_p3 }
0x1a9b   : > { %p7730_p7 = pnand (%p5140_p6), %p7729_p5, %p7725_p2 }
0x1aa0   : >> { %v6756_v60 = vpop.permute.xlu2 %6755 }
0x1aa1   : >> { %v6800_v25 = vadd.f32 %v6756_v60, %v12536_v52 }
0x1aa8   : >> { %v6762_v15 = vpop.permute.xlu2 %6761 }
0x1aa9   : >> { %v6803_v58 = vadd.f32 %v6762_v15, %v12540_v10 }
0x1ab0   : >> { %v6768_v34 = vpop.permute.xlu2 %6767 }
0x1ab1   : >> { %v6806_v56 = vadd.f32 %v6768_v34, %v12544_v26 }
0x1ab6   : >> { %v6760_v24 = vpop.permute.xlu1 %6759 }
0x1ab7   : >> { %v6802_v1 = vadd.f32 %v6760_v24, %v12549_v37 }
0x1ab8   : >> { %v6758_v49 = vpop.permute.xlu0 %6757  ;;  %v6774_v55 = vpop.permute.xlu2 %6773 }
0x1ab9   : >> { %v6801_v59 = vadd.f32 %v6758_v49, %v12551_v27  ;;  %v6809_v63 = vadd.f32 %v6774_v55, %v12547_v50 }
0x1abe   : >> { %v6766_v29 = vpop.permute.xlu1 %6765 }
0x1abf   : >> { %v6805_v62 = vadd.f32 %v6766_v29, %v12555_v0 }
0x1ac0   : >> { %v6764_v51 = vpop.permute.xlu0 %6763  ;;  %v6780_v52 = vpop.permute.xlu2 %6779 }
0x1ac1   : >> { %v6804_v14 = vadd.f32 %v6764_v51, %v12557_v3  ;;  %v6812_v10 = vadd.f32 %v6780_v52, %v12553_v30 }
0x1ac6   : >> { %v6772_v40 = vpop.permute.xlu1 %6771 }
0x1ac7   : >> { %v6808_v26 = vadd.f32 %v6772_v40, %v12565_v46 }
0x1ac8   : >> { %v6770_v23 = vpop.permute.xlu0 %6769  ;;  %v6881_v37 = vpop.permute.xlu2 %6880 }
0x1ac9   : >> { %v6807_v44 = vadd.f32 %v6770_v23, %v12567_v48  ;;  %v12680_v45 = vadd.f32 %v6881_v37, %v6800_v25 }
0x1ace   : >> { %v6778_v27 = vpop.permute.xlu1 %6777 }
0x1acf   : >> { %v6811_v50 = vadd.f32 %v6778_v27, %v12574_v18 }
0x1ad0   : >> { %v6776_v19 = vpop.permute.xlu0 %6775  ;;  %v6887_v0 = vpop.permute.xlu2 %6886 }
0x1ad1   : >> { %v6810_v39 = vadd.f32 %v6776_v19, %v12576_v12  ;;  %v12684_v21 = vadd.f32 %v6887_v0, %v6803_v58 }
0x1ad6   : >> { %v6784_v3 = vpop.permute.xlu1 %6783 }
0x1ad7   : >> { %v6814_v30 = vadd.f32 %v6784_v3, %v12580_v4  ;;  %v7072_v3 = vld [vmem:[#allocation2 + $0xf8] sm:$0xff] }
0x1ad8   : >> { %v6782_v33 = vpop.permute.xlu0 %6781  ;;  %v6893_v46 = vpop.permute.xlu2 %6892 }
0x1ad9   : >> { %v6813_v47 = vadd.f32 %v6782_v33, %v12582_v43  ;;  %v12688_v31 = vadd.f32 %v6893_v46, %v6806_v56  ;;  %v7076_v46 = vrot.slane %v7072_v3, 4 }
0x1ade   : >> { %v6885_v48 = vpop.permute.xlu1 %6884 }
0x1adf   : >> { %v12690_v9 = vadd.f32 %v6885_v48, %v6802_v1 }
0x1ae0   : >> { %v6883_v8 = vpop.permute.xlu0 %6882  ;;  %v6899_v18 = vpop.permute.xlu2 %6898 }
0x1ae1   : >> { %v12692_v54 = vadd.f32 %v6883_v8, %v6801_v59  ;;  %v12694_v38 = vadd.f32 %v6899_v18, %v6809_v63 }
0x1ae6   : >> { %v6891_v12 = vpop.permute.xlu1 %6890 }
0x1ae7   : >> { %v12696_v22 = vadd.f32 %v6891_v12, %v6805_v62 }
0x1ae8   : >> { %v6889_v41 = vpop.permute.xlu0 %6888  ;;  %v6905_v4 = vpop.permute.xlu2 %6904 }
0x1ae9   : >> { %v12698_v11 = vadd.f32 %v6889_v41, %v6804_v14  ;;  %v12700_v2 = vadd.f32 %v6905_v4, %v6812_v10 }
0x1aee   : >> { %v6897_v43 = vpop.permute.xlu1 %6896 }
0x1aef   : >> { %v12702_v60 = vadd.f32 %v6897_v43, %v6808_v26 }
0x1af0   : >> { %v6895_v25 = vpop.permute.xlu0 %6894  ;;  %v6948_v63 = vpop.permute.xlu2 %6947 }
0x1af1   : >> { %v12704_v15 = vadd.f32 %v6895_v25, %v6807_v44  ;;  %v6956_v51 = vmul.f32 %v6948_v63, %v13656_v16  ;;  %v6962_v18 = vmul.f32 %v6948_v63, %v11697_v17 }
0x1af3   : >> { %v6986_v26 = vrot.slane %v6956_v51, 3  ;;  %v6996_v4 = vrot.slane %v6962_v18, 3 }
0x1af6   : >> { %v6903_v58 = vpop.permute.xlu1 %6902 }
0x1af7   : >> { %v12706_v34 = vadd.f32 %v6903_v58, %v6811_v50  ;;  %v6959_v50 = vmul.f32 %v6948_v63, %v11679_v32 }
0x1af8   : >> { %v6901_v56 = vpop.permute.xlu0 %6900 }
0x1af9   : >> { %v12708_v24 = vadd.f32 %v6901_v56, %v6810_v39  ;;  %v7071_v39 = vld [vmem:[#allocation2 + $0xf0] sm:$0xff] }
0x1afa   : >> { %v7075_v33 = vrot.slane %v7071_v39, 4 }
0x1afc   : >> { %v7077_v12 = vsel %vm4355_vm14, %v7075_v33, %v7076_v46 }
0x1afe   : >> { %v6909_v1 = vpop.permute.xlu1 %6908 }
0x1aff   : >> { %v12710_v49 = vadd.f32 %v6909_v1, %v6814_v30  ;;  %v6991_v30 = vrot.slane %v6959_v50, 3 }
0x1b00   : >> { %v6907_v55 = vpop.permute.xlu0 %6906 }
0x1b01   : >> { %v12712_v59 = vadd.f32 %v6907_v55, %v6813_v47 }
0x1b06   : >> { %v6952_v29 = vpop.permute.xlu1 %6951 }
0x1b07   : >> { %v6958_v62 = vmul.f32 %v6952_v29, %v13657_v36  ;;  %v6961_v44 = vmul.f32 %v6952_v29, %v13658_v20  ;;  %v6964_v25 = vmul.f32 %v6952_v29, %v11701_v6  ;;  %v6967_v1 = vmul.f32 %v6952_v29, %v11718_v7 }
0x1b08   : >> { %v6950_v52 = vpop.permute.xlu0 %6949 }
0x1b09   : >> { %v6989_v14 = vrot.slane %v6958_v62, 3  ;;  %v6957_v10 = vmul.f32 %v6950_v52, %v11629_v13  ;;  %v6960_v27 = vmul.f32 %v6950_v52, %v11636_v5  ;;  %v6994_v19 = vrot.slane %v6961_v44, 3 }
0x1b0a   : >> { %v6963_v8 = vmul.f32 %v6950_v52, %v11642_v35  ;;  %v6999_v58 = vrot.slane %v6964_v25, 3  ;;  %v6966_v55 = vmul.f32 %v6950_v52, %v11656_v53  ;;  %v6965_v62 = vmul.f32 %v6948_v63, %v11714_v42 }
0x1b0b   : >> { %7015 = vrot.lane.b32.xlu1 %v6989_v14, %s7802_s5  ;;  %v6987_v40 = vrot.slane %v6957_v10, 3  ;;  %v6992_v0 = vrot.slane %v6960_v27, 3  ;;  %v7004_v51 = vrot.slane %v6967_v1, 3  ;;  %v6968_v44 = vmul.f32 %v6948_v63, %v11730_v61 }
0x1b0c   : >> { %v6997_v41 = vrot.slane %v6963_v8, 3  ;;  %v7001_v10 = vrot.slane %v6965_v62, 3 }
0x1b0d   : >> { %v6990_v23 = vsel %vm13682_vm10, %v6987_v40, %v6989_v14  ;;  %v6988_v37 = vsel %vm13683_vm15, %v6986_v26, %v6987_v40  ;;  %v6995_v47 = vsel %vm13684_vm7, %v6992_v0, %v6994_v19  ;;  %v6993_v48 = vsel %vm13678_vm2, %v6991_v30, %v6992_v0  ;;  %vm13688_vm10 = vmmov %vm13678_vm2 }
0x1b0e   : >> { %7013 = vrot.lane.b32.xlu0 %v6990_v23, %s7802_s5  ;;  %7011 = vrot.lane.b32.xlu2 %v6988_v37, %s7802_s5  ;;  %v6998_v43 = vsel %vm13685_vm12, %v6996_v4, %v6997_v41  ;;  %v7000_v56 = vsel %vm13686_vm13, %v6997_v41, %v6999_v58  ;;  %v7002_v14 = vrot.slane %v6966_v55, 3  ;;  %v6970_v23 = vmul.f32 %v6952_v29, %v13625_v28  ;;  %vm13689_vm15 = vmmov %vm13678_vm2 }
0x1b0f   : >> { %v6969_v37 = vmul.f32 %v6950_v52, %v11676_v57  ;;  %vm13690_vm7 = vmmov %vm13678_vm2 }
0x1b10   : >> { %v7005_v40 = vsel %vm13687_vm9, %v7002_v14, %v7004_v51  ;;  %v7003_v26 = vsel %vm13688_vm10, %v7001_v10, %v7002_v14  ;;  %v7009_v27 = vrot.slane %v6970_v23, 3  ;;  %vm13691_vm12 = vmmov %vm13678_vm2 }
0x1b11   : >> { %v7007_v50 = vrot.slane %v6969_v37, 3  ;;  %vm13692_vm13 = vmmov %vm13678_vm2 }
0x1b12   : >> { %vm13693_vm9 = vmmov %vm13678_vm2 }
0x1b13   : >> { %7021 = vrot.lane.b32.xlu1 %v6994_v19, %s7802_s5  ;;  %v7006_v19 = vrot.slane %v6968_v44, 3  ;;  %v7010_v0 = vsel %vm13689_vm15, %v7007_v50, %v7009_v27  ;;  %vm13694_vm10 = vmmov %vm13678_vm2 }
0x1b14   : >> { %vm13695_vm15 = vmmov %vm13678_vm2 }
0x1b15   : >> { %v7008_v39 = vsel %vm13690_vm7, %v7006_v19, %v7007_v50  ;;  %vm13696_vm7 = vmmov %vm13678_vm2 }
0x1b16   : >> { %7019 = vrot.lane.b32.xlu0 %v6995_v47, %s7802_s5  ;;  %7017 = vrot.lane.b32.xlu2 %v6993_v48, %s7802_s5 }
0x1b1b   : >> { %7080 = vrot.lane.b32.xlu1 %v7077_v12, %s7805_s28 }
0x1b1e   : >> { %7078 = vrot.lane.b32.xlu0 %v7075_v33, %s7805_s28  ;;  %7023 = vrot.lane.b32.xlu2 %v6998_v43, %s7802_s5 }
0x1b23   : >> { %7027 = vrot.lane.b32.xlu1 %v6999_v58, %s7802_s5 }
0x1b26   : >> { %7025 = vrot.lane.b32.xlu0 %v7000_v56, %s7802_s5  ;;  %7082 = vrot.lane.b32.xlu2 %v7076_v46, %s7805_s28 }
0x1b2b   : >> { %7033 = vrot.lane.b32.xlu1 %v7004_v51, %s7802_s5 }
0x1b2e   : >> { %7031 = vrot.lane.b32.xlu0 %v7005_v40, %s7802_s5  ;;  %7029 = vrot.lane.b32.xlu2 %v7003_v26, %s7802_s5 }
0x1b33   : >> { %7039 = vrot.lane.b32.xlu1 %v7009_v27, %s7802_s5 }
0x1b36   : >> { %7037 = vrot.lane.b32.xlu0 %v7010_v0, %s7802_s5  ;;  %7035 = vrot.lane.b32.xlu2 %v7008_v39, %s7802_s5 }
0x1b68   : >> { %v7012_v29 = vpop.permute.xlu2 %7011 }
0x1b69   : >> { %v12759_v52 = vadd.f32 %v7012_v29, %v12680_v45 }
0x1b70   : >> { %v7018_v3 = vpop.permute.xlu2 %7017 }
0x1b71   : >> { %v12762_v63 = vadd.f32 %v7018_v3, %v12684_v21 }
0x1b78   : >> { %v7024_v30 = vpop.permute.xlu2 %7023 }
0x1b79   : >> { %v12765_v33 = vadd.f32 %v7024_v30, %v12688_v31 }
0x1b7d   : >> { %v7016_v46 = vpop.permute.xlu1 %7015 }
0x1b7e   : >> { %v12768_v47 = vadd.f32 %v7016_v46, %v12690_v9 }
0x1b80   : >> { %v7014_v48 = vpop.permute.xlu0 %7013  ;;  %v7083_v8 = vpop.permute.xlu2 %7082 }
0x1b81   : >> { %v12771_v18 = vadd.f32 %v7014_v48, %v12692_v54  ;;  %v7089_v45 = vmul.f32 %v7083_v8, %v13657_v36  ;;  %v7092_v31 = vmul.f32 %v7083_v8, %v13658_v20  ;;  %v7095_v36 = vmul.f32 %v7083_v8, %v11701_v6 }
0x1b82   : >> { %v7098_v51 = vmul.f32 %v7083_v8, %v11718_v7  ;;  %v7101_v23 = vmul.f32 %v7083_v8, %v13625_v28 }
0x1b83   : >> { %v7120_v12 = vrot.slane %v7089_v45, 3  ;;  %v7125_v43 = vrot.slane %v7092_v31, 3 }
0x1b84   : >> { %v7135_v10 = vrot.slane %v7098_v51, 3 }
0x1b85   : >> { %v7022_v41 = vpop.permute.xlu1 %7021  ;;  %7146 = vrot.lane.b32.xlu1 %v7120_v12, %s7806_s24 }
0x1b86   : >> { %v12776_v21 = vadd.f32 %v7022_v41, %v12696_v22 }
0x1b88   : >> { %v7020_v4 = vpop.permute.xlu0 %7019 }
0x1b89   : >> { %v12780_v9 = vadd.f32 %v7020_v4, %v12698_v11  ;;  %v7130_v11 = vrot.slane %v7095_v36, 3 }
0x1b8d   : >> { %v7081_v25 = vpop.permute.xlu1 %7080  ;;  %7152 = vrot.lane.b32.xlu1 %v7125_v43, %s7806_s24 }
0x1b8e   : >> { %v7088_v54 = vmul.f32 %v7081_v25, %v11629_v13  ;;  %v7091_v20 = vmul.f32 %v7081_v25, %v11636_v5  ;;  %v7094_v5 = vmul.f32 %v7081_v25, %v11642_v35  ;;  %v7097_v44 = vmul.f32 %v7081_v25, %v11656_v53 }
0x1b8f   : >> { %v7140_v35 = vrot.slane %v7101_v23, 3  ;;  %v7100_v0 = vmul.f32 %v7081_v25, %v11676_v57  ;;  %v7030_v57 = vpop.permute.xlu2 %7029 }
0x1b90   : >> { %v7079_v58 = vpop.permute.xlu0 %7078  ;;  %v7118_v56 = vrot.slane %v7088_v54, 3  ;;  %v7123_v6 = vrot.slane %v7091_v20, 3  ;;  %v7065_v20 = vadd.f32 %v7030_v57, %v12694_v38 }
0x1b91   : >> { %v7087_v1 = vmul.f32 %v7079_v58, %v13656_v16  ;;  %v7090_v13 = vmul.f32 %v7079_v58, %v11679_v32  ;;  %v7093_v26 = vmul.f32 %v7079_v58, %v11697_v17  ;;  %v7128_v32 = vrot.slane %v7094_v5, 3 }
0x1b92   : >> { %v7121_v22 = vsel %vm13678_vm2, %v7118_v56, %v7120_v12  ;;  %v7126_v14 = vsel %vm13692_vm13, %v7123_v6, %v7125_v43  ;;  %v7096_v50 = vmul.f32 %v7079_v58, %v11714_v42  ;;  %v7133_v17 = vrot.slane %v7097_v44, 3  ;;  %vm13698_vm13 = vmmov %vm13678_vm2 }
0x1b93   : >> { %7144 = vrot.lane.b32.xlu0 %v7121_v22, %s7806_s24  ;;  %v7117_v55 = vrot.slane %v7087_v1, 3  ;;  %v7122_v16 = vrot.slane %v7090_v13, 3  ;;  %v7127_v7 = vrot.slane %v7093_v26, 3  ;;  %v7131_v37 = vsel %vm13694_vm10, %v7128_v32, %v7130_v11 }
0x1b94   : >> { %v7132_v19 = vrot.slane %v7096_v50, 3  ;;  %v7136_v28 = vsel %vm13696_vm7, %v7133_v17, %v7135_v10  ;;  %v7099_v39 = vmul.f32 %v7079_v58, %v11730_v61  ;;  %v7138_v29 = vrot.slane %v7100_v0, 3 }
0x1b95   : >> { %7158 = vrot.lane.b32.xlu1 %v7130_v11, %s7806_s24  ;;  %v7119_v62 = vsel %vm13691_vm12, %v7117_v55, %v7118_v56  ;;  %v7124_v40 = vsel %vm13693_vm9, %v7122_v16, %v7123_v6  ;;  %v7129_v27 = vsel %vm13695_vm15, %v7127_v7, %v7128_v32  ;;  %vm13697_vm12 = vmmov %vm13678_vm2  ;;  %v7028_v46 = vpop.permute.xlu1 %7027 }
0x1b96   : >> { %7142 = vrot.lane.b32.xlu2 %v7119_v62, %s7806_s24  ;;  %v7134_v53 = vsel %vm13678_vm2, %v7132_v19, %v7133_v17  ;;  %v7137_v3 = vrot.slane %v7099_v39, 3  ;;  %v7141_v42 = vsel %vm13697_vm12, %v7138_v29, %v7140_v35 }
0x1b97   : >> { %v7036_v8 = vpop.permute.xlu2 %7035 }
0x1b98   : >> { %v7139_v30 = vsel %vm13698_vm13, %v7137_v3, %v7138_v29  ;;  %v7026_v45 = vpop.permute.xlu0 %7025 }
0x1b9b   : >> { %7150 = vrot.lane.b32.xlu0 %v7126_v14, %s7806_s24  ;;  %v7063_v14 = vadd.f32 %v7026_v45, %v12704_v15 }
0x1b9d   : >> { %7164 = vrot.lane.b32.xlu1 %v7135_v10, %s7806_s24  ;;  %v7034_v48 = vpop.permute.xlu1 %7033 }
0x1b9e   : >> { %7148 = vrot.lane.b32.xlu2 %v7124_v40, %s7806_s24  ;;  %v7067_v13 = vadd.f32 %v7034_v48, %v12706_v34 }
0x1ba0   : >> { %v7032_v31 = vpop.permute.xlu0 %7031 }
0x1ba3   : >> { %7156 = vrot.lane.b32.xlu0 %v7131_v37, %s7806_s24 }
0x1ba5   : >> { %7170 = vrot.lane.b32.xlu1 %v7140_v35, %s7806_s24  ;;  %v7040_v12 = vpop.permute.xlu1 %7039 }
0x1ba6   : >> { %7154 = vrot.lane.b32.xlu2 %v7129_v27, %s7806_s24  ;;  %v7070_v10 = vadd.f32 %v7040_v12, %v12710_v49 }
0x1ba8   : >> { %v7038_v36 = vpop.permute.xlu0 %7037 }
0x1ba9   : >> { %v7069_v23 = vadd.f32 %v7038_v36, %v12712_v59 }
0x1bab   : >> { %7162 = vrot.lane.b32.xlu0 %v7136_v28, %s7806_s24 }
0x1bae   : >> { %7160 = vrot.lane.b32.xlu2 %v7134_v53, %s7806_s24 }
0x1bb3   : >> { %7168 = vrot.lane.b32.xlu0 %v7141_v42, %s7806_s24 }
0x1bb6   : >> { %7166 = vrot.lane.b32.xlu2 %v7139_v30, %s7806_s24 }
0x1bf0   : >> { %v7143_v41 = vpop.permute.xlu2 %7142 }
0x1bf1   : >> { %v7187_v61 = vadd.f32 %v7143_v41, %v12759_v52 }
0x1bf3   : >> { %7217 = vrot.lane.b32.xlu2 %v7187_v61, %s7802_s5 }
0x1bf7   : >> { %v7147_v4 = vpop.permute.xlu1 %7146 }
0x1bf8   : >> { %v7189_v43 = vadd.f32 %v7147_v4, %v12768_v47  ;;  %v7149_v25 = vpop.permute.xlu2 %7148  ;;  %v7064_v47 = vadd.f32 %v7028_v46, %v12702_v60  ;;  %v7068_v60 = vadd.f32 %v7036_v8, %v12700_v2  ;;  %v7066_v2 = vadd.f32 %v7032_v31, %v12708_v24 }
0x1bf9   : >> { %v7190_v54 = vadd.f32 %v7149_v25, %v12762_v63 }
0x1bfa   : >> { %7221 = vrot.lane.b32.xlu1 %v7189_v43, %s7802_s5 }
0x1bfb   : >> { %7223 = vrot.lane.b32.xlu2 %v7190_v54, %s7802_s5 }
0x1bff   : >> { %v7153_v58 = vpop.permute.xlu1 %7152 }
0x1c00   : >> { %v7192_v56 = vadd.f32 %v7153_v58, %v12776_v21  ;;  %v7155_v1 = vpop.permute.xlu2 %7154 }
0x1c01   : >> { %v7193_v52 = vadd.f32 %v7155_v1, %v12765_v33 }
0x1c02   : >> { %7227 = vrot.lane.b32.xlu1 %v7192_v56, %s7802_s5 }
0x1c03   : >> { %7229 = vrot.lane.b32.xlu2 %v7193_v52, %s7802_s5 }
0x1c05   : >> { %v7145_v22 = vpop.permute.xlu0 %7144 }
0x1c06   : >> { %v7188_v63 = vadd.f32 %v7145_v22, %v12771_v18 }
0x1c07   : >> { %v7159_v11 = vpop.permute.xlu1 %7158 }
0x1c08   : >> { %v7195_v55 = vadd.f32 %v7159_v11, %v7064_v47  ;;  %7219 = vrot.lane.b32.xlu0 %v7188_v63, %s7802_s5  ;;  %v7161_v62 = vpop.permute.xlu2 %7160 }
0x1c09   : >> { %v7196_v21 = vadd.f32 %v7161_v62, %v7065_v20 }
0x1c0a   : >> { %7233 = vrot.lane.b32.xlu1 %v7195_v55, %s7802_s5 }
0x1c0b   : >> { %7235 = vrot.lane.b32.xlu2 %v7196_v21, %s7802_s5 }
0x1c0d   : >> { %v7151_v33 = vpop.permute.xlu0 %7150 }
0x1c0e   : >> { %v7191_v6 = vadd.f32 %v7151_v33, %v12780_v9 }
0x1c0f   : >> { %v7165_v18 = vpop.permute.xlu1 %7164 }
0x1c10   : >> { %v7198_v51 = vadd.f32 %v7165_v18, %v7067_v13  ;;  %7225 = vrot.lane.b32.xlu0 %v7191_v6, %s7802_s5  ;;  %v7167_v38 = vpop.permute.xlu2 %7166 }
0x1c11   : >> { %v7199_v16 = vadd.f32 %v7167_v38, %v7068_v60 }
0x1c12   : >> { %7239 = vrot.lane.b32.xlu1 %v7198_v51, %s7802_s5 }
0x1c13   : >> { %7241 = vrot.lane.b32.xlu2 %v7199_v16, %s7802_s5 }
0x1c15   : >> { %v7157_v5 = vpop.permute.xlu0 %7156 }
0x1c16   : >> { %v7194_v34 = vadd.f32 %v7157_v5, %v7063_v14 }
0x1c17   : >> { %v7171_v40 = vpop.permute.xlu1 %7170 }
0x1c18   : >> { %v7201_v9 = vadd.f32 %v7171_v40, %v7070_v10  ;;  %7231 = vrot.lane.b32.xlu0 %v7194_v34, %s7802_s5 }
0x1c1a   : >> { %7245 = vrot.lane.b32.xlu1 %v7201_v9, %s7802_s5 }
0x1c1d   : >> { %v7163_v26 = vpop.permute.xlu0 %7162 }
0x1c1e   : >> { %v7197_v32 = vadd.f32 %v7163_v26, %v7066_v2 }
0x1c20   : >> { %7237 = vrot.lane.b32.xlu0 %v7197_v32, %s7802_s5 }
0x1c25   : >> { %v7169_v7 = vpop.permute.xlu0 %7168 }
0x1c26   : >> { %v7200_v15 = vadd.f32 %v7169_v7, %v7069_v23 }
0x1c28   : >> { %7243 = vrot.lane.b32.xlu0 %v7200_v15, %s7802_s5 }
0x1c4d   : >> { %v7218_v49 = vpop.permute.xlu2 %7217 }
0x1c4e   : >> { %7262 = vst.msk [vmem:[#allocation3 - $0x1] sm:$0xfe] %vm2815_vm3, %v7218_v49 }
0x1c55   : >> { %v7224_v37 = vpop.permute.xlu2 %7223 }
0x1c56   : >> { %7265 = vst.msk [vmem:[#allocation3 + $0xf] sm:$0xfe] %vm2815_vm3, %v7224_v37 }
0x1c5d   : >> { %v7230_v44 = vpop.permute.xlu2 %7229 }
0x1c5e   : >> { %7268 = vst.msk [vmem:[#allocation3 + $0x1f] sm:$0xfe] %vm2815_vm3, %v7230_v44 }
0x1c65   : >> { %v7236_v24 = vpop.permute.xlu2 %7235 }
0x1c66   : >> { %7271 = vst.msk [vmem:[#allocation3 + $0x2f] sm:$0xfe] %vm2815_vm3, %v7236_v24 }
0x1c6c   : >> { %v7222_v35 = vpop.permute.xlu1 %7221 }
0x1c6d   : >> { %7264 = vst.msk [vmem:[#allocation3 + $0xf] sm:$0x1] %vm2819_vm11, %v7222_v35  ;;  %v7242_v59 = vpop.permute.xlu2 %7241 }
0x1c6e   : >> { %7274 = vst.msk [vmem:[#allocation3 + $0x3f] sm:$0xfe] %vm2815_vm3, %v7242_v59 }
0x1c74   : >> { %v7228_v27 = vpop.permute.xlu1 %7227 }
0x1c75   : >> { %7267 = vst.msk [vmem:[#allocation3 + $0x1f] sm:$0x1] %vm2819_vm11, %v7228_v27 }
0x1c7a   : >> { %v7220_v50 = vpop.permute.xlu0 %7219 }
0x1c7b   : >> { %7263 = vst.msk [vmem:[#allocation3 + $0x7] sm:$0xff] %vm2817_vm0, %v7220_v50 }
0x1c7c   : >> { %v7234_v17 = vpop.permute.xlu1 %7233 }
0x1c7d   : >> { %7270 = vst.msk [vmem:[#allocation3 + $0x2f] sm:$0x1] %vm2819_vm11, %v7234_v17 }
0x1c82   : >> { %v7226_v19 = vpop.permute.xlu0 %7225  ;;  %v7277_v3 = vld [vmem:[#allocation3] sm:$0xff] (%p5140_p6)  ;;  %v7278_v42 = vld [vmem:[#allocation3 + $0x8] sm:$0xff] (%p5140_p6) }
0x1c83   : >> { %7266 = vst.msk [vmem:[#allocation3 + $0x17] sm:$0xff] %vm2817_vm0, %v7226_v19 }
0x1c84   : >> { %v7240_v28 = vpop.permute.xlu1 %7239  ;;  %7287 = vst.msk [vmem:[%s11521_s17] sm:$0xff] (%p5140_p6), %vm2817_vm0, %v7277_v3 }
0x1c85   : >> { %7273 = vst.msk [vmem:[#allocation3 + $0x3f] sm:$0x1] %vm2819_vm11, %v7240_v28 }
0x1c86   : > { %7288 = vst.msk [vmem:[%s11521_s17 + $0x8] sm:$0xff] (%p5140_p6), %vm2817_vm0, %v7278_v42 }
0x1c8a   : >> { %v7232_v0 = vpop.permute.xlu0 %7231  ;;  %v7279_v30 = vld [vmem:[#allocation3 + $0x10] sm:$0xff] (%p5140_p6)  ;;  %v7280_v46 = vld [vmem:[#allocation3 + $0x18] sm:$0xff] (%p5140_p6) }
0x1c8b   : >> { %7269 = vst.msk [vmem:[#allocation3 + $0x27] sm:$0xff] %vm2817_vm0, %v7232_v0 }
0x1c8c   : >> { %v7246_v53 = vpop.permute.xlu1 %7245  ;;  %7289 = vst.msk [vmem:[%s11521_s17 + $0x10] sm:$0xff] (%p5140_p6), %vm2817_vm0, %v7279_v30 }
0x1c8d   : >> { %7276 = vst.msk [vmem:[#allocation3 + $0x4f] sm:$0x1] %vm2819_vm11, %v7246_v53 }
0x1c8e   : > { %7290 = vst.msk [vmem:[%s11521_s17 + $0x18] sm:$0xff] (%p5140_p6), %vm2817_vm0, %v7280_v46 }
0x1c92   : >> { %v7238_v39 = vpop.permute.xlu0 %7237  ;;  %v7281_v57 = vld [vmem:[#allocation3 + $0x20] sm:$0xff] (%p5140_p6)  ;;  %v7282_v48 = vld [vmem:[#allocation3 + $0x28] sm:$0xff] (%p5140_p6) }
0x1c93   : >> { %7272 = vst.msk [vmem:[#allocation3 + $0x37] sm:$0xff] %vm2817_vm0, %v7238_v39 }
0x1c94   : > { %7291 = vst.msk [vmem:[%s11521_s17 + $0x20] sm:$0xff] (%p5140_p6), %vm2817_vm0, %v7281_v57 }
0x1c95   : > { %7292 = vst.msk [vmem:[%s11521_s17 + $0x28] sm:$0xff] (%p5140_p6), %vm2817_vm0, %v7282_v48 }
0x1c97   : > { %5142 = sbr.rel (!%p5140_p6) target bundleno = 5262 (0x148e), region = 108 }
0x1c9a   : >> { %v7244_v29 = vpop.permute.xlu0 %7243  ;;  %v7283_v8 = vld [vmem:[#allocation3 + $0x30] sm:$0xff] (%p5140_p6)  ;;  %v7284_v45 = vld [vmem:[#allocation3 + $0x38] sm:$0xff] (%p5140_p6) }
0x1c9b   : >> { %7275 = vst.msk [vmem:[#allocation3 + $0x47] sm:$0xff] %vm2817_vm0, %v7244_v29 }
0x1c9c   : > { %7293 = vst.msk [vmem:[%s11521_s17 + $0x30] sm:$0xff] %vm2817_vm0, %v7283_v8 }
0x1c9d   : > { %7294 = vst.msk [vmem:[%s11521_s17 + $0x38] sm:$0xff] %vm2817_vm0, %v7284_v45 }
0x1ca2   : > { %v7285_v12 = vld [vmem:[#allocation3 + $0x40] sm:$0xff]  ;;  %v7286_v41 = vld [vmem:[#allocation3 + $0x48] sm:$0xff] }
0x1ca3   : > { %7295 = vst.msk [vmem:[%s11521_s17 + $0x40] sm:$0xff] %vm2817_vm0, %v7285_v12 }
0x1ca4   : > { %7296 = vst.msk [vmem:[%s11521_s17 + $0x48] sm:$0xff] %vm2817_vm0, %v7286_v41 }
0x1ca5   : > { %7733 = shalt.err (!%p7730_p7)
}
0x1ca6   : > { %s7807_s25 = smov 128   ;;  %s7808_s17 = smov 8  }
0x1ca7   : > { %7434 = dma.vmem_to_hbm [thread:$0]  (%p7870_p11), %s7311_s13, 1280, %s7313_s14, %s7298_s16, %s7807_s25, %s7807_s25, %s7808_s17  }
0x1ca8 PF: > { %s7327_s23 = sand.u32 1, %s7768_s9   ;;  %p7444_p8 = pnand %p7416_p9, %p7874_p12 }
0x1ca9   : > { %s7328_s6 = scalar_lea.sflag [#allocation6], %s7327_s23 }
0x1caa   : > { %p7445_p10 = pneg %p7444_p8 }
0x1cac   : > { %7763 = dma.done.wait (%p7445_p10), %s7328_s6, 1280  }
0x1cad   : > { %7765 = vsyncadd (%p7445_p10), %s7328_s6, 4294966016  ;;  %p18_p0 = scmp.ge.s32.totalorder %s7849_s15, 4   ;;  %s13699_s9 = smov %s7772_s10 }
0x1cae   : > { %s13700_s10 = smov %s7776_s11  ;;  %s13701_s11 = smov %s7861_s18 }
0x1caf   : > { %s13702_s12 = smov %s7849_s15  ;;  %20 = sbr.rel (!%p18_p0) target bundleno = 7 (0x7), region = 119 }
0x1cb4   :  { %7334 = vsyncpa [#allocation5], 1 }
0x1cb5   :  { %7336 = vsyncpa [#allocation5 + $0x1], 1 }
0x1cb6   :  { %7337 = vsyncpa [#allocation8], 1 }
0x1cb7   :  { %7339 = vsyncpa [#allocation8 + $0x1], 1 }
0x1cb8   :  { %7340 = vsyncpa [#allocation6], 1 }
0x1cb9   :  { %7342 = vsyncpa [#allocation6 + $0x1], 1 }

</bundles_post_ra>
